<compile_context>
chip_gen: v5e
topology: v5e:2x2
jax: 0.10.0
libtpu: 0.0.40
codegen_flags: <defaults>
</compile_context>

<pallas_src>
import functools
import math

import jax
import jax.numpy as jnp
from jax.experimental import pallas as pl
from jax.experimental.pallas import tpu as pltpu

# Logical sizes (PyTorch module) and lane-padded sizes for dense MXU tiles.
IN_F,  IN_P  = 28 * 28, 896     # fc1 input   784  -> 896  (7  * 128)
H1_F,  H1_P  = 784,     896     # fc1 output  784  -> 896  (7  * 128)
H2_F,  H2_P  = 1568,    1664    # fc2 output  1568 -> 1664 (13 * 128)
OUT_F, OUT_P = 10,      128     # fc3 output  10   -> 128  (1  * 128)


def mlp_kernel(x_ref, w1_ref, b1_ref, w2_ref, b2_ref, w3_ref, b3_ref, o_ref):
    """Fused fc1 -> fc2 -> fc3 on one batch tile. bf16 inputs, f32 accumulate."""
    x = x_ref[...]                                                   # bf16 (TB, 896)
    h1 = jnp.dot(x, w1_ref[...], preferred_element_type=jnp.float32)
    h1 = h1 + b1_ref[...]                                            # f32  (TB, 896)
    h2 = jnp.dot(h1.astype(jnp.bfloat16), w2_ref[...],
                 preferred_element_type=jnp.float32)
    h2 = h2 + b2_ref[...]                                            # f32  (TB, 1664)
    h3 = jnp.dot(h2.astype(jnp.bfloat16), w3_ref[...],
                 preferred_element_type=jnp.float32)
    o_ref[...] = (h3 + b3_ref[...]).astype(o_ref.dtype)              # f32  (TB, 128)


def _pad2(a, rows, cols):
    return jnp.pad(a, ((0, rows - a.shape[0]), (0, cols - a.shape[1])))


def prepare_params(params):
    """One-time conversion: (out,in) f32 PyTorch layout -> padded (in,out) bf16."""
    w1, b1, w2, b2, w3, b3 = params
    return (
        _pad2(w1.T, IN_P, H1_P).astype(jnp.bfloat16),   # (896, 896)   bf16
        _pad2(b1[None, :], 1, H1_P),                    # (1, 896)     f32
        _pad2(w2.T, H1_P, H2_P).astype(jnp.bfloat16),   # (896, 1664)  bf16
        _pad2(b2[None, :], 1, H2_P),                    # (1, 1664)    f32
        _pad2(w3.T, H2_P, OUT_P).astype(jnp.bfloat16),  # (1664, 128)  bf16
        _pad2(b3[None, :], 1, OUT_P),                   # (1, 128)     f32
    )


@functools.partial(jax.jit, static_argnames=("tb",))
def cnn_forward(x_nchw, kernel_params, *, tb=512):
    """Forward pass matching CNN.forward. x_nchw: (B, 1, 28, 28) float32.

    tb: max batch-tile rows. 512 fits the 64 MiB VMEM of v7x; on v5e/v6e
    (128 MiB VMEM) larger values (1024-2048) can be passed if desired.
    """
    b = x_nchw.shape[0]
    x_flat = x_nchw.reshape(b, -1)                       # (B, 784), == x.view(B, -1)

    # Effective batch tile: a sublane multiple, no larger than needed.
    tb_eff = min(tb, -(-b // 8) * 8)
    bp = -(-b // tb_eff) * tb_eff                        # batch padded to tile mult.

    x_pad = jnp.pad(x_flat, ((0, bp - b), (0, IN_P - IN_F))).astype(jnp.bfloat16)
    w1t, b1r, w2t, b2r, w3t, b3r = kernel_params

    resident = lambda i: (0, 0)                          # weights stay in VMEM
    out = pl.pallas_call(
        mlp_kernel,
        out_shape=jax.ShapeDtypeStruct((bp, OUT_P), jnp.float32),
        grid=(bp // tb_eff,),
        in_specs=[
            pl.BlockSpec((tb_eff, IN_P), lambda i: (i, 0)),   # x tile
            pl.BlockSpec((IN_P, H1_P), resident),             # W1
            pl.BlockSpec((1, H1_P), resident),                # b1
            pl.BlockSpec((H1_P, H2_P), resident),              # W2
            pl.BlockSpec((1, H2_P), resident),                # b2
            pl.BlockSpec((H2_P, OUT_P), resident),            # W3
            pl.BlockSpec((1, OUT_P), resident),               # b3
        ],
        out_specs=pl.BlockSpec((tb_eff, OUT_P), lambda i: (i, 0)),
        compiler_params=pltpu.CompilerParams(
            dimension_semantics=("parallel",),
            vmem_limit_bytes=48 << 20,                   # fits v7x 64 MiB VMEM
        ),
    )(x_pad, w1t, b1r, w2t, b2r, w3t, b3r)
    return out[:b, :OUT_F]                               # strip batch/lane padding


def xavier_uniform(key, shape):
    # torch.nn.init.xavier_uniform_ for a Linear weight (fan_out, fan_in).
    fan_out, fan_in = shape
    bound = math.sqrt(6.0 / (fan_in + fan_out))
    return jax.random.uniform(key, shape, jnp.float32, -bound, bound)


def linear_bias_init(key, fan_in, out_features):
    # PyTorch Linear default bias init: U(-1/sqrt(fan_in), 1/sqrt(fan_in)).
    bound = 1.0 / math.sqrt(fan_in)
    return jax.random.uniform(key, (out_features,), jnp.float32, -bound, bound)


def init_params(key):
    k = jax.random.split(key, 6)
    w1 = xavier_uniform(k[0], (784, 28 * 28))   # fc1.weight
    b1 = linear_bias_init(k[1], 28 * 28, 784)   # fc1.bias
    w2 = xavier_uniform(k[2], (1568, 784))      # fc2.weight
    b2 = linear_bias_init(k[3], 784, 1568)      # fc2.bias
    w3 = xavier_uniform(k[4], (10, 1568))       # fc3.weight
    b3 = linear_bias_init(k[5], 1568, 10)       # fc3.bias
    return (w1, b1, w2, b2, w3, b3)


if __name__ == "__main__":
    key = jax.random.PRNGKey(0)
    pkey, xkey = jax.random.split(key)
    params = init_params(pkey)
    kparams = prepare_params(params)            # one-time layout/bf16 conversion

    # Small MNIST-like batch: (B, C, H, W) = (2, 1, 28, 28), NCHW like PyTorch.
    x = jax.random.normal(xkey, (2, 1, 28, 28), jnp.float32)

    out = jax.block_until_ready(cnn_forward(x, kparams))
    assert out.shape == (2, 10) and out.dtype == jnp.float32

    w1, b1, w2, b2, w3, b3 = params
    xf = x.reshape(2, -1)

    # Reference with the same bf16 quantization points as the kernel (tight tol).
    q = lambda a: a.astype(jnp.bfloat16).astype(jnp.float32)
    h1 = q(xf) @ q(w1.T) + b1
    h2 = q(h1) @ q(w2.T) + b2
    ref_bf16 = q(h2) @ q(w3.T) + b3
    assert jnp.allclose(out, ref_bf16, atol=2e-3, rtol=2e-3)

    # Pure f32 reference (semantics sanity; loose tol for bf16 weight rounding).
    ref_f32 = ((xf @ w1.T + b1) @ w2.T + b2) @ w3.T + b3
    assert jnp.allclose(out, ref_f32, atol=1e-1, rtol=1e-1)

    print("KERNEL_OK")
</pallas_src>

<mosaic_0001>
module attributes {stable_mosaic.version = 11 : i64} {
  func.func @mlp_kernel(%arg0: i32, %arg1: memref<8x896xbf16, #tpu.memory_space<vmem>>, %arg2: memref<896x896xbf16, #tpu.memory_space<vmem>>, %arg3: memref<1x896xf32, #tpu.memory_space<vmem>>, %arg4: memref<896x1664xbf16, #tpu.memory_space<vmem>>, %arg5: memref<1x1664xf32, #tpu.memory_space<vmem>>, %arg6: memref<1664x128xbf16, #tpu.memory_space<vmem>>, %arg7: memref<1x128xf32, #tpu.memory_space<vmem>>, %arg8: memref<8x128xf32, #tpu.memory_space<vmem>>) attributes {dimension_semantics = [#tpu.dimension_semantics<parallel>], iteration_bounds = array<i64: 1>, scalar_prefetch = 0 : i64, scratch_operands = 0 : i64, tpu.core_type = #tpu.core_type<tc>, window_params = [{transform_indices = @transform_0, window_bounds = array<i64: 8, 896>}, {pipeline_mode = #tpu.pipeline_mode<synchronous>, transform_indices = @transform_1, window_bounds = array<i64: 896, 896>}, {pipeline_mode = #tpu.pipeline_mode<synchronous>, transform_indices = @transform_2, window_bounds = array<i64: 1, 896>}, {pipeline_mode = #tpu.pipeline_mode<synchronous>, transform_indices = @transform_3, window_bounds = array<i64: 896, 1664>}, {pipeline_mode = #tpu.pipeline_mode<synchronous>, transform_indices = @transform_4, window_bounds = array<i64: 1, 1664>}, {pipeline_mode = #tpu.pipeline_mode<synchronous>, transform_indices = @transform_5, window_bounds = array<i64: 1664, 128>}, {pipeline_mode = #tpu.pipeline_mode<synchronous>, transform_indices = @transform_6, window_bounds = array<i64: 1, 128>}, {transform_indices = @transform_7, window_bounds = array<i64: 8, 128>}]} {
    %c0 = arith.constant 0 : index
    %c0_0 = arith.constant 0 : index
    %0 = vector.load %arg1[%c0, %c0_0] : memref<8x896xbf16, #tpu.memory_space<vmem>>, vector<8x896xbf16>
    %c0_1 = arith.constant 0 : index
    %c0_2 = arith.constant 0 : index
    %1 = vector.load %arg2[%c0_1, %c0_2] : memref<896x896xbf16, #tpu.memory_space<vmem>>, vector<896x896xbf16>
    %cst = arith.constant dense<0.000000e+00> : vector<8x896xf32>
    %2 = tpu.matmul %0, %1, %cst {dimension_numbers = #tpu.dot_dimension_numbers<[1], [0], [0], [1], [0, 0, 1, 1], [], []>} : vector<8x896xbf16>, vector<896x896xbf16>, vector<8x896xf32> -> vector<8x896xf32>
    %c0_3 = arith.constant 0 : index
    %c0_4 = arith.constant 0 : index
    %3 = vector.load %arg3[%c0_3, %c0_4] : memref<1x896xf32, #tpu.memory_space<vmem>>, vector<1x896xf32>
    %4 = vector.broadcast %3 : vector<1x896xf32> to vector<8x896xf32>
    %5 = arith.addf %2, %4 : vector<8x896xf32>
    %6 = arith.truncf %5 : vector<8x896xf32> to vector<8x896xbf16>
    %c0_5 = arith.constant 0 : index
    %c0_6 = arith.constant 0 : index
    %7 = vector.load %arg4[%c0_5, %c0_6] : memref<896x1664xbf16, #tpu.memory_space<vmem>>, vector<896x1664xbf16>
    %cst_7 = arith.constant dense<0.000000e+00> : vector<8x1664xf32>
    %8 = tpu.matmul %6, %7, %cst_7 {dimension_numbers = #tpu.dot_dimension_numbers<[1], [0], [0], [1], [0, 0, 1, 1], [], []>} : vector<8x896xbf16>, vector<896x1664xbf16>, vector<8x1664xf32> -> vector<8x1664xf32>
    %c0_8 = arith.constant 0 : index
    %c0_9 = arith.constant 0 : index
    %9 = vector.load %arg5[%c0_8, %c0_9] : memref<1x1664xf32, #tpu.memory_space<vmem>>, vector<1x1664xf32>
    %10 = vector.broadcast %9 : vector<1x1664xf32> to vector<8x1664xf32>
    %11 = arith.addf %8, %10 : vector<8x1664xf32>
    %12 = arith.truncf %11 : vector<8x1664xf32> to vector<8x1664xbf16>
    %c0_10 = arith.constant 0 : index
    %c0_11 = arith.constant 0 : index
    %13 = vector.load %arg6[%c0_10, %c0_11] : memref<1664x128xbf16, #tpu.memory_space<vmem>>, vector<1664x128xbf16>
    %cst_12 = arith.constant dense<0.000000e+00> : vector<8x128xf32>
    %14 = tpu.matmul %12, %13, %cst_12 {dimension_numbers = #tpu.dot_dimension_numbers<[1], [0], [0], [1], [0, 0, 1, 1], [], []>} : vector<8x1664xbf16>, vector<1664x128xbf16>, vector<8x128xf32> -> vector<8x128xf32>
    %c0_13 = arith.constant 0 : index
    %c0_14 = arith.constant 0 : index
    %15 = vector.load %arg7[%c0_13, %c0_14] : memref<1x128xf32, #tpu.memory_space<vmem>>, vector<1x128xf32>
    %16 = vector.broadcast %15 : vector<1x128xf32> to vector<8x128xf32>
    %17 = arith.addf %14, %16 : vector<8x128xf32>
    %c0_15 = arith.constant 0 : index
    %c0_16 = arith.constant 0 : index
    %18 = vector.load %arg8[%c0_15, %c0_16] : memref<8x128xf32, #tpu.memory_space<vmem>>, vector<8x128xf32>
    tpu.vector_store %arg8[%c0_15, %c0_16], %17 {strides = array<i32>} : memref<8x128xf32, #tpu.memory_space<vmem>>, vector<8x128xf32>,
    return
  }
  func.func @transform_0(%arg0: i32) -> (i32, i32) {
    %c0_i32 = arith.constant 0 : i32
    %c0_i32_0 = arith.constant 0 : i32
    return %arg0, %c0_i32 : i32, i32
  }
  func.func @transform_1(%arg0: i32) -> (i32, i32) {
    %c0_i32 = arith.constant 0 : i32
    %c0_i32_0 = arith.constant 0 : i32
    %c0_i32_1 = arith.constant 0 : i32
    return %c0_i32, %c0_i32_0 : i32, i32
  }
  func.func @transform_2(%arg0: i32) -> (i32, i32) {
    %c0_i32 = arith.constant 0 : i32
    %c0_i32_0 = arith.constant 0 : i32
    %c0_i32_1 = arith.constant 0 : i32
    return %c0_i32, %c0_i32_0 : i32, i32
  }
  func.func @transform_3(%arg0: i32) -> (i32, i32) {
    %c0_i32 = arith.constant 0 : i32
    %c0_i32_0 = arith.constant 0 : i32
    %c0_i32_1 = arith.constant 0 : i32
    return %c0_i32, %c0_i32_0 : i32, i32
  }
  func.func @transform_4(%arg0: i32) -> (i32, i32) {
    %c0_i32 = arith.constant 0 : i32
    %c0_i32_0 = arith.constant 0 : i32
    %c0_i32_1 = arith.constant 0 : i32
    return %c0_i32, %c0_i32_0 : i32, i32
  }
  func.func @transform_5(%arg0: i32) -> (i32, i32) {
    %c0_i32 = arith.constant 0 : i32
    %c0_i32_0 = arith.constant 0 : i32
    %c0_i32_1 = arith.constant 0 : i32
    return %c0_i32, %c0_i32_0 : i32, i32
  }
  func.func @transform_6(%arg0: i32) -> (i32, i32) {
    %c0_i32 = arith.constant 0 : i32
    %c0_i32_0 = arith.constant 0 : i32
    %c0_i32_1 = arith.constant 0 : i32
    return %c0_i32, %c0_i32_0 : i32, i32
  }
  func.func @transform_7(%arg0: i32) -> (i32, i32) {
    %c0_i32 = arith.constant 0 : i32
    %c0_i32_0 = arith.constant 0 : i32
    return %arg0, %c0_i32 : i32, i32
  }
}

</mosaic_0001>

<bundles_post_ra>
// kernel: cnn_forward.1
= control target key start
LH: loop header
LB: loop body
LE: loop exit
PB: predicated region body
PF: predicated region fallthrough
CT: control target
= control target key end

     0   :  { %12 = vsyncpa [#allocation3], 0  ;;  %s16868_s0 = inlined_call_operand.vmem [shape: bf16[8,896], index: 0, kind: input, shape index: {}]   ;;  %s16869_s1 = inlined_call_operand.hbm [shape: bf16[896,896], index: 1, kind: input, shape index: {}]   ;;  %s16870_s2 = inlined_call_operand.hbm [shape: f32[1,896], index: 2, kind: input, shape index: {}]   ;;  %s16871_s3 = inlined_call_operand.hbm [shape: bf16[896,1664], index: 3, kind: input, shape index: {}]   ;;  %s16872_s4 = inlined_call_operand.hbm [shape: f32[1,1664], index: 4, kind: input, shape index: {}]   ;;  %s16873_s5 = inlined_call_operand.hbm [shape: bf16[1664,128], index: 5, kind: input, shape index: {}]   ;;  %s16874_s6 = inlined_call_operand.hbm [shape: f32[1,128], index: 6, kind: input, shape index: {}]   ;;  %s16875_s7 = inlined_call_operand.vmem [shape: f32[8,128], index: 7, kind: output, shape index: {}]  }
   0x1   :  { %13 = vsyncpa [#allocation5], 0 }
   0x2   :  { %14 = vsyncpa [#allocation8], 0  ;;  %s36_s26 = sshll.u32 %s16870_s2, 4  ;;  %s37_s26 = int_to_ptr.hbm [resolvable:$true] %s36_s26 }
   0x3   :  { %15 = vsyncpa [#allocation11], 0  ;;  %s16277_s27 = smov [#allocation4]   ;;  %s60_s8 = sshll.u32 %s16872_s4, 4  ;;  %s61_s8 = int_to_ptr.hbm [resolvable:$true] %s60_s8 }
   0x4   :  { %s38_s28 = sshll.u32 %s16277_s27, 4  ;;  %s16278_s9 = smov [#allocation7]   ;;  %s39_s28 = int_to_ptr.vmem [resolvable:$true] %s38_s28 }
   0x5   :  { %41 = dma.hbm_to_vmem [thread:$0]  %s37_s26, 112, %s39_s28, [#allocation5]  }
   0x6   :  { %s62_s10 = sshll.u32 %s16278_s9, 4  ;;  %s22_s13 = sshll.u32 %s16869_s1, 4  ;;  %s63_s10 = int_to_ptr.vmem [resolvable:$true] %s62_s10  ;;  %s23_s13 = int_to_ptr.hbm [resolvable:$true] %s22_s13 }
   0x7   :  { %65 = dma.hbm_to_vmem [thread:$0]  %s61_s8, 208, %s63_s10, [#allocation8]  }
   0x8   :  { %s16279_s2 = smov [#allocation2]   ;;  %s46_s17 = sshll.u32 %s16871_s3, 4  ;;  %s47_s17 = int_to_ptr.hbm [resolvable:$true] %s46_s17 }
   0x9   :  { %s24_s14 = sshll.u32 %s16279_s2, 4  ;;  %s16280_s18 = smov 448   ;;  %s25_s14 = int_to_ptr.vmem [resolvable:$true] %s24_s14 }
   0xa   :  { %s16281_s4 = smov 28   ;;  %s16282_s19 = smov [#allocation6]  }
   0xb   :  { %30 = dma.hbm_to_vmem [thread:$0]  %s23_s13, 50176, %s25_s14, [#allocation3], %s16280_s18, %s16280_s18, %s16281_s4  }
   0xc   :  { %s48_s20 = sshll.u32 %s16282_s19, 4  ;;  %s16283_s21 = smov 832   ;;  %s49_s20 = int_to_ptr.vmem [resolvable:$true] %s48_s20 }
   0xd   :  { %s16284_s22 = smov 52   ;;  %s70_s24 = sshll.u32 %s16873_s5, 4  ;;  %s71_s24 = int_to_ptr.hbm [resolvable:$true] %s70_s24 }
   0xe   :  { %54 = dma.hbm_to_vmem [thread:$0]  %s47_s17, 93184, %s49_s20, [#allocation5], %s16283_s21, %s16283_s21, %s16284_s22  }
   0xf   :  { %s16285_s25 = smov [#allocation9]   ;;  %s84_s28 = sshll.u32 %s16874_s6, 4  ;;  %s85_s28 = int_to_ptr.hbm [resolvable:$true] %s84_s28 }
  0x10   :  { %s72_s26 = sshll.u32 %s16285_s25, 4  ;;  %s16286_s29 = smov 64   ;;  %s73_s26 = int_to_ptr.vmem [resolvable:$true] %s72_s26 }
  0x11   :  { %s16287_s30 = smov 4   ;;  %s16288_s8 = smov [#allocation10]  }
  0x12   :  { %78 = dma.hbm_to_vmem [thread:$0]  %s71_s24, 13312, %s73_s26, [#allocation8], %s16286_s29, %s16286_s29, %s16287_s30  }
  0x13   :  { %s86_s9 = sshll.u32 %s16288_s8, 4  ;;  %s87_s9 = int_to_ptr.vmem [resolvable:$true] %s86_s9 }
  0x14   :  { %89 = dma.hbm_to_vmem [thread:$0]  %s85_s28, 16, %s87_s9, [#allocation11]  }
  0x15   :  { %16269 = dma.done.wait [#allocation3], 50176  }
  0x16   :  { %16270 = vsyncadd [#allocation3], 4294917120 }
  0x17   :  { %16271 = dma.done.wait [#allocation5], 93296  }
  0x18   :  { %16272 = vsyncadd [#allocation5], 4294874000 }
  0x19   :  { %16273 = dma.done.wait [#allocation8], 13520  }
  0x1a   :  { %16274 = vsyncadd [#allocation8], 4294953776 }
  0x1b   :  { %16275 = dma.done.wait [#allocation11], 16  }
  0x1c   :  { %16276 = vsyncadd [#allocation11], 4294967280  ;;  %v10185_v0 = vld [vmem:[#allocation2 + $0x188] sm:$0xf]  ;;  %v14935_v1 = vld [vmem:[#allocation2 + $0x1a0] sm:$0xf0] }
  0x1d   :  { %v10409_v2 = vld [vmem:[#allocation2 + $0x348] sm:$0xf]  ;;  %v10186_v3 = vor.u32 %v14935_v1, %v10185_v0  ;;  %v14991_v4 = vld [vmem:[#allocation2 + $0x360] sm:$0xf0]  ;;  %v10157_v11 = vld [vmem:[#allocation2 + $0x150] sm:$0xf] }
  0x1e   :  { %v10633_v5 = vld [vmem:[#allocation2 + $0x508] sm:$0xf]  ;;  %v15047_v6 = vld [vmem:[#allocation2 + $0x520] sm:$0xf0]  ;;  %v10410_v7 = vor.u32 %v14991_v4, %v10409_v2  ;;  %v14928_v13 = vld [vmem:[#allocation2 + $0x168] sm:$0xf0] }
  0x1f   :  { %v10634_v8 = vor.u32 %v15047_v6, %v10633_v5  ;;  %v10857_v9 = vld [vmem:[#allocation2 + $0x6c8] sm:$0xf]  ;;  %v15103_v10 = vld [vmem:[#allocation2 + $0x6e0] sm:$0xf0]  ;;  %2623 = vmatpush.bf16.msra.mxu0 %v10186_v3  ;;  %v10381_v14 = vld [vmem:[#allocation2 + $0x310] sm:$0xf]  ;;  %v10158_v16 = vor.u32 %v14928_v13, %v10157_v11 }
  0x20   :  { %v10858_v12 = vor.u32 %v15103_v10, %v10857_v9  ;;  %v14984_v15 = vld [vmem:[#allocation2 + $0x328] sm:$0xf0]  ;;  %2636 = vmatpush.bf16.msra.mxu1 %v10410_v7  ;;  %v10605_v18 = vld [vmem:[#allocation2 + $0x4d0] sm:$0xf]  ;;  %v10129_v23 = vld [vmem:[#allocation2 + $0x118] sm:$0xf] }
  0x21   :  { %2649 = vmatpush.bf16.msra.mxu2 %v10634_v8  ;;  %v10382_v17 = vor.u32 %v14984_v15, %v10381_v14  ;;  %v15040_v19 = vld [vmem:[#allocation2 + $0x4e8] sm:$0xf0]  ;;  %v10829_v20 = vld [vmem:[#allocation2 + $0x690] sm:$0xf]  ;;  %v14921_v24 = vld [vmem:[#allocation2 + $0x130] sm:$0xf0] }
  0x22   :  { %2662 = vmatpush.bf16.msra.mxu3 %v10858_v12  ;;  %v10606_v21 = vor.u32 %v15040_v19, %v10605_v18  ;;  %v15096_v22 = vld [vmem:[#allocation2 + $0x6a8] sm:$0xf0]  ;;  %v10353_v26 = vld [vmem:[#allocation2 + $0x2d8] sm:$0xf]  ;;  %v14977_v27 = vld [vmem:[#allocation2 + $0x2f0] sm:$0xf0]  ;;  %v10130_v29 = vor.u32 %v14921_v24, %v10129_v23 }
  0x23   :  { %v10830_v25 = vor.u32 %v15096_v22, %v10829_v20  ;;  %v10577_v28 = vld [vmem:[#allocation2 + $0x498] sm:$0xf]  ;;  %2624 = vmatpush.bf16.msra.mxu0 %v10158_v16  ;;  %v15033_v30 = vld [vmem:[#allocation2 + $0x4b0] sm:$0xf0]  ;;  %v10354_v33 = vor.u32 %v14977_v27, %v10353_v26  ;;  %v10101_v35 = vld [vmem:[#allocation2 + $0xe0] sm:$0xf] }
  0x24   :  { %v10801_v31 = vld [vmem:[#allocation2 + $0x658] sm:$0xf]  ;;  %v15089_v32 = vld [vmem:[#allocation2 + $0x670] sm:$0xf0]  ;;  %2637 = vmatpush.bf16.msra.mxu1 %v10382_v17  ;;  %v10578_v34 = vor.u32 %v15033_v30, %v10577_v28  ;;  %v14914_v36 = vld [vmem:[#allocation2 + $0xf8] sm:$0xf0] }
  0x25   :  { %2650 = vmatpush.bf16.msra.mxu2 %v10606_v21  ;;  %v10325_v37 = vld [vmem:[#allocation2 + $0x2a0] sm:$0xf]  ;;  %v10802_v38 = vor.u32 %v15089_v32, %v10801_v31  ;;  %v14970_v39 = vld [vmem:[#allocation2 + $0x2b8] sm:$0xf0]  ;;  %v10102_v44 = vor.u32 %v14914_v36, %v10101_v35  ;;  %v10073_v47 = vld [vmem:[#allocation2 + $0xa8] sm:$0xf] }
  0x26   :  { %2663 = vmatpush.bf16.msra.mxu3 %v10830_v25  ;;  %v10549_v40 = vld [vmem:[#allocation2 + $0x460] sm:$0xf]  ;;  %v15026_v41 = vld [vmem:[#allocation2 + $0x478] sm:$0xf0]  ;;  %v10326_v45 = vor.u32 %v14970_v39, %v10325_v37  ;;  %v14907_v48 = vld [vmem:[#allocation2 + $0xc0] sm:$0xf0] }
  0x27   :  { %v10773_v42 = vld [vmem:[#allocation2 + $0x620] sm:$0xf]  ;;  %v15082_v43 = vld [vmem:[#allocation2 + $0x638] sm:$0xf0]  ;;  %2625 = vmatpush.bf16.msra.mxu0 %v10130_v29  ;;  %v10550_v46 = vor.u32 %v15026_v41, %v10549_v40  ;;  %v10297_v49 = vld [vmem:[#allocation2 + $0x268] sm:$0xf]  ;;  %v10074_v56 = vor.u32 %v14907_v48, %v10073_v47 }
  0x28   :  { %2638 = vmatpush.bf16.msra.mxu1 %v10354_v33  ;;  %v10774_v50 = vor.u32 %v15082_v43, %v10773_v42  ;;  %v14963_v51 = vld [vmem:[#allocation2 + $0x280] sm:$0xf0]  ;;  %v10521_v52 = vld [vmem:[#allocation2 + $0x428] sm:$0xf]  ;;  %v10045_v59 = vld [vmem:[#allocation2 + $0x70] sm:$0xf] }
  0x29   :  { %2651 = vmatpush.bf16.msra.mxu2 %v10578_v34  ;;  %v15019_v53 = vld [vmem:[#allocation2 + $0x440] sm:$0xf0]  ;;  %v10745_v54 = vld [vmem:[#allocation2 + $0x5e8] sm:$0xf]  ;;  %v10298_v57 = vor.u32 %v14963_v51, %v10297_v49  ;;  %v14900_v60 = vld [vmem:[#allocation2 + $0x88] sm:$0xf0] }
  0x2a   :  { %2664 = vmatpush.bf16.msra.mxu3 %v10802_v38  ;;  %v15075_v55 = vld [vmem:[#allocation2 + $0x600] sm:$0xf0]  ;;  %v10522_v58 = vor.u32 %v15019_v53, %v10521_v52  ;;  %v10269_v61 = vld [vmem:[#allocation2 + $0x230] sm:$0xf]  ;;  %v14956_v63 = vld [vmem:[#allocation2 + $0x248] sm:$0xf0]  ;;  %v10046_v4 = vor.u32 %v14900_v60, %v10045_v59 }
  0x2b   :  { %2626 = vmatpush.bf16.msra.mxu0 %v10102_v44  ;;  %v10746_v62 = vor.u32 %v15075_v55, %v10745_v54  ;;  %v10493_v0 = vld [vmem:[#allocation2 + $0x3f0] sm:$0xf]  ;;  %v15012_v1 = vld [vmem:[#allocation2 + $0x408] sm:$0xf0]  ;;  %v10270_v5 = vor.u32 %v14956_v63, %v10269_v61  ;;  %v10017_v7 = vld [vmem:[#allocation2 + $0x38] sm:$0xf] }
  0x2c   :  { %2639 = vmatpush.bf16.msra.mxu1 %v10326_v45  ;;  %v10717_v2 = vld [vmem:[#allocation2 + $0x5b0] sm:$0xf]  ;;  %v15068_v3 = vld [vmem:[#allocation2 + $0x5c8] sm:$0xf0]  ;;  %v10494_v6 = vor.u32 %v15012_v1, %v10493_v0  ;;  %v14893_v8 = vld [vmem:[#allocation2 + $0x50] sm:$0xf0] }
  0x2d   :  { %2652 = vmatpush.bf16.msra.mxu2 %v10550_v46  ;;  %v10241_v9 = vld [vmem:[#allocation2 + $0x1f8] sm:$0xf]  ;;  %v10718_v10 = vor.u32 %v15068_v3, %v10717_v2  ;;  %v14949_v11 = vld [vmem:[#allocation2 + $0x210] sm:$0xf0]  ;;  %v10018_v16 = vor.u32 %v14893_v8, %v10017_v7  ;;  %v9989_v17 = vld [vmem:[#allocation2] sm:$0xf] }
  0x2e   :  { %2665 = vmatpush.bf16.msra.mxu3 %v10774_v50  ;;  %v10465_v12 = vld [vmem:[#allocation2 + $0x3b8] sm:$0xf]  ;;  %v15005_v13 = vld [vmem:[#allocation2 + $0x3d0] sm:$0xf0]  ;;  %v14886_v18 = vld [vmem:[#allocation2 + $0x18] sm:$0xf0]  ;;  %v10242_v19 = vor.u32 %v14949_v11, %v10241_v9 }
  0x2f   :  { %2627 = vmatpush.bf16.msra.mxu0 %v10074_v56  ;;  %v10689_v14 = vld [vmem:[#allocation2 + $0x578] sm:$0xf]  ;;  %v15061_v15 = vld [vmem:[#allocation2 + $0x590] sm:$0xf0]  ;;  %v10466_v20 = vor.u32 %v15005_v13, %v10465_v12  ;;  %v10213_v21 = vld [vmem:[#allocation2 + $0x1c0] sm:$0xf]  ;;  %v9990_v31 = vor.u32 %v14886_v18, %v9989_v17 }
  0x30   :  { %2640 = vmatpush.bf16.msra.mxu1 %v10298_v57  ;;  %v14942_v22 = vld [vmem:[#allocation2 + $0x1d8] sm:$0xf0]  ;;  %v10437_v23 = vld [vmem:[#allocation2 + $0x380] sm:$0xf]  ;;  %v10690_v24 = vor.u32 %v15061_v15, %v10689_v14  ;;  %v11081_v28 = vld [vmem:[#allocation2 + $0x888] sm:$0xf] }
  0x31   :  { %2653 = vmatpush.bf16.msra.mxu2 %v10522_v58  ;;  %v14998_v25 = vld [vmem:[#allocation2 + $0x398] sm:$0xf0]  ;;  %v10661_v26 = vld [vmem:[#allocation2 + $0x540] sm:$0xf]  ;;  %v15159_v29 = vld [vmem:[#allocation2 + $0x8a0] sm:$0xf0]  ;;  %v10214_v35 = vor.u32 %v14942_v22, %v10213_v21 }
  0x32   :  { %2666 = vmatpush.bf16.msra.mxu3 %v10746_v62  ;;  %v15054_v27 = vld [vmem:[#allocation2 + $0x558] sm:$0xf0]  ;;  %v11305_v30 = vld [vmem:[#allocation2 + $0xa48] sm:$0xf]  ;;  %v15215_v32 = vld [vmem:[#allocation2 + $0xa60] sm:$0xf0]  ;;  %v10438_v36 = vor.u32 %v14998_v25, %v10437_v23  ;;  %v11082_v40 = vor.u32 %v15159_v29, %v11081_v28 }
  0x33   :  { %2628 = vmatpush.bf16.msra.mxu0 %v10046_v4  ;;  %v11529_v33 = vld [vmem:[#allocation2 + $0xc08] sm:$0xf]  ;;  %v15271_v34 = vld [vmem:[#allocation2 + $0xc20] sm:$0xf0]  ;;  %v14932_v37 = vld [vmem:[#allocation2 + $0x18c] sm:$0xf]  ;;  %v10662_v39 = vor.u32 %v15054_v27, %v10661_v26  ;;  %v11306_v41 = vor.u32 %v15215_v32, %v11305_v30 }
  0x34   :  { %2641 = vmatpush.bf16.msra.mxu1 %v10270_v5  ;;  %v10187_v38 = vld [vmem:[#allocation2 + $0x1a4] sm:$0xf0]  ;;  %v11530_v42 = vor.u32 %v15271_v34, %v11529_v33  ;;  %v11053_v43 = vld [vmem:[#allocation2 + $0x850] sm:$0xf]  ;;  %v15152_v44 = vld [vmem:[#allocation2 + $0x868] sm:$0xf0] }
  0x35   :  { %2654 = vmatpush.bf16.msra.mxu2 %v10494_v6  ;;  %v11277_v45 = vld [vmem:[#allocation2 + $0xa10] sm:$0xf]  ;;  %v10190_v46 = vor.u32 %v14932_v37, %v10187_v38  ;;  %v15208_v47 = vld [vmem:[#allocation2 + $0xa28] sm:$0xf0]  ;;  %v14925_v50 = vld [vmem:[#allocation2 + $0x154] sm:$0xf]  ;;  %v11054_v52 = vor.u32 %v15152_v44, %v11053_v43 }
  0x36   :  { %2667 = vmatpush.bf16.msra.mxu3 %v10718_v10  ;;  %v11501_v48 = vld [vmem:[#allocation2 + $0xbd0] sm:$0xf]  ;;  %v15264_v49 = vld [vmem:[#allocation2 + $0xbe8] sm:$0xf0]  ;;  %v11025_v53 = vld [vmem:[#allocation2 + $0x818] sm:$0xf]  ;;  %v11278_v54 = vor.u32 %v15208_v47, %v11277_v45 }
  0x37   :  { %2629 = vmatpush.bf16.msra.mxu0 %v10018_v16  ;;  %v10159_v51 = vld [vmem:[#allocation2 + $0x16c] sm:$0xf0]  ;;  %v11502_v55 = vor.u32 %v15264_v49, %v11501_v48  ;;  %v15145_v56 = vld [vmem:[#allocation2 + $0x830] sm:$0xf0]  ;;  %v11249_v57 = vld [vmem:[#allocation2 + $0x9d8] sm:$0xf] }
  0x38   :  { %2642 = vmatpush.bf16.msra.mxu1 %v10242_v19  ;;  %v115_v58 = vld [vmem:[%s16868_s0 + $0x8] sm:$0xff]  ;;  %v10162_v59 = vor.u32 %v14925_v50, %v10159_v51  ;;  %v15201_v60 = vld [vmem:[#allocation2 + $0x9f0] sm:$0xf0]  ;;  %v11473_v61 = vld [vmem:[#allocation2 + $0xb98] sm:$0xf]  ;;  %v11026_v3 = vor.u32 %v15145_v56, %v11025_v53 }
  0x39   :  { %2655 = vmatpush.bf16.msra.mxu2 %v10466_v20  ;;  %v15257_v62 = vld [vmem:[#allocation2 + $0xbb0] sm:$0xf0]  ;;  %v588_v63 = vunpack.c.l.b16 %v115_v58  ;;  %v589_v0 = vunpack.c.h.b16 %v115_v58  ;;  %v14918_v1 = vld [vmem:[#allocation2 + $0x11c] sm:$0xf]  ;;  %v10131_v2 = vld [vmem:[#allocation2 + $0x134] sm:$0xf0]  ;;  %v11250_v7 = vor.u32 %v15201_v60, %v11249_v57 }
  0x3a   :  { %2668 = vmatpush.bf16.msra.mxu3 %v10690_v24  ;;  %v114_v5 = vld [vmem:[%s16868_s0] sm:$0xff]  ;;  %v11474_v8 = vor.u32 %v15257_v62, %v11473_v61  ;;  %v15138_v10 = vld [vmem:[#allocation2 + $0x7f8] sm:$0xf0]  ;;  %v10134_v14 = vor.u32 %v14918_v1, %v10131_v2  ;;  %v10969_v25 = vld [vmem:[#allocation2 + $0x7a8] sm:$0xf] }
  0x3b   :  { %2630 = vmatpush.bf16.msra.mxu0 %v9990_v31  ;;  %v16350_v4 = vpack.c.b16 %v588_v63, %v588_v63  ;;  %v16355_v6 = vpack.c.b16 %v589_v0, %v589_v0  ;;  %v10997_v9 = vld [vmem:[#allocation2 + $0x7e0] sm:$0xf]  ;;  %v586_v12 = vunpack.c.l.b16 %v114_v5  ;;  %v587_v13 = vunpack.c.h.b16 %v114_v5  ;;  %v15194_v15 = vld [vmem:[#allocation2 + $0x9b8] sm:$0xf0]  ;;  %v14911_v18 = vld [vmem:[#allocation2 + $0xe4] sm:$0xf] }
  0x3c   :  { %2643 = vmatpush.bf16.msra.mxu1 %v10214_v35  ;;  %v11221_v11 = vld [vmem:[#allocation2 + $0x9a0] sm:$0xf]  ;;  %v15250_v17 = vld [vmem:[#allocation2 + $0xb78] sm:$0xf0]  ;;  %v10998_v22 = vor.u32 %v15138_v10, %v10997_v9  ;;  %v15131_v26 = vld [vmem:[#allocation2 + $0x7c0] sm:$0xf0] }
  0x3d   :  { %2656 = vmatpush.bf16.msra.mxu2 %v10438_v36  ;;  %v11445_v16 = vld [vmem:[#allocation2 + $0xb60] sm:$0xf]  ;;  %v16358_v20 = vpack.c.b16 %v586_v12, %v586_v12  ;;  %v16360_v21 = vpack.c.b16 %v587_v13, %v587_v13  ;;  %v11222_v23 = vor.u32 %v15194_v15, %v11221_v11  ;;  %v11193_v27 = vld [vmem:[#allocation2 + $0x968] sm:$0xf]  ;;  %v15187_v29 = vld [vmem:[#allocation2 + $0x980] sm:$0xf0]  ;;  %v10970_v34 = vor.u32 %v15131_v26, %v10969_v25 }
  0x3e   :  { %2669 = vmatpush.bf16.msra.mxu3 %v10662_v39  ;;  %v10103_v19 = vld [vmem:[#allocation2 + $0xfc] sm:$0xf0]  ;;  %v11446_v24 = vor.u32 %v15250_v17, %v11445_v16  ;;  %v11417_v30 = vld [vmem:[#allocation2 + $0xb28] sm:$0xf]  ;;  %v15243_v31 = vld [vmem:[#allocation2 + $0xb40] sm:$0xf0]  ;;  %v11194_v35 = vor.u32 %v15187_v29, %v11193_v27 }
  0x3f   :  { %2675 = vmatpush.bf16.msrb.mxu0 %v11082_v40  ;;  %v10106_v28 = vor.u32 %v14911_v18, %v10103_v19  ;;  %v14904_v32 = vld [vmem:[#allocation2 + $0xac] sm:$0xf]  ;;  %v10075_v33 = vld [vmem:[#allocation2 + $0xc4] sm:$0xf0]  ;;  %2644 = vmatmul.bf16.vlgmr.msra.gmra.mxu1 %v16360_v21  ;;  %v11418_v36 = vor.u32 %v15243_v31, %v11417_v30  ;;  %v10941_v37 = vld [vmem:[#allocation2 + $0x770] sm:$0xf] }
  0x40   :  { %2688 = vmatpush.bf16.msrb.mxu1 %v11306_v41  ;;  %2657 = vmatmul.bf16.vlgmr.msra.gmra.mxu2 %v16350_v4  ;;  %v15124_v38 = vld [vmem:[#allocation2 + $0x788] sm:$0xf0]  ;;  %v11165_v39 = vld [vmem:[#allocation2 + $0x930] sm:$0xf]  ;;  %v10078_v40 = vor.u32 %v14904_v32, %v10075_v33  ;;  %v14897_v44 = vld [vmem:[#allocation2 + $0x74] sm:$0xf] }
  0x41   :  { %2701 = vmatpush.bf16.msrb.mxu2 %v11530_v42  ;;  %2670 = vmatmul.bf16.vlgmr.msra.gmra.mxu3 %v16355_v6  ;;  %v15180_v41 = vld [vmem:[#allocation2 + $0x948] sm:$0xf0]  ;;  %v11389_v42 = vld [vmem:[#allocation2 + $0xaf0] sm:$0xf]  ;;  %v10913_v49 = vld [vmem:[#allocation2 + $0x738] sm:$0xf] }
  0x42   :  { %2714 = vmatpush.bf16.msrb.mxu3 %v10190_v46  ;;  %2631 = vmatmul.bf16.vlgmr.msra.gmra.mxu0 %v16358_v20  ;;  %v15236_v43 = vld [vmem:[#allocation2 + $0xb08] sm:$0xf0]  ;;  %v10047_v45 = vld [vmem:[#allocation2 + $0x8c] sm:$0xf0]  ;;  %v10942_v46 = vor.u32 %v15124_v38, %v10941_v37  ;;  %v11166_v47 = vor.u32 %v15180_v41, %v11165_v39  ;;  %v15117_v50 = vld [vmem:[#allocation2 + $0x750] sm:$0xf0] }
  0x43   :  { %2676 = vmatpush.bf16.msrb.mxu0 %v11054_v52  ;;  %v11390_v48 = vor.u32 %v15236_v43, %v11389_v42  ;;  %v11137_v51 = vld [vmem:[#allocation2 + $0x8f8] sm:$0xf]  ;;  %v10050_v52 = vor.u32 %v14897_v44, %v10047_v45  ;;  %v15173_v53 = vld [vmem:[#allocation2 + $0x910] sm:$0xf0]  ;;  %v14890_v56 = vld [vmem:[#allocation2 + $0x3c] sm:$0xf] }
  0x44   :  { %2689 = vmatpush.bf16.msrb.mxu1 %v11278_v54  ;;  %v11361_v54 = vld [vmem:[#allocation2 + $0xab8] sm:$0xf]  ;;  %v10885_v58 = vld [vmem:[#allocation2 + $0x700] sm:$0xf]  ;;  %v15110_v60 = vld [vmem:[#allocation2 + $0x718] sm:$0xf0]  ;;  %v11138_v63 = vor.u32 %v15173_v53, %v11137_v51 }
  0x45   :  { %2702 = vmatpush.bf16.msrb.mxu2 %v11502_v55  ;;  %v15229_v55 = vld [vmem:[#allocation2 + $0xad0] sm:$0xf0]  ;;  %v10019_v57 = vld [vmem:[#allocation2 + $0x54] sm:$0xf0]  ;;  %v11109_v61 = vld [vmem:[#allocation2 + $0x8c0] sm:$0xf]  ;;  %v10886_v13 = vor.u32 %v15110_v60, %v10885_v58 }
  0x46   :  { %2715 = vmatpush.bf16.msrb.mxu3 %v10162_v59  ;;  %v10914_v59 = vor.u32 %v15117_v50, %v10913_v49  ;;  %v15166_v62 = vld [vmem:[#allocation2 + $0x8d8] sm:$0xf0]  ;;  %v11362_v0 = vor.u32 %v15229_v55, %v11361_v54  ;;  %v11333_v1 = vld [vmem:[#allocation2 + $0xa80] sm:$0xf]  ;;  %v10022_v5 = vor.u32 %v14890_v56, %v10019_v57  ;;  %v116_v9 = vld [vmem:[%s16868_s0 + $0x10] sm:$0xff] }
  0x47   :  { %2677 = vmatpush.bf16.msrb.mxu0 %v11026_v3  ;;  %v15222_v2 = vld [vmem:[#allocation2 + $0xa98] sm:$0xf0]  ;;  %v117_v3 = vld [vmem:[%s16868_s0 + $0x18] sm:$0xf]  ;;  %v14988_v10 = vld [vmem:[#allocation2 + $0x34c] sm:$0xf]  ;;  %v11110_v18 = vor.u32 %v15166_v62, %v11109_v61  ;;  %v591_v25 = vunpack.c.h.b16 %v116_v9 }
  0x48   :  { %2690 = vmatpush.bf16.msrb.mxu1 %v11250_v7  ;;  %v14883_v7 = vld [vmem:[#allocation2 + $0x4] sm:$0xf]  ;;  %v10411_v11 = vld [vmem:[#allocation2 + $0x364] sm:$0xf0]  ;;  %v15044_v12 = vld [vmem:[#allocation2 + $0x50c] sm:$0xf]  ;;  %v592_v17 = vunpack.c.l.b16 %v117_v3  ;;  %v11334_v19 = vor.u32 %v15222_v2, %v11333_v1 }
  0x49   :  { %2703 = vmatpush.bf16.msrb.mxu2 %v11474_v8  ;;  %v9991_v8 = vld [vmem:[#allocation2 + $0x1c] sm:$0xf0]  ;;  %v15100_v15 = vld [vmem:[#allocation2 + $0x6cc] sm:$0xf]  ;;  %v10859_v16 = vld [vmem:[#allocation2 + $0x6e4] sm:$0xf0]  ;;  %v10414_v27 = vor.u32 %v14988_v10, %v10411_v11  ;;  %v16375_v41 = vpack.c.b16 %v591_v25, %v591_v25 }
  0x4a   :  { %2716 = vmatpush.bf16.msrb.mxu3 %v10134_v14  ;;  %v10635_v14 = vld [vmem:[#allocation2 + $0x524] sm:$0xf0]  ;;  %v9994_v26 = vor.u32 %v14883_v7, %v9991_v8  ;;  %v10862_v29 = vor.u32 %v15100_v15, %v10859_v16  ;;  %v14981_v30 = vld [vmem:[#allocation2 + $0x314] sm:$0xf]  ;;  %v10383_v31 = vld [vmem:[#allocation2 + $0x32c] sm:$0xf0]  ;;  %v16371_v37 = vpack.c.b16 %v592_v17, %v592_v17 }
  0x4b   :  { %2678 = vmatpush.bf16.msrb.mxu0 %v10998_v22  ;;  %v15156_v22 = vld [vmem:[#allocation2 + $0x88c] sm:$0xf]  ;;  %v15037_v32 = vld [vmem:[#allocation2 + $0x4d4] sm:$0xf]  ;;  %v11055_v39 = vld [vmem:[#allocation2 + $0x86c] sm:$0xf0]  ;;  %v10386_v42 = vor.u32 %v14981_v30, %v10383_v31 }
  0x4c   :  { %2691 = vmatpush.bf16.msrb.mxu1 %v11222_v23  ;;  %v11083_v23 = vld [vmem:[#allocation2 + $0x8a4] sm:$0xf0]  ;;  %v15149_v38 = vld [vmem:[#allocation2 + $0x854] sm:$0xf]  ;;  %v14974_v45 = vld [vmem:[#allocation2 + $0x2dc] sm:$0xf] }
  0x4d   :  { %2704 = vmatpush.bf16.msrb.mxu2 %v11446_v24  ;;  %v590_v24 = vunpack.c.l.b16 %v116_v9  ;;  %v11086_v33 = vor.u32 %v15156_v22, %v11083_v23  ;;  %v10579_v49 = vld [vmem:[#allocation2 + $0x4b4] sm:$0xf0]  ;;  %v15086_v50 = vld [vmem:[#allocation2 + $0x65c] sm:$0xf]  ;;  %v14967_v57 = vld [vmem:[#allocation2 + $0x2a4] sm:$0xf] }
  0x4e   :  { %2717 = vmatpush.bf16.msrb.mxu3 %v10106_v28  ;;  %v10638_v28 = vor.u32 %v15044_v12, %v10635_v14  ;;  %v10803_v51 = vld [vmem:[#allocation2 + $0x674] sm:$0xf0]  ;;  %v10327_v58 = vld [vmem:[#allocation2 + $0x2bc] sm:$0xf0]  ;;  %v15079_v62 = vld [vmem:[#allocation2 + $0x624] sm:$0xf] }
  0x4f   :  { %2679 = vmatpush.bf16.msrb.mxu0 %v10970_v34  ;;  %v10607_v34 = vld [vmem:[#allocation2 + $0x4ec] sm:$0xf0]  ;;  %v11027_v53 = vld [vmem:[#allocation2 + $0x834] sm:$0xf0]  ;;  %v10806_v56 = vor.u32 %v15086_v50, %v10803_v51  ;;  %v10551_v61 = vld [vmem:[#allocation2 + $0x47c] sm:$0xf0]  ;;  %v10330_v2 = vor.u32 %v14967_v57, %v10327_v58 }
  0x50   :  { %2692 = vmatpush.bf16.msrb.mxu1 %v11194_v35  ;;  %v15093_v35 = vld [vmem:[#allocation2 + $0x694] sm:$0xf]  ;;  %v10610_v43 = vor.u32 %v15037_v32, %v10607_v34  ;;  %v10999_v1 = vld [vmem:[#allocation2 + $0x7fc] sm:$0xf0]  ;;  %v14960_v7 = vld [vmem:[#allocation2 + $0x26c] sm:$0xf] }
  0x51   :  { %2705 = vmatpush.bf16.msrb.mxu2 %v11418_v36  ;;  %v10831_v36 = vld [vmem:[#allocation2 + $0x6ac] sm:$0xf0]  ;;  %v10299_v8 = vld [vmem:[#allocation2 + $0x284] sm:$0xf0]  ;;  %v15016_v9 = vld [vmem:[#allocation2 + $0x42c] sm:$0xf] }
  0x52   :  { %2718 = vmatpush.bf16.msrb.mxu3 %v10078_v40  ;;  %v16373_v40 = vpack.c.b16 %v590_v24, %v590_v24  ;;  %v10834_v44 = vor.u32 %v15093_v35, %v10831_v36  ;;  %v10523_v11 = vld [vmem:[#allocation2 + $0x444] sm:$0xf0]  ;;  %v15072_v12 = vld [vmem:[#allocation2 + $0x5ec] sm:$0xf]  ;;  %v10302_v16 = vor.u32 %v14960_v7, %v10299_v8  ;;  %v10271_v22 = vld [vmem:[#allocation2 + $0x24c] sm:$0xf0] }
  0x53   :  { %2680 = vmatpush.bf16.msrb.mxu0 %v10942_v46  ;;  %v10355_v46 = vld [vmem:[#allocation2 + $0x2f4] sm:$0xf0]  ;;  %v15128_v14 = vld [vmem:[#allocation2 + $0x7ac] sm:$0xf]  ;;  %v10971_v15 = vld [vmem:[#allocation2 + $0x7c4] sm:$0xf0]  ;;  %v10526_v17 = vor.u32 %v15016_v9, %v10523_v11 }
  0x54   :  { %2693 = vmatpush.bf16.msrb.mxu1 %v11166_v47  ;;  %v15030_v47 = vld [vmem:[#allocation2 + $0x49c] sm:$0xf]  ;;  %v10358_v54 = vor.u32 %v14974_v45, %v10355_v46  ;;  %v15009_v23 = vld [vmem:[#allocation2 + $0x3f4] sm:$0xf]  ;;  %v10974_v24 = vor.u32 %v15128_v14, %v10971_v15  ;;  %v10495_v25 = vld [vmem:[#allocation2 + $0x40c] sm:$0xf0] }
  0x55   :  { %2706 = vmatpush.bf16.msrb.mxu2 %v11390_v48  ;;  %v11058_v48 = vor.u32 %v15149_v38, %v11055_v39  ;;  %v10582_v55 = vor.u32 %v15030_v47, %v10579_v49  ;;  %v10498_v31 = vor.u32 %v15009_v23, %v10495_v25  ;;  %v10243_v34 = vld [vmem:[#allocation2 + $0x214] sm:$0xf0]  ;;  %v15002_v35 = vld [vmem:[#allocation2 + $0x3bc] sm:$0xf]  ;;  %v14939_v46 = vld [vmem:[#allocation2 + $0x1c4] sm:$0xf] }
  0x56   :  { %2719 = vmatpush.bf16.msrb.mxu3 %v10050_v52  ;;  %v15142_v52 = vld [vmem:[#allocation2 + $0x81c] sm:$0xf]  ;;  %v10467_v38 = vld [vmem:[#allocation2 + $0x3d4] sm:$0xf0]  ;;  %v10215_v47 = vld [vmem:[#allocation2 + $0x1dc] sm:$0xf0] }
  0x57   :  { %2681 = vmatpush.bf16.msrb.mxu0 %v10914_v59  ;;  %v15023_v59 = vld [vmem:[#allocation2 + $0x464] sm:$0xf]  ;;  %v11030_v60 = vor.u32 %v15142_v52, %v11027_v53  ;;  %v15058_v39 = vld [vmem:[#allocation2 + $0x57c] sm:$0xf]  ;;  %v10439_v51 = vld [vmem:[#allocation2 + $0x39c] sm:$0xf0] }
  0x58   :  { %2694 = vmatpush.bf16.msrb.mxu1 %v11138_v63  ;;  %v10775_v63 = vld [vmem:[#allocation2 + $0x63c] sm:$0xf0]  ;;  %v10554_v3 = vor.u32 %v15023_v59, %v10551_v61  ;;  %v14995_v50 = vld [vmem:[#allocation2 + $0x384] sm:$0xf]  ;;  %v15212_v57 = vld [vmem:[#allocation2 + $0xa4c] sm:$0xf] }
  0x59   :  { %2707 = vmatpush.bf16.msrb.mxu2 %v11362_v0  ;;  %v15135_v0 = vld [vmem:[#allocation2 + $0x7e4] sm:$0xf]  ;;  %v11307_v58 = vld [vmem:[#allocation2 + $0xa64] sm:$0xf0]  ;;  %v15268_v59 = vld [vmem:[#allocation2 + $0xc0c] sm:$0xf] }
  0x5a   :  { %2720 = vmatpush.bf16.msrb.mxu3 %v10022_v5  ;;  %v10778_v5 = vor.u32 %v15079_v62, %v10775_v63  ;;  %v11002_v10 = vor.u32 %v15135_v0, %v10999_v1  ;;  %v15051_v52 = vld [vmem:[#allocation2 + $0x544] sm:$0xf]  ;;  %v11531_v61 = vld [vmem:[#allocation2 + $0xc24] sm:$0xf0]  ;;  %v10193_v62 = vld [vmem:[#allocation2 + $0x190] sm:$0xf]  ;;  %v10442_v0 = vor.u32 %v14995_v50, %v10439_v51  ;;  %v11310_v7 = vor.u32 %v15212_v57, %v11307_v58 }
  0x5b   :  { %2682 = vmatpush.bf16.msrb.mxu0 %v10886_v13  ;;  %v10747_v13 = vld [vmem:[#allocation2 + $0x604] sm:$0xf0]  ;;  %v14936_v63 = vld [vmem:[#allocation2 + $0x1a8] sm:$0xf0]  ;;  %v11534_v8 = vor.u32 %v15268_v59, %v11531_v61  ;;  %v11279_v11 = vld [vmem:[#allocation2 + $0xa2c] sm:$0xf0] }
  0x5c   :  { %2695 = vmatpush.bf16.msrb.mxu1 %v11110_v18  ;;  %v10750_v18 = vor.u32 %v15072_v12, %v10747_v13  ;;  %v10194_v9 = vor.u32 %v14936_v63, %v10193_v62  ;;  %v15261_v12 = vld [vmem:[#allocation2 + $0xbd4] sm:$0xf]  ;;  %v11503_v14 = vld [vmem:[#allocation2 + $0xbec] sm:$0xf0]  ;;  %v10165_v15 = vld [vmem:[#allocation2 + $0x158] sm:$0xf] }
  0x5d   :  { %2708 = vmatpush.bf16.msrb.mxu2 %v11334_v19  ;;  %v14953_v19 = vld [vmem:[#allocation2 + $0x234] sm:$0xf]  ;;  %v11251_v25 = vld [vmem:[#allocation2 + $0x9f4] sm:$0xf0]  ;;  %v15184_v51 = vld [vmem:[#allocation2 + $0x96c] sm:$0xf] }
  0x5e   :  { %2721 = vmatpush.bf16.msrb.mxu3 %v9994_v26  ;;  %2683 = vmatmul.bf16.vlgmr.msrb.gmra.mxu0 %v16373_v40  ;;  %v15065_v26 = vld [vmem:[#allocation2 + $0x5b4] sm:$0xf]  ;;  %v10274_v30 = vor.u32 %v14953_v19, %v10271_v22  ;;  %v11506_v22 = vor.u32 %v15261_v12, %v11503_v14  ;;  %v14908_v57 = vld [vmem:[#allocation2 + $0xc8] sm:$0xf0]  ;;  %v10305_v58 = vld [vmem:[#allocation2 + $0x270] sm:$0xf] }
  0x5f   :  { %2727 = vmatpush.bf16.msra.mxu0 %v10414_v27  ;;  %2696 = vmatmul.bf16.vlgmr.msrb.gmra.mxu1 %v16375_v41  ;;  %v10719_v27 = vld [vmem:[#allocation2 + $0x5cc] sm:$0xf0]  ;;  %v14964_v59 = vld [vmem:[#allocation2 + $0x288] sm:$0xf0]  ;;  %v15177_v63 = vld [vmem:[#allocation2 + $0x934] sm:$0xf] }
  0x60   :  { %2740 = vmatpush.bf16.msra.mxu1 %v10638_v28  ;;  %2709 = vmatmul.bf16.vlgmr.msrb.gmra.mxu2 %v16371_v37  ;;  %v15121_v28 = vld [vmem:[#allocation2 + $0x774] sm:$0xf]  ;;  %v10722_v32 = vor.u32 %v15065_v26, %v10719_v27  ;;  %v15254_v26 = vld [vmem:[#allocation2 + $0xb9c] sm:$0xf]  ;;  %v11139_v14 = vld [vmem:[#allocation2 + $0x914] sm:$0xf0] }
  0x61   :  { %2753 = vmatpush.bf16.msra.mxu2 %v10862_v29  ;;  %2722 = vmatmul.bf16.vlgmr.msrb.gmra.mxu3 %v16358_v20  ;;  %v10943_v29 = vld [vmem:[#allocation2 + $0x78c] sm:$0xf0] }
  0x62   :  { %2766 = vmatpush.bf16.msra.mxu3 %v11086_v33  ;;  %v14946_v33 = vld [vmem:[#allocation2 + $0x1fc] sm:$0xf]  ;;  %v10946_v36 = vor.u32 %v15121_v28, %v10943_v29  ;;  %v11475_v28 = vld [vmem:[#allocation2 + $0xbb4] sm:$0xf0]  ;;  %v10137_v29 = vld [vmem:[#allocation2 + $0x120] sm:$0xf] }
  0x63   :  { %2728 = vmatpush.bf16.msra.mxu0 %v10386_v42  ;;  %v10691_v42 = vld [vmem:[#allocation2 + $0x594] sm:$0xf0]  ;;  %v10246_v45 = vor.u32 %v14946_v33, %v10243_v34  ;;  %v11478_v34 = vor.u32 %v15254_v26, %v11475_v28  ;;  %v11111_v26 = vld [vmem:[#allocation2 + $0x8dc] sm:$0xf0] }
  0x64   :  { %2741 = vmatpush.bf16.msra.mxu1 %v10610_v43  ;;  %v15114_v43 = vld [vmem:[#allocation2 + $0x73c] sm:$0xf]  ;;  %v10694_v49 = vor.u32 %v15058_v39, %v10691_v42  ;;  %v15247_v39 = vld [vmem:[#allocation2 + $0xb64] sm:$0xf] }
  0x65   :  { %2754 = vmatpush.bf16.msra.mxu2 %v10834_v44  ;;  %v10915_v44 = vld [vmem:[#allocation2 + $0x754] sm:$0xf0] }
  0x66   :  { %2767 = vmatpush.bf16.msra.mxu3 %v11058_v48  ;;  %v10470_v48 = vor.u32 %v15002_v35, %v10467_v38  ;;  %v10918_v53 = vor.u32 %v15114_v43, %v10915_v44  ;;  %v11223_v38 = vld [vmem:[#allocation2 + $0x9bc] sm:$0xf0]  ;;  %v10109_v44 = vld [vmem:[#allocation2 + $0xe8] sm:$0xf] }
  0x67   :  { %2729 = vmatpush.bf16.msra.mxu0 %v10358_v54  ;;  %v10663_v54 = vld [vmem:[#allocation2 + $0x55c] sm:$0xf0] }
  0x68   :  { %2742 = vmatpush.bf16.msra.mxu1 %v10582_v55  ;;  %v15107_v55 = vld [vmem:[#allocation2 + $0x704] sm:$0xf]  ;;  %v10666_v1 = vor.u32 %v15051_v52, %v10663_v54  ;;  %v11447_v43 = vld [vmem:[#allocation2 + $0xb7c] sm:$0xf0]  ;;  %v11195_v52 = vld [vmem:[#allocation2 + $0x984] sm:$0xf0] }
  0x69   :  { %2755 = vmatpush.bf16.msra.mxu2 %v10806_v56  ;;  %v10887_v56 = vld [vmem:[#allocation2 + $0x71c] sm:$0xf0] }
  0x6a   :  { %2768 = vmatpush.bf16.msra.mxu3 %v11030_v60  ;;  %v10218_v60 = vor.u32 %v14939_v46, %v10215_v47  ;;  %v10333_v46 = vld [vmem:[#allocation2 + $0x2a8] sm:$0xf]  ;;  %v14971_v47 = vld [vmem:[#allocation2 + $0x2c0] sm:$0xf0] }
  0x6b   :  { %2730 = vmatpush.bf16.msra.mxu0 %v10330_v2  ;;  %v10417_v2 = vld [vmem:[#allocation2 + $0x350] sm:$0xf]  ;;  %v10334_v54 = vor.u32 %v14971_v47, %v10333_v46 }
  0x6c   :  { %2743 = vmatpush.bf16.msra.mxu1 %v10554_v3  ;;  %v14992_v3 = vld [vmem:[#allocation2 + $0x368] sm:$0xf0] }
  0x6d   :  { %2756 = vmatpush.bf16.msra.mxu2 %v10778_v5  ;;  %v10890_v5 = vor.u32 %v15107_v55, %v10887_v56  ;;  %v10418_v13 = vor.u32 %v14992_v3, %v10417_v2  ;;  %v11419_v55 = vld [vmem:[#allocation2 + $0xb44] sm:$0xf0]  ;;  %v10081_v56 = vld [vmem:[#allocation2 + $0xb0] sm:$0xf]  ;;  %v10306_v2 = vor.u32 %v14964_v59, %v10305_v58  ;;  %v15097_v58 = vld [vmem:[#allocation2 + $0x6b0] sm:$0xf0] }
  0x6e   :  { %2769 = vmatpush.bf16.msra.mxu3 %v11002_v10  ;;  %v15205_v10 = vld [vmem:[#allocation2 + $0xa14] sm:$0xf]  ;;  %v10082_v62 = vor.u32 %v14908_v57, %v10081_v56  ;;  %v11391_v3 = vld [vmem:[#allocation2 + $0xb0c] sm:$0xf0]  ;;  %v10837_v56 = vld [vmem:[#allocation2 + $0x698] sm:$0xf] }
  0x6f   :  { %2731 = vmatpush.bf16.msra.mxu0 %v10302_v16  ;;  %v14929_v16 = vld [vmem:[#allocation2 + $0x170] sm:$0xf0]  ;;  %v11282_v19 = vor.u32 %v15205_v10, %v11279_v11  ;;  %v11061_v59 = vld [vmem:[#allocation2 + $0x858] sm:$0xf] }
  0x70   :  { %2744 = vmatpush.bf16.msra.mxu1 %v10526_v17  ;;  %v10389_v17 = vld [vmem:[#allocation2 + $0x318] sm:$0xf]  ;;  %v10166_v23 = vor.u32 %v14929_v16, %v10165_v15  ;;  %v15226_v15 = vld [vmem:[#allocation2 + $0xabc] sm:$0xf] }
  0x71   :  { %2757 = vmatpush.bf16.msra.mxu2 %v10750_v18  ;;  %v14985_v18 = vld [vmem:[#allocation2 + $0x330] sm:$0xf0] }
  0x72   :  { %2770 = vmatpush.bf16.msra.mxu3 %v10974_v24  ;;  %v15198_v24 = vld [vmem:[#allocation2 + $0x9dc] sm:$0xf]  ;;  %v10390_v27 = vor.u32 %v14985_v18, %v10389_v17  ;;  %v11363_v17 = vld [vmem:[#allocation2 + $0xad4] sm:$0xf0]  ;;  %v10025_v18 = vld [vmem:[#allocation2 + $0x40] sm:$0xf] }
  0x73   :  { %2732 = vmatpush.bf16.msra.mxu0 %v10274_v30  ;;  %v14922_v30 = vld [vmem:[#allocation2 + $0x138] sm:$0xf0]  ;;  %v11254_v33 = vor.u32 %v15198_v24, %v11251_v25  ;;  %v15163_v25 = vld [vmem:[#allocation2 + $0x8c4] sm:$0xf] }
  0x74   :  { %2745 = vmatpush.bf16.msra.mxu1 %v10498_v31  ;;  %v10361_v31 = vld [vmem:[#allocation2 + $0x2e0] sm:$0xf]  ;;  %v10138_v35 = vor.u32 %v14922_v30, %v10137_v29  ;;  %v15219_v29 = vld [vmem:[#allocation2 + $0xa84] sm:$0xf] }
  0x75   :  { %2758 = vmatpush.bf16.msra.mxu2 %v10722_v32  ;;  %v14978_v32 = vld [vmem:[#allocation2 + $0x2f8] sm:$0xf0]  ;;  %v11335_v30 = vld [vmem:[#allocation2 + $0xa9c] sm:$0xf0] }
  0x76   :  { %2771 = vmatpush.bf16.msra.mxu3 %v10946_v36  ;;  %v15191_v36 = vld [vmem:[#allocation2 + $0x9a4] sm:$0xf]  ;;  %v10362_v42 = vor.u32 %v14978_v32, %v10361_v31  ;;  %v9997_v31 = vld [vmem:[#allocation2 + $0x8] sm:$0xf]  ;;  %v11338_v46 = vor.u32 %v15219_v29, %v11335_v30  ;;  %v10529_v30 = vld [vmem:[#allocation2 + $0x430] sm:$0xf] }
  0x77   :  { %2733 = vmatpush.bf16.msra.mxu0 %v10246_v45  ;;  %v14915_v45 = vld [vmem:[#allocation2 + $0x100] sm:$0xf0] }
  0x78   :  { %2746 = vmatpush.bf16.msra.mxu1 %v10470_v48  ;;  %v11226_v48 = vor.u32 %v15191_v36, %v11223_v38  ;;  %v10110_v50 = vor.u32 %v14915_v45, %v10109_v44  ;;  %v10641_v36 = vld [vmem:[#allocation2 + $0x510] sm:$0xf]  ;;  %v15048_v38 = vld [vmem:[#allocation2 + $0x528] sm:$0xf0] }
  0x79   :  { %2759 = vmatpush.bf16.msra.mxu2 %v10694_v49  ;;  %v11450_v49 = vor.u32 %v15247_v39, %v11447_v43  ;;  %v10865_v39 = vld [vmem:[#allocation2 + $0x6d0] sm:$0xf]  ;;  %v15104_v43 = vld [vmem:[#allocation2 + $0x6e8] sm:$0xf0] }
  0x7a   :  { %2772 = vmatpush.bf16.msra.mxu3 %v10918_v53  ;;  %v15240_v53 = vld [vmem:[#allocation2 + $0xb2c] sm:$0xf]  ;;  %v11089_v44 = vld [vmem:[#allocation2 + $0x890] sm:$0xf] }
  0x7b   :  { %2734 = vmatpush.bf16.msra.mxu0 %v10218_v60  ;;  %v11198_v60 = vor.u32 %v15184_v51, %v11195_v52  ;;  %v11422_v61 = vor.u32 %v15240_v53, %v11419_v55  ;;  %v15160_v45 = vld [vmem:[#allocation2 + $0x8a8] sm:$0xf0]  ;;  %v10642_v51 = vor.u32 %v15048_v38, %v10641_v36  ;;  %v10866_v52 = vor.u32 %v15104_v43, %v10865_v39  ;;  %v15041_v55 = vld [vmem:[#allocation2 + $0x4f0] sm:$0xf0]  ;;  %v11201_v38 = vld [vmem:[#allocation2 + $0x970] sm:$0xf] }
  0x7c   :  { %2747 = vmatpush.bf16.msra.mxu1 %v10442_v0  ;;  %v11167_v0 = vld [vmem:[#allocation2 + $0x94c] sm:$0xf0]  ;;  %v11090_v53 = vor.u32 %v15160_v45, %v11089_v44  ;;  %v15132_v36 = vld [vmem:[#allocation2 + $0x7c8] sm:$0xf0]  ;;  %v10501_v45 = vld [vmem:[#allocation2 + $0x3f8] sm:$0xf] }
  0x7d   :  { %2760 = vmatpush.bf16.msra.mxu2 %v10666_v1  ;;  %v15233_v1 = vld [vmem:[#allocation2 + $0xaf4] sm:$0xf]  ;;  %v11170_v10 = vor.u32 %v15177_v63, %v11167_v0  ;;  %v10838_v0 = vor.u32 %v15097_v58, %v10837_v56  ;;  %v15188_v39 = vld [vmem:[#allocation2 + $0x988] sm:$0xf0]  ;;  %v15006_v58 = vld [vmem:[#allocation2 + $0x3d8] sm:$0xf0] }
  0x7e   :  { %2773 = vmatpush.bf16.msra.mxu3 %v10890_v5  ;;  %2735 = vmatmul.bf16.vlgmr.msra.gmra.mxu0 %v16360_v21  ;;  %v10053_v5 = vld [vmem:[#allocation2 + $0x78] sm:$0xf]  ;;  %v11394_v11 = vor.u32 %v15233_v1, %v11391_v3  ;;  %v15034_v3 = vld [vmem:[#allocation2 + $0x4b8] sm:$0xf0] }
  0x7f   :  { %2779 = vmatpush.bf16.msrb.mxu0 %v11310_v7  ;;  %2748 = vmatmul.bf16.vlgmr.msra.gmra.mxu1 %v16350_v4  ;;  %v14901_v7 = vld [vmem:[#allocation2 + $0x90] sm:$0xf0] }
  0x80   :  { %2792 = vmatpush.bf16.msrb.mxu1 %v11534_v8  ;;  %2761 = vmatmul.bf16.vlgmr.msra.gmra.mxu2 %v16355_v6  ;;  %v10277_v8 = vld [vmem:[#allocation2 + $0x238] sm:$0xf]  ;;  %v10054_v12 = vor.u32 %v14901_v7, %v10053_v5  ;;  %v10809_v5 = vld [vmem:[#allocation2 + $0x660] sm:$0xf] }
  0x81   :  { %2805 = vmatpush.bf16.msrb.mxu2 %v10194_v9  ;;  %2774 = vmatmul.bf16.vlgmr.msra.gmra.mxu3 %v16373_v40  ;;  %v14957_v9 = vld [vmem:[#allocation2 + $0x250] sm:$0xf0] }
  0x82   :  { %2818 = vmatpush.bf16.msrb.mxu3 %v10418_v13  ;;  %v15170_v13 = vld [vmem:[#allocation2 + $0x8fc] sm:$0xf]  ;;  %v10278_v16 = vor.u32 %v14957_v9, %v10277_v8  ;;  %v11033_v9 = vld [vmem:[#allocation2 + $0x820] sm:$0xf] }
  0x83   :  { %2780 = vmatpush.bf16.msrb.mxu0 %v11282_v19  ;;  %v14894_v19 = vld [vmem:[#allocation2 + $0x58] sm:$0xf0]  ;;  %v11142_v24 = vor.u32 %v15170_v13, %v11139_v14 }
  0x84   :  { %2793 = vmatpush.bf16.msrb.mxu1 %v11506_v22  ;;  %v10249_v22 = vld [vmem:[#allocation2 + $0x200] sm:$0xf]  ;;  %v10026_v28 = vor.u32 %v14894_v19, %v10025_v18  ;;  %v15090_v8 = vld [vmem:[#allocation2 + $0x678] sm:$0xf0]  ;;  %v10781_v18 = vld [vmem:[#allocation2 + $0x628] sm:$0xf] }
  0x85   :  { %2806 = vmatpush.bf16.msrb.mxu2 %v10166_v23  ;;  %v14950_v23 = vld [vmem:[#allocation2 + $0x218] sm:$0xf0]  ;;  %v10810_v14 = vor.u32 %v15090_v8, %v10809_v5  ;;  %v14999_v5 = vld [vmem:[#allocation2 + $0x3a0] sm:$0xf0] }
  0x86   :  { %2819 = vmatpush.bf16.msrb.mxu3 %v10390_v27  ;;  %v11366_v27 = vor.u32 %v15226_v15, %v11363_v17  ;;  %v10250_v32 = vor.u32 %v14950_v23, %v10249_v22  ;;  %v15027_v17 = vld [vmem:[#allocation2 + $0x480] sm:$0xf0]  ;;  %v11005_v23 = vld [vmem:[#allocation2 + $0x7e8] sm:$0xf] }
  0x87   :  { %2781 = vmatpush.bf16.msrb.mxu0 %v11254_v33  ;;  %v14887_v33 = vld [vmem:[#allocation2 + $0x20] sm:$0xf0] }
  0x88   :  { %2794 = vmatpush.bf16.msrb.mxu1 %v11478_v34  ;;  %v10221_v34 = vld [vmem:[#allocation2 + $0x1c8] sm:$0xf]  ;;  %v9998_v47 = vor.u32 %v14887_v33, %v9997_v31  ;;  %v15083_v22 = vld [vmem:[#allocation2 + $0x640] sm:$0xf0]  ;;  %v15020_v31 = vld [vmem:[#allocation2 + $0x448] sm:$0xf0] }
  0x89   :  { %2807 = vmatpush.bf16.msrb.mxu2 %v10138_v35  ;;  %v14943_v35 = vld [vmem:[#allocation2 + $0x1e0] sm:$0xf0] }
  0x8a   :  { %2820 = vmatpush.bf16.msrb.mxu3 %v10362_v42  ;;  %v11114_v42 = vor.u32 %v15163_v25, %v11111_v26  ;;  %v11229_v25 = vld [vmem:[#allocation2 + $0x9a8] sm:$0xf]  ;;  %v15195_v26 = vld [vmem:[#allocation2 + $0x9c0] sm:$0xf0] }
  0x8b   :  { %2782 = vmatpush.bf16.msrb.mxu0 %v11226_v48  ;;  %v11313_v48 = vld [vmem:[#allocation2 + $0xa50] sm:$0xf]  ;;  %v11230_v33 = vor.u32 %v15195_v26, %v11229_v25 }
  0x8c   :  { %2795 = vmatpush.bf16.msrb.mxu1 %v11450_v49  ;;  %v15216_v49 = vld [vmem:[#allocation2 + $0xa68] sm:$0xf0] }
  0x8d   :  { %2808 = vmatpush.bf16.msrb.mxu2 %v10110_v50  ;;  %v10222_v50 = vor.u32 %v14943_v35, %v10221_v34  ;;  %v11314_v57 = vor.u32 %v15216_v49, %v11313_v48  ;;  %v15076_v34 = vld [vmem:[#allocation2 + $0x608] sm:$0xf0]  ;;  %v10977_v35 = vld [vmem:[#allocation2 + $0x7b0] sm:$0xf]  ;;  %v11202_v48 = vor.u32 %v15188_v39, %v11201_v38  ;;  %v15069_v49 = vld [vmem:[#allocation2 + $0x5d0] sm:$0xf0] }
  0x8e   :  { %2821 = vmatpush.bf16.msrb.mxu3 %v10334_v54  ;;  %v10613_v54 = vld [vmem:[#allocation2 + $0x4d8] sm:$0xf]  ;;  %v10978_v44 = vor.u32 %v15132_v36, %v10977_v35  ;;  %v14926_v35 = vld [vmem:[#allocation2 + $0x15c] sm:$0xf] }
  0x8f   :  { %2783 = vmatpush.bf16.msrb.mxu0 %v11198_v60  ;;  %v15153_v60 = vld [vmem:[#allocation2 + $0x870] sm:$0xf0]  ;;  %v10614_v63 = vor.u32 %v15041_v55, %v10613_v54  ;;  %v10167_v38 = vld [vmem:[#allocation2 + $0x174] sm:$0xf0]  ;;  %v14982_v39 = vld [vmem:[#allocation2 + $0x31c] sm:$0xf] }
  0x90   :  { %2796 = vmatpush.bf16.msrb.mxu1 %v11422_v61  ;;  %v11285_v61 = vld [vmem:[#allocation2 + $0xa18] sm:$0xf]  ;;  %v11062_v1 = vor.u32 %v15153_v60, %v11061_v59  ;;  %v10697_v59 = vld [vmem:[#allocation2 + $0x580] sm:$0xf] }
  0x91   :  { %2809 = vmatpush.bf16.msrb.mxu2 %v10082_v62  ;;  %v15209_v62 = vld [vmem:[#allocation2 + $0xa30] sm:$0xf0] }
  0x92   :  { %2822 = vmatpush.bf16.msrb.mxu3 %v10306_v2  ;;  %v10585_v2 = vld [vmem:[#allocation2 + $0x4a0] sm:$0xf]  ;;  %v11286_v7 = vor.u32 %v15209_v62, %v11285_v61  ;;  %v15062_v61 = vld [vmem:[#allocation2 + $0x598] sm:$0xf0] }
  0x93   :  { %2784 = vmatpush.bf16.msrb.mxu0 %v11170_v10  ;;  %v15146_v10 = vld [vmem:[#allocation2 + $0x838] sm:$0xf0]  ;;  %v10586_v13 = vor.u32 %v15034_v3, %v10585_v2  ;;  %v10921_v62 = vld [vmem:[#allocation2 + $0x740] sm:$0xf]  ;;  %v10445_v3 = vld [vmem:[#allocation2 + $0x388] sm:$0xf] }
  0x94   :  { %2797 = vmatpush.bf16.msrb.mxu1 %v11394_v11  ;;  %v11257_v11 = vld [vmem:[#allocation2 + $0x9e0] sm:$0xf]  ;;  %v11034_v15 = vor.u32 %v15146_v10, %v11033_v9  ;;  %v10669_v9 = vld [vmem:[#allocation2 + $0x548] sm:$0xf]  ;;  %v15055_v10 = vld [vmem:[#allocation2 + $0x560] sm:$0xf0] }
  0x95   :  { %2810 = vmatpush.bf16.msrb.mxu2 %v10054_v12  ;;  %v15202_v12 = vld [vmem:[#allocation2 + $0x9f8] sm:$0xf0]  ;;  %v10670_v25 = vor.u32 %v15055_v10, %v10669_v9 }
  0x96   :  { %2823 = vmatpush.bf16.msrb.mxu3 %v10278_v16  ;;  %v10557_v16 = vld [vmem:[#allocation2 + $0x468] sm:$0xf]  ;;  %v11258_v19 = vor.u32 %v15202_v12, %v11257_v11 }
  0x97   :  { %2785 = vmatpush.bf16.msrb.mxu0 %v11142_v24  ;;  %v15139_v24 = vld [vmem:[#allocation2 + $0x800] sm:$0xf0]  ;;  %v10893_v11 = vld [vmem:[#allocation2 + $0x708] sm:$0xf] }
  0x98   :  { %2798 = vmatpush.bf16.msrb.mxu1 %v11366_v27  ;;  %v10558_v27 = vor.u32 %v15027_v17, %v10557_v16  ;;  %v11006_v29 = vor.u32 %v15139_v24, %v11005_v23  ;;  %v11537_v16 = vld [vmem:[#allocation2 + $0xc10] sm:$0xf]  ;;  %v15272_v17 = vld [vmem:[#allocation2 + $0xc28] sm:$0xf0]  ;;  %v14989_v23 = vld [vmem:[#allocation2 + $0x354] sm:$0xf] }
  0x99   :  { %2811 = vmatpush.bf16.msrb.mxu2 %v10026_v28  ;;  %v10782_v28 = vor.u32 %v15083_v22, %v10781_v18  ;;  %v14933_v18 = vld [vmem:[#allocation2 + $0x194] sm:$0xf]  ;;  %v10195_v22 = vld [vmem:[#allocation2 + $0x1ac] sm:$0xf0] }
  0x9a   :  { %2824 = vmatpush.bf16.msrb.mxu3 %v10250_v32  ;;  %v10753_v32 = vld [vmem:[#allocation2 + $0x5f0] sm:$0xf] }
  0x9b   :  { %2786 = vmatpush.bf16.msrb.mxu0 %v11114_v42  ;;  %v10530_v42 = vor.u32 %v15020_v31, %v10529_v30  ;;  %v10754_v43 = vor.u32 %v15076_v34, %v10753_v32  ;;  %v10419_v24 = vld [vmem:[#allocation2 + $0x36c] sm:$0xf0]  ;;  %v11538_v30 = vor.u32 %v15272_v17, %v11537_v16  ;;  %v10198_v31 = vor.u32 %v14933_v18, %v10195_v22  ;;  %v15265_v34 = vld [vmem:[#allocation2 + $0xbf0] sm:$0xf0] }
  0x9c   :  { %2799 = vmatpush.bf16.msrb.mxu1 %v11338_v46  ;;  %v15013_v46 = vld [vmem:[#allocation2 + $0x410] sm:$0xf0]  ;;  %v10422_v32 = vor.u32 %v14989_v23, %v10419_v24  ;;  %v10307_v17 = vld [vmem:[#allocation2 + $0x28c] sm:$0xf0] }
  0x9d   :  { %2812 = vmatpush.bf16.msrb.mxu2 %v9998_v47  ;;  %v10725_v47 = vld [vmem:[#allocation2 + $0x5b8] sm:$0xf]  ;;  %v10502_v54 = vor.u32 %v15013_v46, %v10501_v45  ;;  %v10170_v46 = vor.u32 %v14926_v35, %v10167_v38  ;;  %v14961_v16 = vld [vmem:[#allocation2 + $0x274] sm:$0xf] }
  0x9e   :  { %2825 = vmatpush.bf16.msrb.mxu3 %v10222_v50  ;;  %2787 = vmatmul.bf16.vlgmr.msrb.gmra.mxu0 %v16375_v41  ;;  %v10949_v50 = vld [vmem:[#allocation2 + $0x778] sm:$0xf]  ;;  %v10726_v55 = vor.u32 %v15069_v49, %v10725_v47  ;;  %v15258_v49 = vld [vmem:[#allocation2 + $0xbb8] sm:$0xf0]  ;;  %v15017_v18 = vld [vmem:[#allocation2 + $0x434] sm:$0xf] }
  0x9f   :  { %2831 = vmatpush.bf16.msra.mxu0 %v10642_v51  ;;  %2800 = vmatmul.bf16.vlgmr.msrb.gmra.mxu1 %v16371_v37  ;;  %v15125_v51 = vld [vmem:[#allocation2 + $0x790] sm:$0xf0] }
  0xa0   :  { %2844 = vmatpush.bf16.msra.mxu1 %v10866_v52  ;;  %2813 = vmatmul.bf16.vlgmr.msrb.gmra.mxu2 %v16358_v20  ;;  %v11173_v52 = vld [vmem:[#allocation2 + $0x938] sm:$0xf]  ;;  %v10950_v56 = vor.u32 %v15125_v51, %v10949_v50  ;;  %v14919_v50 = vld [vmem:[#allocation2 + $0x124] sm:$0xf] }
  0xa1   :  { %2857 = vmatpush.bf16.msra.mxu2 %v11090_v53  ;;  %2826 = vmatmul.bf16.vlgmr.msrb.gmra.mxu3 %v16360_v21  ;;  %v15181_v53 = vld [vmem:[#allocation2 + $0x950] sm:$0xf0] }
  0xa2   :  { %2870 = vmatpush.bf16.msra.mxu3 %v11314_v57  ;;  %v10473_v57 = vld [vmem:[#allocation2 + $0x3c0] sm:$0xf]  ;;  %v11174_v60 = vor.u32 %v15181_v53, %v11173_v52  ;;  %v14975_v53 = vld [vmem:[#allocation2 + $0x2e4] sm:$0xf] }
  0xa3   :  { %2832 = vmatpush.bf16.msra.mxu0 %v10614_v63  ;;  %v15118_v63 = vld [vmem:[#allocation2 + $0x758] sm:$0xf0]  ;;  %v10474_v2 = vor.u32 %v15006_v58, %v10473_v57  ;;  %v10139_v52 = vld [vmem:[#allocation2 + $0x13c] sm:$0xf0] }
  0xa4   :  { %2845 = vmatpush.bf16.msra.mxu1 %v10838_v0  ;;  %v11145_v0 = vld [vmem:[#allocation2 + $0x900] sm:$0xf]  ;;  %v10922_v8 = vor.u32 %v15118_v63, %v10921_v62  ;;  %v10142_v58 = vor.u32 %v14919_v50, %v10139_v52  ;;  %v14912_v62 = vld [vmem:[#allocation2 + $0xec] sm:$0xf]  ;;  %v14947_v50 = vld [vmem:[#allocation2 + $0x204] sm:$0xf] }
  0xa5   :  { %2858 = vmatpush.bf16.msra.mxu2 %v11062_v1  ;;  %v15174_v1 = vld [vmem:[#allocation2 + $0x918] sm:$0xf0] }
  0xa6   :  { %2871 = vmatpush.bf16.msra.mxu3 %v11286_v7  ;;  %v10698_v7 = vor.u32 %v15062_v61, %v10697_v59  ;;  %v11146_v12 = vor.u32 %v15174_v1, %v11145_v0  ;;  %v15251_v61 = vld [vmem:[#allocation2 + $0xb80] sm:$0xf0]  ;;  %v10111_v0 = vld [vmem:[#allocation2 + $0x104] sm:$0xf0]  ;;  %v14968_v1 = vld [vmem:[#allocation2 + $0x2ac] sm:$0xf] }
  0xa7   :  { %2833 = vmatpush.bf16.msra.mxu0 %v10586_v13  ;;  %v15111_v13 = vld [vmem:[#allocation2 + $0x720] sm:$0xf0]  ;;  %v10114_v9 = vor.u32 %v14912_v62, %v10111_v0  ;;  %v14884_v62 = vld [vmem:[#allocation2 + $0xc] sm:$0xf] }
  0xa8   :  { %2846 = vmatpush.bf16.msra.mxu1 %v10810_v14  ;;  %v11117_v14 = vld [vmem:[#allocation2 + $0x8c8] sm:$0xf]  ;;  %v10894_v26 = vor.u32 %v15111_v13, %v10893_v11  ;;  %v15244_v11 = vld [vmem:[#allocation2 + $0xb48] sm:$0xf0]  ;;  %v16393_v13 = vld [vmem:[#allocation4] sm:$0xff] }
  0xa9   :  { %2859 = vmatpush.bf16.msra.mxu2 %v11034_v15  ;;  %v15167_v15 = vld [vmem:[#allocation2 + $0x8e0] sm:$0xf0]  ;;  %v568_v23 = vperm.slane %v16393_v13, 0  ;;  %v14940_v0 = vld [vmem:[#allocation2 + $0x1cc] sm:$0xf] }
  0xaa   :  { %2872 = vmatpush.bf16.msra.mxu3 %v11258_v19  ;;  %v10446_v19 = vor.u32 %v14999_v5, %v10445_v3  ;;  %v15024_v3 = vld [vmem:[#allocation2 + $0x46c] sm:$0xf]  ;;  %v10559_v5 = vld [vmem:[#allocation2 + $0x484] sm:$0xf0] }
  0xab   :  { %2834 = vmatpush.bf16.msra.mxu0 %v10558_v27  ;;  %v15045_v27 = vld [vmem:[#allocation2 + $0x514] sm:$0xf] }
  0xac   :  { %2847 = vmatpush.bf16.msra.mxu1 %v10782_v28  ;;  %v10643_v28 = vld [vmem:[#allocation2 + $0x52c] sm:$0xf0] }
  0xad   :  { %2860 = vmatpush.bf16.msra.mxu2 %v11006_v29  ;;  %v11118_v29 = vor.u32 %v15167_v15, %v11117_v14  ;;  %v10646_v36 = vor.u32 %v15045_v27, %v10643_v28  ;;  %v10562_v14 = vor.u32 %v15024_v3, %v10559_v5  ;;  %v10083_v15 = vld [vmem:[#allocation2 + $0xcc] sm:$0xf0]  ;;  %v15237_v27 = vld [vmem:[#allocation2 + $0xb10] sm:$0xf0]  ;;  %v14898_v28 = vld [vmem:[#allocation2 + $0x7c] sm:$0xf] }
  0xae   :  { %2873 = vmatpush.bf16.msra.mxu3 %v11230_v33  ;;  %v11509_v33 = vld [vmem:[#allocation2 + $0xbd8] sm:$0xf]  ;;  %v14996_v3 = vld [vmem:[#allocation2 + $0x38c] sm:$0xf]  ;;  %v10447_v5 = vld [vmem:[#allocation2 + $0x3a4] sm:$0xf0] }
  0xaf   :  { %2835 = vmatpush.bf16.msra.mxu0 %v10530_v42  ;;  %v10391_v42 = vld [vmem:[#allocation2 + $0x334] sm:$0xf0]  ;;  %v11510_v45 = vor.u32 %v15265_v34, %v11509_v33  ;;  %v15010_v33 = vld [vmem:[#allocation2 + $0x3fc] sm:$0xf] }
  0xb0   :  { %2848 = vmatpush.bf16.msra.mxu1 %v10754_v43  ;;  %v15038_v43 = vld [vmem:[#allocation2 + $0x4dc] sm:$0xf]  ;;  %v10394_v47 = vor.u32 %v14982_v39, %v10391_v42  ;;  %v10503_v34 = vld [vmem:[#allocation2 + $0x414] sm:$0xf0] }
  0xb1   :  { %2861 = vmatpush.bf16.msra.mxu2 %v10978_v44  ;;  %v10615_v44 = vld [vmem:[#allocation2 + $0x4f4] sm:$0xf0] }
  0xb2   :  { %2874 = vmatpush.bf16.msra.mxu3 %v11202_v48  ;;  %v11481_v48 = vld [vmem:[#allocation2 + $0xba0] sm:$0xf]  ;;  %v10618_v51 = vor.u32 %v15038_v43, %v10615_v44 }
  0xb3   :  { %2836 = vmatpush.bf16.msra.mxu0 %v10502_v54  ;;  %v10363_v54 = vld [vmem:[#allocation2 + $0x2fc] sm:$0xf0]  ;;  %v11482_v57 = vor.u32 %v15258_v49, %v11481_v48  ;;  %v10506_v48 = vor.u32 %v15010_v33, %v10503_v34  ;;  %v11063_v34 = vld [vmem:[#allocation2 + $0x874] sm:$0xf0] }
  0xb4   :  { %2849 = vmatpush.bf16.msra.mxu1 %v10726_v55  ;;  %v15031_v55 = vld [vmem:[#allocation2 + $0x4a4] sm:$0xf]  ;;  %v10366_v59 = vor.u32 %v14975_v53, %v10363_v54  ;;  %v11369_v44 = vld [vmem:[#allocation2 + $0xac0] sm:$0xf] }
  0xb5   :  { %2862 = vmatpush.bf16.msra.mxu2 %v10950_v56  ;;  %v10587_v56 = vld [vmem:[#allocation2 + $0x4bc] sm:$0xf0]  ;;  %v15003_v54 = vld [vmem:[#allocation2 + $0x3c4] sm:$0xf] }
  0xb6   :  { %2875 = vmatpush.bf16.msra.mxu3 %v11174_v60  ;;  %v11453_v60 = vld [vmem:[#allocation2 + $0xb68] sm:$0xf]  ;;  %v10590_v63 = vor.u32 %v15031_v55, %v10587_v56  ;;  %v10027_v49 = vld [vmem:[#allocation2 + $0x5c] sm:$0xf0] }
  0xb7   :  { %2837 = vmatpush.bf16.msra.mxu0 %v10474_v2  ;;  %v10335_v2 = vld [vmem:[#allocation2 + $0x2c4] sm:$0xf0]  ;;  %v10475_v55 = vld [vmem:[#allocation2 + $0x3dc] sm:$0xf0] }
  0xb8   :  { %2850 = vmatpush.bf16.msra.mxu1 %v10698_v7  ;;  %v11454_v7 = vor.u32 %v15251_v61, %v11453_v60  ;;  %v10338_v10 = vor.u32 %v14968_v1, %v10335_v2  ;;  %v10478_v1 = vor.u32 %v15003_v54, %v10475_v55  ;;  %v10223_v2 = vld [vmem:[#allocation2 + $0x1e4] sm:$0xf0] }
  0xb9   :  { %2863 = vmatpush.bf16.msra.mxu2 %v10922_v8  ;;  %v11425_v8 = vld [vmem:[#allocation2 + $0xb30] sm:$0xf] }
  0xba   :  { %2876 = vmatpush.bf16.msra.mxu3 %v11146_v12  ;;  %v14905_v12 = vld [vmem:[#allocation2 + $0xb4] sm:$0xf]  ;;  %v11426_v22 = vor.u32 %v15244_v11, %v11425_v8 }
  0xbb   :  { %2838 = vmatpush.bf16.msra.mxu0 %v10446_v19  ;;  %v10531_v19 = vld [vmem:[#allocation2 + $0x44c] sm:$0xf0]  ;;  %v10086_v24 = vor.u32 %v14905_v12, %v10083_v15  ;;  %v15101_v8 = vld [vmem:[#allocation2 + $0x6d4] sm:$0xf] }
  0xbc   :  { %2851 = vmatpush.bf16.msra.mxu1 %v10670_v25  ;;  %v10310_v25 = vor.u32 %v14961_v16, %v10307_v17  ;;  %v2645_v39 = vpop.f32.mrf.mxu1  ;;  %v15213_v15 = vld [vmem:[#allocation2 + $0xa54] sm:$0xf]  ;;  %v11315_v16 = vld [vmem:[#allocation2 + $0xa6c] sm:$0xf0] }
  0xbd   :  { %2864 = vmatpush.bf16.msra.mxu2 %v10894_v26  ;;  %v11397_v26 = vld [vmem:[#allocation2 + $0xaf8] sm:$0xf] }
  0xbe   :  { %2877 = vmatpush.bf16.msra.mxu3 %v11118_v29  ;;  %2839 = vmatmul.bf16.vlgmr.msra.gmra.mxu0 %v16350_v4  ;;  %v10534_v29 = vor.u32 %v15017_v18, %v10531_v19  ;;  %v10226_v19 = vor.u32 %v14940_v0, %v10223_v2  ;;  %v15248_v0 = vld [vmem:[#allocation2 + $0xb6c] sm:$0xf] }
  0xbf   :  { %2883 = vmatpush.bf16.msrb.mxu0 %v11538_v30  ;;  %2852 = vmatmul.bf16.vlgmr.msra.gmra.mxu1 %v16355_v6  ;;  %v10055_v30 = vld [vmem:[#allocation2 + $0x94] sm:$0xf0]  ;;  %v2632_v35 = vpop.f32.mrf.mxu0 }
  0xc0   :  { %2896 = vmatpush.bf16.msrb.mxu1 %v10198_v31  ;;  %2865 = vmatmul.bf16.vlgmr.msra.gmra.mxu2 %v16373_v40  ;;  %v14954_v31 = vld [vmem:[#allocation2 + $0x23c] sm:$0xf]  ;;  %v2633_v38 = vadd.f32 %v2632_v35, %v568_v23  ;;  %v10058_v42 = vor.u32 %v14898_v28, %v10055_v30  ;;  %v11539_v23 = vld [vmem:[#allocation2 + $0xc2c] sm:$0xf0] }
  0xc1   :  { %2909 = vmatpush.bf16.msrb.mxu2 %v10422_v32  ;;  %2878 = vmatmul.bf16.vlgmr.msra.gmra.mxu3 %v16375_v41  ;;  %v10279_v32 = vld [vmem:[#allocation2 + $0x254] sm:$0xf0]  ;;  %v15094_v30 = vld [vmem:[#allocation2 + $0x69c] sm:$0xf] }
  0xc2   :  { %2922 = vmatpush.bf16.msrb.mxu3 %v10646_v36  ;;  %v11398_v36 = vor.u32 %v15237_v27, %v11397_v26  ;;  %v10282_v43 = vor.u32 %v14954_v31, %v10279_v32  ;;  %v2646_v52 = vadd.f32 %v2645_v39, %v2633_v38  ;;  %v10839_v31 = vld [vmem:[#allocation2 + $0x6b4] sm:$0xf0]  ;;  %v15150_v32 = vld [vmem:[#allocation2 + $0x85c] sm:$0xf] }
  0xc3   :  { %2884 = vmatpush.bf16.msrb.mxu0 %v11510_v45  ;;  %v15230_v45 = vld [vmem:[#allocation2 + $0xad8] sm:$0xf0]  ;;  %v11511_v39 = vld [vmem:[#allocation2 + $0xbf4] sm:$0xf0] }
  0xc4   :  { %2897 = vmatpush.bf16.msrb.mxu1 %v10170_v46  ;;  %v14891_v46 = vld [vmem:[#allocation2 + $0x44] sm:$0xf]  ;;  %v2671_v53 = vpop.f32.mrf.mxu3  ;;  %v11370_v56 = vor.u32 %v15230_v45, %v11369_v44  ;;  %v2647_v17 = vpop.f32.mrf.mxu1  ;;  %v15206_v35 = vld [vmem:[#allocation2 + $0xa1c] sm:$0xf] }
  0xc5   :  { %2910 = vmatpush.bf16.msrb.mxu2 %v10394_v47  ;;  %v2658_v47 = vpop.f32.mrf.mxu2  ;;  %v10030_v60 = vor.u32 %v14891_v46, %v10027_v49  ;;  %v15262_v38 = vld [vmem:[#allocation2 + $0xbdc] sm:$0xf]  ;;  %v15087_v45 = vld [vmem:[#allocation2 + $0x664] sm:$0xf]  ;;  %v10811_v46 = vld [vmem:[#allocation2 + $0x67c] sm:$0xf0] }
  0xc6   :  { %2923 = vmatpush.bf16.msrb.mxu3 %v10618_v51  ;;  %v10251_v51 = vld [vmem:[#allocation2 + $0x21c] sm:$0xf0]  ;;  %v10814_v54 = vor.u32 %v15087_v45, %v10811_v46  ;;  %v15185_v17 = vld [vmem:[#allocation2 + $0x974] sm:$0xf]  ;;  %v15059_v45 = vld [vmem:[#allocation2 + $0x584] sm:$0xf] }
  0xc7   :  { %2885 = vmatpush.bf16.msrb.mxu0 %v11482_v57  ;;  %v11341_v57 = vld [vmem:[#allocation2 + $0xa88] sm:$0xf]  ;;  %v10254_v61 = vor.u32 %v14947_v50, %v10251_v51  ;;  %v2634_v11 = vpop.f32.mrf.mxu0  ;;  %v11035_v49 = vld [vmem:[#allocation2 + $0x83c] sm:$0xf0]  ;;  %v15199_v50 = vld [vmem:[#allocation2 + $0x9e4] sm:$0xf] }
  0xc8   :  { %2898 = vmatpush.bf16.msrb.mxu1 %v10142_v58  ;;  %v15223_v58 = vld [vmem:[#allocation2 + $0xaa0] sm:$0xf0]  ;;  %v11259_v51 = vld [vmem:[#allocation2 + $0x9fc] sm:$0xf0]  ;;  %v10755_v11 = vld [vmem:[#allocation2 + $0x60c] sm:$0xf0] }
  0xc9   :  { %2911 = vmatpush.bf16.msrb.mxu2 %v10366_v59  ;;  %v2659_v59 = vadd.f32 %v2658_v47, %v2646_v52  ;;  %v11342_v12 = vor.u32 %v15223_v58, %v11341_v57  ;;  %v15143_v47 = vld [vmem:[#allocation2 + $0x824] sm:$0xf]  ;;  %v15080_v57 = vld [vmem:[#allocation2 + $0x62c] sm:$0xf]  ;;  %v10783_v58 = vld [vmem:[#allocation2 + $0x644] sm:$0xf0] }
  0xca   :  { %2924 = vmatpush.bf16.msrb.mxu3 %v10590_v63  ;;  %v9999_v63 = vld [vmem:[#allocation2 + $0x24] sm:$0xf0]  ;;  %v15255_v52 = vld [vmem:[#allocation2 + $0xba4] sm:$0xf]  ;;  %v11038_v55 = vor.u32 %v15143_v47, %v11035_v49  ;;  %v10786_v2 = vor.u32 %v15080_v57, %v10783_v58  ;;  %v10699_v46 = vld [vmem:[#allocation2 + $0x59c] sm:$0xf0] }
  0xcb   :  { %2886 = vmatpush.bf16.msrb.mxu0 %v11454_v7  ;;  %v16396_v7 = vadd.f32 %v2671_v53, %v2659_v59  ;;  %v10002_v18 = vor.u32 %v14884_v62, %v9999_v63  ;;  %v11483_v53 = vld [vmem:[#allocation2 + $0xbbc] sm:$0xf0]  ;;  %v15136_v59 = vld [vmem:[#allocation2 + $0x7ec] sm:$0xf]  ;;  %v11231_v63 = vld [vmem:[#allocation2 + $0x9c4] sm:$0xf0] }
  0xcc   :  { %2899 = vmatpush.bf16.msrb.mxu1 %v10114_v9  ;;  %v10867_v9 = vld [vmem:[#allocation2 + $0x6ec] sm:$0xf0]  ;;  %v2673_v27 = vpop.f32.mrf.mxu3  ;;  %v15192_v62 = vld [vmem:[#allocation2 + $0x9ac] sm:$0xf]  ;;  %v15115_v47 = vld [vmem:[#allocation2 + $0x744] sm:$0xf] }
  0xcd   :  { %2912 = vmatpush.bf16.msrb.mxu2 %v10338_v10  ;;  %v15157_v10 = vld [vmem:[#allocation2 + $0x894] sm:$0xf]  ;;  %v10870_v26 = vor.u32 %v15101_v8, %v10867_v9  ;;  %v11234_v9 = vor.u32 %v15192_v62, %v11231_v63  ;;  %v15066_v27 = vld [vmem:[#allocation2 + $0x5bc] sm:$0xf]  ;;  %v10923_v49 = vld [vmem:[#allocation2 + $0x75c] sm:$0xf0] }
  0xce   :  { %2925 = vmatpush.bf16.msrb.mxu3 %v10562_v14  ;;  %v11091_v14 = vld [vmem:[#allocation2 + $0x8ac] sm:$0xf0]  ;;  %v10926_v57 = vor.u32 %v15115_v47, %v10923_v49  ;;  %v15035_v47 = vld [vmem:[#allocation2 + $0x4c0] sm:$0xf0]  ;;  %v10817_v49 = vld [vmem:[#allocation2 + $0x668] sm:$0xf] }
  0xcf   :  { %2887 = vmatpush.bf16.msrb.mxu0 %v11426_v22  ;;  %v15269_v22 = vld [vmem:[#allocation2 + $0xc14] sm:$0xf]  ;;  %v11094_v28 = vor.u32 %v15157_v10, %v11091_v14 }
  0xd0   :  { %2900 = vmatpush.bf16.msrb.mxu1 %v10086_v24  ;;  %v2660_v24 = vpop.f32.mrf.mxu2  ;;  %v11542_v33 = vor.u32 %v15269_v22, %v11539_v23  ;;  %v15073_v10 = vld [vmem:[#allocation2 + $0x5f4] sm:$0xf]  ;;  %v11427_v22 = vld [vmem:[#allocation2 + $0xb4c] sm:$0xf0] }
  0xd1   :  { %2913 = vmatpush.bf16.msrb.mxu2 %v10310_v25  ;;  %v10450_v25 = vor.u32 %v14996_v3, %v10447_v5  ;;  %v10758_v24 = vor.u32 %v15073_v10, %v10755_v11  ;;  %v14993_v10 = vld [vmem:[#allocation2 + $0x370] sm:$0xf0]  ;;  %v10649_v11 = vld [vmem:[#allocation2 + $0x518] sm:$0xf] }
  0xd2   :  { %2926 = vmatpush.bf16.msrb.mxu3 %v10534_v29  ;;  %v11318_v29 = vor.u32 %v15213_v15, %v11315_v16  ;;  %v10979_v16 = vld [vmem:[#allocation2 + $0x7cc] sm:$0xf0] }
  0xd3   :  { %2888 = vmatpush.bf16.msrb.mxu0 %v11398_v36  ;;  %v11287_v36 = vld [vmem:[#allocation2 + $0xa34] sm:$0xf0] }
  0xd4   :  { %2901 = vmatpush.bf16.msrb.mxu1 %v10058_v42  ;;  %v10842_v42 = vor.u32 %v15094_v30, %v10839_v31  ;;  %v11290_v44 = vor.u32 %v15206_v35, %v11287_v36  ;;  %v10951_v31 = vld [vmem:[#allocation2 + $0x794] sm:$0xf0]  ;;  %v15234_v35 = vld [vmem:[#allocation2 + $0xafc] sm:$0xf] }
  0xd5   :  { %2914 = vmatpush.bf16.msrb.mxu2 %v10282_v43  ;;  %v11066_v43 = vor.u32 %v15150_v32, %v11063_v34  ;;  %v15178_v32 = vld [vmem:[#allocation2 + $0x93c] sm:$0xf]  ;;  %v11399_v36 = vld [vmem:[#allocation2 + $0xb14] sm:$0xf0] }
  0xd6   :  { %2927 = vmatpush.bf16.msrb.mxu3 %v10506_v48  ;;  %v11514_v48 = vor.u32 %v15262_v38, %v11511_v39 }
  0xd7   :  { %2889 = vmatpush.bf16.msrb.mxu0 %v11370_v56  ;;  %v11262_v56 = vor.u32 %v15199_v50, %v11259_v51  ;;  %v15171_v50 = vld [vmem:[#allocation2 + $0x904] sm:$0xf]  ;;  %v11147_v51 = vld [vmem:[#allocation2 + $0x91c] sm:$0xf0] }
  0xd8   :  { %2902 = vmatpush.bf16.msrb.mxu1 %v10030_v60  ;;  %v11486_v60 = vor.u32 %v15255_v52, %v11483_v53  ;;  %v15227_v52 = vld [vmem:[#allocation2 + $0xac4] sm:$0xf]  ;;  %v11371_v53 = vld [vmem:[#allocation2 + $0xadc] sm:$0xf0]  ;;  %v11150_v58 = vor.u32 %v15171_v50, %v11147_v51 }
  0xd9   :  { %2915 = vmatpush.bf16.msrb.mxu2 %v10254_v61  ;;  %v11007_v61 = vld [vmem:[#allocation2 + $0x804] sm:$0xf0]  ;;  %v11374_v63 = vor.u32 %v15227_v52, %v11371_v53  ;;  %v15091_v50 = vld [vmem:[#allocation2 + $0x680] sm:$0xf0] }
  0xda   :  { %2928 = vmatpush.bf16.msrb.mxu3 %v10478_v1  ;;  %v11455_v1 = vld [vmem:[#allocation2 + $0xb84] sm:$0xf0]  ;;  %v11010_v8 = vor.u32 %v15136_v59, %v11007_v61  ;;  %v15108_v59 = vld [vmem:[#allocation2 + $0x70c] sm:$0xf] }
  0xdb   :  { %2890 = vmatpush.bf16.msrb.mxu0 %v11342_v12  ;;  %v2684_v3 = vpop.f32.mrf.mxu0  ;;  %v15129_v12 = vld [vmem:[#allocation2 + $0x7b4] sm:$0xf]  ;;  %v11458_v15 = vor.u32 %v15248_v0, %v11455_v1  ;;  %v15164_v61 = vld [vmem:[#allocation2 + $0x8cc] sm:$0xf]  ;;  %v11119_v0 = vld [vmem:[#allocation2 + $0x8e4] sm:$0xf0] }
  0xdc   :  { %2903 = vmatpush.bf16.msrb.mxu1 %v10002_v18  ;;  %v2697_v5 = vpop.f32.mrf.mxu1  ;;  %v2685_v14 = vadd.f32 %v2684_v3, %v16396_v7  ;;  %v11203_v18 = vld [vmem:[#allocation2 + $0x98c] sm:$0xf0]  ;;  %v15220_v1 = vld [vmem:[#allocation2 + $0xa8c] sm:$0xf]  ;;  %v10201_v3 = vld [vmem:[#allocation2 + $0x198] sm:$0xf] }
  0xdd   :  { %2916 = vmatpush.bf16.msrb.mxu2 %v10226_v19  ;;  %v15241_v19 = vld [vmem:[#allocation2 + $0xb34] sm:$0xf] }
  0xde   :  { %2929 = vmatpush.bf16.msrb.mxu3 %v10450_v25  ;;  %2891 = vmatmul.bf16.vlgmr.msrb.gmra.mxu0 %v16371_v37  ;;  %v2698_v23 = vadd.f32 %v2697_v5, %v2685_v14  ;;  %v10982_v25 = vor.u32 %v15129_v12, %v10979_v16  ;;  %v11430_v7 = vor.u32 %v15241_v19, %v11427_v22  ;;  %v14937_v5 = vld [vmem:[#allocation2 + $0x1b0] sm:$0xf0] }
  0xdf   :  { %2935 = vmatpush.bf16.msra.mxu0 %v10870_v26  ;;  %2904 = vmatmul.bf16.vlgmr.msrb.gmra.mxu1 %v16358_v20  ;;  %v11206_v26 = vor.u32 %v15185_v17, %v11203_v18  ;;  %v15049_v12 = vld [vmem:[#allocation2 + $0x530] sm:$0xf0]  ;;  %v11122_v16 = vor.u32 %v15164_v61, %v11119_v0  ;;  %v10873_v17 = vld [vmem:[#allocation2 + $0x6d8] sm:$0xf]  ;;  %v10202_v22 = vor.u32 %v14937_v5, %v10201_v3  ;;  %v15028_v61 = vld [vmem:[#allocation2 + $0x488] sm:$0xf0] }
  0xe0   :  { %2948 = vmatpush.bf16.msra.mxu1 %v11094_v28  ;;  %2917 = vmatmul.bf16.vlgmr.msrb.gmra.mxu2 %v16360_v21  ;;  %v10727_v28 = vld [vmem:[#allocation2 + $0x5d4] sm:$0xf0]  ;;  %v15105_v18 = vld [vmem:[#allocation2 + $0x6f0] sm:$0xf0] }
  0xe1   :  { %2961 = vmatpush.bf16.msra.mxu2 %v11318_v29  ;;  %2930 = vmatmul.bf16.vlgmr.msrb.gmra.mxu3 %v16350_v4  ;;  %v15122_v29 = vld [vmem:[#allocation2 + $0x77c] sm:$0xf]  ;;  %v10730_v38 = vor.u32 %v15066_v27, %v10727_v28  ;;  %v10397_v27 = vld [vmem:[#allocation2 + $0x320] sm:$0xf]  ;;  %v10874_v28 = vor.u32 %v15105_v18, %v10873_v17  ;;  %v10761_v18 = vld [vmem:[#allocation2 + $0x5f8] sm:$0xf] }
  0xe2   :  { %2974 = vmatpush.bf16.msra.mxu3 %v11542_v33  ;;  %v11175_v33 = vld [vmem:[#allocation2 + $0x954] sm:$0xf0] }
  0xe3   :  { %2936 = vmatpush.bf16.msra.mxu0 %v10842_v42  ;;  %v2710_v30 = vpop.f32.mrf.mxu2  ;;  %v2686_v39 = vpop.f32.mrf.mxu0 }
  0xe4   :  { %2949 = vmatpush.bf16.msra.mxu1 %v11066_v43  ;;  %v16403_v34 = vadd.f32 %v2710_v30, %v2698_v23  ;;  %v2699_v42 = vpop.f32.mrf.mxu1  ;;  %v10954_v43 = vor.u32 %v15122_v29, %v10951_v31  ;;  %v2723_v14 = vpop.f32.mrf.mxu3  ;;  %v14986_v29 = vld [vmem:[#allocation2 + $0x338] sm:$0xf0]  ;;  %v10621_v30 = vld [vmem:[#allocation2 + $0x4e0] sm:$0xf]  ;;  %v10145_v39 = vld [vmem:[#allocation2 + $0x128] sm:$0xf] }
  0xe5   :  { %2962 = vmatpush.bf16.msra.mxu2 %v11290_v44  ;;  %v11178_v44 = vor.u32 %v15178_v32, %v11175_v33  ;;  %v10845_v31 = vld [vmem:[#allocation2 + $0x6a0] sm:$0xf]  ;;  %v15098_v32 = vld [vmem:[#allocation2 + $0x6b8] sm:$0xf0]  ;;  %v14923_v42 = vld [vmem:[#allocation2 + $0x140] sm:$0xf0] }
  0xe6   :  { %2975 = vmatpush.bf16.msra.mxu3 %v11514_v48  ;;  %v11402_v48 = vor.u32 %v15234_v35, %v11399_v36  ;;  %v569_v35 = vperm.slane %v16393_v13, 1  ;;  %v10398_v36 = vor.u32 %v14986_v29, %v10397_v27  ;;  %v10146_v51 = vor.u32 %v14923_v42, %v10145_v39  ;;  %v10285_v27 = vld [vmem:[#allocation2 + $0x240] sm:$0xf]  ;;  %v14958_v29 = vld [vmem:[#allocation2 + $0x258] sm:$0xf0] }
  0xe7   :  { %2937 = vmatpush.bf16.msra.mxu0 %v10814_v54  ;;  %v10702_v54 = vor.u32 %v15059_v45, %v10699_v46  ;;  %v14979_v45 = vld [vmem:[#allocation2 + $0x300] sm:$0xf0]  ;;  %v10593_v46 = vld [vmem:[#allocation2 + $0x4a8] sm:$0xf] }
  0xe8   :  { %2950 = vmatpush.bf16.msra.mxu1 %v11038_v55  ;;  %v15052_v55 = vld [vmem:[#allocation2 + $0x54c] sm:$0xf]  ;;  %v2724_v52 = vadd.f32 %v2723_v14, %v569_v35  ;;  %v14965_v14 = vld [vmem:[#allocation2 + $0x290] sm:$0xf0] }
  0xe9   :  { %2963 = vmatpush.bf16.msra.mxu2 %v11262_v56  ;;  %v10671_v56 = vld [vmem:[#allocation2 + $0x564] sm:$0xf0] }
  0xea   :  { %2976 = vmatpush.bf16.msra.mxu3 %v11486_v60  ;;  %v10895_v60 = vld [vmem:[#allocation2 + $0x724] sm:$0xf0] }
  0xeb   :  { %2938 = vmatpush.bf16.msra.mxu0 %v10786_v2  ;;  %v2712_v62 = vpop.f32.mrf.mxu2  ;;  %v11343_v2 = vld [vmem:[#allocation2 + $0xaa4] sm:$0xf0] }
  0xec   :  { %2951 = vmatpush.bf16.msra.mxu1 %v11010_v8  ;;  %v10425_v8 = vld [vmem:[#allocation2 + $0x358] sm:$0xf]  ;;  %v11346_v19 = vor.u32 %v15220_v1, %v11343_v2  ;;  %v10789_v62 = vld [vmem:[#allocation2 + $0x630] sm:$0xf] }
  0xed   :  { %2964 = vmatpush.bf16.msra.mxu2 %v11234_v9  ;;  %v10674_v9 = vor.u32 %v15052_v55, %v10671_v56  ;;  %v10426_v23 = vor.u32 %v14993_v10, %v10425_v8  ;;  %v10117_v55 = vld [vmem:[#allocation2 + $0xf0] sm:$0xf]  ;;  %v14916_v56 = vld [vmem:[#allocation2 + $0x108] sm:$0xf0]  ;;  %v14909_v10 = vld [vmem:[#allocation2 + $0xd0] sm:$0xf0] }
  0xee   :  { %2977 = vmatpush.bf16.msra.mxu3 %v11458_v15  ;;  %v10898_v15 = vor.u32 %v15108_v59, %v10895_v60  ;;  %v14972_v59 = vld [vmem:[#allocation2 + $0x2c8] sm:$0xf0]  ;;  %v10565_v60 = vld [vmem:[#allocation2 + $0x470] sm:$0xf]  ;;  %v10118_v1 = vor.u32 %v14916_v56, %v10117_v55 }
  0xef   :  { %2939 = vmatpush.bf16.msra.mxu0 %v10758_v24  ;;  %v10650_v24 = vor.u32 %v15049_v12, %v10649_v11  ;;  %v10566_v8 = vor.u32 %v15028_v61, %v10565_v60  ;;  %v10313_v11 = vld [vmem:[#allocation2 + $0x278] sm:$0xf]  ;;  %v10005_v56 = vld [vmem:[#allocation2 + $0x10] sm:$0xf]  ;;  %v14944_v61 = vld [vmem:[#allocation2 + $0x1e8] sm:$0xf0] }
  0xf0   :  { %2952 = vmatpush.bf16.msra.mxu1 %v10982_v25  ;;  %v10173_v25 = vld [vmem:[#allocation2 + $0x160] sm:$0xf]  ;;  %v10229_v60 = vld [vmem:[#allocation2 + $0x1d0] sm:$0xf] }
  0xf1   :  { %2965 = vmatpush.bf16.msra.mxu2 %v11206_v26  ;;  %v14930_v26 = vld [vmem:[#allocation2 + $0x178] sm:$0xf0] }
  0xf2   :  { %2978 = vmatpush.bf16.msra.mxu3 %v11430_v7  ;;  %v15042_v7 = vld [vmem:[#allocation2 + $0x4f8] sm:$0xf0]  ;;  %v10174_v33 = vor.u32 %v14930_v26, %v10173_v25  ;;  %v10061_v25 = vld [vmem:[#allocation2 + $0x80] sm:$0xf] }
  0xf3   :  { %2940 = vmatpush.bf16.msra.mxu0 %v10730_v38  ;;  %v10622_v38 = vor.u32 %v15042_v7, %v10621_v30  ;;  %v14902_v26 = vld [vmem:[#allocation2 + $0x98] sm:$0xf0]  ;;  %v10509_v30 = vld [vmem:[#allocation2 + $0x400] sm:$0xf] }
  0xf4   :  { %2953 = vmatpush.bf16.msra.mxu1 %v10954_v43  ;;  %v10369_v43 = vld [vmem:[#allocation2 + $0x2e8] sm:$0xf]  ;;  %v15014_v7 = vld [vmem:[#allocation2 + $0x418] sm:$0xf0]  ;;  %v10062_v39 = vor.u32 %v14902_v26, %v10061_v25  ;;  %v11069_v26 = vld [vmem:[#allocation2 + $0x860] sm:$0xf] }
  0xf5   :  { %2966 = vmatpush.bf16.msra.mxu2 %v11178_v44  ;;  %v10846_v44 = vor.u32 %v15098_v32, %v10845_v31  ;;  %v10370_v53 = vor.u32 %v14979_v45, %v10369_v43  ;;  %v10733_v32 = vld [vmem:[#allocation2 + $0x5c0] sm:$0xf]  ;;  %v10286_v43 = vor.u32 %v14958_v29, %v10285_v27  ;;  %v10033_v45 = vld [vmem:[#allocation2 + $0x48] sm:$0xf]  ;;  %v15154_v27 = vld [vmem:[#allocation2 + $0x878] sm:$0xf0] }
  0xf6   :  { %2979 = vmatpush.bf16.msra.mxu3 %v11402_v48  ;;  %v2725_v48 = vpop.f32.mrf.mxu3 }
  0xf7   :  { %2941 = vmatpush.bf16.msra.mxu0 %v10702_v54  ;;  %v10594_v54 = vor.u32 %v15035_v47, %v10593_v46  ;;  %v14895_v46 = vld [vmem:[#allocation2 + $0x60] sm:$0xf0]  ;;  %v10257_v47 = vld [vmem:[#allocation2 + $0x208] sm:$0xf] }
  0xf8   :  { %2954 = vmatpush.bf16.msra.mxu1 %v10926_v57  ;;  %v10341_v57 = vld [vmem:[#allocation2 + $0x2b0] sm:$0xf]  ;;  %v10034_v55 = vor.u32 %v14895_v46, %v10033_v45  ;;  %v15203_v45 = vld [vmem:[#allocation2 + $0xa00] sm:$0xf0]  ;;  %v11489_v46 = vld [vmem:[#allocation2 + $0xba8] sm:$0xf] }
  0xf9   :  { %2967 = vmatpush.bf16.msra.mxu2 %v11150_v58  ;;  %v10818_v58 = vor.u32 %v15091_v50, %v10817_v49  ;;  %v10342_v5 = vor.u32 %v14972_v59, %v10341_v57  ;;  %v14951_v50 = vld [vmem:[#allocation2 + $0x220] sm:$0xf0]  ;;  %v14888_v57 = vld [vmem:[#allocation2 + $0x28] sm:$0xf0] }
  0xfa   :  { %2980 = vmatpush.bf16.msra.mxu3 %v11374_v63  ;;  %v15084_v63 = vld [vmem:[#allocation2 + $0x648] sm:$0xf0] }
  0xfb   :  { %2942 = vmatpush.bf16.msra.mxu0 %v10674_v9  ;;  %v2736_v0 = vpop.f32.mrf.mxu0  ;;  %v10089_v9 = vld [vmem:[#allocation2 + $0xb8] sm:$0xf]  ;;  %v10790_v12 = vor.u32 %v15084_v63, %v10789_v62  ;;  %v10453_v62 = vld [vmem:[#allocation2 + $0x390] sm:$0xf] }
  0xfc   :  { %2955 = vmatpush.bf16.msra.mxu1 %v10898_v15  ;;  %v2737_v2 = vadd.f32 %v2736_v0, %v2724_v52  ;;  %v2749_v3 = vpop.f32.mrf.mxu1  ;;  %v10537_v15 = vld [vmem:[#allocation2 + $0x438] sm:$0xf]  ;;  %v15007_v52 = vld [vmem:[#allocation2 + $0x3e0] sm:$0xf0]  ;;  %v15000_v0 = vld [vmem:[#allocation2 + $0x3a8] sm:$0xf0] }
  0xfd   :  { %2968 = vmatpush.bf16.msra.mxu2 %v11122_v16  ;;  %v15021_v16 = vld [vmem:[#allocation2 + $0x450] sm:$0xf0] }
  0xfe   :  { %2981 = vmatpush.bf16.msra.mxu3 %v11346_v19  ;;  %2943 = vmatmul.bf16.vlgmr.msra.gmra.mxu0 %v16355_v6  ;;  %v2750_v17 = vadd.f32 %v2749_v3, %v2737_v2  ;;  %v15077_v19 = vld [vmem:[#allocation2 + $0x610] sm:$0xf0]  ;;  %v15056_v2 = vld [vmem:[#allocation2 + $0x568] sm:$0xf0] }
  0xff   :  { %2987 = vmatpush.bf16.msrb.mxu0 %v10202_v22  ;;  %2956 = vmatmul.bf16.vlgmr.msra.gmra.mxu1 %v16373_v40  ;;  %v10090_v22 = vor.u32 %v14909_v10, %v10089_v9  ;;  %v11321_v9 = vld [vmem:[#allocation2 + $0xa58] sm:$0xf] }
 0x100   :  { %3000 = vmatpush.bf16.msrb.mxu1 %v10426_v23  ;;  %2969 = vmatmul.bf16.vlgmr.msra.gmra.mxu2 %v16375_v41  ;;  %v10314_v23 = vor.u32 %v14965_v14, %v10313_v11  ;;  %v10006_v11 = vor.u32 %v14888_v57, %v10005_v56  ;;  %v11545_v14 = vld [vmem:[#allocation2 + $0xc18] sm:$0xf]  ;;  %v11237_v56 = vld [vmem:[#allocation2 + $0x9b0] sm:$0xf] }
 0x101   :  { %3013 = vmatpush.bf16.msrb.mxu2 %v10650_v24  ;;  %2982 = vmatmul.bf16.vlgmr.msra.gmra.mxu3 %v16371_v37  ;;  %v10538_v24 = vor.u32 %v15021_v16, %v10537_v15  ;;  %v15273_v15 = vld [vmem:[#allocation2 + $0xc30] sm:$0xf0]  ;;  %v10230_v16 = vor.u32 %v14944_v61, %v10229_v60  ;;  %v15252_v60 = vld [vmem:[#allocation2 + $0xb88] sm:$0xf0] }
 0x102   :  { %3026 = vmatpush.bf16.msrb.mxu3 %v10874_v28  ;;  %v10762_v28 = vor.u32 %v15077_v19, %v10761_v18  ;;  %v14934_v18 = vld [vmem:[#allocation2 + $0x19c] sm:$0xf]  ;;  %v10203_v19 = vld [vmem:[#allocation2 + $0x1b4] sm:$0xf0]  ;;  %v11546_v25 = vor.u32 %v15273_v15, %v11545_v14  ;;  %v14913_v61 = vld [vmem:[#allocation2 + $0xf4] sm:$0xf] }
 0x103   :  { %2988 = vmatpush.bf16.msrb.mxu0 %v10174_v33  ;;  %v2762_v31 = vpop.f32.mrf.mxu2  ;;  %v15070_v33 = vld [vmem:[#allocation2 + $0x5d8] sm:$0xf0]  ;;  %v2738_v35 = vpop.f32.mrf.mxu0  ;;  %v10206_v29 = vor.u32 %v14934_v18, %v10203_v19  ;;  %v11433_v14 = vld [vmem:[#allocation2 + $0xb38] sm:$0xf]  ;;  %v15245_v15 = vld [vmem:[#allocation2 + $0xb50] sm:$0xf0] }
 0x104   :  { %3001 = vmatpush.bf16.msrb.mxu1 %v10398_v36  ;;  %v2763_v36 = vadd.f32 %v2762_v31, %v2750_v17  ;;  %v2751_v42 = vpop.f32.mrf.mxu1  ;;  %v10734_v49 = vor.u32 %v15070_v33, %v10733_v32  ;;  %v10454_v17 = vor.u32 %v15000_v0, %v10453_v62  ;;  %v15266_v31 = vld [vmem:[#allocation2 + $0xbf8] sm:$0xf0]  ;;  %v14927_v32 = vld [vmem:[#allocation2 + $0x164] sm:$0xf]  ;;  %v10175_v33 = vld [vmem:[#allocation2 + $0x17c] sm:$0xf0]  ;;  %v11070_v35 = vor.u32 %v15154_v27, %v11069_v26 }
 0x105   :  { %3014 = vmatpush.bf16.msrb.mxu2 %v10622_v38  ;;  %v2775_v38 = vpop.f32.mrf.mxu3  ;;  %v15147_v42 = vld [vmem:[#allocation2 + $0x840] sm:$0xf0]  ;;  %v10119_v62 = vld [vmem:[#allocation2 + $0x10c] sm:$0xf0]  ;;  %v10091_v18 = vld [vmem:[#allocation2 + $0xd4] sm:$0xf0] }
 0x106   :  { %3027 = vmatpush.bf16.msrb.mxu3 %v10846_v44  ;;  %v10510_v44 = vor.u32 %v15014_v7, %v10509_v30  ;;  %v16410_v48 = vadd.f32 %v2775_v38, %v2763_v36  ;;  %v15210_v30 = vld [vmem:[#allocation2 + $0xa38] sm:$0xf0]  ;;  %v11517_v7 = vld [vmem:[#allocation2 + $0xbe0] sm:$0xf] }
 0x107   :  { %2989 = vmatpush.bf16.msrb.mxu0 %v10146_v51  ;;  %v10481_v51 = vld [vmem:[#allocation2 + $0x3c8] sm:$0xf]  ;;  %v11518_v38 = vor.u32 %v15266_v31, %v11517_v7  ;;  %v15182_v27 = vld [vmem:[#allocation2 + $0x958] sm:$0xf0]  ;;  %v10063_v7 = vld [vmem:[#allocation2 + $0x9c] sm:$0xf0] }
 0x108   :  { %3002 = vmatpush.bf16.msrb.mxu1 %v10370_v53  ;;  %v10705_v53 = vld [vmem:[#allocation2 + $0x588] sm:$0xf]  ;;  %v10482_v59 = vor.u32 %v15007_v52, %v10481_v51 }
 0x109   :  { %3015 = vmatpush.bf16.msrb.mxu2 %v10594_v54  ;;  %v15063_v54 = vld [vmem:[#allocation2 + $0x5a0] sm:$0xf0] }
 0x10a   :  { %3028 = vmatpush.bf16.msrb.mxu3 %v10818_v58  ;;  %v10258_v58 = vor.u32 %v14951_v50, %v10257_v47  ;;  %v10706_v63 = vor.u32 %v15063_v54, %v10705_v53  ;;  %v15259_v47 = vld [vmem:[#allocation2 + $0xbc0] sm:$0xf0]  ;;  %v10147_v50 = vld [vmem:[#allocation2 + $0x144] sm:$0xf0]  ;;  %v11013_v54 = vld [vmem:[#allocation2 + $0x7f0] sm:$0xf] }
 0x10b   :  { %2990 = vmatpush.bf16.msrb.mxu0 %v10118_v1  ;;  %v10677_v1 = vld [vmem:[#allocation2 + $0x550] sm:$0xf]  ;;  %v2764_v3 = vpop.f32.mrf.mxu2  ;;  %v11490_v53 = vor.u32 %v15259_v47, %v11489_v46  ;;  %v15231_v46 = vld [vmem:[#allocation2 + $0xae0] sm:$0xf0]  ;;  %v14892_v47 = vld [vmem:[#allocation2 + $0x4c] sm:$0xf] }
 0x10c   :  { %3003 = vmatpush.bf16.msrb.mxu1 %v10342_v5  ;;  %v11097_v5 = vld [vmem:[#allocation2 + $0x898] sm:$0xf] }
 0x10d   :  { %3016 = vmatpush.bf16.msrb.mxu2 %v10566_v8  ;;  %v15161_v8 = vld [vmem:[#allocation2 + $0x8b0] sm:$0xf0]  ;;  %v2777_v10 = vpop.f32.mrf.mxu3 }
 0x10e   :  { %3029 = vmatpush.bf16.msrb.mxu3 %v10790_v12  ;;  %v15217_v12 = vld [vmem:[#allocation2 + $0xa70] sm:$0xf0]  ;;  %v11209_v10 = vld [vmem:[#allocation2 + $0x978] sm:$0xf] }
 0x10f   :  { %2991 = vmatpush.bf16.msrb.mxu0 %v10090_v22  ;;  %v10678_v22 = vor.u32 %v15056_v2, %v10677_v1 }
 0x110   :  { %3004 = vmatpush.bf16.msrb.mxu1 %v10314_v23  ;;  %v11098_v23 = vor.u32 %v15161_v8, %v11097_v5  ;;  %v10985_v8 = vld [vmem:[#allocation2 + $0x7b8] sm:$0xf] }
 0x111   :  { %3017 = vmatpush.bf16.msrb.mxu2 %v10538_v24  ;;  %v11322_v24 = vor.u32 %v15217_v12, %v11321_v9  ;;  %v15133_v9 = vld [vmem:[#allocation2 + $0x7d0] sm:$0xf0] }
 0x112   :  { %3030 = vmatpush.bf16.msrb.mxu3 %v10762_v28  ;;  %v11293_v28 = vld [vmem:[#allocation2 + $0xa20] sm:$0xf]  ;;  %v15189_v12 = vld [vmem:[#allocation2 + $0x990] sm:$0xf0]  ;;  %v10986_v19 = vor.u32 %v15133_v9, %v10985_v8  ;;  %v570_v8 = vperm.slane %v16393_v13, 2 }
 0x113   :  { %2992 = vmatpush.bf16.msrb.mxu0 %v10062_v39  ;;  %v11294_v36 = vor.u32 %v15210_v30, %v11293_v28  ;;  %v11041_v39 = vld [vmem:[#allocation2 + $0x828] sm:$0xf]  ;;  %v11405_v28 = vld [vmem:[#allocation2 + $0xb00] sm:$0xf]  ;;  %v14899_v30 = vld [vmem:[#allocation2 + $0x84] sm:$0xf] }
 0x114   :  { %3005 = vmatpush.bf16.msrb.mxu1 %v10286_v43  ;;  %v11265_v43 = vld [vmem:[#allocation2 + $0x9e8] sm:$0xf]  ;;  %v11042_v51 = vor.u32 %v15147_v42, %v11041_v39  ;;  %v15119_v39 = vld [vmem:[#allocation2 + $0x760] sm:$0xf0]  ;;  %v10623_v13 = vld [vmem:[#allocation2 + $0x4fc] sm:$0xf0] }
 0x115   :  { %3018 = vmatpush.bf16.msrb.mxu2 %v10510_v44  ;;  %v10178_v44 = vor.u32 %v14927_v32, %v10175_v33  ;;  %v11266_v52 = vor.u32 %v15203_v45, %v11265_v43  ;;  %v11153_v42 = vld [vmem:[#allocation2 + $0x908] sm:$0xf]  ;;  %v10066_v43 = vor.u32 %v14899_v30, %v10063_v7  ;;  %v15151_v30 = vld [vmem:[#allocation2 + $0x864] sm:$0xf]  ;;  %v11071_v7 = vld [vmem:[#allocation2 + $0x87c] sm:$0xf0] }
 0x116   :  { %3031 = vmatpush.bf16.msrb.mxu3 %v10734_v49  ;;  %v14920_v49 = vld [vmem:[#allocation2 + $0x12c] sm:$0xf]  ;;  %v11377_v45 = vld [vmem:[#allocation2 + $0xac8] sm:$0xf] }
 0x117   :  { %2993 = vmatpush.bf16.msrb.mxu0 %v10034_v55  ;;  %v15140_v55 = vld [vmem:[#allocation2 + $0x808] sm:$0xf0]  ;;  %v10150_v57 = vor.u32 %v14920_v49, %v10147_v50  ;;  %v10035_v49 = vld [vmem:[#allocation2 + $0x64] sm:$0xf0] }
 0x118   :  { %3006 = vmatpush.bf16.msrb.mxu1 %v10258_v58  ;;  %v15196_v58 = vld [vmem:[#allocation2 + $0x9c8] sm:$0xf0]  ;;  %v11014_v0 = vor.u32 %v15140_v55, %v11013_v54  ;;  %v11378_v55 = vor.u32 %v15231_v46, %v11377_v45 }
 0x119   :  { %3019 = vmatpush.bf16.msrb.mxu2 %v10482_v59  ;;  %v11461_v59 = vld [vmem:[#allocation2 + $0xb70] sm:$0xf]  ;;  %v11238_v3 = vor.u32 %v15196_v58, %v11237_v56  ;;  %v15168_v56 = vld [vmem:[#allocation2 + $0x8e8] sm:$0xf0] }
 0x11a   :  { %3032 = vmatpush.bf16.msrb.mxu3 %v10706_v63  ;;  %v11462_v5 = vor.u32 %v15252_v60, %v11461_v59  ;;  %v15224_v58 = vld [vmem:[#allocation2 + $0xaa8] sm:$0xf0]  ;;  %v10038_v59 = vor.u32 %v14892_v47, %v10035_v49  ;;  %v14885_v60 = vld [vmem:[#allocation2 + $0x14] sm:$0xf]  ;;  %v11043_v49 = vld [vmem:[#allocation2 + $0x844] sm:$0xf0] }
 0x11b   :  { %2994 = vmatpush.bf16.msrb.mxu0 %v10006_v11  ;;  %v2788_v63 = vpop.f32.mrf.mxu0  ;;  %v10122_v11 = vor.u32 %v14913_v61, %v10119_v62  ;;  %v10007_v61 = vld [vmem:[#allocation2 + $0x2c] sm:$0xf0]  ;;  %v14990_v62 = vld [vmem:[#allocation2 + $0x35c] sm:$0xf]  ;;  %v15144_v47 = vld [vmem:[#allocation2 + $0x82c] sm:$0xf] }
 0x11c   :  { %3007 = vmatpush.bf16.msrb.mxu1 %v10230_v16  ;;  %v2789_v1 = vadd.f32 %v2788_v63, %v16410_v48  ;;  %v2801_v2 = vpop.f32.mrf.mxu1  ;;  %v11210_v48 = vor.u32 %v15189_v12, %v11209_v10  ;;  %v10427_v63 = vld [vmem:[#allocation2 + $0x374] sm:$0xf0] }
 0x11d   :  { %3020 = vmatpush.bf16.msrb.mxu2 %v10454_v17  ;;  %v14906_v17 = vld [vmem:[#allocation2 + $0xbc] sm:$0xf] }
 0x11e   :  { %3033 = vmatpush.bf16.msrb.mxu3 %v10678_v22  ;;  %2995 = vmatmul.bf16.vlgmr.msrb.gmra.mxu0 %v16358_v20  ;;  %v16417_v16 = vadd.f32 %v2801_v2, %v2789_v1  ;;  %v11434_v22 = vor.u32 %v15245_v15, %v11433_v14  ;;  %v10094_v26 = vor.u32 %v14906_v17, %v10091_v18  ;;  %v10651_v1 = vld [vmem:[#allocation2 + $0x534] sm:$0xf0]  ;;  %v15158_v14 = vld [vmem:[#allocation2 + $0x89c] sm:$0xf] }
 0x11f   :  { %3039 = vmatpush.bf16.msra.mxu0 %v11098_v23  ;;  %3008 = vmatmul.bf16.vlgmr.msrb.gmra.mxu1 %v16360_v21  ;;  %v10957_v23 = vld [vmem:[#allocation2 + $0x780] sm:$0xf]  ;;  %v11099_v15 = vld [vmem:[#allocation2 + $0x8b4] sm:$0xf0]  ;;  %v10010_v17 = vor.u32 %v14885_v60, %v10007_v61  ;;  %v10430_v18 = vor.u32 %v14990_v62, %v10427_v63  ;;  %v15137_v60 = vld [vmem:[#allocation2 + $0x7f4] sm:$0xf] }
 0x120   :  { %3052 = vmatpush.bf16.msra.mxu1 %v11322_v24  ;;  %3021 = vmatmul.bf16.vlgmr.msrb.gmra.mxu2 %v16350_v4  ;;  %v15126_v24 = vld [vmem:[#allocation2 + $0x798] sm:$0xf0]  ;;  %v11015_v61 = vld [vmem:[#allocation2 + $0x80c] sm:$0xf0] }
 0x121   :  { %3065 = vmatpush.bf16.msra.mxu2 %v11546_v25  ;;  %3034 = vmatmul.bf16.vlgmr.msrb.gmra.mxu3 %v16355_v6  ;;  %v11181_v25 = vld [vmem:[#allocation2 + $0x940] sm:$0xf]  ;;  %v10958_v32 = vor.u32 %v15126_v24, %v10957_v23  ;;  %v14983_v23 = vld [vmem:[#allocation2 + $0x324] sm:$0xf] }
 0x122   :  { %3078 = vmatpush.bf16.msra.mxu3 %v10206_v29  ;;  %v15238_v29 = vld [vmem:[#allocation2 + $0xb18] sm:$0xf0]  ;;  %v10399_v24 = vld [vmem:[#allocation2 + $0x33c] sm:$0xf0] }
 0x123   :  { %3040 = vmatpush.bf16.msra.mxu0 %v11070_v35  ;;  %v2790_v31 = vpop.f32.mrf.mxu0  ;;  %v11182_v35 = vor.u32 %v15182_v27, %v11181_v25  ;;  %v2814_v9 = vpop.f32.mrf.mxu2  ;;  %v15039_v25 = vld [vmem:[#allocation2 + $0x4e4] sm:$0xf] }
 0x124   :  { %3053 = vmatpush.bf16.msra.mxu1 %v11294_v36  ;;  %v2803_v33 = vpop.f32.mrf.mxu1  ;;  %v11406_v36 = vor.u32 %v15238_v29, %v11405_v28  ;;  %v2827_v10 = vpop.f32.mrf.mxu3  ;;  %v15095_v27 = vld [vmem:[#allocation2 + $0x6a4] sm:$0xf]  ;;  %v10847_v28 = vld [vmem:[#allocation2 + $0x6bc] sm:$0xf0]  ;;  %v10402_v31 = vor.u32 %v14983_v23, %v10399_v24 }
 0x125   :  { %3066 = vmatpush.bf16.msra.mxu2 %v11518_v38  ;;  %v10929_v38 = vld [vmem:[#allocation2 + $0x748] sm:$0xf]  ;;  %v10850_v33 = vor.u32 %v15095_v27, %v10847_v28  ;;  %v14955_v23 = vld [vmem:[#allocation2 + $0x244] sm:$0xf]  ;;  %v10287_v24 = vld [vmem:[#allocation2 + $0x25c] sm:$0xf0] }
 0x126   :  { %3079 = vmatpush.bf16.msra.mxu3 %v10178_v44  ;;  %v15175_v44 = vld [vmem:[#allocation2 + $0x920] sm:$0xf0]  ;;  %v10930_v50 = vor.u32 %v15119_v39, %v10929_v38  ;;  %v15032_v38 = vld [vmem:[#allocation2 + $0x4ac] sm:$0xf]  ;;  %v11074_v39 = vor.u32 %v15151_v30, %v11071_v7  ;;  %v10735_v28 = vld [vmem:[#allocation2 + $0x5dc] sm:$0xf0] }
 0x127   :  { %3041 = vmatpush.bf16.msra.mxu0 %v11042_v51  ;;  %v10901_v51 = vld [vmem:[#allocation2 + $0x710] sm:$0xf]  ;;  %v11154_v54 = vor.u32 %v15175_v44, %v11153_v42  ;;  %v10595_v42 = vld [vmem:[#allocation2 + $0x4c4] sm:$0xf0]  ;;  %v15067_v27 = vld [vmem:[#allocation2 + $0x5c4] sm:$0xf] }
 0x128   :  { %3054 = vmatpush.bf16.msra.mxu1 %v11266_v52  ;;  %v15112_v52 = vld [vmem:[#allocation2 + $0x728] sm:$0xf0]  ;;  %v10819_v44 = vld [vmem:[#allocation2 + $0x684] sm:$0xf0]  ;;  %v15123_v30 = vld [vmem:[#allocation2 + $0x784] sm:$0xf] }
 0x129   :  { %3067 = vmatpush.bf16.msra.mxu2 %v11490_v53  ;;  %v11125_v53 = vld [vmem:[#allocation2 + $0x8d0] sm:$0xf]  ;;  %v10902_v2 = vor.u32 %v15112_v52, %v10901_v51  ;;  %v10598_v51 = vor.u32 %v15032_v38, %v10595_v42  ;;  %v10959_v7 = vld [vmem:[#allocation2 + $0x79c] sm:$0xf0]  ;;  %v14948_v42 = vld [vmem:[#allocation2 + $0x20c] sm:$0xf] }
 0x12a   :  { %3080 = vmatpush.bf16.msra.mxu3 %v10150_v57  ;;  %v11349_v57 = vld [vmem:[#allocation2 + $0xa90] sm:$0xf] }
 0x12b   :  { %3042 = vmatpush.bf16.msra.mxu0 %v11014_v0  ;;  %v15046_v0 = vld [vmem:[#allocation2 + $0x51c] sm:$0xf]  ;;  %v11350_v12 = vor.u32 %v15224_v58, %v11349_v57  ;;  %v2816_v45 = vpop.f32.mrf.mxu2  ;;  %v10567_v57 = vld [vmem:[#allocation2 + $0x48c] sm:$0xf0]  ;;  %v15081_v58 = vld [vmem:[#allocation2 + $0x634] sm:$0xf] }
 0x12c   :  { %3055 = vmatpush.bf16.msra.mxu1 %v11238_v3  ;;  %v15102_v3 = vld [vmem:[#allocation2 + $0x6dc] sm:$0xf]  ;;  %v2829_v46 = vpop.f32.mrf.mxu3 }
 0x12d   :  { %3068 = vmatpush.bf16.msra.mxu2 %v11462_v5  ;;  %v10875_v5 = vld [vmem:[#allocation2 + $0x6f4] sm:$0xf0]  ;;  %v10962_v46 = vor.u32 %v15123_v30, %v10959_v7  ;;  %v10405_v30 = vld [vmem:[#allocation2 + $0x328] sm:$0xf]  ;;  %v14987_v7 = vld [vmem:[#allocation2 + $0x340] sm:$0xf0] }
 0x12e   :  { %3081 = vmatpush.bf16.msra.mxu3 %v10122_v11  ;;  %v11126_v11 = vor.u32 %v15168_v56, %v11125_v53  ;;  %v14969_v53 = vld [vmem:[#allocation2 + $0x2b4] sm:$0xf]  ;;  %v11046_v56 = vor.u32 %v15144_v47, %v11043_v49  ;;  %v10483_v47 = vld [vmem:[#allocation2 + $0x3e4] sm:$0xf0]  ;;  %v15060_v49 = vld [vmem:[#allocation2 + $0x58c] sm:$0xf] }
 0x12f   :  { %3043 = vmatpush.bf16.msra.mxu0 %v10986_v19  ;;  %v2815_v19 = vadd.f32 %v2814_v9, %v570_v8  ;;  %v10315_v8 = vld [vmem:[#allocation2 + $0x294] sm:$0xf0]  ;;  %v15018_v9 = vld [vmem:[#allocation2 + $0x43c] sm:$0xf] }
 0x130   :  { %3056 = vmatpush.bf16.msra.mxu1 %v11210_v48  ;;  %v10654_v48 = vor.u32 %v15046_v0, %v10651_v1 }
 0x131   :  { %3069 = vmatpush.bf16.msra.mxu2 %v11434_v22  ;;  %v10878_v22 = vor.u32 %v15102_v3, %v10875_v5  ;;  %v2828_v29 = vadd.f32 %v2827_v10, %v2815_v19  ;;  %v14962_v5 = vld [vmem:[#allocation2 + $0x27c] sm:$0xf]  ;;  %v11018_v10 = vor.u32 %v15137_v60, %v11015_v61  ;;  %v15053_v60 = vld [vmem:[#allocation2 + $0x554] sm:$0xf] }
 0x132   :  { %3082 = vmatpush.bf16.msra.mxu3 %v10094_v26  ;;  %v11102_v26 = vor.u32 %v15158_v14, %v11099_v15  ;;  %v10763_v14 = vld [vmem:[#allocation2 + $0x614] sm:$0xf0]  ;;  %v10318_v19 = vor.u32 %v14962_v5, %v10315_v8  ;;  %v15270_v5 = vld [vmem:[#allocation2 + $0xc1c] sm:$0xf] }
 0x133   :  { %3044 = vmatpush.bf16.msra.mxu0 %v10958_v32  ;;  %v10626_v32 = vor.u32 %v15039_v25, %v10623_v13  ;;  %v15011_v25 = vld [vmem:[#allocation2 + $0x404] sm:$0xf]  ;;  %v10511_v13 = vld [vmem:[#allocation2 + $0x41c] sm:$0xf0] }
 0x134   :  { %3057 = vmatpush.bf16.msra.mxu1 %v11182_v35  ;;  %v14976_v35 = vld [vmem:[#allocation2 + $0x2ec] sm:$0xf]  ;;  %v10514_v38 = vor.u32 %v15011_v25, %v10511_v13  ;;  %v11295_v25 = vld [vmem:[#allocation2 + $0xa3c] sm:$0xf0] }
 0x135   :  { %3070 = vmatpush.bf16.msra.mxu2 %v11406_v36  ;;  %v10371_v36 = vld [vmem:[#allocation2 + $0x304] sm:$0xf0] }
 0x136   :  { %3083 = vmatpush.bf16.msra.mxu3 %v10066_v43  ;;  %v15088_v43 = vld [vmem:[#allocation2 + $0x66c] sm:$0xf] }
 0x137   :  { %3045 = vmatpush.bf16.msra.mxu0 %v10930_v50  ;;  %v10374_v50 = vor.u32 %v14976_v35, %v10371_v36  ;;  %v10822_v52 = vor.u32 %v15088_v43, %v10819_v44  ;;  %v10290_v35 = vor.u32 %v14955_v23, %v10287_v24  ;;  %v10259_v43 = vld [vmem:[#allocation2 + $0x224] sm:$0xf0]  ;;  %v15004_v44 = vld [vmem:[#allocation2 + $0x3cc] sm:$0xf]  ;;  %v15207_v24 = vld [vmem:[#allocation2 + $0xa24] sm:$0xf] }
 0x138   :  { %3058 = vmatpush.bf16.msra.mxu1 %v11154_v54  ;;  %v10343_v54 = vld [vmem:[#allocation2 + $0x2cc] sm:$0xf0] }
 0x139   :  { %3071 = vmatpush.bf16.msra.mxu2 %v11378_v55  ;;  %v15025_v55 = vld [vmem:[#allocation2 + $0x474] sm:$0xf]  ;;  %v10346_v63 = vor.u32 %v14969_v53, %v10343_v54  ;;  %v10262_v53 = vor.u32 %v14948_v42, %v10259_v43  ;;  %v11491_v42 = vld [vmem:[#allocation2 + $0xbc4] sm:$0xf0]  ;;  %v10153_v43 = vld [vmem:[#allocation2 + $0x130] sm:$0xf] }
 0x13a   :  { %3084 = vmatpush.bf16.msra.mxu3 %v10038_v59  ;;  %v10791_v59 = vld [vmem:[#allocation2 + $0x64c] sm:$0xf0]  ;;  %v14941_v54 = vld [vmem:[#allocation2 + $0x1d4] sm:$0xf] }
 0x13b   :  { %3046 = vmatpush.bf16.msra.mxu0 %v10902_v2  ;;  %v2840_v62 = vpop.f32.mrf.mxu0  ;;  %v10570_v2 = vor.u32 %v15025_v55, %v10567_v57  ;;  %v10794_v3 = vor.u32 %v15081_v58, %v10791_v59  ;;  %v10231_v55 = vld [vmem:[#allocation2 + $0x1ec] sm:$0xf0]  ;;  %v14997_v58 = vld [vmem:[#allocation2 + $0x394] sm:$0xf] }
 0x13c   :  { %3059 = vmatpush.bf16.msra.mxu1 %v11126_v11  ;;  %v2841_v0 = vadd.f32 %v2840_v62, %v2828_v29  ;;  %v2853_v1 = vpop.f32.mrf.mxu1  ;;  %v10539_v11 = vld [vmem:[#allocation2 + $0x454] sm:$0xf0]  ;;  %v10455_v59 = vld [vmem:[#allocation2 + $0x3ac] sm:$0xf0] }
 0x13d   :  { %3072 = vmatpush.bf16.msra.mxu2 %v11350_v12  ;;  %v15074_v12 = vld [vmem:[#allocation2 + $0x5fc] sm:$0xf]  ;;  %v10679_v62 = vld [vmem:[#allocation2 + $0x56c] sm:$0xf0] }
 0x13e   :  { %3085 = vmatpush.bf16.msra.mxu3 %v10010_v17  ;;  %3047 = vmatmul.bf16.vlgmr.msra.gmra.mxu0 %v16373_v40  ;;  %v2854_v15 = vadd.f32 %v2853_v1, %v2841_v0  ;;  %v15130_v17 = vld [vmem:[#allocation2 + $0x7bc] sm:$0xf]  ;;  %v10903_v0 = vld [vmem:[#allocation2 + $0x72c] sm:$0xf0] }
 0x13f   :  { %3091 = vmatpush.bf16.msrb.mxu0 %v10430_v18  ;;  %3060 = vmatmul.bf16.vlgmr.msra.gmra.mxu1 %v16375_v41  ;;  %v10987_v18 = vld [vmem:[#allocation2 + $0x7d4] sm:$0xf0] }
 0x140   :  { %3104 = vmatpush.bf16.msrb.mxu1 %v10654_v48  ;;  %3073 = vmatmul.bf16.vlgmr.msra.gmra.mxu2 %v16371_v37  ;;  %v10542_v48 = vor.u32 %v15018_v9, %v10539_v11  ;;  %v10234_v9 = vor.u32 %v14941_v54, %v10231_v55  ;;  %v10209_v11 = vld [vmem:[#allocation2 + $0x1a0] sm:$0xf]  ;;  %v15249_v54 = vld [vmem:[#allocation2 + $0xb74] sm:$0xf] }
 0x141   :  { %3117 = vmatpush.bf16.msrb.mxu2 %v10878_v22  ;;  %3086 = vmatmul.bf16.vlgmr.msra.gmra.mxu3 %v16358_v20  ;;  %v10766_v22 = vor.u32 %v15074_v12, %v10763_v14  ;;  %v14938_v12 = vld [vmem:[#allocation2 + $0x1b8] sm:$0xf0]  ;;  %v10458_v14 = vor.u32 %v14997_v58, %v10455_v59  ;;  %v14917_v58 = vld [vmem:[#allocation2 + $0x110] sm:$0xf0]  ;;  %v10349_v59 = vld [vmem:[#allocation2 + $0x2b8] sm:$0xf] }
 0x142   :  { %3130 = vmatpush.bf16.msrb.mxu3 %v11102_v26  ;;  %v10990_v26 = vor.u32 %v15130_v17, %v10987_v18  ;;  %v10433_v17 = vld [vmem:[#allocation2 + $0x360] sm:$0xf]  ;;  %v14994_v18 = vld [vmem:[#allocation2 + $0x378] sm:$0xf0]  ;;  %v10210_v23 = vor.u32 %v14938_v12, %v10209_v11 }
 0x143   :  { %3092 = vmatpush.bf16.msrb.mxu0 %v10402_v31  ;;  %v2866_v29 = vpop.f32.mrf.mxu2  ;;  %v2842_v31 = vpop.f32.mrf.mxu0  ;;  %v10434_v13 = vor.u32 %v14994_v18, %v10433_v17  ;;  %v14910_v11 = vld [vmem:[#allocation2 + $0xd8] sm:$0xf0]  ;;  %v10321_v12 = vld [vmem:[#allocation2 + $0x280] sm:$0xf]  ;;  %v15179_v18 = vld [vmem:[#allocation2 + $0x944] sm:$0xf] }
 0x144   :  { %3105 = vmatpush.bf16.msrb.mxu1 %v10626_v32  ;;  %v2867_v32 = vadd.f32 %v2866_v29, %v2854_v15  ;;  %v2855_v36 = vpop.f32.mrf.mxu1  ;;  %v10682_v15 = vor.u32 %v15053_v60, %v10679_v62  ;;  %v14931_v29 = vld [vmem:[#allocation2 + $0x180] sm:$0xf0]  ;;  %v11298_v31 = vor.u32 %v15207_v24, %v11295_v25  ;;  %v14973_v60 = vld [vmem:[#allocation2 + $0x2d0] sm:$0xf0]  ;;  %v10069_v24 = vld [vmem:[#allocation2 + $0x88] sm:$0xf] }
 0x145   :  { %3118 = vmatpush.bf16.msrb.mxu2 %v10850_v33  ;;  %v2879_v33 = vpop.f32.mrf.mxu3  ;;  %v11267_v36 = vld [vmem:[#allocation2 + $0xa04] sm:$0xf0]  ;;  %v14903_v25 = vld [vmem:[#allocation2 + $0xa0] sm:$0xf0] }
 0x146   :  { %3131 = vmatpush.bf16.msrb.mxu3 %v11074_v39  ;;  %v10738_v39 = vor.u32 %v15067_v27, %v10735_v28  ;;  %v16424_v45 = vadd.f32 %v2879_v33, %v2867_v32  ;;  %v11519_v27 = vld [vmem:[#allocation2 + $0xbfc] sm:$0xf0]  ;;  %v10181_v28 = vld [vmem:[#allocation2 + $0x168] sm:$0xf] }
 0x147   :  { %3093 = vmatpush.bf16.msrb.mxu0 %v10374_v50  ;;  %v10707_v50 = vld [vmem:[#allocation2 + $0x5a4] sm:$0xf0]  ;;  %v10182_v33 = vor.u32 %v14931_v29, %v10181_v28 }
 0x148   :  { %3106 = vmatpush.bf16.msrb.mxu1 %v10598_v51  ;;  %v15116_v51 = vld [vmem:[#allocation2 + $0x74c] sm:$0xf]  ;;  %v10710_v57 = vor.u32 %v15060_v49, %v10707_v50 }
 0x149   :  { %3119 = vmatpush.bf16.msrb.mxu2 %v10822_v52  ;;  %v10931_v52 = vld [vmem:[#allocation2 + $0x764] sm:$0xf0] }
 0x14a   :  { %3132 = vmatpush.bf16.msrb.mxu3 %v11046_v56  ;;  %v10486_v56 = vor.u32 %v15004_v44, %v10483_v47  ;;  %v10934_v61 = vor.u32 %v15116_v51, %v10931_v52  ;;  %v14924_v44 = vld [vmem:[#allocation2 + $0x148] sm:$0xf0]  ;;  %v15193_v52 = vld [vmem:[#allocation2 + $0x9b4] sm:$0xf] }
 0x14b   :  { %3094 = vmatpush.bf16.msrb.mxu0 %v10346_v63  ;;  %v15109_v63 = vld [vmem:[#allocation2 + $0x714] sm:$0xf]  ;;  %v2868_v1 = vpop.f32.mrf.mxu2  ;;  %v14980_v47 = vld [vmem:[#allocation2 + $0x308] sm:$0xf0]  ;;  %v10154_v51 = vor.u32 %v14924_v44, %v10153_v43 }
 0x14c   :  { %3107 = vmatpush.bf16.msrb.mxu1 %v10570_v2  ;;  %v15214_v2 = vld [vmem:[#allocation2 + $0xa5c] sm:$0xf]  ;;  %v15165_v44 = vld [vmem:[#allocation2 + $0x8d4] sm:$0xf] }
 0x14d   :  { %3120 = vmatpush.bf16.msrb.mxu2 %v10794_v3  ;;  %v11323_v3 = vld [vmem:[#allocation2 + $0xa74] sm:$0xf0]  ;;  %v2881_v8 = vpop.f32.mrf.mxu3 }
 0x14e   :  { %3133 = vmatpush.bf16.msrb.mxu3 %v11018_v10  ;;  %v11547_v10 = vld [vmem:[#allocation2 + $0xc34] sm:$0xf0]  ;;  %v10350_v8 = vor.u32 %v14973_v60, %v10349_v59  ;;  %v14945_v59 = vld [vmem:[#allocation2 + $0x1f0] sm:$0xf0] }
 0x14f   :  { %3095 = vmatpush.bf16.msrb.mxu0 %v10318_v19  ;;  %v10906_v19 = vor.u32 %v15109_v63, %v10903_v0 }
 0x150   :  { %3108 = vmatpush.bf16.msrb.mxu1 %v10542_v48  ;;  %v11326_v48 = vor.u32 %v15214_v2, %v11323_v3  ;;  %v15186_v2 = vld [vmem:[#allocation2 + $0x97c] sm:$0xf]  ;;  %v11211_v3 = vld [vmem:[#allocation2 + $0x994] sm:$0xf0] }
 0x151   :  { %3121 = vmatpush.bf16.msrb.mxu2 %v10766_v22  ;;  %v11550_v22 = vor.u32 %v15270_v5, %v11547_v10  ;;  %v15242_v5 = vld [vmem:[#allocation2 + $0xb3c] sm:$0xf]  ;;  %v10097_v10 = vld [vmem:[#allocation2 + $0xc0] sm:$0xf] }
 0x152   :  { %3134 = vmatpush.bf16.msrb.mxu3 %v10990_v26  ;;  %v15263_v26 = vld [vmem:[#allocation2 + $0xbe4] sm:$0xf]  ;;  %v10098_v17 = vor.u32 %v14910_v11, %v10097_v10 }
 0x153   :  { %3096 = vmatpush.bf16.msrb.mxu0 %v10290_v35  ;;  %v11522_v32 = vor.u32 %v15263_v26, %v11519_v27  ;;  %v15200_v35 = vld [vmem:[#allocation2 + $0x9ec] sm:$0xf]  ;;  %v10293_v26 = vld [vmem:[#allocation2 + $0x248] sm:$0xf] }
 0x154   :  { %3109 = vmatpush.bf16.msrb.mxu1 %v10514_v38  ;;  %v15256_v38 = vld [vmem:[#allocation2 + $0xbac] sm:$0xf]  ;;  %v11270_v49 = vor.u32 %v15200_v35, %v11267_v36  ;;  %v11379_v35 = vld [vmem:[#allocation2 + $0xae4] sm:$0xf0]  ;;  %v10041_v36 = vld [vmem:[#allocation2 + $0x50] sm:$0xf] }
 0x155   :  { %3122 = vmatpush.bf16.msrb.mxu2 %v10738_v39  ;;  %v10406_v39 = vor.u32 %v14987_v7, %v10405_v30  ;;  %v11494_v50 = vor.u32 %v15256_v38, %v11491_v42  ;;  %v10070_v30 = vor.u32 %v14903_v25, %v10069_v24  ;;  %v15172_v7 = vld [vmem:[#allocation2 + $0x90c] sm:$0xf] }
 0x156   :  { %3135 = vmatpush.bf16.msrb.mxu3 %v10962_v46  ;;  %v10377_v46 = vld [vmem:[#allocation2 + $0x2f0] sm:$0xf]  ;;  %v14896_v38 = vld [vmem:[#allocation2 + $0x68] sm:$0xf0] }
 0x157   :  { %3097 = vmatpush.bf16.msrb.mxu0 %v10262_v53  ;;  %v11239_v53 = vld [vmem:[#allocation2 + $0x9cc] sm:$0xf0]  ;;  %v10378_v55 = vor.u32 %v14980_v47, %v10377_v46  ;;  %v14952_v42 = vld [vmem:[#allocation2 + $0x228] sm:$0xf0]  ;;  %v16433_v47 = vld [vmem:[#allocation4] sm:$0xff] }
 0x158   :  { %3110 = vmatpush.bf16.msrb.mxu1 %v10486_v56  ;;  %v11463_v56 = vld [vmem:[#allocation2 + $0xb8c] sm:$0xf0]  ;;  %v11242_v62 = vor.u32 %v15193_v52, %v11239_v53  ;;  %v10042_v52 = vor.u32 %v14896_v38, %v10041_v36  ;;  %v15221_v53 = vld [vmem:[#allocation2 + $0xa94] sm:$0xf] }
 0x159   :  { %3123 = vmatpush.bf16.msrb.mxu2 %v10710_v57  ;;  %v10125_v57 = vld [vmem:[#allocation2 + $0xf8] sm:$0xf]  ;;  %v11466_v0 = vor.u32 %v15249_v54, %v11463_v56  ;;  %v11127_v46 = vld [vmem:[#allocation2 + $0x8ec] sm:$0xf0] }
 0x15a   :  { %3136 = vmatpush.bf16.msrb.mxu3 %v10934_v61  ;;  %v10126_v1 = vor.u32 %v14917_v58, %v10125_v57  ;;  %v11351_v54 = vld [vmem:[#allocation2 + $0xaac] sm:$0xf0]  ;;  %v14889_v57 = vld [vmem:[#allocation2 + $0x30] sm:$0xf0]  ;;  %v10237_v58 = vld [vmem:[#allocation2 + $0x1d8] sm:$0xf] }
 0x15b   :  { %3098 = vmatpush.bf16.msrb.mxu0 %v10234_v9  ;;  %v2892_v61 = vpop.f32.mrf.mxu0  ;;  %v11435_v9 = vld [vmem:[#allocation2 + $0xb54] sm:$0xf0]  ;;  %v11354_v10 = vor.u32 %v15221_v53, %v11351_v54  ;;  %v10825_v36 = vld [vmem:[#allocation2 + $0x670] sm:$0xf] }
 0x15c   :  { %3111 = vmatpush.bf16.msrb.mxu1 %v10458_v14  ;;  %v16431_v63 = vadd.f32 %v2892_v61, %v16424_v45  ;;  %v14966_v14 = vld [vmem:[#allocation2 + $0x298] sm:$0xf0]  ;;  %v11438_v45 = vor.u32 %v15242_v5, %v11435_v9  ;;  %v10657_v61 = vld [vmem:[#allocation2 + $0x520] sm:$0xf]  ;;  %v10573_v54 = vld [vmem:[#allocation2 + $0x478] sm:$0xf] }
 0x15d   :  { %3124 = vmatpush.bf16.msrb.mxu2 %v10682_v15  ;;  %v11214_v15 = vor.u32 %v15186_v2, %v11211_v3  ;;  %v15106_v2 = vld [vmem:[#allocation2 + $0x6f8] sm:$0xf0]  ;;  %v11105_v3 = vld [vmem:[#allocation2 + $0x8a0] sm:$0xf] }
 0x15e   :  { %3137 = vmatpush.bf16.msrb.mxu3 %v10906_v19  ;;  %3099 = vmatmul.bf16.vlgmr.msrb.gmra.mxu0 %v16360_v21  ;;  %v11183_v19 = vld [vmem:[#allocation2 + $0x95c] sm:$0xf0]  ;;  %v15162_v5 = vld [vmem:[#allocation2 + $0x8b8] sm:$0xf0] }
 0x15f   :  { %3143 = vmatpush.bf16.msra.mxu0 %v11326_v48  ;;  %3112 = vmatmul.bf16.vlgmr.msrb.gmra.mxu1 %v16350_v4  ;;  %v15235_v48 = vld [vmem:[#allocation2 + $0xb04] sm:$0xf]  ;;  %v11186_v28 = vor.u32 %v15179_v18, %v11183_v19  ;;  %v11106_v19 = vor.u32 %v15162_v5, %v11105_v3  ;;  %v10545_v5 = vld [vmem:[#allocation2 + $0x440] sm:$0xf] }
 0x160   :  { %3156 = vmatpush.bf16.msra.mxu1 %v11550_v22  ;;  %3125 = vmatmul.bf16.vlgmr.msrb.gmra.mxu2 %v16355_v6  ;;  %v10322_v22 = vor.u32 %v14966_v14, %v10321_v12  ;;  %v11329_v12 = vld [vmem:[#allocation2 + $0xa60] sm:$0xf]  ;;  %v15218_v14 = vld [vmem:[#allocation2 + $0xa78] sm:$0xf0] }
 0x161   :  { %3169 = vmatpush.bf16.msra.mxu2 %v10210_v23  ;;  %3138 = vmatmul.bf16.vlgmr.msrb.gmra.mxu3 %v16373_v40  ;;  %v11407_v23 = vld [vmem:[#allocation2 + $0xb1c] sm:$0xf0]  ;;  %v11330_v25 = vor.u32 %v15218_v14, %v11329_v12  ;;  %v15134_v14 = vld [vmem:[#allocation2 + $0x7d8] sm:$0xf0] }
 0x162   :  { %3182 = vmatpush.bf16.msra.mxu3 %v10434_v13  ;;  %v14959_v13 = vld [vmem:[#allocation2 + $0x260] sm:$0xf0]  ;;  %v11410_v29 = vor.u32 %v15235_v48, %v11407_v23  ;;  %v10629_v48 = vld [vmem:[#allocation2 + $0x4e8] sm:$0xf]  ;;  %v10993_v12 = vld [vmem:[#allocation2 + $0x7c0] sm:$0xf] }
 0x163   :  { %3144 = vmatpush.bf16.msra.mxu0 %v11298_v31  ;;  %v2894_v27 = vpop.f32.mrf.mxu0  ;;  %v11155_v31 = vld [vmem:[#allocation2 + $0x924] sm:$0xf0] }
 0x164   :  { %3157 = vmatpush.bf16.msra.mxu1 %v11522_v32  ;;  %v15228_v32 = vld [vmem:[#allocation2 + $0xacc] sm:$0xf]  ;;  %v11158_v43 = vor.u32 %v15172_v7, %v11155_v31  ;;  %v2931_v9 = vpop.f32.mrf.mxu3  ;;  %v10853_v23 = vld [vmem:[#allocation2 + $0x6a8] sm:$0xf]  ;;  %v15155_v27 = vld [vmem:[#allocation2 + $0x880] sm:$0xf0] }
 0x165   :  { %3170 = vmatpush.bf16.msra.mxu2 %v10182_v33  ;;  %v10294_v33 = vor.u32 %v14959_v13, %v10293_v26  ;;  %v15099_v26 = vld [vmem:[#allocation2 + $0x6c0] sm:$0xf0]  ;;  %v11077_v13 = vld [vmem:[#allocation2 + $0x868] sm:$0xf] }
 0x166   :  { %3183 = vmatpush.bf16.msra.mxu3 %v10406_v39  ;;  %v10265_v39 = vld [vmem:[#allocation2 + $0x210] sm:$0xf]  ;;  %v10854_v31 = vor.u32 %v15099_v26, %v10853_v23  ;;  %v15015_v23 = vld [vmem:[#allocation2 + $0x420] sm:$0xf0] }
 0x167   :  { %3145 = vmatpush.bf16.msra.mxu0 %v11270_v49  ;;  %v571_v49 = vperm.slane %v16433_v47, 3  ;;  %v10266_v56 = vor.u32 %v14952_v42, %v10265_v39  ;;  %v15092_v39 = vld [vmem:[#allocation2 + $0x688] sm:$0xf0]  ;;  %v11049_v42 = vld [vmem:[#allocation2 + $0x830] sm:$0xf] }
 0x168   :  { %3158 = vmatpush.bf16.msra.mxu1 %v11494_v50  ;;  %v2905_v50 = vpop.f32.mrf.mxu1  ;;  %v15071_v26 = vld [vmem:[#allocation2 + $0x5e0] sm:$0xf0] }
 0x169   :  { %3171 = vmatpush.bf16.msra.mxu2 %v10154_v51  ;;  %v11382_v51 = vor.u32 %v15228_v32, %v11379_v35  ;;  %v2906_v60 = vadd.f32 %v2905_v50, %v571_v49  ;;  %v11078_v32 = vor.u32 %v15155_v27, %v11077_v13  ;;  %v15036_v35 = vld [vmem:[#allocation2 + $0x4c8] sm:$0xf0]  ;;  %v11273_v49 = vld [vmem:[#allocation2 + $0x9f0] sm:$0xf]  ;;  %v10965_v13 = vld [vmem:[#allocation2 + $0x788] sm:$0xf] }
 0x16a   :  { %3184 = vmatpush.bf16.msra.mxu3 %v10378_v55  ;;  %v10013_v55 = vld [vmem:[#allocation2 + $0x18] sm:$0xf]  ;;  %v15204_v50 = vld [vmem:[#allocation2 + $0xa08] sm:$0xf0]  ;;  %v15127_v27 = vld [vmem:[#allocation2 + $0x7a0] sm:$0xf0] }
 0x16b   :  { %3146 = vmatpush.bf16.msra.mxu0 %v11242_v62  ;;  %v15050_v62 = vld [vmem:[#allocation2 + $0x538] sm:$0xf0]  ;;  %v10014_v11 = vor.u32 %v14889_v57, %v10013_v55  ;;  %v15029_v55 = vld [vmem:[#allocation2 + $0x490] sm:$0xf0]  ;;  %v11274_v57 = vor.u32 %v15204_v50, %v11273_v49  ;;  %v15064_v49 = vld [vmem:[#allocation2 + $0x5a8] sm:$0xf0] }
 0x16c   :  { %3159 = vmatpush.bf16.msra.mxu1 %v11466_v0  ;;  %v10881_v0 = vld [vmem:[#allocation2 + $0x6e0] sm:$0xf]  ;;  %v10937_v50 = vld [vmem:[#allocation2 + $0x750] sm:$0xf] }
 0x16d   :  { %3172 = vmatpush.bf16.msra.mxu2 %v10126_v1  ;;  %v11130_v1 = vor.u32 %v15165_v44, %v11127_v46  ;;  %v10882_v18 = vor.u32 %v15106_v2, %v10881_v0  ;;  %v2933_v46 = vpop.f32.mrf.mxu3 }
 0x16e   :  { %3185 = vmatpush.bf16.msra.mxu3 %v10350_v8  ;;  %v2918_v8 = vpop.f32.mrf.mxu2 }
 0x16f   :  { %3147 = vmatpush.bf16.msra.mxu0 %v11214_v15  ;;  %v2919_v15 = vadd.f32 %v2918_v8, %v2906_v60  ;;  %v15141_v60 = vld [vmem:[#allocation2 + $0x810] sm:$0xf0]  ;;  %v15022_v8 = vld [vmem:[#allocation2 + $0x458] sm:$0xf0] }
 0x170   :  { %3160 = vmatpush.bf16.msra.mxu1 %v11438_v45  ;;  %v10238_v45 = vor.u32 %v14945_v59, %v10237_v58  ;;  %v15085_v58 = vld [vmem:[#allocation2 + $0x650] sm:$0xf0]  ;;  %v11021_v59 = vld [vmem:[#allocation2 + $0x7f8] sm:$0xf] }
 0x171   :  { %3173 = vmatpush.bf16.msra.mxu2 %v10098_v17  ;;  %v10658_v17 = vor.u32 %v15050_v62, %v10657_v61  ;;  %v2932_v24 = vadd.f32 %v2931_v9, %v2919_v15  ;;  %v11245_v61 = vld [vmem:[#allocation2 + $0x9b8] sm:$0xf]  ;;  %v15197_v62 = vld [vmem:[#allocation2 + $0x9d0] sm:$0xf0]  ;;  %v11022_v3 = vor.u32 %v15141_v60, %v11021_v59  ;;  %v10769_v9 = vld [vmem:[#allocation2 + $0x600] sm:$0xf] }
 0x172   :  { %3186 = vmatpush.bf16.msra.mxu3 %v10322_v22  ;;  %v15043_v22 = vld [vmem:[#allocation2 + $0x500] sm:$0xf0]  ;;  %v10685_v59 = vld [vmem:[#allocation2 + $0x558] sm:$0xf]  ;;  %v15057_v60 = vld [vmem:[#allocation2 + $0x570] sm:$0xf0] }
 0x173   :  { %3148 = vmatpush.bf16.msra.mxu0 %v11186_v28  ;;  %v2907_v28 = vpop.f32.mrf.mxu1  ;;  %v10630_v7 = vor.u32 %v15043_v22, %v10629_v48  ;;  %v10994_v48 = vor.u32 %v15134_v14, %v10993_v12  ;;  %v10517_v22 = vld [vmem:[#allocation2 + $0x408] sm:$0xf]  ;;  %v15476_v12 = vld [vmem:[#allocation6 + $0x648] sm:$0xf0]  ;;  %v10686_v14 = vor.u32 %v15057_v60, %v10685_v59 }
 0x174   :  { %3161 = vmatpush.bf16.msra.mxu1 %v11410_v29  ;;  %v11301_v29 = vld [vmem:[#allocation2 + $0xa28] sm:$0xf] }
 0x175   :  { %3174 = vmatpush.bf16.msra.mxu2 %v10070_v30  ;;  %v15211_v30 = vld [vmem:[#allocation2 + $0xa40] sm:$0xf0]  ;;  %v12597_v59 = vld [vmem:[#allocation6 + $0x820] sm:$0xf] }
 0x176   :  { %3187 = vmatpush.bf16.msra.mxu3 %v10294_v33  ;;  %v10601_v33 = vld [vmem:[#allocation2 + $0x4b0] sm:$0xf]  ;;  %v11302_v38 = vor.u32 %v15211_v30, %v11301_v29  ;;  %v2920_v44 = vpop.f32.mrf.mxu2  ;;  %v11189_v29 = vld [vmem:[#allocation2 + $0x948] sm:$0xf]  ;;  %v15183_v30 = vld [vmem:[#allocation2 + $0x960] sm:$0xf0] }
 0x177   :  { %3149 = vmatpush.bf16.msra.mxu0 %v11158_v43  ;;  %v15148_v43 = vld [vmem:[#allocation2 + $0x848] sm:$0xf0]  ;;  %v11190_v46 = vor.u32 %v15183_v30, %v11189_v29  ;;  %v12701_v29 = vld [vmem:[#allocation6 + $0x8f0] sm:$0xf] }
 0x178   :  { %3162 = vmatpush.bf16.msra.mxu1 %v11382_v51  ;;  %v10602_v51 = vor.u32 %v15036_v35, %v10601_v33  ;;  %v11050_v53 = vor.u32 %v15148_v43, %v11049_v42  ;;  %v10518_v33 = vor.u32 %v15015_v23, %v10517_v22  ;;  %v15008_v42 = vld [vmem:[#allocation2 + $0x3e8] sm:$0xf0]  ;;  %v10713_v43 = vld [vmem:[#allocation2 + $0x590] sm:$0xf]  ;;  %v11525_v23 = vld [vmem:[#allocation2 + $0xbe8] sm:$0xf] }
 0x179   :  { %3175 = vmatpush.bf16.msra.mxu2 %v10042_v52  ;;  %v10826_v52 = vor.u32 %v15092_v39, %v10825_v36  ;;  %v10489_v39 = vld [vmem:[#allocation2 + $0x3d0] sm:$0xf]  ;;  %v15567_v30 = vld [vmem:[#allocation6 + $0x920] sm:$0xf0] }
 0x17a   :  { %3188 = vmatpush.bf16.msra.mxu3 %v10266_v56  ;;  %v10797_v56 = vld [vmem:[#allocation2 + $0x638] sm:$0xf] }
 0x17b   :  { %3150 = vmatpush.bf16.msra.mxu0 %v11130_v1  ;;  %v2944_v0 = vpop.f32.mrf.mxu0 }
 0x17c   :  { %3163 = vmatpush.bf16.msra.mxu1 %v11354_v10  ;;  %v2945_v1 = vadd.f32 %v2944_v0, %v2932_v24  ;;  %v2957_v2 = vpop.f32.mrf.mxu1  ;;  %v11246_v10 = vor.u32 %v15197_v62, %v11245_v61  ;;  %v10741_v24 = vld [vmem:[#allocation2 + $0x5c8] sm:$0xf]  ;;  %v10909_v61 = vld [vmem:[#allocation2 + $0x718] sm:$0xf]  ;;  %v15113_v0 = vld [vmem:[#allocation2 + $0x730] sm:$0xf0] }
 0x17d   :  { %3176 = vmatpush.bf16.msra.mxu2 %v10014_v11  ;;  %v15078_v11 = vld [vmem:[#allocation2 + $0x618] sm:$0xf0]  ;;  %v10742_v36 = vor.u32 %v15071_v26, %v10741_v24  ;;  %v15267_v24 = vld [vmem:[#allocation2 + $0xc00] sm:$0xf0] }
 0x17e   :  { %3189 = vmatpush.bf16.msra.mxu3 %v10238_v45  ;;  %3151 = vmatmul.bf16.vlgmr.msra.gmra.mxu0 %v16375_v41  ;;  %v2958_v15 = vadd.f32 %v2957_v2, %v2945_v1  ;;  %v11217_v45 = vld [vmem:[#allocation2 + $0x980] sm:$0xf]  ;;  %v15169_v1 = vld [vmem:[#allocation2 + $0x8f0] sm:$0xf0] }
 0x17f   :  { %3195 = vmatpush.bf16.msrb.mxu0 %v10658_v17  ;;  %3164 = vmatmul.bf16.vlgmr.msra.gmra.mxu1 %v16371_v37  ;;  %v15190_v17 = vld [vmem:[#allocation2 + $0x998] sm:$0xf0] }
 0x180   :  { %3208 = vmatpush.bf16.msrb.mxu1 %v10882_v18  ;;  %3177 = vmatmul.bf16.vlgmr.msra.gmra.mxu2 %v16358_v20  ;;  %v10574_v20 = vor.u32 %v15029_v55, %v10573_v54  ;;  %v10546_v18 = vor.u32 %v15022_v8, %v10545_v5  ;;  %v10490_v54 = vor.u32 %v15008_v42, %v10489_v39  ;;  %v10461_v55 = vld [vmem:[#allocation2 + $0x398] sm:$0xf]  ;;  %v11921_v5 = vld [vmem:[#allocation6 + $0x2d8] sm:$0xf]  ;;  %v15346_v39 = vld [vmem:[#allocation6 + $0x238] sm:$0xf0] }
 0x181   :  { %3221 = vmatpush.bf16.msrb.mxu2 %v11106_v19  ;;  %3190 = vmatmul.bf16.vlgmr.msra.gmra.mxu3 %v16360_v21  ;;  %v10798_v21 = vor.u32 %v15085_v58, %v10797_v56  ;;  %v10770_v19 = vor.u32 %v15078_v11, %v10769_v9  ;;  %v15001_v56 = vld [vmem:[#allocation2 + $0x3b0] sm:$0xf0]  ;;  %v12337_v11 = vld [vmem:[#allocation6 + $0x618] sm:$0xf]  ;;  %v12233_v42 = vld [vmem:[#allocation6 + $0x548] sm:$0xf] }
 0x182   :  { %3234 = vmatpush.bf16.msrb.mxu3 %v11330_v25  ;;  %v11218_v25 = vor.u32 %v15190_v17, %v11217_v45  ;;  %v10462_v9 = vor.u32 %v15001_v56, %v10461_v55  ;;  %v12753_v45 = vld [vmem:[#allocation6 + $0x958] sm:$0xf]  ;;  %v15580_v17 = vld [vmem:[#allocation6 + $0x988] sm:$0xf0]  ;;  %v12338_v22 = vor.u32 %v15476_v12, %v12337_v11  ;;  %v15333_v56 = vld [vmem:[#allocation6 + $0x1d0] sm:$0xf0] }
 0x183   :  { %3196 = vmatpush.bf16.msrb.mxu0 %v10630_v7  ;;  %v2970_v28 = vpop.f32.mrf.mxu2  ;;  %v2946_v7 = vpop.f32.mrf.mxu0  ;;  %v12754_v26 = vor.u32 %v15580_v17, %v12753_v45  ;;  %v11661_v45 = vld [vmem:[#allocation6 + $0xd0] sm:$0xf] }
 0x184   :  { %3209 = vmatpush.bf16.msrb.mxu1 %v10854_v31  ;;  %v2971_v31 = vadd.f32 %v2970_v28, %v2958_v15  ;;  %v2959_v35 = vpop.f32.mrf.mxu1  ;;  %v10910_v15 = vor.u32 %v15113_v0, %v10909_v61  ;;  %v15463_v28 = vld [vmem:[#allocation6 + $0x5e0] sm:$0xf0]  ;;  %v11526_v7 = vor.u32 %v15267_v24, %v11525_v23  ;;  %v11441_v0 = vld [vmem:[#allocation2 + $0xb40] sm:$0xf]  ;;  %v12493_v23 = vld [vmem:[#allocation6 + $0x750] sm:$0xf] }
 0x185   :  { %3222 = vmatpush.bf16.msrb.mxu2 %v11078_v32  ;;  %v2983_v32 = vpop.f32.mrf.mxu3  ;;  %v15260_v35 = vld [vmem:[#allocation2 + $0xbc8] sm:$0xf0] }
 0x186   :  { %3235 = vmatpush.bf16.msrb.mxu3 %v11302_v38  ;;  %v10966_v38 = vor.u32 %v15127_v27, %v10965_v13  ;;  %v16440_v44 = vadd.f32 %v2983_v32, %v2971_v31  ;;  %v15359_v13 = vld [vmem:[#allocation6 + $0x2a0] sm:$0xf0]  ;;  %v12285_v27 = vld [vmem:[#allocation6 + $0x5b0] sm:$0xf] }
 0x187   :  { %3197 = vmatpush.bf16.msrb.mxu0 %v10602_v51  ;;  %v15120_v51 = vld [vmem:[#allocation2 + $0x768] sm:$0xf0]  ;;  %v12286_v32 = vor.u32 %v15463_v28, %v12285_v27 }
 0x188   :  { %3210 = vmatpush.bf16.msrb.mxu1 %v10826_v52  ;;  %v11161_v52 = vld [vmem:[#allocation2 + $0x910] sm:$0xf]  ;;  %v10938_v58 = vor.u32 %v15120_v51, %v10937_v50  ;;  %v15515_v24 = vld [vmem:[#allocation6 + $0x780] sm:$0xf0] }
 0x189   :  { %3223 = vmatpush.bf16.msrb.mxu2 %v11050_v53  ;;  %v15176_v53 = vld [vmem:[#allocation2 + $0x928] sm:$0xf0] }
 0x18a   :  { %3236 = vmatpush.bf16.msrb.mxu3 %v11274_v57  ;;  %v10714_v57 = vor.u32 %v15064_v49, %v10713_v43  ;;  %v11162_v62 = vor.u32 %v15176_v53, %v11161_v52  ;;  %v15450_v43 = vld [vmem:[#allocation6 + $0x578] sm:$0xf0]  ;;  %v11469_v53 = vld [vmem:[#allocation2 + $0xb78] sm:$0xf] }
 0x18b   :  { %3198 = vmatpush.bf16.msrb.mxu0 %v10574_v20  ;;  %v11133_v20 = vld [vmem:[#allocation2 + $0x8d8] sm:$0xf]  ;;  %v2972_v2 = vpop.f32.mrf.mxu2  ;;  %v15554_v49 = vld [vmem:[#allocation6 + $0x8b8] sm:$0xf0]  ;;  %v12234_v52 = vor.u32 %v15450_v43, %v12233_v42 }
 0x18c   :  { %3211 = vmatpush.bf16.msrb.mxu1 %v10798_v21  ;;  %v11553_v21 = vld [vmem:[#allocation2 + $0xc20] sm:$0xf]  ;;  %v11357_v43 = vld [vmem:[#allocation2 + $0xa98] sm:$0xf] }
 0x18d   :  { %3224 = vmatpush.bf16.msrb.mxu2 %v11022_v3  ;;  %v15274_v3 = vld [vmem:[#allocation2 + $0xc38] sm:$0xf0]  ;;  %v2985_v8 = vpop.f32.mrf.mxu3 }
 0x18e   :  { %3237 = vmatpush.bf16.msrb.mxu3 %v11246_v10  ;;  %v15372_v10 = vld [vmem:[#allocation6 + $0x308] sm:$0xf0]  ;;  %v12545_v8 = vld [vmem:[#allocation6 + $0x7b8] sm:$0xf] }
 0x18f   :  { %3199 = vmatpush.bf16.msrb.mxu0 %v10546_v18  ;;  %v11134_v18 = vor.u32 %v15169_v1, %v11133_v20  ;;  %v15246_v20 = vld [vmem:[#allocation2 + $0xb58] sm:$0xf0]  ;;  %v11713_v1 = vld [vmem:[#allocation6 + $0x138] sm:$0xf] }
 0x190   :  { %3212 = vmatpush.bf16.msrb.mxu1 %v10770_v19  ;;  %v11554_v19 = vor.u32 %v15274_v3, %v11553_v21  ;;  %v15320_v21 = vld [vmem:[#allocation6 + $0x168] sm:$0xf0]  ;;  %v12129_v3 = vld [vmem:[#allocation6 + $0x478] sm:$0xf] }
 0x191   :  { %3225 = vmatpush.bf16.msrb.mxu2 %v10994_v48  ;;  %v11922_v48 = vor.u32 %v15372_v10, %v11921_v5  ;;  %v15424_v5 = vld [vmem:[#allocation6 + $0x4a8] sm:$0xf0]  ;;  %v11442_v10 = vor.u32 %v15246_v20, %v11441_v0  ;;  %v11714_v11 = vor.u32 %v15320_v21, %v11713_v1  ;;  %v14001_v21 = vld [vmem:[#allocation6 + $0x1318] sm:$0xf] }
 0x192   :  { %3238 = vmatpush.bf16.msrb.mxu3 %v11218_v25  ;;  %v11869_v25 = vld [vmem:[#allocation6 + $0x270] sm:$0xf]  ;;  %v12130_v12 = vor.u32 %v15424_v5, %v12129_v3  ;;  %v15892_v3 = vld [vmem:[#allocation6 + $0x1348] sm:$0xf0] }
 0x193   :  { %3200 = vmatpush.bf16.msrb.mxu0 %v10518_v33  ;;  %v11870_v31 = vor.u32 %v15359_v13, %v11869_v25  ;;  %v11497_v33 = vld [vmem:[#allocation2 + $0xbb0] sm:$0xf] }
 0x194   :  { %3213 = vmatpush.bf16.msrb.mxu1 %v10742_v36  ;;  %v11817_v36 = vld [vmem:[#allocation6 + $0x208] sm:$0xf]  ;;  %v11498_v50 = vor.u32 %v15260_v35, %v11497_v33  ;;  %v15294_v33 = vld [vmem:[#allocation6 + $0x98] sm:$0xf0] }
 0x195   :  { %3226 = vmatpush.bf16.msrb.mxu2 %v10966_v38  ;;  %v12702_v38 = vor.u32 %v15567_v30, %v12701_v29  ;;  %v11818_v51 = vor.u32 %v15346_v39, %v11817_v36  ;;  %v11385_v30 = vld [vmem:[#allocation2 + $0xad0] sm:$0xf]  ;;  %v15398_v36 = vld [vmem:[#allocation6 + $0x3d8] sm:$0xf0] }
 0x196   :  { %3239 = vmatpush.bf16.msrb.mxu3 %v11190_v46  ;;  %v12649_v46 = vld [vmem:[#allocation6 + $0x888] sm:$0xf]  ;;  %v15502_v39 = vld [vmem:[#allocation6 + $0x718] sm:$0xf0] }
 0x197   :  { %3201 = vmatpush.bf16.msrb.mxu0 %v10490_v54  ;;  %v15253_v54 = vld [vmem:[#allocation2 + $0xb90] sm:$0xf0]  ;;  %v12650_v55 = vor.u32 %v15554_v49, %v12649_v46  ;;  %v12025_v35 = vld [vmem:[#allocation6 + $0x3a8] sm:$0xf] }
 0x198   :  { %3214 = vmatpush.bf16.msrb.mxu1 %v10714_v57  ;;  %v12181_v57 = vld [vmem:[#allocation6 + $0x4e0] sm:$0xf]  ;;  %v12026_v49 = vor.u32 %v15398_v36, %v12025_v35 }
 0x199   :  { %3227 = vmatpush.bf16.msrb.mxu2 %v10938_v58  ;;  %v15437_v58 = vld [vmem:[#allocation6 + $0x510] sm:$0xf0] }
 0x19a   :  { %3240 = vmatpush.bf16.msrb.mxu3 %v11162_v62  ;;  %v12182_v62 = vor.u32 %v15437_v58, %v12181_v57  ;;  %v15489_v57 = vld [vmem:[#allocation6 + $0x6b0] sm:$0xf0]  ;;  %v13169_v58 = vld [vmem:[#allocation6 + $0xc98] sm:$0xf] }
 0x19b   :  { %3202 = vmatpush.bf16.msrb.mxu0 %v10462_v9  ;;  %v16446_v60 = vpop.f32.mrf.mxu0  ;;  %v15528_v9 = vld [vmem:[#allocation6 + $0x7e8] sm:$0xf0] }
 0x19c   :  { %3215 = vmatpush.bf16.msrb.mxu1 %v10686_v14  ;;  %v16448_v61 = vpop.f32.mrf.mxu1  ;;  %v11413_v14 = vld [vmem:[#allocation2 + $0xb08] sm:$0xf] }
 0x19d   :  { %3228 = vmatpush.bf16.msrb.mxu2 %v10910_v15  ;;  %v15239_v15 = vld [vmem:[#allocation2 + $0xb20] sm:$0xf0] }
 0x19e   :  { %3241 = vmatpush.bf16.msrb.mxu3 %v11134_v18  ;;  %3203 = vmatmul.bf16.vlgmr.msrb.gmra.mxu0 %v16350_v4  ;;  %v11765_v4 = vld [vmem:[#allocation6 + $0x1a0] sm:$0xf]  ;;  %v12546_v18 = vor.u32 %v15528_v9, %v12545_v8  ;;  %v13117_v8 = vld [vmem:[#allocation6 + $0xc30] sm:$0xf]  ;;  %v15671_v9 = vld [vmem:[#allocation6 + $0xc60] sm:$0xf0] }
 0x19f   :  { %3247 = vmatpush.bf16.msra.mxu0 %v11554_v19  ;;  %3216 = vmatmul.bf16.vlgmr.msrb.gmra.mxu1 %v16355_v6  ;;  %v11470_v6 = vor.u32 %v15253_v54, %v11469_v53  ;;  %v15307_v19 = vld [vmem:[#allocation6 + $0x100] sm:$0xf0] }
 0x1a0   :  { %7777 = vmatpush.bf16.msra.mxu1 %v11922_v48  ;;  %3229 = vmatmul.bf16.vlgmr.msrb.gmra.mxu2 %v16373_v40  ;;  %v15541_v40 = vld [vmem:[#allocation6 + $0x850] sm:$0xf0]  ;;  %v12077_v48 = vld [vmem:[#allocation6 + $0x410] sm:$0xf]  ;;  %v11662_v28 = vor.u32 %v15307_v19, %v11661_v45  ;;  %v16461_v45 = vpack.c.bf16 %v16417_v16, %v16417_v16  ;;  %v13481_v16 = vld [vmem:[#allocation6 + $0xf08] sm:$0xf] }
 0x1a1   :  { %7790 = vmatpush.bf16.msra.mxu2 %v12338_v22  ;;  %3242 = vmatmul.bf16.vlgmr.msrb.gmra.mxu3 %v16375_v41  ;;  %v11766_v41 = vor.u32 %v15333_v56, %v11765_v4  ;;  %v12598_v2 = vor.u32 %v15541_v40, %v12597_v59  ;;  %v15411_v22 = vld [vmem:[#allocation6 + $0x440] sm:$0xf0]  ;;  %v11973_v4 = vld [vmem:[#allocation6 + $0x340] sm:$0xf]  ;;  %v15684_v59 = vld [vmem:[#allocation6 + $0xcc8] sm:$0xf0] }
 0x1a2   :  { %7803 = vmatpush.bf16.msra.mxu3 %v12754_v26  ;;  %v11414_v26 = vor.u32 %v15239_v15, %v11413_v14  ;;  %v12078_v29 = vor.u32 %v15411_v22, %v12077_v48  ;;  %v12389_v56 = vld [vmem:[#allocation6 + $0x680] sm:$0xf]  ;;  %v14002_v14 = vor.u32 %v15892_v3, %v14001_v21  ;;  %v16457_v15 = vpack.c.bf16 %v16403_v34, %v16403_v34  ;;  %v13949_v19 = vld [vmem:[#allocation6 + $0x12b0] sm:$0xf]  ;;  %v15879_v48 = vld [vmem:[#allocation6 + $0x12e0] sm:$0xf0] }
 0x1a3   :  { %3248 = vmatpush.bf16.msra.mxu0 %v11526_v7  ;;  %v16450_v17 = vpop.f32.mrf.mxu2  ;;  %v2998_v13 = vpop.f32.mrf.mxu0  ;;  %v15232_v7 = vld [vmem:[#allocation2 + $0xae8] sm:$0xf0]  ;;  %v12390_v1 = vor.u32 %v15489_v57, %v12389_v56  ;;  %v16465_v22 = vpack.c.bf16 %v16431_v63, %v16431_v63  ;;  %v15658_v34 = vld [vmem:[#allocation6 + $0xbf8] sm:$0xf0]  ;;  %v12909_v56 = vld [vmem:[#allocation6 + $0xa90] sm:$0xf] }
 0x1a4   :  { %7778 = vmatpush.bf16.msra.mxu1 %v11870_v31  ;;  %v16452_v25 = vpop.f32.mrf.mxu3  ;;  %v3011_v27 = vpop.f32.mrf.mxu1  ;;  %v11609_v31 = vld [vmem:[#allocation6 + $0x68] sm:$0xf]  ;;  %v11386_v42 = vor.u32 %v15232_v7, %v11385_v30  ;;  %v15762_v13 = vld [vmem:[#allocation6 + $0xf38] sm:$0xf0]  ;;  %v13013_v30 = vld [vmem:[#allocation6 + $0xb60] sm:$0xf] }
 0x1a5   :  { %7791 = vmatpush.bf16.msra.mxu2 %v12286_v32  ;;  %v12494_v32 = vor.u32 %v15515_v24, %v12493_v23  ;;  %v11610_v46 = vor.u32 %v15294_v33, %v11609_v31  ;;  %v13065_v24 = vld [vmem:[#allocation6 + $0xbc8] sm:$0xf]  ;;  %v13950_v27 = vor.u32 %v15879_v48, %v13949_v19  ;;  %v15645_v7 = vld [vmem:[#allocation6 + $0xb90] sm:$0xf0]  ;;  %v13429_v31 = vld [vmem:[#allocation6 + $0xea0] sm:$0xf] }
 0x1a6   :  { %7804 = vmatpush.bf16.msra.mxu3 %v12702_v38  ;;  %v12441_v38 = vld [vmem:[#allocation6 + $0x6e8] sm:$0xf]  ;;  %v13066_v63 = vor.u32 %v15658_v34, %v13065_v24  ;;  %v13014_v35 = vor.u32 %v15645_v7, %v13013_v30  ;;  %v15619_v57 = vld [vmem:[#allocation6 + $0xac0] sm:$0xf0]  ;;  %v15606_v3 = vld [vmem:[#allocation6 + $0xa58] sm:$0xf0] }
 0x1a7   :  { %3249 = vmatpush.bf16.msra.mxu0 %v11498_v50  ;;  %v15225_v50 = vld [vmem:[#allocation2 + $0xab0] sm:$0xf0]  ;;  %v12442_v54 = vor.u32 %v15502_v39, %v12441_v38  ;;  %v13845_v39 = vld [vmem:[#allocation6 + $0x11e0] sm:$0xf]  ;;  %v12857_v21 = vld [vmem:[#allocation6 + $0xa28] sm:$0xf] }
 0x1a8   :  { %7779 = vmatpush.bf16.msra.mxu1 %v11818_v51  ;;  %v11557_v51 = vld [vmem:[#allocation6] sm:$0xf]  ;;  %v15593_v48 = vld [vmem:[#allocation6 + $0x9f0] sm:$0xf0] }
 0x1a9   :  { %7792 = vmatpush.bf16.msra.mxu2 %v12234_v52  ;;  %v15281_v52 = vld [vmem:[#allocation6 + $0x30] sm:$0xf0]  ;;  %v12805_v19 = vld [vmem:[#allocation6 + $0x9c0] sm:$0xf] }
 0x1aa   :  { %7805 = vmatpush.bf16.msra.mxu3 %v12650_v55  ;;  %v15385_v55 = vld [vmem:[#allocation6 + $0x370] sm:$0xf0]  ;;  %v11558_v0 = vor.u32 %v15281_v52, %v11557_v51  ;;  %v13377_v51 = vld [vmem:[#allocation6 + $0xe38] sm:$0xf]  ;;  %v15736_v52 = vld [vmem:[#allocation6 + $0xe68] sm:$0xf0] }
 0x1ab   :  { %3250 = vmatpush.bf16.msra.mxu0 %v11470_v6  ;;  %v3024_v53 = vpop.f32.mrf.mxu2  ;;  %v11358_v6 = vor.u32 %v15225_v50, %v11357_v43  ;;  %v11974_v20 = vor.u32 %v15385_v55, %v11973_v4  ;;  %v15840_v4 = vld [vmem:[#allocation6 + $0x11a8] sm:$0xf0]  ;;  %v13378_v55 = vor.u32 %v15736_v52, %v13377_v51  ;;  %v15801_v30 = vld [vmem:[#allocation6 + $0x1070] sm:$0xf0] }
 0x1ac   :  { %7780 = vmatpush.bf16.msra.mxu1 %v11766_v41  ;;  %v3037_v40 = vpop.f32.mrf.mxu3  ;;  %v13585_v41 = vld [vmem:[#allocation6 + $0xfd8] sm:$0xf]  ;;  %v15561_v52 = vld [vmem:[#allocation6 + $0x8f4] sm:$0xf] }
 0x1ad   :  { %7793 = vmatpush.bf16.msra.mxu2 %v12182_v62  ;;  %v15788_v62 = vld [vmem:[#allocation6 + $0x1008] sm:$0xf0]  ;;  %v13325_v40 = vld [vmem:[#allocation6 + $0xdd0] sm:$0xf] }
 0x1ae   :  { %7806 = vmatpush.bf16.msra.mxu3 %v12598_v2  ;;  %v13170_v2 = vor.u32 %v15684_v59, %v13169_v58  ;;  %v13586_v5 = vor.u32 %v15788_v62, %v13585_v41 }
 0x1af   :  { %3251 = vmatpush.bf16.msra.mxu0 %v11442_v10  ;;  %v572_v10 = vperm.slane %v16433_v47, 4 }
 0x1b0   :  { %7781 = vmatpush.bf16.msra.mxu1 %v11714_v11  ;;  %v13533_v11 = vld [vmem:[#allocation6 + $0xf70] sm:$0xf] }
 0x1b1   :  { %7794 = vmatpush.bf16.msra.mxu2 %v12130_v12  ;;  %v15775_v12 = vld [vmem:[#allocation6 + $0xfa0] sm:$0xf0] }
 0x1b2   :  { %7807 = vmatpush.bf16.msra.mxu3 %v12546_v18  ;;  %v13118_v18 = vor.u32 %v15671_v9, %v13117_v8  ;;  %v13534_v23 = vor.u32 %v15775_v12, %v13533_v11  ;;  %v13273_v8 = vld [vmem:[#allocation6 + $0xd68] sm:$0xf]  ;;  %v15710_v9 = vld [vmem:[#allocation6 + $0xd98] sm:$0xf0]  ;;  %v12858_v11 = vor.u32 %v15606_v3, %v12857_v21  ;;  %v15535_v21 = vld [vmem:[#allocation6 + $0x824] sm:$0xf] }
 0x1b3   :  { %3252 = vmatpush.bf16.msra.mxu0 %v11414_v26  ;;  %v2997_v26 = vadd.f32 %v16446_v60, %v572_v10  ;;  %v13689_v12 = vld [vmem:[#allocation6 + $0x10a8] sm:$0xf]  ;;  %v12599_v3 = vld [vmem:[#allocation6 + $0x854] sm:$0xf0] }
 0x1b4   :  { %7782 = vmatpush.bf16.msra.mxu1 %v11662_v28  ;;  %v13897_v28 = vld [vmem:[#allocation6 + $0x1248] sm:$0xf] }
 0x1b5   :  { %7795 = vmatpush.bf16.msra.mxu2 %v12078_v29  ;;  %v15866_v29 = vld [vmem:[#allocation6 + $0x1278] sm:$0xf0]  ;;  %v3010_v60 = vadd.f32 %v16448_v61, %v2997_v26  ;;  %v15697_v26 = vld [vmem:[#allocation6 + $0xd30] sm:$0xf0] }
 0x1b6   :  { %7808 = vmatpush.bf16.msra.mxu3 %v12494_v32  ;;  %v15749_v32 = vld [vmem:[#allocation6 + $0xed0] sm:$0xf0]  ;;  %v13898_v33 = vor.u32 %v15866_v29, %v13897_v28  ;;  %v12806_v29 = vor.u32 %v15593_v48, %v12805_v19  ;;  %v15996_v19 = vld [vmem:[#allocation6 + $0x1688] sm:$0xf0] }
 0x1b7   :  { %3253 = vmatpush.bf16.msra.mxu0 %v11386_v42  ;;  %v15853_v42 = vld [vmem:[#allocation6 + $0x1210] sm:$0xf0]  ;;  %v13430_v43 = vor.u32 %v15749_v32, %v13429_v31  ;;  %v3023_v50 = vadd.f32 %v16450_v17, %v3010_v60  ;;  %v12910_v17 = vor.u32 %v15619_v57, %v12909_v56  ;;  %v15574_v31 = vld [vmem:[#allocation6 + $0x95c] sm:$0xf]  ;;  %v12755_v32 = vld [vmem:[#allocation6 + $0x98c] sm:$0xf0] }
 0x1b8   :  { %7783 = vmatpush.bf16.msra.mxu1 %v11610_v46  ;;  %v12961_v46 = vld [vmem:[#allocation6 + $0xaf8] sm:$0xf]  ;;  %v13846_v61 = vor.u32 %v15853_v42, %v13845_v39  ;;  %v15457_v42 = vld [vmem:[#allocation6 + $0x5b4] sm:$0xf]  ;;  %v15444_v56 = vld [vmem:[#allocation6 + $0x54c] sm:$0xf] }
 0x1b9   :  { %7796 = vmatpush.bf16.msra.mxu2 %v12026_v49  ;;  %v15632_v49 = vld [vmem:[#allocation6 + $0xb28] sm:$0xf0]  ;;  %v3036_v59 = vadd.f32 %v16452_v25, %v3023_v50  ;;  %v16479_v50 = vpack.c.bf16 %v16440_v44, %v16440_v44  ;;  %v12235_v57 = vld [vmem:[#allocation6 + $0x57c] sm:$0xf0] }
 0x1ba   :  { %7809 = vmatpush.bf16.msra.mxu3 %v12442_v54  ;;  %v12962_v53 = vor.u32 %v15632_v49, %v12961_v46  ;;  %v13793_v54 = vld [vmem:[#allocation6 + $0x1178] sm:$0xf]  ;;  %v12758_v49 = vor.u32 %v15574_v31, %v12755_v32 }
 0x1bb   :  { %3254 = vmatpush.bf16.msra.mxu0 %v11358_v6  ;;  %v3048_v36 = vpop.f32.mrf.mxu0  ;;  %v15723_v6 = vld [vmem:[#allocation6 + $0xe00] sm:$0xf0]  ;;  %v13794_v41 = vor.u32 %v15840_v4, %v13793_v54  ;;  %v15340_v4 = vld [vmem:[#allocation6 + $0x20c] sm:$0xf] }
 0x1bc   :  { %7784 = vmatpush.bf16.msra.mxu1 %v11558_v0  ;;  %v3061_v38 = vpop.f32.mrf.mxu1  ;;  %v13741_v0 = vld [vmem:[#allocation6 + $0x1110] sm:$0xf] }
 0x1bd   :  { %7797 = vmatpush.bf16.msra.mxu2 %v11974_v20  ;;  %v15827_v20 = vld [vmem:[#allocation6 + $0x1140] sm:$0xf0] }
 0x1be   :  { %7810 = vmatpush.bf16.msra.mxu3 %v12390_v1  ;;  %3255 = vmatmul.bf16.vlgmr.msra.gmra.mxu0 %v16371_v37  ;;  %v13482_v37 = vor.u32 %v15762_v13, %v13481_v16  ;;  %v13742_v25 = vor.u32 %v15827_v20, %v13741_v0  ;;  %v15366_v16 = vld [vmem:[#allocation6 + $0x2dc] sm:$0xf]  ;;  %v11923_v13 = vld [vmem:[#allocation6 + $0x30c] sm:$0xf0]  ;;  %v12183_v0 = vld [vmem:[#allocation6 + $0x514] sm:$0xf0] }
 0x1bf   :  { %7816 = vmatpush.bf16.msrb.mxu0 %v13170_v2  ;;  %7785 = vmatmul.bf16.vlgmr.msra.gmra.mxu1 %v16457_v15  ;;  %v13326_v2 = vor.u32 %v15723_v6, %v13325_v40  ;;  %v11926_v60 = vor.u32 %v15366_v16, %v11923_v13  ;;  %v12651_v40 = vld [vmem:[#allocation6 + $0x8bc] sm:$0xf0]  ;;  %v12238_v6 = vor.u32 %v15444_v56, %v12235_v57  ;;  %v15301_v16 = vld [vmem:[#allocation6 + $0xd4] sm:$0xf]  ;;  %v11663_v13 = vld [vmem:[#allocation6 + $0x104] sm:$0xf0] }
 0x1c0   :  { %7829 = vmatpush.bf16.msrb.mxu1 %v13586_v5  ;;  %7798 = vmatmul.bf16.vlgmr.msra.gmra.mxu2 %v16461_v45  ;;  %v3049_v5 = vadd.f32 %v3048_v36, %v3036_v59  ;;  %v15353_v36 = vld [vmem:[#allocation6 + $0x274] sm:$0xf]  ;;  %v15548_v59 = vld [vmem:[#allocation6 + $0x88c] sm:$0xf]  ;;  %v11666_v31 = vor.u32 %v15301_v16, %v11663_v13  ;;  %v11559_v56 = vld [vmem:[#allocation6 + $0x34] sm:$0xf0] }
 0x1c1   :  { %7811 = vmatmul.bf16.vlgmr.msra.gmra.mxu3 %v16465_v22  ;;  %7842 = vmatpush.bf16.msrb.mxu2 %v14002_v14  ;;  %v15814_v14 = vld [vmem:[#allocation6 + $0x10d8] sm:$0xf0]  ;;  %v12654_v20 = vor.u32 %v15548_v59, %v12651_v40  ;;  %v15496_v57 = vld [vmem:[#allocation6 + $0x6ec] sm:$0xf]  ;;  %v15379_v59 = vld [vmem:[#allocation6 + $0x344] sm:$0xf] }
 0x1c2   :  { %v3062_v34 = vadd.f32 %v3061_v38, %v3049_v5  ;;  %v13690_v28 = vor.u32 %v15814_v14, %v13689_v12  ;;  %v11871_v38 = vld [vmem:[#allocation6 + $0x2a4] sm:$0xf0]  ;;  %v12131_v12 = vld [vmem:[#allocation6 + $0x4ac] sm:$0xf0]  ;;  %v12602_v14 = vor.u32 %v15535_v21, %v12599_v3  ;;  %v11975_v40 = vld [vmem:[#allocation6 + $0x374] sm:$0xf0] }
 0x1c3   :  { %7817 = vmatpush.bf16.msrb.mxu0 %v13118_v18  ;;  %v3074_v58 = vpop.f32.mrf.mxu2  ;;  %v3050_v62 = vpop.f32.mrf.mxu0  ;;  %v13274_v18 = vor.u32 %v15710_v9, %v13273_v8  ;;  %v11874_v51 = vor.u32 %v15353_v36, %v11871_v38  ;;  %v15314_v8 = vld [vmem:[#allocation6 + $0x13c] sm:$0xf]  ;;  %v11715_v9 = vld [vmem:[#allocation6 + $0x16c] sm:$0xf0]  ;;  %v12495_v36 = vld [vmem:[#allocation6 + $0x784] sm:$0xf0] }
 0x1c4   :  { %7830 = vmatpush.bf16.msrb.mxu1 %v13534_v23  ;;  %v3063_v1 = vpop.f32.mrf.mxu1  ;;  %v16475_v10 = vpop.f32.mrf.mxu3  ;;  %v13221_v23 = vld [vmem:[#allocation6 + $0xd00] sm:$0xf]  ;;  %v15431_v62 = vld [vmem:[#allocation6 + $0x4e4] sm:$0xf]  ;;  %v11718_v48 = vor.u32 %v15314_v8, %v11715_v9  ;;  %v12391_v9 = vld [vmem:[#allocation6 + $0x6b4] sm:$0xf0] }
 0x1c5   :  { %7843 = vmatpush.bf16.msrb.mxu2 %v13950_v27  ;;  %v15470_v27 = vld [vmem:[#allocation6 + $0x61c] sm:$0xf]  ;;  %v13222_v7 = vor.u32 %v15697_v26, %v13221_v23  ;;  %v12186_v5 = vor.u32 %v15431_v62, %v12183_v0  ;;  %v15957_v62 = vld [vmem:[#allocation6 + $0x1550] sm:$0xf0]  ;;  %v15483_v8 = vld [vmem:[#allocation6 + $0x684] sm:$0xf] }
 0x1c6   :  { %v15522_v23 = vld [vmem:[#allocation6 + $0x7bc] sm:$0xf]  ;;  %v15944_v16 = vld [vmem:[#allocation6 + $0x14e8] sm:$0xf0] }
 0x1c7   :  { %7818 = vmatpush.bf16.msrb.mxu0 %v13066_v63  ;;  %v12339_v63 = vld [vmem:[#allocation6 + $0x64c] sm:$0xf0]  ;;  %v15886_v0 = vld [vmem:[#allocation6 + $0x131c] sm:$0xf] }
 0x1c8   :  { %7831 = vmatpush.bf16.msrb.mxu1 %v13482_v37  ;;  %v13637_v37 = vld [vmem:[#allocation6 + $0x1040] sm:$0xf] }
 0x1c9   :  { %7844 = vmatpush.bf16.msrb.mxu2 %v13898_v33  ;;  %v3075_v33 = vadd.f32 %v3074_v58, %v3062_v34  ;;  %v13638_v46 = vor.u32 %v15801_v30, %v13637_v37  ;;  %v573_v37 = vperm.slane %v16433_v47, 5  ;;  %v14313_v47 = vld [vmem:[#allocation6 + $0x1588] sm:$0xf] }
 0x1cb   :  { %7819 = vmatpush.bf16.msrb.mxu0 %v13014_v35  ;;  %v3076_v24 = vpop.f32.mrf.mxu2  ;;  %v12342_v35 = vor.u32 %v15470_v27, %v12339_v63  ;;  %v15405_v27 = vld [vmem:[#allocation6 + $0x414] sm:$0xf]  ;;  %v12079_v63 = vld [vmem:[#allocation6 + $0x444] sm:$0xf0] }
 0x1cc   :  { %7832 = vmatpush.bf16.msrb.mxu1 %v13430_v43  ;;  %v3089_v39 = vpop.f32.mrf.mxu3  ;;  %v12287_v43 = vld [vmem:[#allocation6 + $0x5e4] sm:$0xf0]  ;;  %v12547_v24 = vld [vmem:[#allocation6 + $0x7ec] sm:$0xf0]  ;;  %v12082_v38 = vor.u32 %v15405_v27, %v12079_v63 }
 0x1cd   :  { %7845 = vmatpush.bf16.msrb.mxu2 %v13846_v61  ;;  %v12703_v61 = vld [vmem:[#allocation6 + $0x924] sm:$0xf0]  ;;  %v12290_v54 = vor.u32 %v15457_v42, %v12287_v43  ;;  %v12550_v30 = vor.u32 %v15522_v23, %v12547_v24  ;;  %v15288_v39 = vld [vmem:[#allocation6 + $0x6c] sm:$0xf]  ;;  %v11611_v42 = vld [vmem:[#allocation6 + $0x9c] sm:$0xf0] }
 0x1ce   :  { %v12706_v44 = vor.u32 %v15561_v52, %v12703_v61  ;;  %v15392_v43 = vld [vmem:[#allocation6 + $0x3ac] sm:$0xf]  ;;  %v3088_v52 = vadd.f32 %v16475_v10, %v573_v37  ;;  %v15275_v61 = vld [vmem:[#allocation6 + $0x4] sm:$0xf]  ;;  %v15873_v23 = vld [vmem:[#allocation6 + $0x12b4] sm:$0xf] }
 0x1cf   :  { %7820 = vmatpush.bf16.msrb.mxu0 %v12962_v53  ;;  %v16481_v53 = vpack.c.bf16 %v3075_v33, %v3075_v33  ;;  %v13951_v24 = vld [vmem:[#allocation6 + $0x12e4] sm:$0xf0]  ;;  %v15860_v37 = vld [vmem:[#allocation6 + $0x124c] sm:$0xf] }
 0x1d0   :  { %7833 = vmatpush.bf16.msrb.mxu1 %v13378_v55  ;;  %v11819_v55 = vld [vmem:[#allocation6 + $0x23c] sm:$0xf0]  ;;  %v13954_v63 = vor.u32 %v15873_v23, %v13951_v24 }
 0x1d1   :  { %7846 = vmatpush.bf16.msrb.mxu2 %v13794_v41  ;;  %v11822_v58 = vor.u32 %v15340_v4, %v11819_v55  ;;  %v15327_v41 = vld [vmem:[#allocation6 + $0x1a4] sm:$0xf]  ;;  %v11614_v55 = vor.u32 %v15288_v39, %v11611_v42  ;;  %v13431_v39 = vld [vmem:[#allocation6 + $0xed4] sm:$0xf0] }
 0x1d2   :  { %v15847_v42 = vld [vmem:[#allocation6 + $0x11e4] sm:$0xf] }
 0x1d3   :  { %7821 = vmatpush.bf16.msrb.mxu0 %v12910_v17  ;;  %v11767_v17 = vld [vmem:[#allocation6 + $0x1d4] sm:$0xf0] }
 0x1d4   :  { %7834 = vmatpush.bf16.msrb.mxu1 %v13326_v2  ;;  %v11770_v1 = vor.u32 %v15327_v41, %v11767_v17  ;;  %v13587_v41 = vld [vmem:[#allocation6 + $0x100c] sm:$0xf0]  ;;  %v14261_v17 = vld [vmem:[#allocation6 + $0x1520] sm:$0xf] }
 0x1d5   :  { %7847 = vmatpush.bf16.msrb.mxu2 %v13742_v25  ;;  %v14262_v21 = vor.u32 %v15957_v62, %v14261_v17  ;;  %v13171_v17 = vld [vmem:[#allocation6 + $0xccc] sm:$0xf0] }
 0x1d7   :  { %7822 = vmatpush.bf16.msrb.mxu0 %v12858_v11  ;;  %v15418_v11 = vld [vmem:[#allocation6 + $0x47c] sm:$0xf] }
 0x1d8   :  { %7835 = vmatpush.bf16.msrb.mxu1 %v13274_v18  ;;  %v14417_v18 = vld [vmem:[#allocation6 + $0x1658] sm:$0xf]  ;;  %v12134_v26 = vor.u32 %v15418_v11, %v12131_v12  ;;  %v11978_v12 = vor.u32 %v15379_v59, %v11975_v40  ;;  %v14053_v40 = vld [vmem:[#allocation6 + $0x1380] sm:$0xf] }
 0x1d9   :  { %7848 = vmatpush.bf16.msrb.mxu2 %v13690_v28  ;;  %v14418_v34 = vor.u32 %v15996_v19, %v14417_v18  ;;  %v14365_v28 = vld [vmem:[#allocation6 + $0x15f0] sm:$0xf]  ;;  %v15769_v19 = vld [vmem:[#allocation6 + $0xf74] sm:$0xf] }
 0x1db   :  { %7823 = vmatpush.bf16.msrb.mxu0 %v12806_v29  ;;  %v16485_v2 = vpop.f32.mrf.mxu0  ;;  %7855 = vmatpush.bf16.msrb.mxu3 %v14418_v34  ;;  %v15983_v29 = vld [vmem:[#allocation6 + $0x1620] sm:$0xf0]  ;;  %v12394_v34 = vor.u32 %v15483_v8, %v12391_v9  ;;  %v13743_v9 = vld [vmem:[#allocation6 + $0x1144] sm:$0xf0] }
 0x1dc   :  { %7836 = vmatpush.bf16.msrb.mxu1 %v13222_v7  ;;  %v16487_v25 = vpop.f32.mrf.mxu1  ;;  %v3101_v10 = vadd.f32 %v16485_v2, %v3088_v52  ;;  %v15730_v52 = vld [vmem:[#allocation6 + $0xe3c] sm:$0xf] }
 0x1dd   :  { %7849 = vmatpush.bf16.msrb.mxu2 %v13638_v46 }
 0x1de   :  { %7824 = vmatmul.bf16.vlgmr.msrb.gmra.mxu0 %v16479_v50  ;;  %v3114_v2 = vadd.f32 %v16487_v25, %v3101_v10 }
 0x1df   :  { %7868 = vmatpush.bf16.msra.mxu0 %v11926_v60  ;;  %7837 = vmatmul.bf16.vlgmr.msrb.gmra.mxu1 %v16481_v53  ;;  %v14366_v60 = vor.u32 %v15983_v29, %v14365_v28  ;;  %v15756_v28 = vld [vmem:[#allocation6 + $0xf0c] sm:$0xf]  ;;  %v13483_v29 = vld [vmem:[#allocation6 + $0xf3c] sm:$0xf0] }
 0x1e0   :  { %7881 = vmatpush.bf16.msra.mxu1 %v12342_v35  ;;  %v15509_v35 = vld [vmem:[#allocation6 + $0x754] sm:$0xf] }
 0x1e1   :  { %7894 = vmatpush.bf16.msra.mxu2 %v12758_v49  ;;  %v12027_v49 = vld [vmem:[#allocation6 + $0x3dc] sm:$0xf0]  ;;  %7856 = vmatpush.bf16.msrb.mxu3 %v14366_v60  ;;  %v14157_v60 = vld [vmem:[#allocation6 + $0x1450] sm:$0xf] }
 0x1e3   :  { %7869 = vmatpush.bf16.msra.mxu0 %v11874_v51  ;;  %v16490_v7 = vpop.f32.mrf.mxu2  ;;  %v3102_v32 = vpop.f32.mrf.mxu0  ;;  %v15970_v51 = vld [vmem:[#allocation6 + $0x15b8] sm:$0xf0] }
 0x1e4   :  { %7882 = vmatpush.bf16.msra.mxu1 %v12290_v54  ;;  %v16492_v33 = vpop.f32.mrf.mxu3  ;;  %v3115_v46 = vpop.f32.mrf.mxu1  ;;  %v12498_v54 = vor.u32 %v15509_v35, %v12495_v36  ;;  %v14314_v4 = vor.u32 %v15970_v51, %v14313_v47  ;;  %v3127_v25 = vadd.f32 %v16490_v7, %v3114_v2  ;;  %v13486_v35 = vor.u32 %v15756_v28, %v13483_v29  ;;  %v15918_v7 = vld [vmem:[#allocation6 + $0x1418] sm:$0xf0]  ;;  %v15964_v28 = vld [vmem:[#allocation6 + $0x158c] sm:$0xf]  ;;  %v14315_v29 = vld [vmem:[#allocation6 + $0x15bc] sm:$0xf0] }
 0x1e5   :  { %7895 = vmatpush.bf16.msra.mxu2 %v12706_v44  ;;  %v12443_v44 = vld [vmem:[#allocation6 + $0x71c] sm:$0xf0]  ;;  %v13847_v46 = vld [vmem:[#allocation6 + $0x1214] sm:$0xf0] }
 0x1e6   :  { %7857 = vmatpush.bf16.msrb.mxu3 %v14314_v4 }
 0x1e7   :  { %7870 = vmatpush.bf16.msra.mxu0 %v11822_v58  ;;  %v12030_v58 = vor.u32 %v15392_v43, %v12027_v49  ;;  %v3140_v43 = vadd.f32 %v16492_v33, %v3127_v25  ;;  %v14105_v49 = vld [vmem:[#allocation6 + $0x13e8] sm:$0xf]  ;;  %v15905_v33 = vld [vmem:[#allocation6 + $0x13b0] sm:$0xf0]  ;;  %v15652_v25 = vld [vmem:[#allocation6 + $0xbcc] sm:$0xf] }
 0x1e8   :  { %7883 = vmatpush.bf16.msra.mxu1 %v12238_v6  ;;  %v15782_v6 = vld [vmem:[#allocation6 + $0xfdc] sm:$0xf]  ;;  %v14106_v47 = vor.u32 %v15918_v7, %v14105_v49  ;;  %v12761_v49 = vld [vmem:[#allocation6 + $0x960] sm:$0xf]  ;;  %v15581_v7 = vld [vmem:[#allocation6 + $0x990] sm:$0xf0] }
 0x1e9   :  { %7896 = vmatpush.bf16.msra.mxu2 %v12654_v20  ;;  %v14003_v20 = vld [vmem:[#allocation6 + $0x134c] sm:$0xf0] }
 0x1ea   :  { %v14006_v18 = vor.u32 %v15886_v0, %v14003_v20  ;;  %7858 = vmatpush.bf16.msrb.mxu3 %v14262_v21  ;;  %v15717_v21 = vld [vmem:[#allocation6 + $0xdd4] sm:$0xf] }
 0x1eb   :  { %7871 = vmatpush.bf16.msra.mxu0 %v11770_v1  ;;  %v12446_v1 = vor.u32 %v15496_v57, %v12443_v44  ;;  %v3128_v3 = vpop.f32.mrf.mxu2  ;;  %v15990_v57 = vld [vmem:[#allocation6 + $0x165c] sm:$0xf]  ;;  %v14419_v44 = vld [vmem:[#allocation6 + $0x168c] sm:$0xf0] }
 0x1ec   :  { %7884 = vmatpush.bf16.msra.mxu1 %v12186_v5  ;;  %v11562_v5 = vor.u32 %v15275_v61, %v11559_v56  ;;  %v3141_v11 = vpop.f32.mrf.mxu3  ;;  %v13379_v61 = vld [vmem:[#allocation6 + $0xe6c] sm:$0xf0]  ;;  %v13327_v3 = vld [vmem:[#allocation6 + $0xe04] sm:$0xf0] }
 0x1ed   :  { %7897 = vmatpush.bf16.msra.mxu2 %v12602_v14  ;;  %v13590_v14 = vor.u32 %v15782_v6, %v13587_v41  ;;  %v13795_v56 = vld [vmem:[#allocation6 + $0x11ac] sm:$0xf0]  ;;  %v15678_v6 = vld [vmem:[#allocation6 + $0xc9c] sm:$0xf]  ;;  %v14054_v41 = vor.u32 %v15905_v33, %v14053_v40  ;;  %v13382_v10 = vor.u32 %v15730_v52, %v13379_v61  ;;  %v15977_v11 = vld [vmem:[#allocation6 + $0x15f4] sm:$0xf]  ;;  %v12762_v40 = vor.u32 %v15581_v7, %v12761_v49 }
 0x1ee   :  { %v13174_v0 = vor.u32 %v15678_v6, %v13171_v17  ;;  %v15639_v52 = vld [vmem:[#allocation6 + $0xb64] sm:$0xf]  ;;  %v13015_v61 = vld [vmem:[#allocation6 + $0xb94] sm:$0xf0]  ;;  %v15938_v17 = vld [vmem:[#allocation6 + $0x14bc] sm:$0xf] }
 0x1ef   :  { %7872 = vmatpush.bf16.msra.mxu0 %v11718_v48  ;;  %v13535_v48 = vld [vmem:[#allocation6 + $0xfa4] sm:$0xf0]  ;;  %v12709_v6 = vld [vmem:[#allocation6 + $0x8f8] sm:$0xf]  ;;  %v15587_v7 = vld [vmem:[#allocation6 + $0x9c4] sm:$0xf] }
 0x1f0   :  { %7885 = vmatpush.bf16.msra.mxu1 %v12134_v26  ;;  %v14209_v26 = vld [vmem:[#allocation6 + $0x14b8] sm:$0xf]  ;;  %v13538_v27 = vor.u32 %v15769_v19, %v13535_v48  ;;  %v13330_v19 = vor.u32 %v15717_v21, %v13327_v3  ;;  %v12241_v21 = vld [vmem:[#allocation6 + $0x550] sm:$0xf]  ;;  %v15451_v3 = vld [vmem:[#allocation6 + $0x580] sm:$0xf0] }
 0x1f1   :  { %7898 = vmatpush.bf16.msra.mxu2 %v12550_v30  ;;  %v14210_v13 = vor.u32 %v15944_v16, %v14209_v26  ;;  %v13899_v30 = vld [vmem:[#allocation6 + $0x127c] sm:$0xf0]  ;;  %v15808_v16 = vld [vmem:[#allocation6 + $0x10ac] sm:$0xf]  ;;  %v14055_v49 = vld [vmem:[#allocation6 + $0x13b4] sm:$0xf0] }
 0x1f2   :  { %v13902_v36 = vor.u32 %v15860_v37, %v13899_v30  ;;  %v13275_v26 = vld [vmem:[#allocation6 + $0xd9c] sm:$0xf0] }
 0x1f3   :  { %7873 = vmatpush.bf16.msra.mxu0 %v11666_v31  ;;  %7859 = vmatpush.bf16.msrb.mxu3 %v14210_v13  ;;  %v15931_v31 = vld [vmem:[#allocation6 + $0x1480] sm:$0xf0]  ;;  %v13067_v30 = vld [vmem:[#allocation6 + $0xbfc] sm:$0xf0] }
 0x1f4   :  { %7886 = vmatpush.bf16.msra.mxu1 %v12082_v38  ;;  %v14158_v32 = vor.u32 %v15931_v31, %v14157_v60  ;;  %v15743_v38 = vld [vmem:[#allocation6 + $0xea4] sm:$0xf] }
 0x1f5   :  { %7899 = vmatpush.bf16.msra.mxu2 %v12498_v54  ;;  %v13434_v51 = vor.u32 %v15743_v38, %v13431_v39  ;;  %v15834_v54 = vld [vmem:[#allocation6 + $0x117c] sm:$0xf]  ;;  %v15691_v31 = vld [vmem:[#allocation6 + $0xd04] sm:$0xf]  ;;  %v14318_v39 = vor.u32 %v15964_v28, %v14315_v29  ;;  %v15912_v29 = vld [vmem:[#allocation6 + $0x13ec] sm:$0xf] }
 0x1f6   :  { %v13798_v20 = vor.u32 %v15834_v54, %v13795_v56  ;;  %v15542_v28 = vld [vmem:[#allocation6 + $0x858] sm:$0xf0] }
 0x1f7   :  { %7874 = vmatpush.bf16.msra.mxu0 %v11614_v55  ;;  %7860 = vmatpush.bf16.msrb.mxu3 %v14158_v32  ;;  %v13850_v55 = vor.u32 %v15847_v42, %v13847_v46  ;;  %v13223_v32 = vld [vmem:[#allocation6 + $0xd34] sm:$0xf0]  ;;  %v15477_v46 = vld [vmem:[#allocation6 + $0x650] sm:$0xf0] }
 0x1f8   :  { %7887 = vmatpush.bf16.msra.mxu1 %v12030_v58  ;;  %v13639_v42 = vld [vmem:[#allocation6 + $0x1074] sm:$0xf0]  ;;  %v13226_v54 = vor.u32 %v15691_v31, %v13223_v32  ;;  %v12137_v32 = vld [vmem:[#allocation6 + $0x480] sm:$0xf] }
 0x1f9   :  { %7900 = vmatpush.bf16.msra.mxu2 %v12446_v1  ;;  %v14422_v1 = vor.u32 %v15990_v57, %v14419_v44  ;;  %v12293_v44 = vld [vmem:[#allocation6 + $0x5b8] sm:$0xf] }
 0x1fb   :  { %7875 = vmatpush.bf16.msra.mxu0 %v11562_v5  ;;  %v3152_v4 = vpop.f32.mrf.mxu0  ;;  %7861 = vmatpush.bf16.msrb.mxu3 %v14106_v47  ;;  %v15821_v5 = vld [vmem:[#allocation6 + $0x1114] sm:$0xf]  ;;  %v15951_v47 = vld [vmem:[#allocation6 + $0x1524] sm:$0xf] }
 0x1fc   :  { %7888 = vmatpush.bf16.msra.mxu1 %v11978_v12  ;;  %v3153_v58 = vadd.f32 %v3152_v4, %v3140_v43  ;;  %v3165_v59 = vpop.f32.mrf.mxu1  ;;  %v14367_v12 = vld [vmem:[#allocation6 + $0x1624] sm:$0xf0]  ;;  %v13746_v2 = vor.u32 %v15821_v5, %v13743_v9  ;;  %v12345_v43 = vld [vmem:[#allocation6 + $0x620] sm:$0xf] }
 0x1fd   :  { %7901 = vmatpush.bf16.msra.mxu2 %v12394_v34  ;;  %v14370_v24 = vor.u32 %v15977_v11, %v14367_v12  ;;  %v15704_v34 = vld [vmem:[#allocation6 + $0xd6c] sm:$0xf]  ;;  %v12346_v57 = vor.u32 %v15477_v46, %v12345_v43  ;;  %v12657_v11 = vld [vmem:[#allocation6 + $0x890] sm:$0xf]  ;;  %v15555_v12 = vld [vmem:[#allocation6 + $0x8c0] sm:$0xf0] }
 0x1fe   :  { %7876 = vmatmul.bf16.vlgmr.msra.gmra.mxu0 %v16457_v15  ;;  %v3166_v62 = vadd.f32 %v3165_v59, %v3153_v58  ;;  %v13278_v60 = vor.u32 %v15704_v34, %v13275_v26  ;;  %v15464_v58 = vld [vmem:[#allocation6 + $0x5e8] sm:$0xf0]  ;;  %v12189_v34 = vld [vmem:[#allocation6 + $0x4e8] sm:$0xf]  ;;  %v15438_v26 = vld [vmem:[#allocation6 + $0x518] sm:$0xf0] }
 0x1ff   :  { %7920 = vmatpush.bf16.msrb.mxu0 %v13590_v14  ;;  %7889 = vmatmul.bf16.vlgmr.msra.gmra.mxu1 %v16461_v45  ;;  %v15665_v14 = vld [vmem:[#allocation6 + $0xc34] sm:$0xf]  ;;  %v12190_v31 = vor.u32 %v15438_v26, %v12189_v34  ;;  %v15899_v43 = vld [vmem:[#allocation6 + $0x1384] sm:$0xf]  ;;  %v15386_v34 = vld [vmem:[#allocation6 + $0x378] sm:$0xf0] }
 0x200   :  { %7933 = vmatpush.bf16.msrb.mxu1 %v14006_v18  ;;  %7862 = vmatpush.bf16.msrb.mxu3 %v14054_v41  ;;  %v16501_v8 = vpack.c.bf16 %v3166_v62, %v3166_v62  ;;  %v13119_v18 = vld [vmem:[#allocation6 + $0xc64] sm:$0xf0]  ;;  %v15568_v41 = vld [vmem:[#allocation6 + $0x928] sm:$0xf0]  ;;  %v14211_v62 = vld [vmem:[#allocation6 + $0x14ec] sm:$0xf0] }
 0x201   :  { %v13122_v23 = vor.u32 %v15665_v14, %v13119_v18  ;;  %v12710_v5 = vor.u32 %v15568_v41, %v12709_v6  ;;  %v14214_v9 = vor.u32 %v15938_v17, %v14211_v62  ;;  %v15925_v14 = vld [vmem:[#allocation6 + $0x1454] sm:$0xf]  ;;  %v14159_v18 = vld [vmem:[#allocation6 + $0x1484] sm:$0xf0]  ;;  %v15516_v6 = vld [vmem:[#allocation6 + $0x788] sm:$0xf0] }
 0x202   :  { %7850 = vmatmul.bf16.vlgmr.msrb.gmra.mxu2 %v16501_v8  ;;  %v13125_v41 = vld [vmem:[#allocation6 + $0xc38] sm:$0xf]  ;;  %v15672_v17 = vld [vmem:[#allocation6 + $0xc68] sm:$0xf0]  ;;  %v12397_v26 = vld [vmem:[#allocation6 + $0x688] sm:$0xf] }
 0x203   :  { %7921 = vmatpush.bf16.msrb.mxu0 %v13538_v27  ;;  %v16504_v48 = vpop.f32.mrf.mxu2  ;;  %7946 = vmatpush.bf16.msrb.mxu2 %v14422_v1  ;;  %v3154_v13 = vpop.f32.mrf.mxu0  ;;  %v12294_v1 = vor.u32 %v15464_v58, %v12293_v44  ;;  %v15412_v44 = vld [vmem:[#allocation6 + $0x448] sm:$0xf0]  ;;  %v16121_v58 = vld [vmem:[#allocation4] sm:$0xff] }
 0x204   :  { %7934 = vmatpush.bf16.msrb.mxu1 %v13954_v63  ;;  %7907 = vmatpush.bf16.msra.mxu3 %v13174_v0  ;;  %v16506_v27 = vpop.f32.mrf.mxu3  ;;  %v13691_v63 = vld [vmem:[#allocation6 + $0x10dc] sm:$0xf0]  ;;  %v3167_v37 = vpop.f32.mrf.mxu1  ;;  %v12963_v0 = vld [vmem:[#allocation6 + $0xb2c] sm:$0xf0]  ;;  %v14162_v13 = vor.u32 %v15925_v14, %v14159_v18  ;;  %v15659_v18 = vld [vmem:[#allocation6 + $0xc00] sm:$0xf0] }
 0x205   :  { %v13694_v38 = vor.u32 %v15808_v16, %v13691_v63  ;;  %v12658_v16 = vor.u32 %v15555_v12, %v12657_v11  ;;  %v12605_v63 = vld [vmem:[#allocation6 + $0x828] sm:$0xf]  ;;  %v14107_v37 = vld [vmem:[#allocation6 + $0x141c] sm:$0xf0]  ;;  %v15503_v11 = vld [vmem:[#allocation6 + $0x720] sm:$0xf0] }
 0x206   :  { %v13073_v14 = vld [vmem:[#allocation6 + $0xbd0] sm:$0xf] }
 0x207   :  { %7922 = vmatpush.bf16.msrb.mxu0 %v13486_v35  ;;  %v15795_v35 = vld [vmem:[#allocation6 + $0x1044] sm:$0xf]  ;;  %7947 = vmatpush.bf16.msrb.mxu2 %v14370_v24  ;;  %v12242_v24 = vor.u32 %v15451_v3, %v12241_v21  ;;  %v13126_v3 = vor.u32 %v15672_v17, %v13125_v41  ;;  %v13853_v41 = vld [vmem:[#allocation6 + $0x11e8] sm:$0xf]  ;;  %v15854_v17 = vld [vmem:[#allocation6 + $0x1218] sm:$0xf0] }
 0x208   :  { %7935 = vmatpush.bf16.msrb.mxu1 %v13902_v36  ;;  %7908 = vmatpush.bf16.msra.mxu3 %v13122_v23  ;;  %v13070_v36 = vor.u32 %v15652_v25, %v13067_v30  ;;  %v13642_v56 = vor.u32 %v15795_v35, %v13639_v42  ;;  %v12911_v23 = vld [vmem:[#allocation6 + $0xac4] sm:$0xf0]  ;;  %v15600_v25 = vld [vmem:[#allocation6 + $0xa2c] sm:$0xf]  ;;  %v12859_v30 = vld [vmem:[#allocation6 + $0xa5c] sm:$0xf0] }
 0x209   :  { %v15425_v35 = vld [vmem:[#allocation6 + $0x4b0] sm:$0xf0] }
 0x20a   :  { %v15529_v42 = vld [vmem:[#allocation6 + $0x7f0] sm:$0xf0] }
 0x20b   :  { %7923 = vmatpush.bf16.msrb.mxu0 %v13434_v51  ;;  %v14263_v51 = vld [vmem:[#allocation6 + $0x1554] sm:$0xf0]  ;;  %v3180_v4 = vpop.f32.mrf.mxu2  ;;  %7948 = vmatpush.bf16.msrb.mxu2 %v14318_v39  ;;  %v12553_v39 = vld [vmem:[#allocation6 + $0x7c0] sm:$0xf] }
 0x20c   :  { %7936 = vmatpush.bf16.msrb.mxu1 %v13850_v55  ;;  %7909 = vmatpush.bf16.msra.mxu3 %v13070_v36  ;;  %v13018_v55 = vor.u32 %v15639_v52, %v13015_v61  ;;  %v3193_v59 = vpop.f32.mrf.mxu3  ;;  %v14266_v33 = vor.u32 %v15951_v47, %v14263_v51  ;;  %v12606_v36 = vor.u32 %v15542_v28, %v12605_v63  ;;  %v12807_v47 = vld [vmem:[#allocation6 + $0x9f4] sm:$0xf0]  ;;  %v13177_v51 = vld [vmem:[#allocation6 + $0xca0] sm:$0xf]  ;;  %v15685_v52 = vld [vmem:[#allocation6 + $0xcd0] sm:$0xf0] }
 0x20d   :  { %v12138_v4 = vor.u32 %v15425_v35, %v12137_v32  ;;  %v574_v59 = vperm.slane %v16121_v58, 6  ;;  %v14009_v63 = vld [vmem:[#allocation6 + $0x1320] sm:$0xf]  ;;  %v15893_v28 = vld [vmem:[#allocation6 + $0x1350] sm:$0xf0] }
 0x20e   :  { %v14010_v32 = vor.u32 %v15893_v28, %v14009_v63  ;;  %v12917_v58 = vld [vmem:[#allocation6 + $0xa98] sm:$0xf] }
 0x20f   :  { %7924 = vmatpush.bf16.msrb.mxu0 %v13382_v10  ;;  %v15626_v10 = vld [vmem:[#allocation6 + $0xafc] sm:$0xf]  ;;  %7949 = vmatpush.bf16.msrb.mxu2 %v14266_v33  ;;  %v12501_v33 = vld [vmem:[#allocation6 + $0x758] sm:$0xf]  ;;  %v3179_v21 = vadd.f32 %v16504_v48, %v574_v59  ;;  %v15620_v59 = vld [vmem:[#allocation6 + $0xac8] sm:$0xf0] }
 0x210   :  { %7937 = vmatpush.bf16.msrb.mxu1 %v13798_v20  ;;  %7910 = vmatpush.bf16.msra.mxu3 %v13018_v55  ;;  %v12966_v20 = vor.u32 %v15626_v10, %v12963_v0  ;;  %v12554_v55 = vor.u32 %v15529_v42, %v12553_v39  ;;  %v12502_v10 = vor.u32 %v15516_v6, %v12501_v33  ;;  %v12033_v0 = vld [vmem:[#allocation6 + $0x3b0] sm:$0xf]  ;;  %v15880_v42 = vld [vmem:[#allocation6 + $0x12e8] sm:$0xf0]  ;;  %v11931_v63 = vld [vmem:[#allocation6 + $0x314] sm:$0xf0] }
 0x211   :  { %v3192_v48 = vadd.f32 %v16506_v27, %v3179_v21  ;;  %v13957_v27 = vld [vmem:[#allocation6 + $0x12b8] sm:$0xf]  ;;  %v12918_v6 = vor.u32 %v15620_v59, %v12917_v58  ;;  %v16526_v21 = vld [vmem:[#allocation7] sm:$0xff]  ;;  %v14113_v58 = vld [vmem:[#allocation6 + $0x13f0] sm:$0xf] }
 0x212   :  { %7902 = vmatmul.bf16.vlgmr.msra.gmra.mxu2 %v16465_v22  ;;  %v4055_v28 = vperm.slane %v16526_v21, 0  ;;  %v15919_v59 = vld [vmem:[#allocation6 + $0x1420] sm:$0xf0] }
 0x213   :  { %7925 = vmatpush.bf16.msrb.mxu0 %v13330_v19  ;;  %v15613_v19 = vld [vmem:[#allocation6 + $0xa94] sm:$0xf]  ;;  %7950 = vmatpush.bf16.msrb.mxu2 %v14214_v9  ;;  %v12449_v9 = vld [vmem:[#allocation6 + $0x6f0] sm:$0xf] }
 0x214   :  { %7938 = vmatpush.bf16.msrb.mxu1 %v13746_v2  ;;  %7911 = vmatpush.bf16.msra.mxu3 %v12966_v20  ;;  %v12914_v2 = vor.u32 %v15613_v19, %v12911_v23  ;;  %v15399_v20 = vld [vmem:[#allocation6 + $0x3e0] sm:$0xf0] }
 0x215   :  { %v12034_v23 = vor.u32 %v15399_v20, %v12033_v0  ;;  %v12865_v0 = vld [vmem:[#allocation6 + $0xa30] sm:$0xf]  ;;  %v15607_v20 = vld [vmem:[#allocation6 + $0xa60] sm:$0xf0] }
 0x217   :  { %7926 = vmatpush.bf16.msrb.mxu0 %v13278_v60  ;;  %v12862_v60 = vor.u32 %v15600_v25, %v12859_v30  ;;  %7951 = vmatpush.bf16.msrb.mxu2 %v14162_v13  ;;  %v13074_v13 = vor.u32 %v15659_v18, %v13073_v14  ;;  %v13021_v25 = vld [vmem:[#allocation6 + $0xb68] sm:$0xf]  ;;  %v15646_v30 = vld [vmem:[#allocation6 + $0xb98] sm:$0xf0]  ;;  %v12866_v14 = vor.u32 %v15607_v20, %v12865_v0  ;;  %v13801_v18 = vld [vmem:[#allocation6 + $0x1180] sm:$0xf] }
 0x218   :  { %7939 = vmatpush.bf16.msrb.mxu1 %v13694_v38  ;;  %7912 = vmatpush.bf16.msra.mxu3 %v12914_v2  ;;  %v14110_v38 = vor.u32 %v15912_v29, %v14107_v37  ;;  %v11981_v2 = vld [vmem:[#allocation6 + $0x348] sm:$0xf]  ;;  %v14425_v29 = vld [vmem:[#allocation6 + $0x1660] sm:$0xf]  ;;  %v15997_v37 = vld [vmem:[#allocation6 + $0x1690] sm:$0xf0]  ;;  %v13022_v39 = vor.u32 %v15646_v30, %v13021_v25  ;;  %v14114_v20 = vor.u32 %v15919_v59, %v14113_v58 }
 0x219   :  { %v13645_v0 = vld [vmem:[#allocation6 + $0x1048] sm:$0xf]  ;;  %v15536_v58 = vld [vmem:[#allocation6 + $0x82c] sm:$0xf]  ;;  %v12607_v59 = vld [vmem:[#allocation6 + $0x85c] sm:$0xf0] }
 0x21b   :  { %7927 = vmatpush.bf16.msrb.mxu0 %v13226_v54  ;;  %v16511_v46 = vpop.f32.mrf.mxu0  ;;  %v12810_v54 = vor.u32 %v15587_v7, %v12807_v47  ;;  %7952 = vmatpush.bf16.msrb.mxu2 %v14110_v38  ;;  %v14426_v38 = vor.u32 %v15997_v37, %v14425_v29  ;;  %v15984_v7 = vld [vmem:[#allocation6 + $0x1628] sm:$0xf0]  ;;  %v12969_v47 = vld [vmem:[#allocation6 + $0xb00] sm:$0xf]  ;;  %v11877_v37 = vld [vmem:[#allocation6 + $0x278] sm:$0xf] }
 0x21c   :  { %7940 = vmatpush.bf16.msrb.mxu1 %v13642_v56  ;;  %7913 = vmatpush.bf16.msra.mxu3 %v12862_v60  ;;  %v16513_v61 = vpop.f32.mrf.mxu1  ;;  %v14058_v56 = vor.u32 %v15899_v43, %v14055_v49  ;;  %v11982_v60 = vor.u32 %v15386_v34, %v11981_v2  ;;  %v14373_v43 = vld [vmem:[#allocation6 + $0x15f8] sm:$0xf]  ;;  %v12813_v34 = vld [vmem:[#allocation6 + $0x9c8] sm:$0xf] }
 0x21e   :  { %7928 = vmatmul.bf16.vlgmr.msrb.gmra.mxu0 %v16481_v53 }
 0x21f   :  { %7972 = vmatpush.bf16.msra.mxu0 %v12346_v57  ;;  %7941 = vmatmul.bf16.vlgmr.msrb.gmra.mxu1 %v16501_v8  ;;  %v12085_v57 = vld [vmem:[#allocation6 + $0x418] sm:$0xf] }
 0x220   :  { %7985 = vmatpush.bf16.msra.mxu1 %v12762_v40  ;;  %v13178_v40 = vor.u32 %v15685_v52, %v13177_v51  ;;  %7914 = vmatpush.bf16.msra.mxu3 %v12810_v54  ;;  %v12086_v62 = vor.u32 %v15412_v44, %v12085_v57  ;;  %v15633_v51 = vld [vmem:[#allocation6 + $0xb30] sm:$0xf0]  ;;  %v13958_v52 = vor.u32 %v15880_v42, %v13957_v27  ;;  %v14321_v57 = vld [vmem:[#allocation6 + $0x1590] sm:$0xf]  ;;  %v15971_v44 = vld [vmem:[#allocation6 + $0x15c0] sm:$0xf0] }
 0x221   :  { %7953 = vmatpush.bf16.msrb.mxu2 %v14058_v56  ;;  %v15867_v56 = vld [vmem:[#allocation6 + $0x1280] sm:$0xf0]  ;;  %v15354_v27 = vld [vmem:[#allocation6 + $0x27c] sm:$0xf]  ;;  %v11879_v42 = vld [vmem:[#allocation6 + $0x2ac] sm:$0xf0] }
 0x223   :  { %7973 = vmatpush.bf16.msra.mxu0 %v12294_v1  ;;  %v16515_v1 = vpop.f32.mrf.mxu2 }
 0x224   :  { %7986 = vmatpush.bf16.msra.mxu1 %v12710_v5  ;;  %v3206_v5 = vpop.f32.mrf.mxu0  ;;  %v16518_v12 = vpop.f32.mrf.mxu3 }
 0x225   :  { %7998 = vmatpush.bf16.msra.mxu2 %v13178_v40  ;;  %v3219_v19 = vpop.f32.mrf.mxu1  ;;  %v11929_v5 = vld [vmem:[#allocation6 + $0x2e0] sm:$0xf] }
 0x226   :  { %v15841_v19 = vld [vmem:[#allocation6 + $0x11b0] sm:$0xf0] }
 0x227   :  { %7974 = vmatpush.bf16.msra.mxu0 %v12242_v24  ;;  %v12450_v24 = vor.u32 %v15503_v11, %v12449_v9  ;;  %v15373_v9 = vld [vmem:[#allocation6 + $0x310] sm:$0xf0] }
 0x228   :  { %7987 = vmatpush.bf16.msra.mxu1 %v12658_v16  ;;  %v15490_v16 = vld [vmem:[#allocation6 + $0x6b8] sm:$0xf0]  ;;  %v11930_v29 = vor.u32 %v15373_v9, %v11929_v5  ;;  %v14061_v5 = vld [vmem:[#allocation6 + $0x1388] sm:$0xf] }
 0x229   :  { %7999 = vmatpush.bf16.msra.mxu2 %v13126_v3  ;;  %v13854_v3 = vor.u32 %v15854_v17, %v13853_v41  ;;  %v15906_v9 = vld [vmem:[#allocation6 + $0x13b8] sm:$0xf0] }
 0x22b   :  { %7975 = vmatpush.bf16.msra.mxu0 %v12190_v31  ;;  %v12398_v31 = vor.u32 %v15490_v16, %v12397_v26  ;;  %v3232_v35 = vpop.f32.mrf.mxu2  ;;  %v15594_v26 = vld [vmem:[#allocation6 + $0x9f8] sm:$0xf0] }
 0x22c   :  { %7988 = vmatpush.bf16.msra.mxu1 %v12606_v36  ;;  %v3205_v36 = vadd.f32 %v16511_v46, %v3192_v48  ;;  %v3245_v49 = vpop.f32.mrf.mxu3  ;;  %v12970_v46 = vor.u32 %v15633_v51, %v12969_v47  ;;  %v15828_v35 = vld [vmem:[#allocation6 + $0x1148] sm:$0xf0]  ;;  %v11825_v47 = vld [vmem:[#allocation6 + $0x210] sm:$0xf] }
 0x22d   :  { %8000 = vmatpush.bf16.msra.mxu2 %v13074_v13  ;;  %v15367_v13 = vld [vmem:[#allocation6 + $0x2e4] sm:$0xf] }
 0x22e   :  { %v3218_v54 = vadd.f32 %v16513_v61, %v3205_v36  ;;  %v14322_v61 = vor.u32 %v15971_v44, %v14321_v57  ;;  %v11934_v36 = vor.u32 %v15367_v13, %v11931_v63  ;;  %v11882_v44 = vor.u32 %v15354_v27, %v11879_v42  ;;  %v11721_v13 = vld [vmem:[#allocation6 + $0x140] sm:$0xf]  ;;  %v15321_v63 = vld [vmem:[#allocation6 + $0x170] sm:$0xf0]  ;;  %v15308_v27 = vld [vmem:[#allocation6 + $0x108] sm:$0xf0] }
 0x22f   :  { %7976 = vmatpush.bf16.msra.mxu0 %v12138_v4  ;;  %v14374_v4 = vor.u32 %v15984_v7, %v14373_v43 }
 0x230   :  { %7989 = vmatpush.bf16.msra.mxu1 %v12554_v55  ;;  %v13905_v55 = vld [vmem:[#allocation6 + $0x1250] sm:$0xf]  ;;  %v3231_v33 = vadd.f32 %v16515_v1, %v3218_v54  ;;  %v15347_v54 = vld [vmem:[#allocation6 + $0x240] sm:$0xf0] }
 0x231   :  { %8001 = vmatpush.bf16.msra.mxu2 %v13022_v39  ;;  %v13906_v40 = vor.u32 %v15867_v56, %v13905_v55  ;;  %v15932_v39 = vld [vmem:[#allocation6 + $0x1488] sm:$0xf0]  ;;  %v11826_v41 = vor.u32 %v15347_v54, %v11825_v47  ;;  %v15653_v47 = vld [vmem:[#allocation6 + $0xbd4] sm:$0xf]  ;;  %v11671_v54 = vld [vmem:[#allocation6 + $0x10c] sm:$0xf0] }
 0x232   :  { %v3244_v11 = vadd.f32 %v16518_v12, %v3231_v33  ;;  %v13802_v12 = vor.u32 %v15841_v19, %v13801_v18  ;;  %v15341_v33 = vld [vmem:[#allocation6 + $0x214] sm:$0xf]  ;;  %v15679_v18 = vld [vmem:[#allocation6 + $0xca4] sm:$0xf]  ;;  %v13179_v19 = vld [vmem:[#allocation6 + $0xcd4] sm:$0xf0] }
 0x233   :  { %7977 = vmatpush.bf16.msra.mxu0 %v12086_v62  ;;  %v14269_v62 = vld [vmem:[#allocation6 + $0x1528] sm:$0xf] }
 0x234   :  { %7990 = vmatpush.bf16.msra.mxu1 %v12502_v10  ;;  %v15958_v10 = vld [vmem:[#allocation6 + $0x1558] sm:$0xf0] }
 0x235   :  { %8002 = vmatpush.bf16.msra.mxu2 %v12970_v46  ;;  %v14270_v1 = vor.u32 %v15958_v10, %v14269_v62  ;;  %v15815_v46 = vld [vmem:[#allocation6 + $0x10e0] sm:$0xf0]  ;;  %v11773_v62 = vld [vmem:[#allocation6 + $0x1a8] sm:$0xf]  ;;  %v15334_v10 = vld [vmem:[#allocation6 + $0x1d8] sm:$0xf0] }
 0x237   :  { %7978 = vmatpush.bf16.msra.mxu0 %v12034_v23  ;;  %v14217_v23 = vld [vmem:[#allocation6 + $0x14c0] sm:$0xf] }
 0x238   :  { %7991 = vmatpush.bf16.msra.mxu1 %v12450_v24  ;;  %v15945_v24 = vld [vmem:[#allocation6 + $0x14f0] sm:$0xf0] }
 0x239   :  { %8003 = vmatpush.bf16.msra.mxu2 %v12918_v6  ;;  %v14218_v30 = vor.u32 %v15945_v24, %v14217_v23  ;;  %v15328_v23 = vld [vmem:[#allocation6 + $0x1ac] sm:$0xf]  ;;  %v11774_v24 = vor.u32 %v15334_v10, %v11773_v62  ;;  %v11565_v62 = vld [vmem:[#allocation6 + $0x8] sm:$0xf]  ;;  %v12610_v10 = vor.u32 %v15536_v58, %v12607_v59 }
 0x23b   :  { %7979 = vmatpush.bf16.msra.mxu0 %v11982_v60  ;;  %v3256_v2 = vpop.f32.mrf.mxu0  ;;  %v12814_v60 = vor.u32 %v15594_v26, %v12813_v34 }
 0x23c   :  { %7992 = vmatpush.bf16.msra.mxu1 %v12398_v31  ;;  %v3257_v16 = vadd.f32 %v3256_v2, %v3244_v11  ;;  %v7786_v48 = vpop.f32.mrf.mxu1  ;;  %v15360_v31 = vld [vmem:[#allocation6 + $0x2a8] sm:$0xf0]  ;;  %v11775_v2 = vld [vmem:[#allocation6 + $0x1dc] sm:$0xf0] }
 0x23d   :  { %8004 = vmatpush.bf16.msra.mxu2 %v12866_v14  ;;  %v7787_v43 = vadd.f32 %v7786_v48, %v4055_v28  ;;  %v11878_v49 = vor.u32 %v15360_v31, %v11877_v37  ;;  %v12763_v14 = vld [vmem:[#allocation6 + $0x994] sm:$0xf0]  ;;  %v15562_v37 = vld [vmem:[#allocation6 + $0x8fc] sm:$0xf]  ;;  %v13127_v31 = vld [vmem:[#allocation6 + $0xc6c] sm:$0xf0] }
 0x23e   :  { %7980 = vmatmul.bf16.vlgmr.msra.gmra.mxu0 %v16461_v45  ;;  %v16530_v25 = vpack.c.bf16 %v3257_v16, %v3257_v16  ;;  %v14062_v16 = vor.u32 %v15906_v9, %v14061_v5 }
 0x23f   :  { %8024 = vmatpush.bf16.msrb.mxu0 %v14010_v32  ;;  %7993 = vmatmul.bf16.vlgmr.msra.gmra.mxu1 %v16465_v22  ;;  %v13749_v32 = vld [vmem:[#allocation6 + $0x1118] sm:$0xf] }
 0x240   :  { %8037 = vmatpush.bf16.msrb.mxu1 %v14426_v38  ;;  %v14165_v38 = vld [vmem:[#allocation6 + $0x1458] sm:$0xf]  ;;  %7863 = vmatmul.bf16.vlgmr.msrb.gmra.mxu3 %v16530_v25  ;;  %v13750_v7 = vor.u32 %v15828_v35, %v13749_v32  ;;  %v15315_v32 = vld [vmem:[#allocation6 + $0x144] sm:$0xf] }
 0x241   :  { %7954 = vmatmul.bf16.vlgmr.msrb.gmra.mxu2 %v16530_v25  ;;  %7959 = vmatpush.bf16.msrb.mxu3 %v11930_v29  ;;  %v13182_v29 = vor.u32 %v15679_v18, %v13179_v19  ;;  %v11723_v35 = vld [vmem:[#allocation6 + $0x174] sm:$0xf0]  ;;  %v15276_v19 = vld [vmem:[#allocation6 + $0xc] sm:$0xf] }
 0x242   :  { %8005 = vmatpush.bf16.msra.mxu2 %v12814_v60  ;;  %v15666_v60 = vld [vmem:[#allocation6 + $0xc3c] sm:$0xf]  ;;  %v12971_v18 = vld [vmem:[#allocation6 + $0xb34] sm:$0xf0] }
 0x243   :  { %8025 = vmatpush.bf16.msrb.mxu0 %v13958_v52  ;;  %v7799_v51 = vpop.f32.mrf.mxu2  ;;  %v14166_v52 = vor.u32 %v15932_v39, %v14165_v38  ;;  %v3258_v57 = vpop.f32.mrf.mxu0  ;;  %v11669_v39 = vld [vmem:[#allocation6 + $0xd8] sm:$0xf]  ;;  %v13130_v42 = vor.u32 %v15666_v60, %v13127_v31 }
 0x244   :  { %8038 = vmatpush.bf16.msrb.mxu1 %v14374_v4  ;;  %v13697_v4 = vld [vmem:[#allocation6 + $0x10b0] sm:$0xf]  ;;  %v7800_v55 = vadd.f32 %v7799_v51, %v7787_v43  ;;  %v7812_v56 = vpop.f32.mrf.mxu3  ;;  %v11726_v43 = vor.u32 %v15315_v32, %v11723_v35  ;;  %v13075_v51 = vld [vmem:[#allocation6 + $0xc04] sm:$0xf0]  ;;  %v15614_v35 = vld [vmem:[#allocation6 + $0xa9c] sm:$0xf] }
 0x245   :  { %7960 = vmatpush.bf16.msrb.mxu3 %v11878_v49  ;;  %v13698_v17 = vor.u32 %v15815_v46, %v13697_v4  ;;  %v15549_v49 = vld [vmem:[#allocation6 + $0x894] sm:$0xf]  ;;  %v11670_v4 = vor.u32 %v15308_v27, %v11669_v39  ;;  %v13078_v57 = vor.u32 %v15653_v47, %v13075_v51  ;;  %v12503_v32 = vld [vmem:[#allocation6 + $0x78c] sm:$0xf0]  ;;  %v12451_v51 = vld [vmem:[#allocation6 + $0x724] sm:$0xf0] }
 0x246   :  { %8050 = vmatpush.bf16.msrb.mxu2 %v11934_v36  ;;  %v16534_v6 = vadd.f32 %v7812_v56, %v7800_v55  ;;  %v11722_v36 = vor.u32 %v15321_v63, %v11721_v13  ;;  %v11617_v55 = vld [vmem:[#allocation6 + $0x70] sm:$0xf]  ;;  %v15295_v56 = vld [vmem:[#allocation6 + $0xa0] sm:$0xf0] }
 0x247   :  { %8026 = vmatpush.bf16.msrb.mxu0 %v13906_v40  ;;  %v7788_v40 = vpop.f32.mrf.mxu1 }
 0x248   :  { %8039 = vmatpush.bf16.msrb.mxu1 %v14322_v61  ;;  %v11827_v61 = vld [vmem:[#allocation6 + $0x244] sm:$0xf0]  ;;  %v15640_v40 = vld [vmem:[#allocation6 + $0xb6c] sm:$0xf] }
 0x249   :  { %v11830_v11 = vor.u32 %v15341_v33, %v11827_v61  ;;  %7961 = vmatpush.bf16.msrb.mxu3 %v11826_v41  ;;  %v13023_v33 = vld [vmem:[#allocation6 + $0xb9c] sm:$0xf0]  ;;  %v15289_v61 = vld [vmem:[#allocation6 + $0x74] sm:$0xf]  ;;  %v11619_v41 = vld [vmem:[#allocation6 + $0xa4] sm:$0xf0] }
 0x24a   :  { %8051 = vmatpush.bf16.msrb.mxu2 %v11882_v44  ;;  %v13026_v5 = vor.u32 %v15640_v40, %v13023_v33  ;;  %v11622_v9 = vor.u32 %v15289_v61, %v11619_v41  ;;  %v15750_v40 = vld [vmem:[#allocation6 + $0xed8] sm:$0xf0]  ;;  %v15484_v33 = vld [vmem:[#allocation6 + $0x68c] sm:$0xf]  ;;  %v12399_v61 = vld [vmem:[#allocation6 + $0x6bc] sm:$0xf0] }
 0x24b   :  { %8027 = vmatpush.bf16.msrb.mxu0 %v13854_v3  ;;  %v15802_v3 = vld [vmem:[#allocation6 + $0x1078] sm:$0xf0]  ;;  %v7801_v26 = vpop.f32.mrf.mxu2 }
 0x24c   :  { %8040 = vmatpush.bf16.msrb.mxu1 %v14270_v1  ;;  %v15575_v1 = vld [vmem:[#allocation6 + $0x964] sm:$0xf]  ;;  %v13646_v34 = vor.u32 %v15802_v3, %v13645_v0  ;;  %v7814_v28 = vpop.f32.mrf.mxu3  ;;  %v15282_v0 = vld [vmem:[#allocation6 + $0x38] sm:$0xf0]  ;;  %v15789_v3 = vld [vmem:[#allocation6 + $0x1010] sm:$0xf0] }
 0x24d   :  { %v12766_v48 = vor.u32 %v15575_v1, %v12763_v14  ;;  %7962 = vmatpush.bf16.msrb.mxu3 %v11774_v24  ;;  %v12555_v1 = vld [vmem:[#allocation6 + $0x7f4] sm:$0xf0]  ;;  %v15627_v14 = vld [vmem:[#allocation6 + $0xb04] sm:$0xf]  ;;  %v11566_v24 = vor.u32 %v15282_v0, %v11565_v62  ;;  %v12815_v62 = vld [vmem:[#allocation6 + $0x9fc] sm:$0xf0] }
 0x24e   :  { %8052 = vmatpush.bf16.msrb.mxu2 %v11830_v11  ;;  %v15523_v11 = vld [vmem:[#allocation6 + $0x7c4] sm:$0xf]  ;;  %v13595_v26 = vld [vmem:[#allocation6 + $0x1014] sm:$0xf0]  ;;  %v12974_v28 = vor.u32 %v15627_v14, %v12971_v18 }
 0x24f   :  { %8028 = vmatpush.bf16.msrb.mxu0 %v13802_v12  ;;  %v11778_v12 = vor.u32 %v15328_v23, %v11775_v2  ;;  %v11567_v23 = vld [vmem:[#allocation6 + $0x3c] sm:$0xf0]  ;;  %v12558_v63 = vor.u32 %v15523_v11, %v12555_v1  ;;  %v14427_v0 = vld [vmem:[#allocation6 + $0x1694] sm:$0xf0]  ;;  %v12402_v1 = vor.u32 %v15484_v33, %v12399_v61  ;;  %v15471_v33 = vld [vmem:[#allocation6 + $0x624] sm:$0xf] }
 0x250   :  { %8041 = vmatpush.bf16.msrb.mxu1 %v14218_v30  ;;  %v12711_v30 = vld [vmem:[#allocation6 + $0x92c] sm:$0xf0]  ;;  %7915 = vmatmul.bf16.vlgmr.msra.gmra.mxu3 %v16479_v50  ;;  %v13439_v11 = vld [vmem:[#allocation6 + $0xedc] sm:$0xf0]  ;;  %v12347_v61 = vld [vmem:[#allocation6 + $0x654] sm:$0xf0] }
 0x251   :  { %v12714_v38 = vor.u32 %v15562_v37, %v12711_v30  ;;  %7963 = vmatpush.bf16.msrb.mxu3 %v11722_v36  ;;  %8006 = vmatmul.bf16.vlgmr.msra.gmra.mxu2 %v16479_v50  ;;  %v15776_v37 = vld [vmem:[#allocation6 + $0xfa8] sm:$0xf0]  ;;  %v15510_v30 = vld [vmem:[#allocation6 + $0x75c] sm:$0xf]  ;;  %v12919_v36 = vld [vmem:[#allocation6 + $0xacc] sm:$0xf0] }
 0x252   :  { %8053 = vmatpush.bf16.msrb.mxu2 %v11778_v12  ;;  %v13541_v12 = vld [vmem:[#allocation6 + $0xf78] sm:$0xf]  ;;  %v12506_v27 = vor.u32 %v15510_v30, %v12503_v32  ;;  %v15724_v30 = vld [vmem:[#allocation6 + $0xe08] sm:$0xf0] }
 0x253   :  { %8029 = vmatpush.bf16.msrb.mxu0 %v13750_v7  ;;  %v12659_v7 = vld [vmem:[#allocation6 + $0x8c4] sm:$0xf0]  ;;  %v13542_v39 = vor.u32 %v15776_v37, %v13541_v12  ;;  %v13333_v37 = vld [vmem:[#allocation6 + $0xdd8] sm:$0xf] }
 0x254   :  { %8042 = vmatpush.bf16.msrb.mxu1 %v14166_v52  ;;  %v15302_v52 = vld [vmem:[#allocation6 + $0xdc] sm:$0xf]  ;;  %v12662_v46 = vor.u32 %v15549_v49, %v12659_v7  ;;  %v15763_v49 = vld [vmem:[#allocation6 + $0xf40] sm:$0xf0]  ;;  %v15497_v7 = vld [vmem:[#allocation6 + $0x6f4] sm:$0xf] }
 0x255   :  { %v11674_v44 = vor.u32 %v15302_v52, %v11671_v54  ;;  %7964 = vmatpush.bf16.msrb.mxu3 %v11670_v4  ;;  %v15601_v52 = vld [vmem:[#allocation6 + $0xa34] sm:$0xf]  ;;  %v12867_v54 = vld [vmem:[#allocation6 + $0xa64] sm:$0xf0]  ;;  %v12454_v58 = vor.u32 %v15497_v7, %v12451_v51  ;;  %v15711_v7 = vld [vmem:[#allocation6 + $0xda0] sm:$0xf0] }
 0x256   :  { %8054 = vmatpush.bf16.msrb.mxu2 %v11726_v43  ;;  %v13489_v43 = vld [vmem:[#allocation6 + $0xf10] sm:$0xf]  ;;  %v12870_v59 = vor.u32 %v15601_v52, %v12867_v54  ;;  %v14271_v52 = vld [vmem:[#allocation6 + $0x155c] sm:$0xf0] }
 0x257   :  { %8030 = vmatpush.bf16.msrb.mxu0 %v13698_v17  ;;  %v11618_v17 = vor.u32 %v15295_v56, %v11617_v55  ;;  %v13491_v55 = vld [vmem:[#allocation6 + $0xf44] sm:$0xf0]  ;;  %v11781_v54 = vld [vmem:[#allocation6 + $0x1b0] sm:$0xf] }
 0x258   :  { %8043 = vmatpush.bf16.msrb.mxu1 %v14114_v20  ;;  %v13593_v20 = vld [vmem:[#allocation6 + $0xfe0] sm:$0xf] }
 0x259   :  { %7965 = vmatpush.bf16.msrb.mxu3 %v11618_v17  ;;  %v13594_v13 = vor.u32 %v15789_v3, %v13593_v20  ;;  %v15588_v17 = vld [vmem:[#allocation6 + $0x9cc] sm:$0xf]  ;;  %v11937_v20 = vld [vmem:[#allocation6 + $0x2e8] sm:$0xf]  ;;  %v15374_v3 = vld [vmem:[#allocation6 + $0x318] sm:$0xf0] }
 0x25a   :  { %8055 = vmatpush.bf16.msrb.mxu2 %v11674_v44  ;;  %v13437_v44 = vld [vmem:[#allocation6 + $0xea8] sm:$0xf]  ;;  %v12818_v14 = vor.u32 %v15588_v17, %v12815_v62  ;;  %v15939_v17 = vld [vmem:[#allocation6 + $0x14c4] sm:$0xf]  ;;  %v14219_v62 = vld [vmem:[#allocation6 + $0x14f4] sm:$0xf0] }
 0x25b   :  { %8031 = vmatpush.bf16.msrb.mxu0 %v13646_v34  ;;  %v7825_v2 = vpop.f32.mrf.mxu0  ;;  %v15783_v34 = vld [vmem:[#allocation6 + $0xfe4] sm:$0xf] }
 0x25c   :  { %8044 = vmatpush.bf16.msrb.mxu1 %v14062_v16  ;;  %v7826_v16 = vadd.f32 %v7825_v2, %v16534_v6  ;;  %v13598_v31 = vor.u32 %v15783_v34, %v13595_v26  ;;  %v13543_v6 = vld [vmem:[#allocation6 + $0xfac] sm:$0xf0]  ;;  %v15737_v2 = vld [vmem:[#allocation6 + $0xe70] sm:$0xf0] }
 0x25d   :  { %7966 = vmatpush.bf16.msrb.mxu3 %v11566_v24  ;;  %v15978_v24 = vld [vmem:[#allocation6 + $0x15fc] sm:$0xf]  ;;  %v14375_v26 = vld [vmem:[#allocation6 + $0x162c] sm:$0xf0] }
 0x25e   :  { %8032 = vmatmul.bf16.vlgmr.msrb.gmra.mxu0 %v16501_v8  ;;  %8056 = vmatpush.bf16.msrb.mxu2 %v11622_v9  ;;  %v15744_v9 = vld [vmem:[#allocation6 + $0xeac] sm:$0xf] }
 0x25f   :  { %8076 = vmatpush.bf16.msra.mxu0 %v12766_v48  ;;  %8045 = vmatmul.bf16.vlgmr.msrb.gmra.mxu1 %v16530_v25  ;;  %v7838_v48 = vpop.f32.mrf.mxu1  ;;  %v13442_v34 = vor.u32 %v15744_v9, %v13439_v11 }
 0x260   :  { %8089 = vmatpush.bf16.msra.mxu1 %v13182_v29  ;;  %v11570_v29 = vor.u32 %v15276_v19, %v11567_v23  ;;  %v16541_v60 = vadd.f32 %v7838_v48, %v7826_v16  ;;  %7967 = vmatmul.bf16.vlgmr.msrb.gmra.mxu3 %v16457_v15  ;;  %v11938_v19 = vor.u32 %v15374_v3, %v11937_v20  ;;  %v13385_v23 = vld [vmem:[#allocation6 + $0xe40] sm:$0xf]  ;;  %v15361_v48 = vld [vmem:[#allocation6 + $0x2b0] sm:$0xf0]  ;;  %v15322_v20 = vld [vmem:[#allocation6 + $0x178] sm:$0xf0] }
 0x261   :  { %8011 = vmatpush.bf16.msra.mxu3 %v13594_v13  ;;  %v11885_v16 = vld [vmem:[#allocation6 + $0x280] sm:$0xf]  ;;  %v15731_v13 = vld [vmem:[#allocation6 + $0xe44] sm:$0xf]  ;;  %v15692_v3 = vld [vmem:[#allocation6 + $0xd0c] sm:$0xf] }
 0x262   :  { %8057 = vmatpush.bf16.msrb.mxu2 %v11570_v29  ;;  %v14378_v29 = vor.u32 %v15978_v24, %v14375_v26  ;;  %v11886_v12 = vor.u32 %v15361_v48, %v11885_v16  ;;  %v12295_v26 = vld [vmem:[#allocation6 + $0x5ec] sm:$0xf0]  ;;  %v15926_v16 = vld [vmem:[#allocation6 + $0x145c] sm:$0xf] }
 0x263   :  { %8077 = vmatpush.bf16.msra.mxu0 %v12714_v38  ;;  %v15770_v38 = vld [vmem:[#allocation6 + $0xf7c] sm:$0xf]  ;;  %v7827_v4 = vpop.f32.mrf.mxu0 }
 0x264   :  { %8090 = vmatpush.bf16.msra.mxu1 %v13130_v42  ;;  %v12922_v42 = vor.u32 %v15614_v35, %v12919_v36  ;;  %v13546_v47 = vor.u32 %v15770_v38, %v13543_v6  ;;  %v14323_v35 = vld [vmem:[#allocation6 + $0x15c4] sm:$0xf0]  ;;  %v11833_v36 = vld [vmem:[#allocation6 + $0x218] sm:$0xf]  ;;  %v15348_v38 = vld [vmem:[#allocation6 + $0x248] sm:$0xf0] }
 0x265   :  { %8012 = vmatpush.bf16.msra.mxu3 %v13542_v39  ;;  %8058 = vmatmul.bf16.vlgmr.msrb.gmra.mxu2 %v16457_v15  ;;  %v15718_v6 = vld [vmem:[#allocation6 + $0xddc] sm:$0xf]  ;;  %v13335_v39 = vld [vmem:[#allocation6 + $0xe0c] sm:$0xf0]  ;;  %v15335_v4 = vld [vmem:[#allocation6 + $0x1e0] sm:$0xf0] }
 0x266   :  { %8102 = vmatpush.bf16.msra.mxu2 %v13598_v31  ;;  %v15965_v31 = vld [vmem:[#allocation6 + $0x1594] sm:$0xf]  ;;  %v13338_v51 = vor.u32 %v15718_v6, %v13335_v39  ;;  %v14115_v39 = vld [vmem:[#allocation6 + $0x1424] sm:$0xf0] }
 0x267   :  { %8078 = vmatpush.bf16.msra.mxu0 %v12662_v46  ;;  %v15757_v46 = vld [vmem:[#allocation6 + $0xf14] sm:$0xf]  ;;  %v7840_v56 = vpop.f32.mrf.mxu1 }
 0x268   :  { %8091 = vmatpush.bf16.msra.mxu1 %v13078_v57  ;;  %v13490_v57 = vor.u32 %v15763_v49, %v13489_v43  ;;  %v13494_v41 = vor.u32 %v15757_v46, %v13491_v55  ;;  %v11834_v43 = vor.u32 %v15348_v38, %v11833_v36  ;;  %v13281_v49 = vld [vmem:[#allocation6 + $0xd70] sm:$0xf]  ;;  %v15705_v46 = vld [vmem:[#allocation6 + $0xd74] sm:$0xf]  ;;  %v13283_v55 = vld [vmem:[#allocation6 + $0xda4] sm:$0xf0] }
 0x269   :  { %v4056_v56 = vperm.slane %v16526_v21, 1  ;;  %v15913_v36 = vld [vmem:[#allocation6 + $0x13f4] sm:$0xf] }
 0x26a   :  { %8103 = vmatpush.bf16.msra.mxu2 %v13546_v47  ;;  %8013 = vmatpush.bf16.msra.mxu3 %v13490_v57  ;;  %v15952_v47 = vld [vmem:[#allocation6 + $0x152c] sm:$0xf]  ;;  %v13282_v57 = vor.u32 %v15711_v7, %v13281_v49  ;;  %v12249_v49 = vld [vmem:[#allocation6 + $0x558] sm:$0xf] }
 0x26b   :  { %8079 = vmatpush.bf16.msra.mxu0 %v12610_v10  ;;  %v15991_v10 = vld [vmem:[#allocation6 + $0x1664] sm:$0xf]  ;;  %v15452_v7 = vld [vmem:[#allocation6 + $0x588] sm:$0xf0] }
 0x26c   :  { %8092 = vmatpush.bf16.msra.mxu1 %v13026_v5  ;;  %v13438_v5 = vor.u32 %v15750_v40, %v13437_v44  ;;  %v14430_v18 = vor.u32 %v15991_v10, %v14427_v0  ;;  %v13229_v44 = vld [vmem:[#allocation6 + $0xd08] sm:$0xf]  ;;  %v15698_v40 = vld [vmem:[#allocation6 + $0xd38] sm:$0xf0] }
 0x26d   :  { %v11729_v10 = vld [vmem:[#allocation6 + $0x148] sm:$0xf]  ;;  %v13230_v11 = vor.u32 %v15698_v40, %v13229_v44  ;;  %v15283_v44 = vld [vmem:[#allocation6 + $0x40] sm:$0xf0] }
 0x26e   :  { %8104 = vmatpush.bf16.msra.mxu2 %v13494_v41  ;;  %8014 = vmatpush.bf16.msra.mxu3 %v13438_v5  ;;  %v13286_v41 = vor.u32 %v15705_v46, %v13283_v55  ;;  %v13231_v5 = vld [vmem:[#allocation6 + $0xd3c] sm:$0xf0]  ;;  %v15900_v46 = vld [vmem:[#allocation6 + $0x138c] sm:$0xf]  ;;  %v13601_v40 = vld [vmem:[#allocation6 + $0xfe8] sm:$0xf] }
 0x26f   :  { %8080 = vmatpush.bf16.msra.mxu0 %v12558_v63  ;;  %v13387_v63 = vld [vmem:[#allocation6 + $0xe74] sm:$0xf0]  ;;  %v13234_v24 = vor.u32 %v15692_v3, %v13231_v5  ;;  %v14063_v55 = vld [vmem:[#allocation6 + $0x13bc] sm:$0xf0]  ;;  %v15419_v3 = vld [vmem:[#allocation6 + $0x484] sm:$0xf] }
 0x270   :  { %8093 = vmatpush.bf16.msra.mxu1 %v12974_v28  ;;  %v13386_v28 = vor.u32 %v15737_v2, %v13385_v23  ;;  %v13390_v32 = vor.u32 %v15731_v13, %v13387_v63  ;;  %v11730_v2 = vor.u32 %v15322_v20, %v11729_v10  ;;  %v14167_v13 = vld [vmem:[#allocation6 + $0x148c] sm:$0xf0]  ;;  %v11677_v63 = vld [vmem:[#allocation6 + $0xe0] sm:$0xf]  ;;  %v12139_v5 = vld [vmem:[#allocation6 + $0x4b4] sm:$0xf0] }
 0x272   :  { %8105 = vmatpush.bf16.msra.mxu2 %v13442_v34  ;;  %8015 = vmatpush.bf16.msra.mxu3 %v13386_v28  ;;  %v15458_v34 = vld [vmem:[#allocation6 + $0x5bc] sm:$0xf]  ;;  %v15309_v28 = vld [vmem:[#allocation6 + $0x110] sm:$0xf0] }
 0x273   :  { %8081 = vmatpush.bf16.msra.mxu0 %v12506_v27  ;;  %v13334_v27 = vor.u32 %v15724_v30, %v13333_v37  ;;  %v12298_v37 = vor.u32 %v15458_v34, %v12295_v26  ;;  %v14170_v30 = vor.u32 %v15926_v16, %v14167_v13  ;;  %v15406_v16 = vld [vmem:[#allocation6 + $0x41c] sm:$0xf]  ;;  %v13081_v13 = vld [vmem:[#allocation6 + $0xbd8] sm:$0xf] }
 0x274   :  { %8094 = vmatpush.bf16.msra.mxu1 %v12922_v42  ;;  %v14326_v42 = vor.u32 %v15965_v31, %v14323_v35  ;;  %v11678_v31 = vor.u32 %v15309_v28, %v11677_v63  ;;  %v12243_v35 = vld [vmem:[#allocation6 + $0x584] sm:$0xf0] }
 0x276   :  { %8106 = vmatpush.bf16.msra.mxu2 %v13390_v32  ;;  %8016 = vmatpush.bf16.msra.mxu3 %v13334_v27  ;;  %v15445_v32 = vld [vmem:[#allocation6 + $0x554] sm:$0xf]  ;;  %v11625_v27 = vld [vmem:[#allocation6 + $0x78] sm:$0xf] }
 0x277   :  { %8082 = vmatpush.bf16.msra.mxu0 %v12454_v58  ;;  %v14274_v58 = vor.u32 %v15952_v47, %v14271_v52  ;;  %v12246_v47 = vor.u32 %v15445_v32, %v12243_v35  ;;  %v14118_v52 = vor.u32 %v15913_v36, %v14115_v39 }
 0x278   :  { %8095 = vmatpush.bf16.msra.mxu1 %v12870_v59  ;;  %v11782_v59 = vor.u32 %v15335_v4, %v11781_v54  ;;  %v12191_v4 = vld [vmem:[#allocation6 + $0x51c] sm:$0xf0] }
 0x27a   :  { %8107 = vmatpush.bf16.msra.mxu2 %v13338_v51  ;;  %8017 = vmatpush.bf16.msra.mxu3 %v13282_v57  ;;  %v15432_v51 = vld [vmem:[#allocation6 + $0x4ec] sm:$0xf]  ;;  %v11573_v57 = vld [vmem:[#allocation6 + $0x10] sm:$0xf] }
 0x27b   :  { %8083 = vmatpush.bf16.msra.mxu0 %v12402_v1  ;;  %v7877_v0 = vpop.f32.mrf.mxu0  ;;  %v12353_v1 = vld [vmem:[#allocation6 + $0x628] sm:$0xf]  ;;  %v11574_v10 = vor.u32 %v15283_v44, %v11573_v57 }
 0x27c   :  { %8096 = vmatpush.bf16.msra.mxu1 %v12818_v14  ;;  %v7878_v9 = vadd.f32 %v7877_v0, %v4056_v56  ;;  %v7890_v21 = vpop.f32.mrf.mxu1  ;;  %v15478_v14 = vld [vmem:[#allocation6 + $0x658] sm:$0xf0]  ;;  %v12250_v56 = vor.u32 %v15452_v7, %v12249_v49  ;;  %v12041_v49 = vld [vmem:[#allocation6 + $0x3b8] sm:$0xf]  ;;  %v15400_v7 = vld [vmem:[#allocation6 + $0x3e8] sm:$0xf0] }
 0x27d   :  { %v12354_v48 = vor.u32 %v15478_v14, %v12353_v1  ;;  %v13549_v1 = vld [vmem:[#allocation6 + $0xf80] sm:$0xf]  ;;  %v15777_v14 = vld [vmem:[#allocation6 + $0xfb0] sm:$0xf0]  ;;  %v12042_v44 = vor.u32 %v15400_v7, %v12041_v49  ;;  %v12821_v49 = vld [vmem:[#allocation6 + $0x9d0] sm:$0xf] }
 0x27e   :  { %8084 = vmatmul.bf16.vlgmr.msra.gmra.mxu0 %v16465_v22  ;;  %v16548_v23 = vadd.f32 %v7890_v21, %v7878_v9  ;;  %8108 = vmatpush.bf16.msra.mxu2 %v13286_v41  ;;  %v12197_v41 = vld [vmem:[#allocation6 + $0x4f0] sm:$0xf]  ;;  %v13133_v9 = vld [vmem:[#allocation6 + $0xc40] sm:$0xf]  ;;  %v13550_v26 = vor.u32 %v15777_v14, %v13549_v1  ;;  %v15595_v7 = vld [vmem:[#allocation6 + $0xa00] sm:$0xf0] }
 0x27f   :  { %8128 = vmatpush.bf16.msrb.mxu0 %v14430_v18  ;;  %8097 = vmatmul.bf16.vlgmr.msra.gmra.mxu1 %v16479_v50  ;;  %v12350_v18 = vor.u32 %v15471_v33, %v12347_v61  ;;  %v15790_v33 = vld [vmem:[#allocation6 + $0x1018] sm:$0xf0]  ;;  %v12194_v61 = vor.u32 %v15432_v51, %v12191_v4  ;;  %v15380_v51 = vld [vmem:[#allocation6 + $0x34c] sm:$0xf]  ;;  %v12925_v1 = vld [vmem:[#allocation6 + $0xaa0] sm:$0xf] }
 0x280   :  { %8141 = vmatpush.bf16.msrb.mxu1 %v11938_v19  ;;  %v14222_v19 = vor.u32 %v15939_v17, %v14219_v62  ;;  %8018 = vmatpush.bf16.msra.mxu3 %v13230_v11  ;;  %v15439_v17 = vld [vmem:[#allocation6 + $0x520] sm:$0xf0]  ;;  %v14066_v62 = vor.u32 %v15900_v46, %v14063_v55  ;;  %v13602_v20 = vor.u32 %v15790_v33, %v13601_v40  ;;  %v15673_v11 = vld [vmem:[#allocation6 + $0xc70] sm:$0xf0]  ;;  %v11983_v46 = vld [vmem:[#allocation6 + $0x37c] sm:$0xf0] }
 0x281   :  { %v12198_v21 = vor.u32 %v15439_v17, %v12197_v41  ;;  %v13134_v34 = vor.u32 %v15673_v11, %v13133_v9  ;;  %v15887_v55 = vld [vmem:[#allocation6 + $0x1324] sm:$0xf]  ;;  %v13393_v40 = vld [vmem:[#allocation6 + $0xe48] sm:$0xf]  ;;  %v11989_v41 = vld [vmem:[#allocation6 + $0x350] sm:$0xf] }
 0x282   :  { %8109 = vmatpush.bf16.msra.mxu2 %v13234_v24  ;;  %v15387_v17 = vld [vmem:[#allocation6 + $0x380] sm:$0xf0]  ;;  %v13959_v11 = vld [vmem:[#allocation6 + $0x12ec] sm:$0xf0] }
 0x283   :  { %8129 = vmatpush.bf16.msrb.mxu0 %v14378_v29  ;;  %v12301_v29 = vld [vmem:[#allocation6 + $0x5c0] sm:$0xf]  ;;  %8019 = vmatmul.bf16.vlgmr.msra.gmra.mxu3 %v16481_v53  ;;  %v7879_v38 = vpop.f32.mrf.mxu0  ;;  %v11990_v9 = vor.u32 %v15387_v17, %v11989_v41 }
 0x284   :  { %8142 = vmatpush.bf16.msrb.mxu1 %v11886_v12  ;;  %v15465_v12 = vld [vmem:[#allocation6 + $0x5f0] sm:$0xf0]  ;;  %8063 = vmatpush.bf16.msrb.mxu3 %v12350_v18  ;;  %v12145_v18 = vld [vmem:[#allocation6 + $0x488] sm:$0xf] }
 0x285   :  { %v12302_v6 = vor.u32 %v15465_v12, %v12301_v29  ;;  %8110 = vmatmul.bf16.vlgmr.msra.gmra.mxu2 %v16481_v53  ;;  %v7851_v24 = vpop.f32.mrf.mxu2  ;;  %v15660_v29 = vld [vmem:[#allocation6 + $0xc08] sm:$0xf0]  ;;  %v13497_v12 = vld [vmem:[#allocation6 + $0xf18] sm:$0xf]  ;;  %v15393_v38 = vld [vmem:[#allocation6 + $0x3b4] sm:$0xf] }
 0x286   :  { %8154 = vmatpush.bf16.msrb.mxu2 %v12354_v48  ;;  %v12087_v48 = vld [vmem:[#allocation6 + $0x44c] sm:$0xf0]  ;;  %v16553_v63 = vadd.f32 %v7851_v24, %v16541_v60  ;;  %v13082_v35 = vor.u32 %v15660_v29, %v13081_v13  ;;  %v13965_v24 = vld [vmem:[#allocation6 + $0x12c0] sm:$0xf] }
 0x287   :  { %8130 = vmatpush.bf16.msrb.mxu0 %v14326_v42  ;;  %v15296_v42 = vld [vmem:[#allocation6 + $0xa8] sm:$0xf0]  ;;  %v12090_v32 = vor.u32 %v15406_v16, %v12087_v48  ;;  %v13029_v60 = vld [vmem:[#allocation6 + $0xb70] sm:$0xf] }
 0x288   :  { %8143 = vmatpush.bf16.msrb.mxu1 %v11834_v43  ;;  %v7892_v43 = vpop.f32.mrf.mxu1  ;;  %8064 = vmatpush.bf16.msrb.mxu3 %v12298_v37  ;;  %v11626_v54 = vor.u32 %v15296_v42, %v11625_v27  ;;  %v15764_v37 = vld [vmem:[#allocation6 + $0xf48] sm:$0xf0]  ;;  %v15647_v27 = vld [vmem:[#allocation6 + $0xba0] sm:$0xf0]  ;;  %v13445_v42 = vld [vmem:[#allocation6 + $0xeb0] sm:$0xf] }
 0x289   :  { %v13498_v36 = vor.u32 %v15764_v37, %v13497_v12  ;;  %v15751_v43 = vld [vmem:[#allocation6 + $0xee0] sm:$0xf0]  ;;  %v15861_v12 = vld [vmem:[#allocation6 + $0x1254] sm:$0xf]  ;;  %v13907_v37 = vld [vmem:[#allocation6 + $0x1284] sm:$0xf0] }
 0x28a   :  { %8155 = vmatpush.bf16.msrb.mxu2 %v12302_v6  ;;  %v12035_v6 = vld [vmem:[#allocation6 + $0x3e4] sm:$0xf0]  ;;  %v13446_v4 = vor.u32 %v15751_v43, %v13445_v42  ;;  %v13855_v43 = vld [vmem:[#allocation6 + $0x121c] sm:$0xf0] }
 0x28b   :  { %8131 = vmatpush.bf16.msrb.mxu0 %v14274_v58  ;;  %v13185_v58 = vld [vmem:[#allocation6 + $0xca8] sm:$0xf] }
 0x28c   :  { %8144 = vmatpush.bf16.msrb.mxu1 %v11782_v59  ;;  %v15686_v59 = vld [vmem:[#allocation6 + $0xcd8] sm:$0xf0]  ;;  %8065 = vmatpush.bf16.msrb.mxu3 %v12246_v47  ;;  %v12038_v47 = vor.u32 %v15393_v38, %v12035_v6  ;;  %v15712_v38 = vld [vmem:[#allocation6 + $0xda8] sm:$0xf0]  ;;  %v13913_v6 = vld [vmem:[#allocation6 + $0x1258] sm:$0xf] }
 0x28d   :  { %v13186_v0 = vor.u32 %v15686_v59, %v13185_v58  ;;  %v12977_v58 = vld [vmem:[#allocation6 + $0xb08] sm:$0xf]  ;;  %v15634_v59 = vld [vmem:[#allocation6 + $0xb38] sm:$0xf0] }
 0x28e   :  { %8156 = vmatpush.bf16.msrb.mxu2 %v12250_v56  ;;  %v14011_v56 = vld [vmem:[#allocation6 + $0x1354] sm:$0xf0] }
 0x28f   :  { %8132 = vmatpush.bf16.msrb.mxu0 %v14222_v19  ;;  %v15426_v19 = vld [vmem:[#allocation6 + $0x4b8] sm:$0xf0] }
 0x290   :  { %8145 = vmatpush.bf16.msrb.mxu1 %v11730_v2  ;;  %8066 = vmatpush.bf16.msrb.mxu3 %v12194_v61  ;;  %v12142_v2 = vor.u32 %v15419_v3, %v12139_v5  ;;  %v12146_v28 = vor.u32 %v15426_v19, %v12145_v18  ;;  %v15738_v61 = vld [vmem:[#allocation6 + $0xe78] sm:$0xf0]  ;;  %v12978_v3 = vor.u32 %v15634_v59, %v12977_v58  ;;  %v15621_v18 = vld [vmem:[#allocation6 + $0xad0] sm:$0xf0]  ;;  %v13341_v19 = vld [vmem:[#allocation6 + $0xde0] sm:$0xf] }
 0x291   :  { %v13394_v5 = vor.u32 %v15738_v61, %v13393_v40  ;;  %v13861_v58 = vld [vmem:[#allocation6 + $0x11f0] sm:$0xf]  ;;  %v15855_v59 = vld [vmem:[#allocation6 + $0x1220] sm:$0xf0]  ;;  %v12822_v40 = vor.u32 %v15595_v7, %v12821_v49 }
 0x292   :  { %8157 = vmatpush.bf16.msrb.mxu2 %v12198_v21  ;;  %v15874_v21 = vld [vmem:[#allocation6 + $0x12bc] sm:$0xf] }
 0x293   :  { %8133 = vmatpush.bf16.msrb.mxu0 %v14170_v30  ;;  %v12093_v30 = vld [vmem:[#allocation6 + $0x420] sm:$0xf]  ;;  %v13962_v16 = vor.u32 %v15874_v21, %v13959_v11  ;;  %v13809_v21 = vld [vmem:[#allocation6 + $0x1188] sm:$0xf]  ;;  %v15842_v11 = vld [vmem:[#allocation6 + $0x11b8] sm:$0xf0] }
 0x294   :  { %8146 = vmatpush.bf16.msrb.mxu1 %v11678_v31  ;;  %v15413_v31 = vld [vmem:[#allocation6 + $0x450] sm:$0xf0]  ;;  %8067 = vmatpush.bf16.msrb.mxu3 %v12142_v2 }
 0x295   :  { %v12094_v39 = vor.u32 %v15413_v31, %v12093_v30  ;;  %v15725_v2 = vld [vmem:[#allocation6 + $0xe10] sm:$0xf0]  ;;  %v12873_v30 = vld [vmem:[#allocation6 + $0xa38] sm:$0xf] }
 0x296   :  { %8158 = vmatpush.bf16.msrb.mxu2 %v12146_v28  ;;  %v12926_v28 = vor.u32 %v15621_v18, %v12925_v1  ;;  %v13342_v29 = vor.u32 %v15725_v2, %v13341_v19  ;;  %v15822_v19 = vld [vmem:[#allocation6 + $0x111c] sm:$0xf]  ;;  %v13751_v2 = vld [vmem:[#allocation6 + $0x114c] sm:$0xf0] }
 0x297   :  { %8134 = vmatpush.bf16.msrb.mxu0 %v14118_v52  ;;  %v7853_v52 = vpop.f32.mrf.mxu2 }
 0x298   :  { %8147 = vmatpush.bf16.msrb.mxu1 %v11626_v54  ;;  %8068 = vmatpush.bf16.msrb.mxu3 %v12090_v32  ;;  %v13030_v54 = vor.u32 %v15647_v27, %v13029_v60  ;;  %v15868_v60 = vld [vmem:[#allocation6 + $0x1288] sm:$0xf0]  ;;  %v15699_v52 = vld [vmem:[#allocation6 + $0xd40] sm:$0xf0] }
 0x29a   :  { %8159 = vmatpush.bf16.msrb.mxu2 %v12094_v39  ;;  %v15848_v39 = vld [vmem:[#allocation6 + $0x11ec] sm:$0xf] }
 0x29b   :  { %8135 = vmatpush.bf16.msrb.mxu0 %v14066_v62  ;;  %v16557_v57 = vpop.f32.mrf.mxu0  ;;  %v11986_v62 = vor.u32 %v15380_v51, %v11983_v46  ;;  %v13237_v51 = vld [vmem:[#allocation6 + $0xd10] sm:$0xf]  ;;  %v15472_v46 = vld [vmem:[#allocation6 + $0x62c] sm:$0xf] }
 0x29c   :  { %8148 = vmatpush.bf16.msrb.mxu1 %v11574_v10  ;;  %v16559_v33 = vpop.f32.mrf.mxu1  ;;  %8069 = vmatpush.bf16.msrb.mxu3 %v12038_v47  ;;  %v14017_v10 = vld [vmem:[#allocation6 + $0x1328] sm:$0xf]  ;;  %v13914_v47 = vor.u32 %v15868_v60, %v13913_v6  ;;  %v13238_v61 = vor.u32 %v15699_v52, %v13237_v51  ;;  %v15433_v6 = vld [vmem:[#allocation6 + $0x4f4] sm:$0xf]  ;;  %v15582_v52 = vld [vmem:[#allocation6 + $0x998] sm:$0xf0] }
 0x29d   :  { %v12199_v60 = vld [vmem:[#allocation6 + $0x524] sm:$0xf0] }
 0x29e   :  { %8136 = vmatmul.bf16.vlgmr.msrb.gmra.mxu0 %v16530_v25  ;;  %8160 = vmatpush.bf16.msrb.mxu2 %v12042_v44  ;;  %v13858_v44 = vor.u32 %v15848_v39, %v13855_v43  ;;  %v15816_v39 = vld [vmem:[#allocation6 + $0x10e8] sm:$0xf0]  ;;  %v12202_v7 = vor.u32 %v15433_v6, %v12199_v60  ;;  %v12769_v51 = vld [vmem:[#allocation6 + $0x968] sm:$0xf]  ;;  %v15543_v60 = vld [vmem:[#allocation6 + $0x860] sm:$0xf0] }
 0x29f   :  { %8180 = vmatpush.bf16.msra.mxu0 %v13186_v0  ;;  %8149 = vmatmul.bf16.vlgmr.msrb.gmra.mxu1 %v16457_v15  ;;  %v15894_v0 = vld [vmem:[#allocation6 + $0x1358] sm:$0xf0] }
 0x2a0   :  { %8193 = vmatpush.bf16.msra.mxu1 %v13602_v20  ;;  %v14014_v20 = vor.u32 %v15887_v55, %v14011_v56  ;;  %v14018_v14 = vor.u32 %v15894_v0, %v14017_v10  ;;  %8070 = vmatpush.bf16.msrb.mxu3 %v11986_v62  ;;  %v12355_v55 = vld [vmem:[#allocation6 + $0x65c] sm:$0xf0]  ;;  %v15835_v62 = vld [vmem:[#allocation6 + $0x1184] sm:$0xf]  ;;  %v13803_v10 = vld [vmem:[#allocation6 + $0x11b4] sm:$0xf0] }
 0x2a1   :  { %v12358_v17 = vor.u32 %v15472_v46, %v12355_v55  ;;  %v15355_v0 = vld [vmem:[#allocation6 + $0x284] sm:$0xf]  ;;  %v13806_v1 = vor.u32 %v15835_v62, %v13803_v10  ;;  %v15316_v46 = vld [vmem:[#allocation6 + $0x14c] sm:$0xf]  ;;  %v11731_v55 = vld [vmem:[#allocation6 + $0x17c] sm:$0xf0] }
 0x2a2   :  { %8161 = vmatpush.bf16.msrb.mxu2 %v11990_v9  ;;  %v12303_v9 = vld [vmem:[#allocation6 + $0x5f4] sm:$0xf0]  ;;  %v11734_v62 = vor.u32 %v15316_v46, %v11731_v55  ;;  %v15537_v46 = vld [vmem:[#allocation6 + $0x834] sm:$0xf]  ;;  %v12615_v55 = vld [vmem:[#allocation6 + $0x864] sm:$0xf0] }
 0x2a3   :  { %8181 = vmatpush.bf16.msra.mxu0 %v13134_v34  ;;  %v15881_v34 = vld [vmem:[#allocation6 + $0x12f0] sm:$0xf0]  ;;  %v7931_v48 = vpop.f32.mrf.mxu0  ;;  %8071 = vmatmul.bf16.vlgmr.msrb.gmra.mxu3 %v16461_v45 }
 0x2a4   :  { %8194 = vmatpush.bf16.msra.mxu1 %v13550_v26  ;;  %8115 = vmatpush.bf16.msra.mxu3 %v14014_v20  ;;  %v7903_v26 = vpop.f32.mrf.mxu2  ;;  %v7944_v31 = vpop.f32.mrf.mxu1  ;;  %v13966_v32 = vor.u32 %v15881_v34, %v13965_v24  ;;  %v13862_v20 = vor.u32 %v15855_v59, %v13861_v58  ;;  %v15342_v24 = vld [vmem:[#allocation6 + $0x21c] sm:$0xf]  ;;  %v13810_v34 = vor.u32 %v15842_v11, %v13809_v21  ;;  %v12251_v48 = vld [vmem:[#allocation6 + $0x58c] sm:$0xf0]  ;;  %v15803_v59 = vld [vmem:[#allocation6 + $0x1080] sm:$0xf0] }
 0x2a5   :  { %v16562_v13 = vadd.f32 %v7903_v26, %v16548_v23  ;;  %8162 = vmatmul.bf16.vlgmr.msrb.gmra.mxu2 %v16461_v45  ;;  %v13910_v23 = vor.u32 %v15861_v12, %v13907_v37  ;;  %v11835_v26 = vld [vmem:[#allocation6 + $0x24c] sm:$0xf0]  ;;  %v13754_v12 = vor.u32 %v15822_v19, %v13751_v2  ;;  %v15809_v31 = vld [vmem:[#allocation6 + $0x10b4] sm:$0xf]  ;;  %v11679_v21 = vld [vmem:[#allocation6 + $0x114] sm:$0xf0] }
 0x2a6   :  { %8206 = vmatpush.bf16.msra.mxu2 %v14018_v14  ;;  %v11838_v37 = vor.u32 %v15342_v24, %v11835_v26  ;;  %v13653_v58 = vld [vmem:[#allocation6 + $0x1050] sm:$0xf]  ;;  %v15407_v11 = vld [vmem:[#allocation6 + $0x424] sm:$0xf] }
 0x2a7   :  { %8182 = vmatpush.bf16.msra.mxu0 %v13082_v35  ;;  %v15608_v35 = vld [vmem:[#allocation6 + $0xa68] sm:$0xf0] }
 0x2a8   :  { %8195 = vmatpush.bf16.msra.mxu1 %v13498_v36  ;;  %v13289_v36 = vld [vmem:[#allocation6 + $0xd78] sm:$0xf]  ;;  %8116 = vmatpush.bf16.msra.mxu3 %v13962_v16  ;;  %v12874_v27 = vor.u32 %v15608_v35, %v12873_v30  ;;  %v15446_v16 = vld [vmem:[#allocation6 + $0x55c] sm:$0xf]  ;;  %v15329_v35 = vld [vmem:[#allocation6 + $0x1b4] sm:$0xf] }
 0x2a9   :  { %v13290_v42 = vor.u32 %v15712_v38, %v13289_v36  ;;  %v12254_v30 = vor.u32 %v15446_v16, %v12251_v48  ;;  %v11783_v38 = vld [vmem:[#allocation6 + $0x1e4] sm:$0xf0]  ;;  %v12665_v16 = vld [vmem:[#allocation6 + $0x898] sm:$0xf]  ;;  %v15556_v48 = vld [vmem:[#allocation6 + $0x8c8] sm:$0xf0] }
 0x2aa   :  { %8207 = vmatpush.bf16.msra.mxu2 %v13966_v32  ;;  %v13699_v32 = vld [vmem:[#allocation6 + $0x10e4] sm:$0xf0]  ;;  %v11786_v49 = vor.u32 %v15329_v35, %v11783_v38  ;;  %v12666_v35 = vor.u32 %v15556_v48, %v12665_v16  ;;  %v13915_v16 = vld [vmem:[#allocation6 + $0x128c] sm:$0xf0]  ;;  %v12511_v48 = vld [vmem:[#allocation6 + $0x794] sm:$0xf0] }
 0x2ab   :  { %8183 = vmatpush.bf16.msra.mxu0 %v13030_v54  ;;  %v15368_v54 = vld [vmem:[#allocation6 + $0x2ec] sm:$0xf] }
 0x2ac   :  { %8196 = vmatpush.bf16.msra.mxu1 %v13446_v4  ;;  %v11939_v4 = vld [vmem:[#allocation6 + $0x31c] sm:$0xf0]  ;;  %8117 = vmatpush.bf16.msra.mxu3 %v13910_v23  ;;  %v7905_v56 = vpop.f32.mrf.mxu2  ;;  %v13705_v23 = vld [vmem:[#allocation6 + $0x10b8] sm:$0xf] }
 0x2ad   :  { %v11942_v41 = vor.u32 %v15368_v54, %v11939_v4  ;;  %v13706_v4 = vor.u32 %v15816_v39, %v13705_v23  ;;  %v15420_v56 = vld [vmem:[#allocation6 + $0x48c] sm:$0xf]  ;;  %v15277_v23 = vld [vmem:[#allocation6 + $0x14] sm:$0xf]  ;;  %v11575_v39 = vld [vmem:[#allocation6 + $0x44] sm:$0xf0] }
 0x2ae   :  { %8208 = vmatpush.bf16.msra.mxu2 %v13914_v47  ;;  %v13647_v47 = vld [vmem:[#allocation6 + $0x107c] sm:$0xf0] }
 0x2af   :  { %8184 = vmatpush.bf16.msra.mxu0 %v12978_v3  ;;  %v11887_v3 = vld [vmem:[#allocation6 + $0x2b4] sm:$0xf0] }
 0x2b0   :  { %8197 = vmatpush.bf16.msra.mxu1 %v13394_v5  ;;  %v15459_v5 = vld [vmem:[#allocation6 + $0x5c4] sm:$0xf]  ;;  %8118 = vmatpush.bf16.msra.mxu3 %v13858_v44  ;;  %v11890_v14 = vor.u32 %v15355_v0, %v11887_v3  ;;  %v12147_v44 = vld [vmem:[#allocation6 + $0x4bc] sm:$0xf0]  ;;  %v13654_v0 = vor.u32 %v15803_v59, %v13653_v58  ;;  %v15569_v3 = vld [vmem:[#allocation6 + $0x930] sm:$0xf0] }
 0x2b1   :  { %v12306_v18 = vor.u32 %v15459_v5, %v12303_v9  ;;  %v12150_v10 = vor.u32 %v15420_v56, %v12147_v44  ;;  %v15303_v5 = vld [vmem:[#allocation6 + $0xe4] sm:$0xf]  ;;  %v11578_v56 = vor.u32 %v15277_v23, %v11575_v39  ;;  %v15498_v23 = vld [vmem:[#allocation6 + $0x6fc] sm:$0xf]  ;;  %v12459_v39 = vld [vmem:[#allocation6 + $0x72c] sm:$0xf0] }
 0x2b2   :  { %8209 = vmatpush.bf16.msra.mxu2 %v13862_v20  ;;  %v12717_v20 = vld [vmem:[#allocation6 + $0x900] sm:$0xf] }
 0x2b3   :  { %8185 = vmatpush.bf16.msra.mxu0 %v12926_v28  ;;  %v13757_v28 = vld [vmem:[#allocation6 + $0x1120] sm:$0xf]  ;;  %v12718_v2 = vor.u32 %v15569_v3, %v12717_v20  ;;  %v15875_v20 = vld [vmem:[#allocation6 + $0x12c4] sm:$0xf]  ;;  %v13967_v3 = vld [vmem:[#allocation6 + $0x12f4] sm:$0xf0] }
 0x2b4   :  { %8198 = vmatpush.bf16.msra.mxu1 %v13342_v29  ;;  %v15829_v29 = vld [vmem:[#allocation6 + $0x1150] sm:$0xf0]  ;;  %8119 = vmatpush.bf16.msra.mxu3 %v13806_v1  ;;  %v12095_v1 = vld [vmem:[#allocation6 + $0x454] sm:$0xf0] }
 0x2b5   :  { %v13758_v36 = vor.u32 %v15829_v29, %v13757_v28  ;;  %v12098_v26 = vor.u32 %v15407_v11, %v12095_v1  ;;  %v15290_v28 = vld [vmem:[#allocation6 + $0x7c] sm:$0xf] }
 0x2b6   :  { %8210 = vmatpush.bf16.msra.mxu2 %v13810_v34  ;;  %v11682_v34 = vor.u32 %v15303_v5, %v11679_v21  ;;  %v12563_v21 = vld [vmem:[#allocation6 + $0x7fc] sm:$0xf0] }
 0x2b7   :  { %8186 = vmatpush.bf16.msra.mxu0 %v12874_v27  ;;  %v13702_v27 = vor.u32 %v15809_v31, %v13699_v32  ;;  %v15550_v31 = vld [vmem:[#allocation6 + $0x89c] sm:$0xf]  ;;  %v12667_v32 = vld [vmem:[#allocation6 + $0x8cc] sm:$0xf0] }
 0x2b8   :  { %8199 = vmatpush.bf16.msra.mxu1 %v13290_v42  ;;  %8120 = vmatpush.bf16.msra.mxu3 %v13754_v12  ;;  %v15796_v42 = vld [vmem:[#allocation6 + $0x104c] sm:$0xf]  ;;  %v11627_v12 = vld [vmem:[#allocation6 + $0xac] sm:$0xf0] }
 0x2b9   :  { %v11630_v38 = vor.u32 %v15290_v28, %v11627_v12 }
 0x2ba   :  { %8211 = vmatpush.bf16.msra.mxu2 %v13758_v36  ;;  %v12613_v36 = vld [vmem:[#allocation6 + $0x830] sm:$0xf] }
 0x2bb   :  { %8187 = vmatpush.bf16.msra.mxu0 %v12822_v40  ;;  %v16568_v43 = vpop.f32.mrf.mxu0  ;;  %v13650_v40 = vor.u32 %v15796_v42, %v13647_v47  ;;  %v15381_v42 = vld [vmem:[#allocation6 + $0x354] sm:$0xf]  ;;  %v13603_v47 = vld [vmem:[#allocation6 + $0x101c] sm:$0xf0] }
 0x2bc   :  { %8200 = vmatpush.bf16.msra.mxu1 %v13238_v61  ;;  %v16570_v54 = vpop.f32.mrf.mxu1  ;;  %8121 = vmatpush.bf16.msra.mxu3 %v13702_v27  ;;  %v15576_v61 = vld [vmem:[#allocation6 + $0x96c] sm:$0xf]  ;;  %v12670_v27 = vor.u32 %v15550_v31, %v12667_v32  ;;  %v15745_v31 = vld [vmem:[#allocation6 + $0xeb4] sm:$0xf] }
 0x2be   :  { %8188 = vmatmul.bf16.vlgmr.msra.gmra.mxu0 %v16479_v50  ;;  %8212 = vmatpush.bf16.msra.mxu2 %v13706_v4  ;;  %v12614_v4 = vor.u32 %v15543_v60, %v12613_v36  ;;  %v13863_v60 = vld [vmem:[#allocation6 + $0x1224] sm:$0xf0] }
 0x2bf   :  { %8232 = vmatpush.bf16.msrb.mxu0 %v11942_v41  ;;  %8201 = vmatmul.bf16.vlgmr.msra.gmra.mxu1 %v16481_v53  ;;  %v12771_v41 = vld [vmem:[#allocation6 + $0x99c] sm:$0xf0] }
 0x2c0   :  { %8245 = vmatpush.bf16.msrb.mxu1 %v12358_v17  ;;  %v12770_v17 = vor.u32 %v15582_v52, %v12769_v51  ;;  %v12774_v9 = vor.u32 %v15576_v61, %v12771_v41  ;;  %8122 = vmatpush.bf16.msra.mxu3 %v13650_v40  ;;  %v15888_v51 = vld [vmem:[#allocation6 + $0x132c] sm:$0xf]  ;;  %v14019_v52 = vld [vmem:[#allocation6 + $0x135c] sm:$0xf0]  ;;  %v12561_v40 = vld [vmem:[#allocation6 + $0x7c8] sm:$0xf] }
 0x2c1   :  { %v14022_v59 = vor.u32 %v15888_v51, %v14019_v52  ;;  %v15530_v61 = vld [vmem:[#allocation6 + $0x7f8] sm:$0xf0]  ;;  %v15771_v41 = vld [vmem:[#allocation6 + $0xf84] sm:$0xf] }
 0x2c2   :  { %8213 = vmatpush.bf16.msra.mxu2 %v13654_v0  ;;  %v13551_v0 = vld [vmem:[#allocation6 + $0xfb4] sm:$0xf0]  ;;  %v12562_v11 = vor.u32 %v15530_v61, %v12561_v40  ;;  %v15491_v52 = vld [vmem:[#allocation6 + $0x6c0] sm:$0xf0]  ;;  %v15485_v40 = vld [vmem:[#allocation6 + $0x694] sm:$0xf] }
 0x2c3   :  { %8233 = vmatpush.bf16.msrb.mxu0 %v11890_v14  ;;  %v15563_v14 = vld [vmem:[#allocation6 + $0x904] sm:$0xf]  ;;  %v7983_v19 = vpop.f32.mrf.mxu0  ;;  %8123 = vmatmul.bf16.vlgmr.msra.gmra.mxu3 %v16501_v8  ;;  %v13554_v1 = vor.u32 %v15771_v41, %v13551_v0  ;;  %v12407_v61 = vld [vmem:[#allocation6 + $0x6c4] sm:$0xf0] }
 0x2c4   :  { %8246 = vmatpush.bf16.msrb.mxu1 %v12306_v18  ;;  %v12719_v18 = vld [vmem:[#allocation6 + $0x934] sm:$0xf0]  ;;  %8167 = vmatpush.bf16.msrb.mxu3 %v12770_v17  ;;  %v7996_v24 = vpop.f32.mrf.mxu1  ;;  %v12618_v17 = vor.u32 %v15537_v46, %v12615_v55  ;;  %v15517_v19 = vld [vmem:[#allocation6 + $0x790] sm:$0xf0]  ;;  %v15998_v46 = vld [vmem:[#allocation6 + $0x1698] sm:$0xf0]  ;;  %v12462_v55 = vor.u32 %v15498_v23, %v12459_v39 }
 0x2c5   :  { %v12722_v29 = vor.u32 %v15563_v14, %v12719_v18  ;;  %8214 = vmatmul.bf16.vlgmr.msra.gmra.mxu2 %v16501_v8  ;;  %v13970_v14 = vor.u32 %v15875_v20, %v13967_v3  ;;  %v12509_v18 = vld [vmem:[#allocation6 + $0x760] sm:$0xf]  ;;  %v15966_v23 = vld [vmem:[#allocation6 + $0x159c] sm:$0xf] }
 0x2c6   :  { %8258 = vmatpush.bf16.msrb.mxu2 %v12774_v9  ;;  %v15524_v9 = vld [vmem:[#allocation6 + $0x7cc] sm:$0xf]  ;;  %v12510_v28 = vor.u32 %v15517_v19, %v12509_v18 }
 0x2c7   :  { %8234 = vmatpush.bf16.msrb.mxu0 %v11838_v37  ;;  %v15394_v37 = vld [vmem:[#allocation6 + $0x3bc] sm:$0xf]  ;;  %v12566_v24 = vor.u32 %v15524_v9, %v12563_v21  ;;  %v12410_v9 = vor.u32 %v15485_v40, %v12407_v61  ;;  %v12777_v40 = vld [vmem:[#allocation6 + $0x970] sm:$0xf]  ;;  %v15583_v61 = vld [vmem:[#allocation6 + $0x9a0] sm:$0xf0] }
 0x2c8   :  { %8247 = vmatpush.bf16.msrb.mxu1 %v12254_v30  ;;  %v12043_v30 = vld [vmem:[#allocation6 + $0x3ec] sm:$0xf0]  ;;  %8168 = vmatpush.bf16.msrb.mxu3 %v12718_v2  ;;  %v15758_v2 = vld [vmem:[#allocation6 + $0xf1c] sm:$0xf] }
 0x2c9   :  { %v12046_v6 = vor.u32 %v15394_v37, %v12043_v30  ;;  %v12457_v37 = vld [vmem:[#allocation6 + $0x6f8] sm:$0xf]  ;;  %v15504_v30 = vld [vmem:[#allocation6 + $0x728] sm:$0xf0] }
 0x2ca   :  { %8259 = vmatpush.bf16.msrb.mxu2 %v12722_v29 }
 0x2cb   :  { %8235 = vmatpush.bf16.msrb.mxu0 %v11786_v49  ;;  %v11991_v49 = vld [vmem:[#allocation6 + $0x384] sm:$0xf0] }
 0x2cc   :  { %8248 = vmatpush.bf16.msrb.mxu1 %v12202_v7  ;;  %v15784_v7 = vld [vmem:[#allocation6 + $0xfec] sm:$0xf]  ;;  %8169 = vmatpush.bf16.msrb.mxu3 %v12666_v35  ;;  %v11994_v44 = vor.u32 %v15381_v42, %v11991_v49  ;;  %v12458_v42 = vor.u32 %v15504_v30, %v12457_v37  ;;  %v12405_v49 = vld [vmem:[#allocation6 + $0x690] sm:$0xf]  ;;  %v14329_v30 = vld [vmem:[#allocation6 + $0x1598] sm:$0xf] }
 0x2cd   :  { %v13606_v58 = vor.u32 %v15784_v7, %v13603_v47  ;;  %v12406_v41 = vor.u32 %v15491_v52, %v12405_v49  ;;  %v14277_v49 = vld [vmem:[#allocation6 + $0x1530] sm:$0xf]  ;;  %v15959_v52 = vld [vmem:[#allocation6 + $0x1560] sm:$0xf0] }
 0x2ce   :  { %8260 = vmatpush.bf16.msrb.mxu2 %v12670_v27 }
 0x2cf   :  { %8236 = vmatpush.bf16.msrb.mxu0 %v11734_v62  ;;  %v7864_v62 = vpop.f32.mrf.mxu3 }
 0x2d0   :  { %8249 = vmatpush.bf16.msrb.mxu1 %v12150_v10  ;;  %v16574_v10 = vpop.f32.mrf.mxu2  ;;  %8170 = vmatpush.bf16.msrb.mxu3 %v12614_v4  ;;  %v16577_v5 = vadd.f32 %v7864_v62, %v16553_v63  ;;  %v15511_v63 = vld [vmem:[#allocation6 + $0x764] sm:$0xf]  ;;  %v14433_v4 = vld [vmem:[#allocation6 + $0x1668] sm:$0xf]  ;;  %v14435_v62 = vld [vmem:[#allocation6 + $0x169c] sm:$0xf0] }
 0x2d1   :  { %v12514_v32 = vor.u32 %v15511_v63, %v12511_v48  ;;  %v14434_v0 = vor.u32 %v15998_v46, %v14433_v4  ;;  %v15979_v63 = vld [vmem:[#allocation6 + $0x1604] sm:$0xf]  ;;  %v14383_v48 = vld [vmem:[#allocation6 + $0x1634] sm:$0xf0]  ;;  %v15693_v4 = vld [vmem:[#allocation6 + $0xd14] sm:$0xf] }
 0x2d2   :  { %8261 = vmatpush.bf16.msrb.mxu2 %v12618_v17  ;;  %v15992_v17 = vld [vmem:[#allocation6 + $0x166c] sm:$0xf]  ;;  %v13239_v46 = vld [vmem:[#allocation6 + $0xd44] sm:$0xf0] }
 0x2d3   :  { %8237 = vmatpush.bf16.msrb.mxu0 %v11682_v34  ;;  %v13499_v34 = vld [vmem:[#allocation6 + $0xf4c] sm:$0xf0]  ;;  %v14438_v19 = vor.u32 %v15992_v17, %v14435_v62  ;;  %v15953_v17 = vld [vmem:[#allocation6 + $0x1534] sm:$0xf]  ;;  %v14279_v62 = vld [vmem:[#allocation6 + $0x1564] sm:$0xf0] }
 0x2d4   :  { %8250 = vmatpush.bf16.msrb.mxu1 %v12098_v26  ;;  %v15862_v26 = vld [vmem:[#allocation6 + $0x125c] sm:$0xf]  ;;  %8171 = vmatpush.bf16.msrb.mxu3 %v12562_v11  ;;  %v13502_v29 = vor.u32 %v15758_v2, %v13499_v34  ;;  %v14381_v11 = vld [vmem:[#allocation6 + $0x1600] sm:$0xf]  ;;  %v13343_v2 = vld [vmem:[#allocation6 + $0xe14] sm:$0xf0] }
 0x2d5   :  { %v13918_v12 = vor.u32 %v15862_v26, %v13915_v16  ;;  %v13759_v34 = vld [vmem:[#allocation6 + $0x1154] sm:$0xf0] }
 0x2d6   :  { %8262 = vmatpush.bf16.msrb.mxu2 %v12566_v24  ;;  %v15823_v24 = vld [vmem:[#allocation6 + $0x1124] sm:$0xf] }
 0x2d7   :  { %8238 = vmatpush.bf16.msrb.mxu0 %v11630_v38  ;;  %v7866_v35 = vpop.f32.mrf.mxu3  ;;  %v13447_v38 = vld [vmem:[#allocation6 + $0xee4] sm:$0xf0] }
 0x2d8   :  { %8251 = vmatpush.bf16.msrb.mxu1 %v12046_v6  ;;  %v7957_v36 = vpop.f32.mrf.mxu2  ;;  %v15849_v6 = vld [vmem:[#allocation6 + $0x11f4] sm:$0xf]  ;;  %8172 = vmatpush.bf16.msrb.mxu3 %v12510_v28  ;;  %v13450_v47 = vor.u32 %v15745_v31, %v13447_v38  ;;  %v15972_v31 = vld [vmem:[#allocation6 + $0x15c8] sm:$0xf0]  ;;  %v13291_v38 = vld [vmem:[#allocation6 + $0xdac] sm:$0xf0] }
 0x2d9   :  { %v13866_v51 = vor.u32 %v15849_v6, %v13863_v60  ;;  %v14386_v36 = vor.u32 %v15979_v63, %v14383_v48  ;;  %v15810_v6 = vld [vmem:[#allocation6 + $0x10bc] sm:$0xf]  ;;  %v13707_v60 = vld [vmem:[#allocation6 + $0x10ec] sm:$0xf0]  ;;  %v14227_v63 = vld [vmem:[#allocation6 + $0x14fc] sm:$0xf0] }
 0x2da   :  { %8263 = vmatpush.bf16.msrb.mxu2 %v12514_v32  ;;  %v15706_v32 = vld [vmem:[#allocation6 + $0xd7c] sm:$0xf] }
 0x2db   :  { %8239 = vmatpush.bf16.msrb.mxu0 %v11578_v56  ;;  %v16581_v27 = vpop.f32.mrf.mxu0  ;;  %v15732_v56 = vld [vmem:[#allocation6 + $0xe4c] sm:$0xf] }
 0x2dc   :  { %8252 = vmatpush.bf16.msrb.mxu1 %v11994_v44  ;;  %v16583_v7 = vpop.f32.mrf.mxu1  ;;  %v13395_v44 = vld [vmem:[#allocation6 + $0xe7c] sm:$0xf0]  ;;  %8173 = vmatpush.bf16.msrb.mxu3 %v12458_v42  ;;  %v14330_v42 = vor.u32 %v15972_v31, %v14329_v30  ;;  %v15933_v30 = vld [vmem:[#allocation6 + $0x1490] sm:$0xf0] }
 0x2dd   :  { %v13398_v20 = vor.u32 %v15732_v56, %v13395_v44  ;;  %v15797_v56 = vld [vmem:[#allocation6 + $0x1054] sm:$0xf]  ;;  %v13655_v44 = vld [vmem:[#allocation6 + $0x1084] sm:$0xf0]  ;;  %v12257_v31 = vld [vmem:[#allocation6 + $0x560] sm:$0xf] }
 0x2de   :  { %8240 = vmatmul.bf16.vlgmr.msrb.gmra.mxu0 %v16457_v15  ;;  %8264 = vmatpush.bf16.msrb.mxu2 %v12462_v55 }
 0x2df   :  { %8284 = vmatpush.bf16.msra.mxu0 %v13606_v58  ;;  %8253 = vmatmul.bf16.vlgmr.msrb.gmra.mxu1 %v16461_v45  ;;  %v15836_v58 = vld [vmem:[#allocation6 + $0x118c] sm:$0xf]  ;;  %v7916_v21 = vpop.f32.mrf.mxu3 }
 0x2e0   :  { %8297 = vmatpush.bf16.msra.mxu1 %v14022_v59  ;;  %v13811_v59 = vld [vmem:[#allocation6 + $0x11bc] sm:$0xf0]  ;;  %v7917_v18 = vadd.f32 %v7916_v21, %v16562_v13  ;;  %8174 = vmatpush.bf16.msrb.mxu3 %v12406_v41  ;;  %v16586_v26 = vpop.f32.mrf.mxu2  ;;  %v13762_v13 = vor.u32 %v15823_v24, %v13759_v34  ;;  %v14278_v41 = vor.u32 %v15959_v52, %v14277_v49  ;;  %v12725_v24 = vld [vmem:[#allocation6 + $0x908] sm:$0xf]  ;;  %v15570_v34 = vld [vmem:[#allocation6 + $0x938] sm:$0xf0] }
 0x2e1   :  { %v13814_v3 = vor.u32 %v15836_v58, %v13811_v59  ;;  %v12361_v58 = vld [vmem:[#allocation6 + $0x630] sm:$0xf]  ;;  %v15479_v59 = vld [vmem:[#allocation6 + $0x660] sm:$0xf0]  ;;  %v12778_v21 = vor.u32 %v15583_v61, %v12777_v40  ;;  %v12205_v52 = vld [vmem:[#allocation6 + $0x4f8] sm:$0xf] }
 0x2e2   :  { %v7930_v28 = vadd.f32 %v16557_v57, %v7917_v18  ;;  %8265 = vmatpush.bf16.msrb.mxu2 %v12410_v9  ;;  %v14331_v57 = vld [vmem:[#allocation6 + $0x15cc] sm:$0xf0]  ;;  %v12362_v9 = vor.u32 %v15479_v59, %v12361_v58  ;;  %v15914_v58 = vld [vmem:[#allocation6 + $0x13fc] sm:$0xf] }
 0x2e3   :  { %8285 = vmatpush.bf16.msra.mxu0 %v13554_v1  ;;  %v15985_v1 = vld [vmem:[#allocation6 + $0x1630] sm:$0xf0]  ;;  %v8035_v16 = vpop.f32.mrf.mxu0  ;;  %8175 = vmatmul.bf16.vlgmr.msrb.gmra.mxu3 %v16465_v22  ;;  %v14334_v55 = vor.u32 %v15966_v23, %v14331_v57  ;;  %v15927_v23 = vld [vmem:[#allocation6 + $0x1464] sm:$0xf]  ;;  %v14175_v57 = vld [vmem:[#allocation6 + $0x1494] sm:$0xf0] }
 0x2e4   :  { %8298 = vmatpush.bf16.msra.mxu1 %v13970_v14  ;;  %v15719_v14 = vld [vmem:[#allocation6 + $0xde4] sm:$0xf]  ;;  %8219 = vmatpush.bf16.msra.mxu3 %v14434_v0  ;;  %v7943_v35 = vadd.f32 %v16559_v33, %v7930_v28  ;;  %v13294_v33 = vor.u32 %v15706_v32, %v13291_v38  ;;  %v13242_v0 = vor.u32 %v15693_v4, %v13239_v46  ;;  %v15940_v16 = vld [vmem:[#allocation6 + $0x14cc] sm:$0xf]  ;;  %v12673_v38 = vld [vmem:[#allocation6 + $0x8a0] sm:$0xf] }
 0x2e5   :  { %v13346_v37 = vor.u32 %v15719_v14, %v13343_v2  ;;  %8266 = vmatmul.bf16.vlgmr.msrb.gmra.mxu2 %v16465_v22  ;;  %v16595_v14 = vld [vmem:[#allocation7] sm:$0xff]  ;;  %v15466_v2 = vld [vmem:[#allocation6 + $0x5f8] sm:$0xf0]  ;;  %v14230_v32 = vor.u32 %v15940_v16, %v14227_v63  ;;  %v14178_v46 = vor.u32 %v15927_v23, %v14175_v57 }
 0x2e6   :  { %8310 = vmatpush.bf16.msra.mxu2 %v14438_v19  ;;  %v16592_v39 = vadd.f32 %v16574_v10, %v7943_v35  ;;  %v4057_v18 = vperm.slane %v16595_v14, 2  ;;  %v14282_v19 = vor.u32 %v15953_v17, %v14279_v62  ;;  %v15687_v16 = vld [vmem:[#allocation6 + $0xce0] sm:$0xf0]  ;;  %v15674_v23 = vld [vmem:[#allocation6 + $0xc78] sm:$0xf0] }
 0x2e7   :  { %8286 = vmatpush.bf16.msra.mxu0 %v13502_v29  ;;  %v8048_v29 = vpop.f32.mrf.mxu1 }
 0x2e8   :  { %8299 = vmatpush.bf16.msra.mxu1 %v13918_v12  ;;  %v14382_v12 = vor.u32 %v15985_v1, %v14381_v11  ;;  %v8009_v10 = vpop.f32.mrf.mxu2  ;;  %v15946_v11 = vld [vmem:[#allocation6 + $0x14f8] sm:$0xf0]  ;;  %v12309_v1 = vld [vmem:[#allocation6 + $0x5c8] sm:$0xf] }
 0x2e9   :  { %v12310_v29 = vor.u32 %v15466_v2, %v12309_v1  ;;  %v12569_v1 = vld [vmem:[#allocation6 + $0x7d0] sm:$0xf]  ;;  %v14071_v2 = vld [vmem:[#allocation6 + $0x13c4] sm:$0xf0] }
 0x2ea   :  { %8220 = vmatpush.bf16.msra.mxu3 %v14382_v12  ;;  %8311 = vmatpush.bf16.msra.mxu2 %v14386_v36  ;;  %v12726_v12 = vor.u32 %v15570_v34, %v12725_v24  ;;  %v15453_v36 = vld [vmem:[#allocation6 + $0x590] sm:$0xf0]  ;;  %v13193_v34 = vld [vmem:[#allocation6 + $0xcb0] sm:$0xf] }
 0x2eb   :  { %8287 = vmatpush.bf16.msra.mxu0 %v13450_v47  ;;  %v13710_v47 = vor.u32 %v15810_v6, %v13707_v60  ;;  %v15557_v6 = vld [vmem:[#allocation6 + $0x8d0] sm:$0xf0]  ;;  %v12258_v49 = vor.u32 %v15453_v36, %v12257_v31  ;;  %v15414_v31 = vld [vmem:[#allocation6 + $0x458] sm:$0xf0] }
 0x2ec   :  { %8300 = vmatpush.bf16.msra.mxu1 %v13866_v51  ;;  %v7918_v51 = vpop.f32.mrf.mxu3  ;;  %v15518_v36 = vld [vmem:[#allocation6 + $0x798] sm:$0xf0] }
 0x2ed   :  { %v15920_v51 = vld [vmem:[#allocation6 + $0x1428] sm:$0xf0] }
 0x2ee   :  { %8221 = vmatpush.bf16.msra.mxu3 %v14330_v42  ;;  %8312 = vmatpush.bf16.msra.mxu2 %v14334_v55  ;;  %v15440_v55 = vld [vmem:[#allocation6 + $0x528] sm:$0xf0] }
 0x2ef   :  { %8288 = vmatpush.bf16.msra.mxu0 %v13398_v20  ;;  %v13658_v20 = vor.u32 %v15797_v56, %v13655_v44  ;;  %v12621_v56 = vld [vmem:[#allocation6 + $0x838] sm:$0xf]  ;;  %v15544_v44 = vld [vmem:[#allocation6 + $0x868] sm:$0xf0] }
 0x2f0   :  { %8301 = vmatpush.bf16.msra.mxu1 %v13814_v3  ;;  %v14225_v3 = vld [vmem:[#allocation6 + $0x14c8] sm:$0xf]  ;;  %v16598_v35 = vpop.f32.mrf.mxu2  ;;  %v12622_v17 = vor.u32 %v15544_v44, %v12621_v56  ;;  %v13089_v56 = vld [vmem:[#allocation6 + $0xbe0] sm:$0xf]  ;;  %v15661_v44 = vld [vmem:[#allocation6 + $0xc10] sm:$0xf0] }
 0x2f1   :  { %v14226_v48 = vor.u32 %v15946_v11, %v14225_v3  ;;  %v13187_v3 = vld [vmem:[#allocation6 + $0xcdc] sm:$0xf0]  ;;  %v15427_v11 = vld [vmem:[#allocation6 + $0x4c0] sm:$0xf0] }
 0x2f2   :  { %8222 = vmatpush.bf16.msra.mxu3 %v14278_v41  ;;  %8313 = vmatpush.bf16.msra.mxu2 %v14282_v19  ;;  %v14069_v41 = vld [vmem:[#allocation6 + $0x1390] sm:$0xf]  ;;  %v15901_v19 = vld [vmem:[#allocation6 + $0x1394] sm:$0xf] }
 0x2f3   :  { %8289 = vmatpush.bf16.msra.mxu0 %v13346_v37 }
 0x2f4   :  { %8302 = vmatpush.bf16.msra.mxu1 %v13762_v13  ;;  %v7968_v28 = vpop.f32.mrf.mxu3  ;;  %v14173_v13 = vld [vmem:[#allocation6 + $0x1460] sm:$0xf] }
 0x2f5   :  { %v7969_v37 = vadd.f32 %v7968_v28, %v4057_v18  ;;  %v14174_v42 = vor.u32 %v15933_v30, %v14173_v13  ;;  %v15531_v18 = vld [vmem:[#allocation6 + $0x800] sm:$0xf0]  ;;  %v12101_v13 = vld [vmem:[#allocation6 + $0x428] sm:$0xf]  ;;  %v13194_v30 = vor.u32 %v15687_v16, %v13193_v34 }
 0x2f6   :  { %8223 = vmatpush.bf16.msra.mxu3 %v14226_v48  ;;  %8314 = vmatpush.bf16.msra.mxu2 %v14230_v32  ;;  %v12570_v28 = vor.u32 %v15531_v18, %v12569_v1  ;;  %v12517_v32 = vld [vmem:[#allocation6 + $0x768] sm:$0xf]  ;;  %v13037_v18 = vld [vmem:[#allocation6 + $0xb78] sm:$0xf] }
 0x2f7   :  { %8290 = vmatpush.bf16.msra.mxu0 %v13294_v33  ;;  %v7982_v60 = vadd.f32 %v16568_v43, %v7969_v37  ;;  %v12674_v33 = vor.u32 %v15557_v6, %v12673_v38  ;;  %v14123_v43 = vld [vmem:[#allocation6 + $0x142c] sm:$0xf0]  ;;  %v13135_v37 = vld [vmem:[#allocation6 + $0xc74] sm:$0xf0] }
 0x2f8   :  { %8303 = vmatpush.bf16.msra.mxu1 %v13710_v47  ;;  %v14121_v47 = vld [vmem:[#allocation6 + $0x13f8] sm:$0xf] }
 0x2f9   :  { %v7995_v4 = vadd.f32 %v16570_v54, %v7982_v60  ;;  %v14122_v61 = vor.u32 %v15920_v51, %v14121_v47  ;;  %v12206_v54 = vor.u32 %v15440_v55, %v12205_v52  ;;  %v13141_v60 = vld [vmem:[#allocation6 + $0xc48] sm:$0xf]  ;;  %v13083_v47 = vld [vmem:[#allocation6 + $0xc0c] sm:$0xf0]  ;;  %v12049_v51 = vld [vmem:[#allocation6 + $0x3c0] sm:$0xf] }
 0x2fa   :  { %8224 = vmatpush.bf16.msra.mxu3 %v14174_v42  ;;  %8315 = vmatpush.bf16.msra.mxu2 %v14178_v46  ;;  %v12102_v42 = vor.u32 %v15414_v31, %v12101_v13  ;;  %v13142_v52 = vor.u32 %v15674_v23, %v13141_v60  ;;  %v12465_v46 = vld [vmem:[#allocation6 + $0x700] sm:$0xf]  ;;  %v15505_v55 = vld [vmem:[#allocation6 + $0x730] sm:$0xf0]  ;;  %v15986_v13 = vld [vmem:[#allocation6 + $0x1638] sm:$0xf0] }
 0x2fb   :  { %8291 = vmatpush.bf16.msra.mxu0 %v13242_v0  ;;  %v16605_v10 = vadd.f32 %v16586_v26, %v7995_v4  ;;  %v16607_v59 = vpop.f32.mrf.mxu0  ;;  %v15907_v0 = vld [vmem:[#allocation6 + $0x13c0] sm:$0xf0]  ;;  %v12153_v26 = vld [vmem:[#allocation6 + $0x490] sm:$0xf]  ;;  %v15401_v4 = vld [vmem:[#allocation6 + $0x3f0] sm:$0xf0] }
 0x2fc   :  { %8304 = vmatpush.bf16.msra.mxu1 %v13658_v20  ;;  %v16609_v40 = vpop.f32.mrf.mxu1  ;;  %v7970_v62 = vpop.f32.mrf.mxu3  ;;  %v15680_v20 = vld [vmem:[#allocation6 + $0xcac] sm:$0xf]  ;;  %v14070_v24 = vor.u32 %v15907_v0, %v14069_v41  ;;  %v12154_v48 = vor.u32 %v15427_v11, %v12153_v26  ;;  %v12466_v41 = vor.u32 %v15505_v55, %v12465_v46  ;;  %v13090_v0 = vor.u32 %v15661_v44, %v13089_v56  ;;  %v14441_v26 = vld [vmem:[#allocation6 + $0x1670] sm:$0xf]  ;;  %v15999_v11 = vld [vmem:[#allocation6 + $0x16a0] sm:$0xf0] }
 0x2fd   :  { %v13190_v63 = vor.u32 %v15680_v20, %v13187_v3  ;;  %v15388_v62 = vld [vmem:[#allocation6 + $0x388] sm:$0xf0]  ;;  %v12413_v20 = vld [vmem:[#allocation6 + $0x698] sm:$0xf]  ;;  %v14442_v16 = vor.u32 %v15999_v11, %v14441_v26  ;;  %v15635_v31 = vld [vmem:[#allocation6 + $0xb40] sm:$0xf0] }
 0x2fe   :  { %8292 = vmatmul.bf16.vlgmr.msra.gmra.mxu0 %v16481_v53  ;;  %8225 = vmatpush.bf16.msra.mxu3 %v14122_v61  ;;  %v12050_v61 = vor.u32 %v15401_v4, %v12049_v51  ;;  %v15492_v3 = vld [vmem:[#allocation6 + $0x6c8] sm:$0xf0]  ;;  %v15615_v23 = vld [vmem:[#allocation6 + $0xaa4] sm:$0xf]  ;;  %v14337_v51 = vld [vmem:[#allocation6 + $0x15a0] sm:$0xf] }
 0x2ff   :  { %8336 = vmatpush.bf16.msrb.mxu0 %v12362_v9  ;;  %8305 = vmatmul.bf16.vlgmr.msra.gmra.mxu1 %v16501_v8  ;;  %v14126_v9 = vor.u32 %v15914_v58, %v14123_v43  ;;  %v15641_v43 = vld [vmem:[#allocation6 + $0xb74] sm:$0xf]  ;;  %v12933_v46 = vld [vmem:[#allocation6 + $0xaa8] sm:$0xf] }
 0x300   :  { %8349 = vmatpush.bf16.msrb.mxu1 %v12778_v21  ;;  %v8061_v21 = vpop.f32.mrf.mxu2 }
 0x301   :  { %8316 = vmatpush.bf16.msra.mxu2 %v14126_v9  ;;  %v14025_v9 = vld [vmem:[#allocation6 + $0x1330] sm:$0xf]  ;;  %v15895_v21 = vld [vmem:[#allocation6 + $0x1360] sm:$0xf0] }
 0x302   :  { %8226 = vmatpush.bf16.msra.mxu3 %v14070_v24  ;;  %v12414_v24 = vor.u32 %v15492_v3, %v12413_v20  ;;  %v14026_v34 = vor.u32 %v15895_v21, %v14025_v9  ;;  %v15609_v20 = vld [vmem:[#allocation6 + $0xa70] sm:$0xf0] }
 0x303   :  { %8337 = vmatpush.bf16.msrb.mxu0 %v12310_v29  ;;  %v14074_v29 = vor.u32 %v15901_v19, %v14071_v2  ;;  %v8087_v38 = vpop.f32.mrf.mxu0  ;;  %v15648_v19 = vld [vmem:[#allocation6 + $0xba8] sm:$0xf0]  ;;  %v15589_v21 = vld [vmem:[#allocation6 + $0x9d4] sm:$0xf] }
 0x304   :  { %8350 = vmatpush.bf16.msrb.mxu1 %v12726_v12  ;;  %v15667_v12 = vld [vmem:[#allocation6 + $0xc44] sm:$0xf]  ;;  %v8100_v6 = vpop.f32.mrf.mxu1 }
 0x305   :  { %v13138_v57 = vor.u32 %v15667_v12, %v13135_v37  ;;  %8317 = vmatpush.bf16.msra.mxu2 %v14074_v29  ;;  %8227 = vmatmul.bf16.vlgmr.msra.gmra.mxu3 %v16530_v25  ;;  %v13038_v29 = vor.u32 %v15648_v19, %v13037_v18  ;;  %v15882_v12 = vld [vmem:[#allocation6 + $0x12f8] sm:$0xf0]  ;;  %v14389_v37 = vld [vmem:[#allocation6 + $0x1608] sm:$0xf]  ;;  %v11945_v19 = vld [vmem:[#allocation6 + $0x2f0] sm:$0xf] }
 0x306   :  { %8271 = vmatpush.bf16.msrb.mxu3 %v13190_v63  ;;  %v15628_v63 = vld [vmem:[#allocation6 + $0xb0c] sm:$0xf]  ;;  %v14390_v60 = vor.u32 %v15986_v13, %v14389_v37  ;;  %v12823_v18 = vld [vmem:[#allocation6 + $0xa04] sm:$0xf0]  ;;  %v15369_v13 = vld [vmem:[#allocation6 + $0x2f4] sm:$0xf] }
 0x307   :  { %8338 = vmatpush.bf16.msrb.mxu0 %v12258_v49  ;;  %v12518_v49 = vor.u32 %v15518_v36, %v12517_v32  ;;  %v8020_v36 = vpop.f32.mrf.mxu3  ;;  %v12826_v37 = vor.u32 %v15589_v21, %v12823_v18  ;;  %v15804_v18 = vld [vmem:[#allocation6 + $0x1088] sm:$0xf0] }
 0x308   :  { %8351 = vmatpush.bf16.msrb.mxu1 %v12674_v33  ;;  %v15654_v33 = vld [vmem:[#allocation6 + $0xbdc] sm:$0xf]  ;;  %8318 = vmatmul.bf16.vlgmr.msra.gmra.mxu2 %v16530_v25  ;;  %v8021_v38 = vadd.f32 %v8020_v36, %v16605_v10 }
 0x309   :  { %8362 = vmatpush.bf16.msrb.mxu2 %v13194_v30  ;;  %v13086_v58 = vor.u32 %v15654_v33, %v13083_v47  ;;  %v12985_v30 = vld [vmem:[#allocation6 + $0xb10] sm:$0xf]  ;;  %v16614_v33 = vpop.f32.mrf.mxu2  ;;  %v15869_v47 = vld [vmem:[#allocation6 + $0x1290] sm:$0xf0]  ;;  %v15622_v10 = vld [vmem:[#allocation6 + $0xad8] sm:$0xf0] }
 0x30a   :  { %8272 = vmatpush.bf16.msrb.mxu3 %v13138_v57  ;;  %v12927_v57 = vld [vmem:[#allocation6 + $0xad4] sm:$0xf0]  ;;  %v8034_v4 = vadd.f32 %v16581_v27, %v8021_v38  ;;  %v12881_v27 = vld [vmem:[#allocation6 + $0xa40] sm:$0xf] }
 0x30b   :  { %8339 = vmatpush.bf16.msrb.mxu0 %v12206_v54  ;;  %v13031_v54 = vld [vmem:[#allocation6 + $0xba4] sm:$0xf0]  ;;  %v12930_v55 = vor.u32 %v15615_v23, %v12927_v57 }
 0x30c   :  { %8352 = vmatpush.bf16.msrb.mxu1 %v12622_v17  ;;  %v11997_v17 = vld [vmem:[#allocation6 + $0x358] sm:$0xf]  ;;  %v13034_v1 = vor.u32 %v15641_v43, %v13031_v54  ;;  %v16620_v56 = vadd.f32 %v16583_v7, %v8034_v4  ;;  %v15602_v43 = vld [vmem:[#allocation6 + $0xa3c] sm:$0xf]  ;;  %v12934_v54 = vor.u32 %v15622_v10, %v12933_v46  ;;  %v13765_v23 = vld [vmem:[#allocation6 + $0x1128] sm:$0xf] }
 0x30d   :  { %8363 = vmatpush.bf16.msrb.mxu2 %v13142_v52  ;;  %v11998_v2 = vor.u32 %v15388_v62, %v11997_v17  ;;  %v15973_v52 = vld [vmem:[#allocation6 + $0x15d0] sm:$0xf0]  ;;  %v15856_v17 = vld [vmem:[#allocation6 + $0x1228] sm:$0xf0]  ;;  %v14285_v62 = vld [vmem:[#allocation6 + $0x1538] sm:$0xf] }
 0x30e   :  { %8273 = vmatpush.bf16.msrb.mxu3 %v13086_v58  ;;  %v14338_v58 = vor.u32 %v15973_v52, %v14337_v51  ;;  %v15356_v4 = vld [vmem:[#allocation6 + $0x28c] sm:$0xf]  ;;  %v11895_v46 = vld [vmem:[#allocation6 + $0x2bc] sm:$0xf0] }
 0x30f   :  { %8340 = vmatpush.bf16.msrb.mxu0 %v12154_v48  ;;  %v12979_v48 = vld [vmem:[#allocation6 + $0xb3c] sm:$0xf0]  ;;  %v8022_v26 = vpop.f32.mrf.mxu3 }
 0x310   :  { %8353 = vmatpush.bf16.msrb.mxu1 %v12570_v28  ;;  %v13973_v28 = vld [vmem:[#allocation6 + $0x12c8] sm:$0xf]  ;;  %v12982_v32 = vor.u32 %v15628_v63, %v12979_v48  ;;  %v15843_v63 = vld [vmem:[#allocation6 + $0x11c0] sm:$0xf0]  ;;  %v14233_v48 = vld [vmem:[#allocation6 + $0x14d0] sm:$0xf] }
 0x311   :  { %8364 = vmatpush.bf16.msrb.mxu2 %v13090_v0  ;;  %v13974_v6 = vor.u32 %v15882_v12, %v13973_v28  ;;  %v15960_v0 = vld [vmem:[#allocation6 + $0x1568] sm:$0xf0]  ;;  %v15947_v28 = vld [vmem:[#allocation6 + $0x1500] sm:$0xf0] }
 0x312   :  { %8274 = vmatpush.bf16.msrb.mxu3 %v13034_v1  ;;  %v14286_v1 = vor.u32 %v15960_v0, %v14285_v62  ;;  %v15596_v12 = vld [vmem:[#allocation6 + $0xa08] sm:$0xf0]  ;;  %v14234_v36 = vor.u32 %v15947_v28, %v14233_v48  ;;  %v15921_v62 = vld [vmem:[#allocation6 + $0x1430] sm:$0xf0]  ;;  %v15343_v0 = vld [vmem:[#allocation6 + $0x224] sm:$0xf] }
 0x313   :  { %8341 = vmatpush.bf16.msrb.mxu0 %v12102_v42  ;;  %v13921_v42 = vld [vmem:[#allocation6 + $0x1260] sm:$0xf]  ;;  %v13195_v48 = vld [vmem:[#allocation6 + $0xce4] sm:$0xf0]  ;;  %v4058_v28 = vperm.slane %v16595_v14, 3 }
 0x314   :  { %8354 = vmatpush.bf16.msrb.mxu1 %v12518_v49  ;;  %v12986_v49 = vor.u32 %v15635_v31, %v12985_v30  ;;  %v13922_v44 = vor.u32 %v15869_v47, %v13921_v42  ;;  %v11947_v30 = vld [vmem:[#allocation6 + $0x324] sm:$0xf0]  ;;  %v15830_v42 = vld [vmem:[#allocation6 + $0x1158] sm:$0xf0] }
 0x315   :  { %8365 = vmatpush.bf16.msrb.mxu2 %v13038_v29  ;;  %v12829_v29 = vld [vmem:[#allocation6 + $0x9d8] sm:$0xf]  ;;  %v11950_v57 = vor.u32 %v15369_v13, %v11947_v30  ;;  %v15934_v47 = vld [vmem:[#allocation6 + $0x1498] sm:$0xf0]  ;;  %v4059_v13 = vperm.slane %v16595_v14, 4 }
 0x316   :  { %8275 = vmatpush.bf16.msrb.mxu3 %v12982_v32  ;;  %v12830_v38 = vor.u32 %v15596_v12, %v12829_v29  ;;  %v15330_v12 = vld [vmem:[#allocation6 + $0x1bc] sm:$0xf] }
 0x317   :  { %8342 = vmatpush.bf16.msrb.mxu0 %v12050_v61  ;;  %v12875_v61 = vld [vmem:[#allocation6 + $0xa6c] sm:$0xf0] }
 0x318   :  { %8355 = vmatpush.bf16.msrb.mxu1 %v12466_v41  ;;  %v13869_v41 = vld [vmem:[#allocation6 + $0x11f8] sm:$0xf]  ;;  %v12878_v7 = vor.u32 %v15602_v43, %v12875_v61  ;;  %v15349_v43 = vld [vmem:[#allocation6 + $0x250] sm:$0xf0]  ;;  %v13713_v61 = vld [vmem:[#allocation6 + $0x10c0] sm:$0xf] }
 0x319   :  { %8366 = vmatpush.bf16.msrb.mxu2 %v12986_v49  ;;  %v13870_v11 = vor.u32 %v15856_v17, %v13869_v41  ;;  %v14181_v49 = vld [vmem:[#allocation6 + $0x1468] sm:$0xf]  ;;  %v11898_v41 = vor.u32 %v15356_v4, %v11895_v46  ;;  %v14129_v17 = vld [vmem:[#allocation6 + $0x1400] sm:$0xf] }
 0x31a   :  { %8276 = vmatpush.bf16.msrb.mxu3 %v12930_v55  ;;  %v13766_v55 = vor.u32 %v15830_v42, %v13765_v23  ;;  %v14130_v26 = vor.u32 %v15921_v62, %v14129_v17  ;;  %v12727_v23 = vld [vmem:[#allocation6 + $0x93c] sm:$0xf0]  ;;  %v15668_v42 = vld [vmem:[#allocation6 + $0xc4c] sm:$0xf]  ;;  %v12675_v17 = vld [vmem:[#allocation6 + $0x8d4] sm:$0xf0] }
 0x31b   :  { %8343 = vmatpush.bf16.msrb.mxu0 %v11998_v2  ;;  %v16622_v3 = vpop.f32.mrf.mxu0  ;;  %v15375_v2 = vld [vmem:[#allocation6 + $0x320] sm:$0xf0] }
 0x31c   :  { %8356 = vmatpush.bf16.msrb.mxu1 %v12414_v24  ;;  %v16624_v9 = vpop.f32.mrf.mxu1  ;;  %v12882_v24 = vor.u32 %v15609_v20, %v12881_v27  ;;  %v11946_v31 = vor.u32 %v15375_v2, %v11945_v19  ;;  %v11843_v27 = vld [vmem:[#allocation6 + $0x254] sm:$0xf0]  ;;  %v15655_v62 = vld [vmem:[#allocation6 + $0xbe4] sm:$0xf] }
 0x31d   :  { %8367 = vmatpush.bf16.msrb.mxu2 %v12934_v54  ;;  %v15817_v54 = vld [vmem:[#allocation6 + $0x10f0] sm:$0xf0]  ;;  %v11846_v19 = vor.u32 %v15343_v0, %v11843_v27  ;;  %v14077_v2 = vld [vmem:[#allocation6 + $0x1398] sm:$0xf] }
 0x31e   :  { %8344 = vmatmul.bf16.vlgmr.msrb.gmra.mxu0 %v16461_v45  ;;  %8277 = vmatpush.bf16.msrb.mxu3 %v12878_v7  ;;  %v11789_v7 = vld [vmem:[#allocation6 + $0x1b8] sm:$0xf]  ;;  %v13714_v21 = vor.u32 %v15817_v54, %v13713_v61  ;;  %v15310_v61 = vld [vmem:[#allocation6 + $0x118] sm:$0xf0] }
 0x31f   :  { %8388 = vmatpush.bf16.msra.mxu0 %v14026_v34  ;;  %8357 = vmatmul.bf16.vlgmr.msrb.gmra.mxu1 %v16465_v22  ;;  %v8113_v34 = vpop.f32.mrf.mxu2  ;;  %v13091_v0 = vld [vmem:[#allocation6 + $0xc14] sm:$0xf0] }
 0x320   :  { %8401 = vmatpush.bf16.msra.mxu1 %v14442_v16  ;;  %v13817_v16 = vld [vmem:[#allocation6 + $0x1190] sm:$0xf]  ;;  %v15577_v34 = vld [vmem:[#allocation6 + $0x974] sm:$0xf] }
 0x321   :  { %v13818_v32 = vor.u32 %v15843_v63, %v13817_v16  ;;  %8368 = vmatpush.bf16.msrb.mxu2 %v12882_v24  ;;  %v15908_v24 = vld [vmem:[#allocation6 + $0x13c8] sm:$0xf0]  ;;  %v12779_v16 = vld [vmem:[#allocation6 + $0x9a4] sm:$0xf0]  ;;  %v15681_v63 = vld [vmem:[#allocation6 + $0xcb4] sm:$0xf] }
 0x322   :  { %8278 = vmatpush.bf16.msrb.mxu3 %v12826_v37  ;;  %v11791_v37 = vld [vmem:[#allocation6 + $0x1ec] sm:$0xf0] }
 0x323   :  { %8389 = vmatpush.bf16.msra.mxu0 %v13974_v6  ;;  %v11893_v6 = vld [vmem:[#allocation6 + $0x288] sm:$0xf]  ;;  %v8139_v51 = vpop.f32.mrf.mxu0 }
 0x324   :  { %8402 = vmatpush.bf16.msra.mxu1 %v14390_v60  ;;  %v15362_v60 = vld [vmem:[#allocation6 + $0x2b8] sm:$0xf0]  ;;  %v8152_v52 = vpop.f32.mrf.mxu1  ;;  %v15317_v51 = vld [vmem:[#allocation6 + $0x154] sm:$0xf] }
 0x325   :  { %v11894_v10 = vor.u32 %v15362_v60, %v11893_v6  ;;  %8369 = vmatpush.bf16.msrb.mxu2 %v12830_v38  ;;  %8279 = vmatmul.bf16.vlgmr.msrb.gmra.mxu3 %v16479_v50  ;;  %v13198_v38 = vor.u32 %v15681_v63, %v13195_v48  ;;  %v15323_v6 = vld [vmem:[#allocation6 + $0x180] sm:$0xf0]  ;;  %v15564_v60 = vld [vmem:[#allocation6 + $0x90c] sm:$0xf]  ;;  %v11739_v52 = vld [vmem:[#allocation6 + $0x184] sm:$0xf0] }
 0x326   :  { %8323 = vmatpush.bf16.msra.mxu3 %v11946_v31  ;;  %v14078_v31 = vor.u32 %v15908_v24, %v14077_v2  ;;  %v8072_v46 = vpop.f32.mrf.mxu3  ;;  %v11742_v54 = vor.u32 %v15317_v51, %v11739_v52  ;;  %v15291_v63 = vld [vmem:[#allocation6 + $0x84] sm:$0xf]  ;;  %v11635_v48 = vld [vmem:[#allocation6 + $0xb4] sm:$0xf0]  ;;  %v15785_v52 = vld [vmem:[#allocation6 + $0xff4] sm:$0xf] }
 0x327   :  { %8390 = vmatpush.bf16.msra.mxu0 %v13922_v44  ;;  %v14182_v44 = vor.u32 %v15934_v47, %v14181_v49  ;;  %v13143_v49 = vld [vmem:[#allocation6 + $0xc7c] sm:$0xf0]  ;;  %v8060_v47 = vadd.f32 %v16598_v35, %v4058_v28 }
 0x328   :  { %8403 = vmatpush.bf16.msra.mxu1 %v14338_v58  ;;  %v11841_v58 = vld [vmem:[#allocation6 + $0x220] sm:$0xf]  ;;  %8370 = vmatmul.bf16.vlgmr.msrb.gmra.mxu2 %v16479_v50  ;;  %v8163_v35 = vpop.f32.mrf.mxu2 }
 0x329   :  { %8414 = vmatpush.bf16.msra.mxu2 %v11950_v57  ;;  %v11842_v20 = vor.u32 %v15349_v43, %v11841_v58  ;;  %v11794_v57 = vor.u32 %v15330_v12, %v11791_v37  ;;  %v13146_v58 = vor.u32 %v15668_v42, %v13143_v49  ;;  %v11685_v43 = vld [vmem:[#allocation6 + $0xe8] sm:$0xf]  ;;  %v15278_v49 = vld [vmem:[#allocation6 + $0x1c] sm:$0xf] }
 0x32a   :  { %8324 = vmatpush.bf16.msra.mxu3 %v11894_v10  ;;  %v12730_v10 = vor.u32 %v15564_v60, %v12727_v23  ;;  %v12571_v23 = vld [vmem:[#allocation6 + $0x804] sm:$0xf0] }
 0x32b   :  { %8391 = vmatpush.bf16.msra.mxu0 %v13870_v11  ;;  %v15336_v11 = vld [vmem:[#allocation6 + $0x1e8] sm:$0xf0]  ;;  %v12987_v42 = vld [vmem:[#allocation6 + $0xb44] sm:$0xf0] }
 0x32c   :  { %8404 = vmatpush.bf16.msra.mxu1 %v14286_v1  ;;  %v13661_v1 = vld [vmem:[#allocation6 + $0x1058] sm:$0xf]  ;;  %v11790_v29 = vor.u32 %v15336_v11, %v11789_v7  ;;  %v11687_v7 = vld [vmem:[#allocation6 + $0x11c] sm:$0xf0]  ;;  %v13094_v11 = vor.u32 %v15655_v62, %v13091_v0 }
 0x32d   :  { %8415 = vmatpush.bf16.msra.mxu2 %v11898_v41  ;;  %v13662_v30 = vor.u32 %v15804_v18, %v13661_v1  ;;  %v15551_v41 = vld [vmem:[#allocation6 + $0x8a4] sm:$0xf]  ;;  %v11633_v1 = vld [vmem:[#allocation6 + $0x80] sm:$0xf]  ;;  %v15297_v18 = vld [vmem:[#allocation6 + $0xb0] sm:$0xf0] }
 0x32e   :  { %8325 = vmatpush.bf16.msra.mxu3 %v11842_v20  ;;  %v15304_v20 = vld [vmem:[#allocation6 + $0xec] sm:$0xf]  ;;  %v11634_v37 = vor.u32 %v15297_v18, %v11633_v1  ;;  %v15765_v1 = vld [vmem:[#allocation6 + $0xf50] sm:$0xf0]  ;;  %v15499_v18 = vld [vmem:[#allocation6 + $0x704] sm:$0xf] }
 0x32f   :  { %8392 = vmatpush.bf16.msra.mxu0 %v13818_v32  ;;  %v11737_v32 = vld [vmem:[#allocation6 + $0x150] sm:$0xf]  ;;  %v11690_v24 = vor.u32 %v15304_v20, %v11687_v7  ;;  %v13559_v20 = vld [vmem:[#allocation6 + $0xfbc] sm:$0xf0] }
 0x330   :  { %8405 = vmatpush.bf16.msra.mxu1 %v14234_v36  ;;  %v12782_v36 = vor.u32 %v15577_v34, %v12779_v16  ;;  %v11738_v4 = vor.u32 %v15323_v6, %v11737_v32  ;;  %v12623_v34 = vld [vmem:[#allocation6 + $0x86c] sm:$0xf0]  ;;  %v15642_v16 = vld [vmem:[#allocation6 + $0xb7c] sm:$0xf]  ;;  %v15284_v32 = vld [vmem:[#allocation6 + $0x48] sm:$0xf0]  ;;  %v11638_v6 = vor.u32 %v15291_v63, %v11635_v48  ;;  %v8165_v60 = vpop.f32.mrf.mxu2 }
 0x331   :  { %8416 = vmatpush.bf16.msra.mxu2 %v11846_v19  ;;  %v15538_v19 = vld [vmem:[#allocation6 + $0x83c] sm:$0xf]  ;;  %v13453_v48 = vld [vmem:[#allocation6 + $0xeb8] sm:$0xf]  ;;  %v14443_v60 = vld [vmem:[#allocation6 + $0x16a4] sm:$0xf0] }
 0x332   :  { %8326 = vmatpush.bf16.msra.mxu3 %v11790_v29 }
 0x333   :  { %8393 = vmatpush.bf16.msra.mxu0 %v13766_v55  ;;  %v8151_v55 = vadd.f32 %v16624_v9, %v4059_v13  ;;  %v11581_v13 = vld [vmem:[#allocation6 + $0x18] sm:$0xf] }
 0x334   :  { %8406 = vmatpush.bf16.msra.mxu1 %v14182_v44  ;;  %v8073_v44 = vadd.f32 %v8072_v46, %v8060_v47  ;;  %v11583_v47 = vld [vmem:[#allocation6 + $0x4c] sm:$0xf0]  ;;  %v11582_v51 = vor.u32 %v15284_v32, %v11581_v13 }
 0x335   :  { %8417 = vmatpush.bf16.msra.mxu2 %v11794_v57  ;;  %v16635_v9 = vadd.f32 %v8163_v35, %v8151_v55  ;;  %v15629_v57 = vld [vmem:[#allocation6 + $0xb14] sm:$0xf]  ;;  %v15616_v35 = vld [vmem:[#allocation6 + $0xaac] sm:$0xf] }
 0x336   :  { %v8086_v27 = vadd.f32 %v16607_v59, %v8073_v44  ;;  %8327 = vmatpush.bf16.msra.mxu3 %v11738_v4  ;;  %v13039_v59 = vld [vmem:[#allocation6 + $0xbac] sm:$0xf0]  ;;  %v13611_v4 = vld [vmem:[#allocation6 + $0x1024] sm:$0xf0]  ;;  %v12990_v55 = vor.u32 %v15629_v57, %v12987_v42  ;;  %v11586_v44 = vor.u32 %v15278_v49, %v11583_v47  ;;  %v15746_v42 = vld [vmem:[#allocation6 + $0xebc] sm:$0xf] }
 0x337   :  { %8394 = vmatpush.bf16.msra.mxu0 %v13714_v21  ;;  %v11686_v21 = vor.u32 %v15310_v61, %v11685_v43  ;;  %v15778_v43 = vld [vmem:[#allocation6 + $0xfb8] sm:$0xf0]  ;;  %v15512_v61 = vld [vmem:[#allocation6 + $0x76c] sm:$0xf]  ;;  %v13455_v49 = vld [vmem:[#allocation6 + $0xeec] sm:$0xf0] }
 0x338   :  { %8407 = vmatpush.bf16.msra.mxu1 %v14130_v26  ;;  %v12678_v26 = vor.u32 %v15551_v41, %v12675_v17  ;;  %v8099_v2 = vadd.f32 %v16609_v40, %v8086_v27  ;;  %v8074_v40 = vpop.f32.mrf.mxu3  ;;  %v13614_v41 = vor.u32 %v15785_v52, %v13611_v4  ;;  %v12935_v17 = vld [vmem:[#allocation6 + $0xadc] sm:$0xf0]  ;;  %v15772_v27 = vld [vmem:[#allocation6 + $0xf8c] sm:$0xf] }
 0x339   :  { %8418 = vmatpush.bf16.msra.mxu2 %v11742_v54  ;;  %v12519_v54 = vld [vmem:[#allocation6 + $0x79c] sm:$0xf0]  ;;  %v15752_v40 = vld [vmem:[#allocation6 + $0xee8] sm:$0xf0] }
 0x33a   :  { %v16639_v28 = vadd.f32 %v16614_v33, %v8099_v2  ;;  %8328 = vmatpush.bf16.msra.mxu3 %v11686_v21  ;;  %v15525_v33 = vld [vmem:[#allocation6 + $0x7d4] sm:$0xf]  ;;  %v12522_v21 = vor.u32 %v15512_v61, %v12519_v54  ;;  %v12467_v2 = vld [vmem:[#allocation6 + $0x734] sm:$0xf0]  ;;  %v13454_v57 = vor.u32 %v15752_v40, %v13453_v48  ;;  %v15363_v61 = vld [vmem:[#allocation6 + $0x2c0] sm:$0xf0] }
 0x33b   :  { %8395 = vmatpush.bf16.msra.mxu0 %v13662_v30  ;;  %v16641_v29 = vpop.f32.mrf.mxu0  ;;  %v12626_v30 = vor.u32 %v15538_v19, %v12623_v34  ;;  %v13562_v19 = vor.u32 %v15772_v27, %v13559_v20  ;;  %v12883_v34 = vld [vmem:[#allocation6 + $0xa74] sm:$0xf0]  ;;  %v13403_v54 = vld [vmem:[#allocation6 + $0xe84] sm:$0xf0]  ;;  %v4060_v48 = vperm.slane %v16595_v14, 5 }
 0x33c   :  { %8408 = vmatpush.bf16.msra.mxu1 %v14078_v31  ;;  %v16643_v12 = vpop.f32.mrf.mxu1  ;;  %v13042_v31 = vor.u32 %v15642_v16, %v13039_v59  ;;  %v15759_v16 = vld [vmem:[#allocation6 + $0xf24] sm:$0xf]  ;;  %v13507_v59 = vld [vmem:[#allocation6 + $0xf54] sm:$0xf0]  ;;  %v13349_v20 = vld [vmem:[#allocation6 + $0xde8] sm:$0xf] }
 0x33d   :  { %8419 = vmatpush.bf16.msra.mxu2 %v11690_v24  ;;  %v15603_v24 = vld [vmem:[#allocation6 + $0xa44] sm:$0xf]  ;;  %v13510_v32 = vor.u32 %v15759_v16, %v13507_v59  ;;  %v13297_v16 = vld [vmem:[#allocation6 + $0xd80] sm:$0xf] }
 0x33e   :  { %8396 = vmatmul.bf16.vlgmr.msra.gmra.mxu0 %v16501_v8  ;;  %8329 = vmatpush.bf16.msra.mxu3 %v11634_v37  ;;  %v12470_v37 = vor.u32 %v15499_v18, %v12467_v2  ;;  %v12886_v13 = vor.u32 %v15603_v24, %v12883_v34  ;;  %v11849_v18 = vld [vmem:[#allocation6 + $0x228] sm:$0xf]  ;;  %v13351_v24 = vld [vmem:[#allocation6 + $0xe1c] sm:$0xf0] }
 0x33f   :  { %8440 = vmatpush.bf16.msrb.mxu0 %v12782_v36  ;;  %8409 = vmatmul.bf16.vlgmr.msra.gmra.mxu1 %v16530_v25  ;;  %v13609_v36 = vld [vmem:[#allocation6 + $0xff0] sm:$0xf] }
 0x340   :  { %8453 = vmatpush.bf16.msrb.mxu1 %v13198_v38  ;;  %v15791_v38 = vld [vmem:[#allocation6 + $0x1020] sm:$0xf0] }
 0x341   :  { %v13610_v46 = vor.u32 %v15791_v38, %v13609_v36  ;;  %8420 = vmatpush.bf16.msra.mxu2 %v11638_v6  ;;  %v15590_v36 = vld [vmem:[#allocation6 + $0x9dc] sm:$0xf]  ;;  %v12831_v38 = vld [vmem:[#allocation6 + $0xa0c] sm:$0xf0]  ;;  %v15993_v6 = vld [vmem:[#allocation6 + $0x1674] sm:$0xf] }
 0x342   :  { %8330 = vmatpush.bf16.msra.mxu3 %v11582_v51  ;;  %v12834_v51 = vor.u32 %v15590_v36, %v12831_v38  ;;  %v14446_v52 = vor.u32 %v15993_v6, %v14443_v60  ;;  %v13299_v36 = vld [vmem:[#allocation6 + $0xdb4] sm:$0xf0] }
 0x343   :  { %8441 = vmatpush.bf16.msrb.mxu0 %v12730_v10  ;;  %v12574_v10 = vor.u32 %v15525_v33, %v12571_v23  ;;  %v8191_v62 = vpop.f32.mrf.mxu0  ;;  %v11953_v33 = vld [vmem:[#allocation6 + $0x2f8] sm:$0xf]  ;;  %v15376_v23 = vld [vmem:[#allocation6 + $0x328] sm:$0xf0] }
 0x344   :  { %8454 = vmatpush.bf16.msrb.mxu1 %v13146_v58  ;;  %v13557_v58 = vld [vmem:[#allocation6 + $0xf88] sm:$0xf]  ;;  %v8204_v0 = vpop.f32.mrf.mxu1  ;;  %v11954_v4 = vor.u32 %v15376_v23, %v11953_v33  ;;  %v13245_v33 = vld [vmem:[#allocation6 + $0xd18] sm:$0xf] }
 0x345   :  { %v13558_v7 = vor.u32 %v15778_v43, %v13557_v58  ;;  %8421 = vmatpush.bf16.msra.mxu2 %v11586_v44  ;;  %8331 = vmatmul.bf16.vlgmr.msra.gmra.mxu3 %v16457_v15  ;;  %v13458_v44 = vor.u32 %v15746_v42, %v13455_v49  ;;  %v14391_v58 = vld [vmem:[#allocation6 + $0x163c] sm:$0xf0]  ;;  %v11901_v43 = vld [vmem:[#allocation6 + $0x290] sm:$0xf]  ;;  %v15700_v49 = vld [vmem:[#allocation6 + $0xd48] sm:$0xf0] }
 0x346   :  { %8375 = vmatpush.bf16.msrb.mxu3 %v13610_v46  ;;  %v13401_v46 = vld [vmem:[#allocation6 + $0xe50] sm:$0xf]  ;;  %v11902_v27 = vor.u32 %v15363_v61, %v11901_v43  ;;  %v15694_v43 = vld [vmem:[#allocation6 + $0xd1c] sm:$0xf] }
 0x347   :  { %8442 = vmatpush.bf16.msrb.mxu0 %v12678_v26  ;;  %v12938_v26 = vor.u32 %v15616_v35, %v12935_v17  ;;  %v8124_v17 = vpop.f32.mrf.mxu3  ;;  %v13247_v61 = vld [vmem:[#allocation6 + $0xd4c] sm:$0xf0] }
 0x348   :  { %8455 = vmatpush.bf16.msrb.mxu1 %v13094_v11  ;;  %v13505_v11 = vld [vmem:[#allocation6 + $0xf20] sm:$0xf]  ;;  %8422 = vmatmul.bf16.vlgmr.msra.gmra.mxu2 %v16457_v15  ;;  %v8125_v62 = vadd.f32 %v8124_v17, %v16639_v28  ;;  %v15720_v28 = vld [vmem:[#allocation6 + $0xdec] sm:$0xf] }
 0x349   :  { %8466 = vmatpush.bf16.msrb.mxu2 %v13614_v41  ;;  %v13506_v63 = vor.u32 %v15765_v1, %v13505_v11  ;;  %v15733_v41 = vld [vmem:[#allocation6 + $0xe54] sm:$0xf]  ;;  %v16648_v11 = vpop.f32.mrf.mxu2  ;;  %v14339_v1 = vld [vmem:[#allocation6 + $0x15d4] sm:$0xf0]  ;;  %v13354_v40 = vor.u32 %v15720_v28, %v13351_v24 }
 0x34a   :  { %8376 = vmatpush.bf16.msrb.mxu3 %v13558_v7  ;;  %v15726_v7 = vld [vmem:[#allocation6 + $0xe18] sm:$0xf0]  ;;  %v16653_v2 = vadd.f32 %v16622_v3, %v8125_v62  ;;  %v15707_v3 = vld [vmem:[#allocation6 + $0xd84] sm:$0xf] }
 0x34b   :  { %8443 = vmatpush.bf16.msrb.mxu0 %v12626_v30  ;;  %v15486_v30 = vld [vmem:[#allocation6 + $0x69c] sm:$0xf]  ;;  %v13350_v34 = vor.u32 %v15726_v7, %v13349_v20  ;;  %v15460_v20 = vld [vmem:[#allocation6 + $0x5cc] sm:$0xf]  ;;  %v12311_v7 = vld [vmem:[#allocation6 + $0x5fc] sm:$0xf0] }
 0x34c   :  { %8456 = vmatpush.bf16.msrb.mxu1 %v13042_v31  ;;  %v12415_v31 = vld [vmem:[#allocation6 + $0x6cc] sm:$0xf0] }
 0x34d   :  { %8467 = vmatpush.bf16.msrb.mxu2 %v13562_v19  ;;  %v12418_v47 = vor.u32 %v15486_v30, %v12415_v31  ;;  %v15350_v19 = vld [vmem:[#allocation6 + $0x258] sm:$0xf0]  ;;  %v14287_v30 = vld [vmem:[#allocation6 + $0x156c] sm:$0xf0]  ;;  %v11797_v31 = vld [vmem:[#allocation6 + $0x1c0] sm:$0xf] }
 0x34e   :  { %8377 = vmatpush.bf16.msrb.mxu3 %v13506_v63  ;;  %v11850_v63 = vor.u32 %v15350_v19, %v11849_v18  ;;  %v11693_v18 = vld [vmem:[#allocation6 + $0xf0] sm:$0xf]  ;;  %v15311_v19 = vld [vmem:[#allocation6 + $0x120] sm:$0xf0] }
 0x34f   :  { %8444 = vmatpush.bf16.msrb.mxu0 %v12574_v10  ;;  %v15739_v10 = vld [vmem:[#allocation6 + $0xe80] sm:$0xf0] }
 0x350   :  { %8457 = vmatpush.bf16.msrb.mxu1 %v12990_v55  ;;  %v15980_v55 = vld [vmem:[#allocation6 + $0x160c] sm:$0xf]  ;;  %v13402_v35 = vor.u32 %v15739_v10, %v13401_v46  ;;  %v15941_v46 = vld [vmem:[#allocation6 + $0x14d4] sm:$0xf]  ;;  %v14235_v10 = vld [vmem:[#allocation6 + $0x1504] sm:$0xf0] }
 0x351   :  { %8468 = vmatpush.bf16.msrb.mxu2 %v13510_v32  ;;  %v14394_v0 = vor.u32 %v15980_v55, %v14391_v58  ;;  %v15337_v32 = vld [vmem:[#allocation6 + $0x1f0] sm:$0xf0]  ;;  %v11745_v55 = vld [vmem:[#allocation6 + $0x158] sm:$0xf]  ;;  %v15324_v58 = vld [vmem:[#allocation6 + $0x188] sm:$0xf0]  ;;  %v14238_v62 = vor.u32 %v15941_v46, %v14235_v10 }
 0x352   :  { %8378 = vmatpush.bf16.msrb.mxu3 %v13454_v57  ;;  %v8126_v57 = vpop.f32.mrf.mxu3  ;;  %v11798_v14 = vor.u32 %v15337_v32, %v11797_v31  ;;  %v14131_v31 = vld [vmem:[#allocation6 + $0x1434] sm:$0xf0]  ;;  %v11641_v32 = vld [vmem:[#allocation6 + $0x88] sm:$0xf]  ;;  %v15792_v10 = vld [vmem:[#allocation6 + $0x1028] sm:$0xf0] }
 0x353   :  { %8445 = vmatpush.bf16.msrb.mxu0 %v12522_v21  ;;  %v15967_v21 = vld [vmem:[#allocation6 + $0x15a4] sm:$0xf]  ;;  %v12207_v57 = vld [vmem:[#allocation6 + $0x52c] sm:$0xf0]  ;;  %v13617_v46 = vld [vmem:[#allocation6 + $0xff8] sm:$0xf] }
 0x354   :  { %8458 = vmatpush.bf16.msrb.mxu1 %v12938_v26  ;;  %v13406_v26 = vor.u32 %v15733_v41, %v13403_v54  ;;  %v14342_v59 = vor.u32 %v15967_v21, %v14339_v1  ;;  %v13246_v41 = vor.u32 %v15700_v49, %v13245_v33  ;;  %v12369_v54 = vld [vmem:[#allocation6 + $0x638] sm:$0xf]  ;;  %v15928_v21 = vld [vmem:[#allocation6 + $0x146c] sm:$0xf]  ;;  %v14183_v1 = vld [vmem:[#allocation6 + $0x149c] sm:$0xf0] }
 0x355   :  { %8469 = vmatpush.bf16.msrb.mxu2 %v13458_v44 }
 0x356   :  { %8379 = vmatpush.bf16.msrb.mxu3 %v13402_v35  ;;  %v15480_v35 = vld [vmem:[#allocation6 + $0x668] sm:$0xf0] }
 0x357   :  { %8446 = vmatpush.bf16.msrb.mxu0 %v12470_v37  ;;  %v15713_v37 = vld [vmem:[#allocation6 + $0xdb0] sm:$0xf0] }
 0x358   :  { %8459 = vmatpush.bf16.msrb.mxu1 %v12886_v13  ;;  %v15954_v13 = vld [vmem:[#allocation6 + $0x153c] sm:$0xf]  ;;  %v13298_v60 = vor.u32 %v15713_v37, %v13297_v16  ;;  %v15467_v16 = vld [vmem:[#allocation6 + $0x600] sm:$0xf0] }
 0x359   :  { %8470 = vmatpush.bf16.msrb.mxu2 %v13406_v26  ;;  %v14290_v42 = vor.u32 %v15954_v13, %v14287_v30  ;;  %v12370_v26 = vor.u32 %v15480_v35, %v12369_v54  ;;  %v15447_v37 = vld [vmem:[#allocation6 + $0x564] sm:$0xf]  ;;  %v12259_v13 = vld [vmem:[#allocation6 + $0x594] sm:$0xf0]  ;;  %v13618_v35 = vor.u32 %v15792_v10, %v13617_v46  ;;  %v15382_v10 = vld [vmem:[#allocation6 + $0x35c] sm:$0xf] }
 0x35a   :  { %8380 = vmatpush.bf16.msrb.mxu3 %v13350_v34  ;;  %v12317_v34 = vld [vmem:[#allocation6 + $0x5d0] sm:$0xf] }
 0x35b   :  { %8447 = vmatpush.bf16.msrb.mxu0 %v12418_v47  ;;  %v8241_v38 = vpop.f32.mrf.mxu0  ;;  %v15473_v47 = vld [vmem:[#allocation6 + $0x634] sm:$0xf]  ;;  %v12318_v30 = vor.u32 %v15467_v16, %v12317_v34  ;;  %v15408_v16 = vld [vmem:[#allocation6 + $0x42c] sm:$0xf] }
 0x35c   :  { %8460 = vmatpush.bf16.msrb.mxu1 %v12834_v51  ;;  %v8254_v6 = vpop.f32.mrf.mxu1  ;;  %v8242_v23 = vadd.f32 %v8241_v38, %v4060_v48  ;;  %v12363_v51 = vld [vmem:[#allocation6 + $0x664] sm:$0xf0]  ;;  %v11694_v48 = vor.u32 %v15311_v19, %v11693_v18  ;;  %v15454_v38 = vld [vmem:[#allocation6 + $0x598] sm:$0xf0] }
 0x35d   :  { %8471 = vmatpush.bf16.msrb.mxu2 %v13354_v40  ;;  %v12366_v17 = vor.u32 %v15473_v47, %v12363_v51  ;;  %v15915_v40 = vld [vmem:[#allocation6 + $0x1404] sm:$0xf]  ;;  %v11589_v47 = vld [vmem:[#allocation6 + $0x20] sm:$0xf]  ;;  %v15285_v51 = vld [vmem:[#allocation6 + $0x50] sm:$0xf0] }
 0x35e   :  { %8448 = vmatmul.bf16.vlgmr.msrb.gmra.mxu0 %v16465_v22  ;;  %v16656_v44 = vadd.f32 %v8254_v6, %v8242_v23  ;;  %8381 = vmatpush.bf16.msrb.mxu3 %v13298_v60  ;;  %v12262_v6 = vor.u32 %v15447_v37, %v12259_v13  ;;  %v15434_v60 = vld [vmem:[#allocation6 + $0x4fc] sm:$0xf]  ;;  %v14134_v33 = vor.u32 %v15915_v40, %v14131_v31  ;;  %v13513_v40 = vld [vmem:[#allocation6 + $0xf28] sm:$0xf] }
 0x35f   :  { %8492 = vmatpush.bf16.msra.mxu0 %v14446_v52  ;;  %8461 = vmatmul.bf16.vlgmr.msrb.gmra.mxu1 %v16479_v50  ;;  %v13302_v52 = vor.u32 %v15707_v3, %v13299_v36  ;;  %v15298_v3 = vld [vmem:[#allocation6 + $0xb8] sm:$0xf0]  ;;  %v12265_v36 = vld [vmem:[#allocation6 + $0x568] sm:$0xf] }
 0x360   :  { %8505 = vmatpush.bf16.msra.mxu1 %v11954_v4  ;;  %v8217_v4 = vpop.f32.mrf.mxu2  ;;  %v11642_v23 = vor.u32 %v15298_v3, %v11641_v32  ;;  %v12266_v49 = vor.u32 %v15454_v38, %v12265_v36  ;;  %v15662_v13 = vld [vmem:[#allocation6 + $0xc18] sm:$0xf0]  ;;  %v15415_v3 = vld [vmem:[#allocation6 + $0x460] sm:$0xf0] }
 0x361   :  { %8472 = vmatpush.bf16.msrb.mxu2 %v13302_v52  ;;  %v13201_v52 = vld [vmem:[#allocation6 + $0xcb8] sm:$0xf]  ;;  %v15688_v4 = vld [vmem:[#allocation6 + $0xce8] sm:$0xf0] }
 0x362   :  { %8382 = vmatpush.bf16.msrb.mxu3 %v13246_v41  ;;  %v11590_v41 = vor.u32 %v15285_v51, %v11589_v47  ;;  %v13202_v54 = vor.u32 %v15688_v4, %v13201_v52  ;;  %v15402_v47 = vld [vmem:[#allocation6 + $0x3f8] sm:$0xf0] }
 0x363   :  { %8493 = vmatpush.bf16.msra.mxu0 %v14394_v0  ;;  %v11746_v0 = vor.u32 %v15324_v58, %v11745_v55  ;;  %v8243_v28 = vpop.f32.mrf.mxu0  ;;  %v12210_v55 = vor.u32 %v15434_v60, %v12207_v57  ;;  %v12213_v58 = vld [vmem:[#allocation6 + $0x500] sm:$0xf]  ;;  %v15395_v60 = vld [vmem:[#allocation6 + $0x3c4] sm:$0xf] }
 0x364   :  { %8506 = vmatpush.bf16.msra.mxu1 %v11902_v27  ;;  %v13250_v27 = vor.u32 %v15694_v43, %v13247_v61  ;;  %v8256_v24 = vpop.f32.mrf.mxu1  ;;  %v15441_v43 = vld [vmem:[#allocation6 + $0x530] sm:$0xf0] }
 0x365   :  { %8383 = vmatmul.bf16.vlgmr.msrb.gmra.mxu3 %v16481_v53 }
 0x366   :  { %8427 = vmatpush.bf16.msra.mxu3 %v12366_v17  ;;  %8473 = vmatpush.bf16.msrb.mxu2 %v13250_v27  ;;  %v15421_v17 = vld [vmem:[#allocation6 + $0x494] sm:$0xf]  ;;  %v12214_v27 = vor.u32 %v15441_v43, %v12213_v58  ;;  %v8176_v19 = vpop.f32.mrf.mxu3  ;;  %v11999_v43 = vld [vmem:[#allocation6 + $0x38c] sm:$0xf0] }
 0x367   :  { %8494 = vmatpush.bf16.msra.mxu0 %v14342_v59  ;;  %v12314_v59 = vor.u32 %v15460_v20, %v12311_v7  ;;  %v15675_v20 = vld [vmem:[#allocation6 + $0xc80] sm:$0xf0]  ;;  %v13565_v7 = vld [vmem:[#allocation6 + $0xf90] sm:$0xf]  ;;  %v8177_v28 = vadd.f32 %v8176_v19, %v16635_v9 }
 0x368   :  { %8507 = vmatpush.bf16.msra.mxu1 %v11850_v63  ;;  %v14186_v63 = vor.u32 %v15928_v21, %v14183_v1  ;;  %v15779_v21 = vld [vmem:[#allocation6 + $0xfc0] sm:$0xf0]  ;;  %v15428_v1 = vld [vmem:[#allocation6 + $0x4c8] sm:$0xf0]  ;;  %v8267_v37 = vpop.f32.mrf.mxu2  ;;  %v12109_v9 = vld [vmem:[#allocation6 + $0x430] sm:$0xf] }
 0x369   :  { %8474 = vmatmul.bf16.vlgmr.msrb.gmra.mxu2 %v16481_v53  ;;  %v13566_v34 = vor.u32 %v15779_v21, %v13565_v7  ;;  %v8190_v31 = vadd.f32 %v16641_v29, %v8177_v28  ;;  %v16665_v32 = vadd.f32 %v8267_v37, %v16656_v44  ;;  %v13461_v29 = vld [vmem:[#allocation6 + $0xec0] sm:$0xf]  ;;  %v12057_v44 = vld [vmem:[#allocation6 + $0x3c8] sm:$0xf]  ;;  %v12002_v7 = vor.u32 %v15382_v10, %v11999_v43  ;;  %v14033_v21 = vld [vmem:[#allocation6 + $0x1338] sm:$0xf] }
 0x36a   :  { %8518 = vmatpush.bf16.msra.mxu2 %v12370_v26  ;;  %8428 = vmatpush.bf16.msra.mxu3 %v12314_v59  ;;  %v12161_v26 = vld [vmem:[#allocation6 + $0x498] sm:$0xf]  ;;  %v12103_v59 = vld [vmem:[#allocation6 + $0x45c] sm:$0xf0]  ;;  %v15727_v37 = vld [vmem:[#allocation6 + $0xe20] sm:$0xf0] }
 0x36b   :  { %8495 = vmatpush.bf16.msra.mxu0 %v14290_v42  ;;  %v15902_v42 = vld [vmem:[#allocation6 + $0x139c] sm:$0xf]  ;;  %v12106_v36 = vor.u32 %v15408_v16, %v12103_v59  ;;  %v8203_v57 = vadd.f32 %v16643_v12, %v8190_v31  ;;  %v12941_v16 = vld [vmem:[#allocation6 + $0xab0] sm:$0xf]  ;;  %v15883_v31 = vld [vmem:[#allocation6 + $0x1300] sm:$0xf0] }
 0x36c   :  { %8508 = vmatpush.bf16.msra.mxu1 %v11798_v14  ;;  %v14079_v14 = vld [vmem:[#allocation6 + $0x13cc] sm:$0xf0]  ;;  %v13253_v43 = vld [vmem:[#allocation6 + $0xd20] sm:$0xf] }
 0x36d   :  { %v14082_v61 = vor.u32 %v15902_v42, %v14079_v14  ;;  %v12110_v42 = vor.u32 %v15415_v3, %v12109_v9  ;;  %v15649_v14 = vld [vmem:[#allocation6 + $0xbb0] sm:$0xf0]  ;;  %v16669_v51 = vadd.f32 %v16648_v11, %v8203_v57  ;;  %v12993_v11 = vld [vmem:[#allocation6 + $0xb18] sm:$0xf]  ;;  %v13305_v57 = vld [vmem:[#allocation6 + $0xd88] sm:$0xf] }
 0x36e   :  { %8519 = vmatpush.bf16.msra.mxu2 %v12318_v30  ;;  %8429 = vmatpush.bf16.msra.mxu3 %v12262_v6  ;;  %v15766_v30 = vld [vmem:[#allocation6 + $0xf58] sm:$0xf0]  ;;  %v8178_v12 = vpop.f32.mrf.mxu3  ;;  %v13871_v10 = vld [vmem:[#allocation6 + $0x122c] sm:$0xf0] }
 0x36f   :  { %8496 = vmatpush.bf16.msra.mxu0 %v14238_v62  ;;  %v12155_v62 = vld [vmem:[#allocation6 + $0x4c4] sm:$0xf0]  ;;  %v13514_v6 = vor.u32 %v15766_v30, %v13513_v40  ;;  %v13981_v30 = vld [vmem:[#allocation6 + $0x12d0] sm:$0xf]  ;;  %v12837_v12 = vld [vmem:[#allocation6 + $0x9e0] sm:$0xf] }
 0x370   :  { %8509 = vmatpush.bf16.msra.mxu1 %v11746_v0  ;;  %v13149_v0 = vld [vmem:[#allocation6 + $0xc50] sm:$0xf]  ;;  %v12158_v18 = vor.u32 %v15421_v17, %v12155_v62  ;;  %v15636_v17 = vld [vmem:[#allocation6 + $0xb48] sm:$0xf0]  ;;  %v13409_v62 = vld [vmem:[#allocation6 + $0xe58] sm:$0xf] }
 0x371   :  { %v13150_v24 = vor.u32 %v15675_v20, %v13149_v0  ;;  %v15740_v0 = vld [vmem:[#allocation6 + $0xe88] sm:$0xf0]  ;;  %v15389_v20 = vld [vmem:[#allocation6 + $0x390] sm:$0xf0] }
 0x372   :  { %8520 = vmatpush.bf16.msra.mxu2 %v12266_v49  ;;  %8430 = vmatpush.bf16.msra.mxu3 %v12210_v55  ;;  %v15753_v49 = vld [vmem:[#allocation6 + $0xef0] sm:$0xf0]  ;;  %v13410_v19 = vor.u32 %v15740_v0, %v13409_v62  ;;  %v13877_v62 = vld [vmem:[#allocation6 + $0x1200] sm:$0xf] }
 0x373   :  { %8497 = vmatpush.bf16.msra.mxu0 %v14186_v63  ;;  %v13097_v63 = vld [vmem:[#allocation6 + $0xbe8] sm:$0xf]  ;;  %v13462_v58 = vor.u32 %v15753_v49, %v13461_v29  ;;  %v15870_v29 = vld [vmem:[#allocation6 + $0x1298] sm:$0xf0]  ;;  %v15857_v0 = vld [vmem:[#allocation6 + $0x1230] sm:$0xf0] }
 0x374   :  { %8510 = vmatpush.bf16.msra.mxu1 %v11694_v48  ;;  %v12162_v48 = vor.u32 %v15428_v1, %v12161_v26  ;;  %v13098_v38 = vor.u32 %v15662_v13, %v13097_v63  ;;  %v15896_v26 = vld [vmem:[#allocation6 + $0x1368] sm:$0xf0]  ;;  %v15623_v63 = vld [vmem:[#allocation6 + $0xae0] sm:$0xf0] }
 0x375   :  { %v14034_v59 = vor.u32 %v15896_v26, %v14033_v21  ;;  %v12942_v3 = vor.u32 %v15623_v63, %v12941_v16  ;;  %v15837_v26 = vld [vmem:[#allocation6 + $0x1194] sm:$0xf]  ;;  %v13825_v16 = vld [vmem:[#allocation6 + $0x1198] sm:$0xf] }
 0x376   :  { %8521 = vmatpush.bf16.msra.mxu2 %v12214_v27  ;;  %8431 = vmatpush.bf16.msra.mxu3 %v12158_v18  ;;  %v12005_v27 = vld [vmem:[#allocation6 + $0x360] sm:$0xf]  ;;  %v12994_v18 = vor.u32 %v15636_v17, %v12993_v11  ;;  %v12371_v11 = vld [vmem:[#allocation6 + $0x66c] sm:$0xf0] }
 0x377   :  { %8498 = vmatpush.bf16.msra.mxu0 %v14134_v33  ;;  %v12051_v33 = vld [vmem:[#allocation6 + $0x3f4] sm:$0xf0]  ;;  %v12006_v28 = vor.u32 %v15389_v20, %v12005_v27 }
 0x378   :  { %8511 = vmatpush.bf16.msra.mxu1 %v11642_v23  ;;  %v13045_v23 = vld [vmem:[#allocation6 + $0xb80] sm:$0xf]  ;;  %v12054_v46 = vor.u32 %v15395_v60, %v12051_v33  ;;  %v12889_v60 = vld [vmem:[#allocation6 + $0xa48] sm:$0xf]  ;;  %v13982_v33 = vor.u32 %v15883_v31, %v13981_v30  ;;  %v15824_v30 = vld [vmem:[#allocation6 + $0x112c] sm:$0xf] }
 0x379   :  { %v13046_v55 = vor.u32 %v15649_v14, %v13045_v23  ;;  %v15610_v23 = vld [vmem:[#allocation6 + $0xa78] sm:$0xf0]  ;;  %v13929_v14 = vld [vmem:[#allocation6 + $0x1268] sm:$0xf]  ;;  %v13767_v31 = vld [vmem:[#allocation6 + $0x115c] sm:$0xf0] }
 0x37a   :  { %8522 = vmatpush.bf16.msra.mxu2 %v12162_v48  ;;  %8432 = vmatpush.bf16.msra.mxu3 %v12106_v36  ;;  %v13357_v48 = vld [vmem:[#allocation6 + $0xdf0] sm:$0xf] }
 0x37b   :  { %8499 = vmatpush.bf16.msra.mxu0 %v14082_v61  ;;  %v16671_v52 = vpop.f32.mrf.mxu0  ;;  %v15889_v61 = vld [vmem:[#allocation6 + $0x1334] sm:$0xf]  ;;  %v13358_v36 = vor.u32 %v15727_v37, %v13357_v48 }
 0x37c   :  { %8512 = vmatpush.bf16.msra.mxu1 %v11590_v41  ;;  %v16673_v4 = vpop.f32.mrf.mxu1  ;;  %v14027_v41 = vld [vmem:[#allocation6 + $0x1364] sm:$0xf0] }
 0x37d   :  { %v14030_v1 = vor.u32 %v15889_v61, %v14027_v41  ;;  %v15701_v61 = vld [vmem:[#allocation6 + $0xd50] sm:$0xf0]  ;;  %v15370_v41 = vld [vmem:[#allocation6 + $0x2fc] sm:$0xf] }
 0x37e   :  { %8500 = vmatmul.bf16.vlgmr.msra.gmra.mxu0 %v16530_v25  ;;  %8523 = vmatpush.bf16.msra.mxu2 %v12110_v42  ;;  %v15714_v42 = vld [vmem:[#allocation6 + $0xdb8] sm:$0xf0]  ;;  %v13254_v20 = vor.u32 %v15701_v61, %v13253_v43 }
 0x37f   :  { %8544 = vmatpush.bf16.msrb.mxu0 %v13202_v54  ;;  %8513 = vmatmul.bf16.vlgmr.msra.gmra.mxu1 %v16457_v15  ;;  %v12058_v54 = vor.u32 %v15402_v47, %v12057_v44  ;;  %v15850_v44 = vld [vmem:[#allocation6 + $0x11fc] sm:$0xf]  ;;  %v12890_v47 = vor.u32 %v15610_v23, %v12889_v60  ;;  %v12267_v60 = vld [vmem:[#allocation6 + $0x59c] sm:$0xf0]  ;;  %v15831_v23 = vld [vmem:[#allocation6 + $0x1160] sm:$0xf0] }
 0x380   :  { %8557 = vmatpush.bf16.msrb.mxu1 %v13618_v35  ;;  %v8269_v35 = vpop.f32.mrf.mxu2  ;;  %8433 = vmatpush.bf16.msra.mxu3 %v12054_v46  ;;  %v13306_v46 = vor.u32 %v15714_v42, %v13305_v57  ;;  %v13874_v17 = vor.u32 %v15850_v44, %v13871_v10  ;;  %v12215_v10 = vld [vmem:[#allocation6 + $0x534] sm:$0xf0] }
 0x381   :  { %v15474_v35 = vld [vmem:[#allocation6 + $0x63c] sm:$0xf] }
 0x382   :  { %8524 = vmatpush.bf16.msra.mxu2 %v12058_v54  ;;  %v11955_v54 = vld [vmem:[#allocation6 + $0x32c] sm:$0xf0]  ;;  %v12374_v21 = vor.u32 %v15474_v35, %v12371_v11 }
 0x383   :  { %8545 = vmatpush.bf16.msrb.mxu0 %v13150_v24  ;;  %v15876_v24 = vld [vmem:[#allocation6 + $0x12cc] sm:$0xf]  ;;  %v8295_v13 = vpop.f32.mrf.mxu0 }
 0x384   :  { %8558 = vmatpush.bf16.msrb.mxu1 %v13566_v34  ;;  %v13975_v34 = vld [vmem:[#allocation6 + $0x12fc] sm:$0xf0]  ;;  %8434 = vmatpush.bf16.msra.mxu3 %v12002_v7  ;;  %v8308_v40 = vpop.f32.mrf.mxu1  ;;  %v11958_v7 = vor.u32 %v15370_v41, %v11955_v54  ;;  %v15798_v41 = vld [vmem:[#allocation6 + $0x105c] sm:$0xf] }
 0x385   :  { %v13978_v9 = vor.u32 %v15876_v24, %v13975_v34  ;;  %v15461_v24 = vld [vmem:[#allocation6 + $0x5d4] sm:$0xf]  ;;  %v12319_v34 = vld [vmem:[#allocation6 + $0x604] sm:$0xf0] }
 0x386   :  { %8525 = vmatpush.bf16.msra.mxu2 %v12006_v28  ;;  %v11903_v28 = vld [vmem:[#allocation6 + $0x2c4] sm:$0xf0]  ;;  %v12322_v40 = vor.u32 %v15461_v24, %v12319_v34  ;;  %v15578_v24 = vld [vmem:[#allocation6 + $0x97c] sm:$0xf]  ;;  %v12787_v34 = vld [vmem:[#allocation6 + $0x9ac] sm:$0xf0] }
 0x387   :  { %8546 = vmatpush.bf16.msrb.mxu0 %v13098_v38  ;;  %v15863_v38 = vld [vmem:[#allocation6 + $0x1264] sm:$0xf]  ;;  %8435 = vmatmul.bf16.vlgmr.msra.gmra.mxu3 %v16461_v45 }
 0x388   :  { %8559 = vmatpush.bf16.msrb.mxu1 %v13514_v6  ;;  %8479 = vmatpush.bf16.msrb.mxu3 %v14030_v1  ;;  %v13923_v6 = vld [vmem:[#allocation6 + $0x1294] sm:$0xf0]  ;;  %v13819_v1 = vld [vmem:[#allocation6 + $0x11c4] sm:$0xf0]  ;;  %v8228_v48 = vpop.f32.mrf.mxu3 }
 0x389   :  { %8526 = vmatmul.bf16.vlgmr.msra.gmra.mxu2 %v16461_v45  ;;  %v13926_v49 = vor.u32 %v15863_v38, %v13923_v6  ;;  %v13822_v63 = vor.u32 %v15837_v26, %v13819_v1  ;;  %v16678_v37 = vadd.f32 %v8228_v48, %v16669_v51  ;;  %v11851_v38 = vld [vmem:[#allocation6 + $0x25c] sm:$0xf0]  ;;  %v15448_v6 = vld [vmem:[#allocation6 + $0x56c] sm:$0xf]  ;;  %v13770_v51 = vor.u32 %v15824_v30, %v13767_v31  ;;  %v15422_v26 = vld [vmem:[#allocation6 + $0x49c] sm:$0xf] }
 0x38a   :  { %8570 = vmatpush.bf16.msrb.mxu2 %v14034_v59  ;;  %v15844_v59 = vld [vmem:[#allocation6 + $0x11c8] sm:$0xf0]  ;;  %v12270_v42 = vor.u32 %v15448_v6, %v12267_v60  ;;  %v12163_v1 = vld [vmem:[#allocation6 + $0x4cc] sm:$0xf0]  ;;  %v15305_v30 = vld [vmem:[#allocation6 + $0xf4] sm:$0xf]  ;;  %v12790_v31 = vor.u32 %v15578_v24, %v12787_v34 }
 0x38b   :  { %8547 = vmatpush.bf16.msrb.mxu0 %v13046_v55  ;;  %v15597_v55 = vld [vmem:[#allocation6 + $0xa10] sm:$0xf0] }
 0x38c   :  { %8560 = vmatpush.bf16.msrb.mxu1 %v13462_v58  ;;  %8480 = vmatpush.bf16.msrb.mxu3 %v13978_v9  ;;  %v13930_v58 = vor.u32 %v15870_v29, %v13929_v14  ;;  %v12838_v27 = vor.u32 %v15597_v55, %v12837_v12  ;;  %v15344_v9 = vld [vmem:[#allocation6 + $0x22c] sm:$0xf]  ;;  %v15811_v14 = vld [vmem:[#allocation6 + $0x10c4] sm:$0xf]  ;;  %v13715_v29 = vld [vmem:[#allocation6 + $0x10f4] sm:$0xf0] }
 0x38d   :  { %v11854_v57 = vor.u32 %v15344_v9, %v11851_v38  ;;  %v13721_v12 = vld [vmem:[#allocation6 + $0x10c8] sm:$0xf]  ;;  %v15818_v55 = vld [vmem:[#allocation6 + $0x10f8] sm:$0xf0]  ;;  %v13718_v61 = vor.u32 %v15811_v14, %v13715_v29 }
 0x38e   :  { %8571 = vmatpush.bf16.msrb.mxu2 %v13982_v33  ;;  %v13773_v33 = vld [vmem:[#allocation6 + $0x1130] sm:$0xf]  ;;  %v11695_v9 = vld [vmem:[#allocation6 + $0x124] sm:$0xf0]  ;;  %v15558_v29 = vld [vmem:[#allocation6 + $0x8d8] sm:$0xf0] }
 0x38f   :  { %8548 = vmatpush.bf16.msrb.mxu0 %v12994_v18  ;;  %v15357_v18 = vld [vmem:[#allocation6 + $0x294] sm:$0xf]  ;;  %v13774_v44 = vor.u32 %v15831_v23, %v13773_v33  ;;  %v12111_v38 = vld [vmem:[#allocation6 + $0x464] sm:$0xf0] }
 0x390   :  { %8561 = vmatpush.bf16.msrb.mxu1 %v13410_v19  ;;  %8481 = vmatpush.bf16.msrb.mxu3 %v13926_v49  ;;  %v13878_v19 = vor.u32 %v15857_v0, %v13877_v62  ;;  %v11906_v13 = vor.u32 %v15357_v18, %v11903_v28  ;;  %v15331_v49 = vld [vmem:[#allocation6 + $0x1c4] sm:$0xf]  ;;  %v8230_v54 = vpop.f32.mrf.mxu3  ;;  %v12785_v62 = vld [vmem:[#allocation6 + $0x978] sm:$0xf]  ;;  %v15584_v0 = vld [vmem:[#allocation6 + $0x9a8] sm:$0xf0] }
 0x391   :  { %v13669_v18 = vld [vmem:[#allocation6 + $0x1060] sm:$0xf]  ;;  %v15565_v33 = vld [vmem:[#allocation6 + $0x914] sm:$0xf]  ;;  %v12735_v23 = vld [vmem:[#allocation6 + $0x944] sm:$0xf0] }
 0x392   :  { %8572 = vmatpush.bf16.msrb.mxu2 %v13930_v58  ;;  %v12681_v14 = vld [vmem:[#allocation6 + $0x8a8] sm:$0xf] }
 0x393   :  { %8549 = vmatpush.bf16.msrb.mxu0 %v12942_v3  ;;  %v13826_v3 = vor.u32 %v15844_v59, %v13825_v16  ;;  %v12786_v16 = vor.u32 %v15584_v0, %v12785_v62  ;;  %v11591_v62 = vld [vmem:[#allocation6 + $0x54] sm:$0xf0] }
 0x394   :  { %8562 = vmatpush.bf16.msrb.mxu1 %v13358_v36  ;;  %8482 = vmatpush.bf16.msrb.mxu3 %v13874_v17  ;;  %v16680_v36 = vpop.f32.mrf.mxu2  ;;  %v13663_v17 = vld [vmem:[#allocation6 + $0x108c] sm:$0xf0] }
 0x395   :  { %v13666_v28 = vor.u32 %v15798_v41, %v13663_v17  ;;  %v12629_v41 = vld [vmem:[#allocation6 + $0x840] sm:$0xf]  ;;  %v15279_v17 = vld [vmem:[#allocation6 + $0x24] sm:$0xf] }
 0x396   :  { %8573 = vmatpush.bf16.msrb.mxu2 %v13878_v19  ;;  %v15805_v19 = vld [vmem:[#allocation6 + $0x1090] sm:$0xf0]  ;;  %v11594_v24 = vor.u32 %v15279_v17, %v11591_v62  ;;  %v15747_v17 = vld [vmem:[#allocation6 + $0xec4] sm:$0xf] }
 0x397   :  { %8550 = vmatpush.bf16.msrb.mxu0 %v12890_v47  ;;  %v11799_v47 = vld [vmem:[#allocation6 + $0x1f4] sm:$0xf0]  ;;  %v13670_v48 = vor.u32 %v15805_v19, %v13669_v18  ;;  %v15539_v19 = vld [vmem:[#allocation6 + $0x844] sm:$0xf] }
 0x398   :  { %8563 = vmatpush.bf16.msrb.mxu1 %v13306_v46  ;;  %8483 = vmatpush.bf16.msrb.mxu3 %v13822_v63  ;;  %v15435_v46 = vld [vmem:[#allocation6 + $0x504] sm:$0xf]  ;;  %v11802_v35 = vor.u32 %v15331_v49, %v11799_v47  ;;  %v12166_v63 = vor.u32 %v15422_v26, %v12163_v1  ;;  %v15292_v49 = vld [vmem:[#allocation6 + $0x8c] sm:$0xf]  ;;  %v11643_v47 = vld [vmem:[#allocation6 + $0xbc] sm:$0xf0] }
 0x399   :  { %v12218_v11 = vor.u32 %v15435_v46, %v12215_v10  ;;  %v15396_v46 = vld [vmem:[#allocation6 + $0x3cc] sm:$0xf]  ;;  %v12059_v10 = vld [vmem:[#allocation6 + $0x3fc] sm:$0xf0]  ;;  %v11646_v54 = vor.u32 %v15292_v49, %v11643_v47  ;;  %v15890_v26 = vld [vmem:[#allocation6 + $0x133c] sm:$0xf] }
 0x39a   :  { %8574 = vmatpush.bf16.msrb.mxu2 %v13826_v3  ;;  %v15409_v3 = vld [vmem:[#allocation6 + $0x434] sm:$0xf]  ;;  %v14035_v1 = vld [vmem:[#allocation6 + $0x136c] sm:$0xf0]  ;;  %v15864_v47 = vld [vmem:[#allocation6 + $0x126c] sm:$0xf] }
 0x39b   :  { %8551 = vmatpush.bf16.msrb.mxu0 %v12838_v27  ;;  %v16684_v58 = vpop.f32.mrf.mxu0  ;;  %v13722_v27 = vor.u32 %v15818_v55, %v13721_v12  ;;  %v15552_v12 = vld [vmem:[#allocation6 + $0x8ac] sm:$0xf]  ;;  %v12683_v55 = vld [vmem:[#allocation6 + $0x8dc] sm:$0xf0] }
 0x39c   :  { %8564 = vmatpush.bf16.msrb.mxu1 %v13254_v20  ;;  %8484 = vmatpush.bf16.msrb.mxu3 %v13770_v51  ;;  %v16686_v43 = vpop.f32.mrf.mxu1  ;;  %v8321_v20 = vpop.f32.mrf.mxu2  ;;  %v12686_v0 = vor.u32 %v15552_v12, %v12683_v55  ;;  %v15513_v12 = vld [vmem:[#allocation6 + $0x774] sm:$0xf] }
 0x39d   :  { %v12007_v20 = vld [vmem:[#allocation6 + $0x394] sm:$0xf0] }
 0x39e   :  { %8552 = vmatmul.bf16.vlgmr.msrb.gmra.mxu0 %v16479_v50  ;;  %8575 = vmatpush.bf16.msrb.mxu2 %v13774_v44  ;;  %v12738_v44 = vor.u32 %v15565_v33, %v12735_v23 }
 0x39f   :  { %8596 = vmatpush.bf16.msra.mxu0 %v11958_v7  ;;  %8565 = vmatmul.bf16.vlgmr.msrb.gmra.mxu1 %v16481_v53  ;;  %v15318_v7 = vld [vmem:[#allocation6 + $0x15c] sm:$0xf] }
 0x3a0   :  { %8609 = vmatpush.bf16.msra.mxu1 %v12374_v21  ;;  %v11747_v21 = vld [vmem:[#allocation6 + $0x18c] sm:$0xf0]  ;;  %8485 = vmatpush.bf16.msrb.mxu3 %v13718_v61  ;;  %v12682_v61 = vor.u32 %v15558_v29, %v12681_v14  ;;  %v15760_v14 = vld [vmem:[#allocation6 + $0xf2c] sm:$0xf] }
 0x3a1   :  { %v11750_v59 = vor.u32 %v15318_v7, %v11747_v21  ;;  %v15786_v7 = vld [vmem:[#allocation6 + $0xffc] sm:$0xf]  ;;  %v13619_v21 = vld [vmem:[#allocation6 + $0x102c] sm:$0xf0] }
 0x3a2   :  { %8576 = vmatpush.bf16.msrb.mxu2 %v13722_v27  ;;  %v15383_v27 = vld [vmem:[#allocation6 + $0x364] sm:$0xf] }
 0x3a3   :  { %8597 = vmatpush.bf16.msra.mxu0 %v11906_v13  ;;  %v12733_v13 = vld [vmem:[#allocation6 + $0x910] sm:$0xf]  ;;  %v8347_v6 = vpop.f32.mrf.mxu0  ;;  %v12010_v34 = vor.u32 %v15383_v27, %v12007_v20  ;;  %v15851_v27 = vld [vmem:[#allocation6 + $0x1204] sm:$0xf]  ;;  %v13879_v20 = vld [vmem:[#allocation6 + $0x1234] sm:$0xf0] }
 0x3a4   :  { %8610 = vmatpush.bf16.msra.mxu1 %v12322_v40  ;;  %v15571_v40 = vld [vmem:[#allocation6 + $0x940] sm:$0xf0]  ;;  %8486 = vmatpush.bf16.msrb.mxu3 %v13666_v28  ;;  %v8360_v60 = vpop.f32.mrf.mxu1  ;;  %v12631_v28 = vld [vmem:[#allocation6 + $0x874] sm:$0xf0] }
 0x3a5   :  { %v12734_v51 = vor.u32 %v15571_v40, %v12733_v13  ;;  %v15773_v13 = vld [vmem:[#allocation6 + $0xf94] sm:$0xf]  ;;  %v12634_v40 = vor.u32 %v15539_v19, %v12631_v28 }
 0x3a6   :  { %8577 = vmatpush.bf16.msrb.mxu2 %v13670_v48  ;;  %v15532_v48 = vld [vmem:[#allocation6 + $0x808] sm:$0xf0] }
 0x3a7   :  { %8598 = vmatpush.bf16.msra.mxu0 %v11854_v57  ;;  %v11698_v57 = vor.u32 %v15305_v30, %v11695_v9  ;;  %8487 = vmatmul.bf16.vlgmr.msrb.gmra.mxu3 %v16501_v8  ;;  %v13567_v30 = vld [vmem:[#allocation6 + $0xfc4] sm:$0xf0] }
 0x3a8   :  { %8611 = vmatpush.bf16.msra.mxu1 %v12270_v42  ;;  %8531 = vmatpush.bf16.msra.mxu3 %v12786_v16  ;;  %v12114_v42 = vor.u32 %v15409_v3, %v12111_v38  ;;  %v13622_v16 = vor.u32 %v15786_v7, %v13619_v21  ;;  %v13983_v9 = vld [vmem:[#allocation6 + $0x1304] sm:$0xf0]  ;;  %v15526_v3 = vld [vmem:[#allocation6 + $0x7dc] sm:$0xf]  ;;  %v12579_v38 = vld [vmem:[#allocation6 + $0x80c] sm:$0xf0]  ;;  %v8280_v60 = vpop.f32.mrf.mxu3  ;;  %v13570_v23 = vor.u32 %v15773_v13, %v13567_v30 }
 0x3a9   :  { %8578 = vmatmul.bf16.vlgmr.msrb.gmra.mxu2 %v16501_v8  ;;  %v8281_v33 = vadd.f32 %v8280_v60, %v16665_v32  ;;  %v12582_v29 = vor.u32 %v15526_v3, %v12579_v38  ;;  %v12527_v32 = vld [vmem:[#allocation6 + $0x7a4] sm:$0xf0]  ;;  %v15500_v7 = vld [vmem:[#allocation6 + $0x70c] sm:$0xf]  ;;  %v12475_v21 = vld [vmem:[#allocation6 + $0x73c] sm:$0xf0] }
 0x3aa   :  { %8622 = vmatpush.bf16.msra.mxu2 %v12790_v31  ;;  %v15877_v31 = vld [vmem:[#allocation6 + $0x12d4] sm:$0xf]  ;;  %v12530_v62 = vor.u32 %v15513_v12, %v12527_v32  ;;  %v13411_v13 = vld [vmem:[#allocation6 + $0xe8c] sm:$0xf0]  ;;  %v15994_v38 = vld [vmem:[#allocation6 + $0x167c] sm:$0xf] }
 0x3ab   :  { %8599 = vmatpush.bf16.msra.mxu0 %v11802_v35  ;;  %v12062_v35 = vor.u32 %v15396_v46, %v12059_v10  ;;  %v16691_v49 = vpop.f32.mrf.mxu2  ;;  %v13931_v46 = vld [vmem:[#allocation6 + $0x129c] sm:$0xf0]  ;;  %v8294_v10 = vadd.f32 %v16671_v52, %v8281_v33  ;;  %v13827_v30 = vld [vmem:[#allocation6 + $0x11cc] sm:$0xf0]  ;;  %v15981_v32 = vld [vmem:[#allocation6 + $0x1614] sm:$0xf] }
 0x3ac   :  { %8612 = vmatpush.bf16.msra.mxu1 %v12218_v11  ;;  %8532 = vmatpush.bf16.msra.mxu3 %v12734_v51  ;;  %v15545_v11 = vld [vmem:[#allocation6 + $0x870] sm:$0xf0]  ;;  %v13986_v51 = vor.u32 %v15877_v31, %v13983_v9  ;;  %v15487_v31 = vld [vmem:[#allocation6 + $0x6a4] sm:$0xf]  ;;  %v12423_v9 = vld [vmem:[#allocation6 + $0x6d4] sm:$0xf0] }
 0x3ad   :  { %v12630_v18 = vor.u32 %v15545_v11, %v12629_v41  ;;  %v15506_v11 = vld [vmem:[#allocation6 + $0x738] sm:$0xf0] }
 0x3ae   :  { %8623 = vmatpush.bf16.msra.mxu2 %v12738_v44  ;;  %v13515_v44 = vld [vmem:[#allocation6 + $0xf5c] sm:$0xf0] }
 0x3af   :  { %8600 = vmatpush.bf16.msra.mxu0 %v11750_v59  ;;  %v14038_v59 = vor.u32 %v15890_v26, %v14035_v1  ;;  %v13518_v41 = vor.u32 %v15760_v14, %v13515_v44  ;;  %v15721_v14 = vld [vmem:[#allocation6 + $0xdf4] sm:$0xf]  ;;  %v13359_v44 = vld [vmem:[#allocation6 + $0xe24] sm:$0xf0] }
 0x3b0   :  { %8613 = vmatpush.bf16.msra.mxu1 %v12166_v63  ;;  %8533 = vmatpush.bf16.msra.mxu3 %v12682_v61  ;;  %v12577_v63 = vld [vmem:[#allocation6 + $0x7d8] sm:$0xf]  ;;  %v8307_v61 = vadd.f32 %v16673_v4, %v8294_v10  ;;  %v8282_v19 = vpop.f32.mrf.mxu3 }
 0x3b1   :  { %v12578_v6 = vor.u32 %v15532_v48, %v12577_v63  ;;  %v15734_v48 = vld [vmem:[#allocation6 + $0xe5c] sm:$0xf] }
 0x3b2   :  { %8624 = vmatpush.bf16.msra.mxu2 %v12686_v0  ;;  %v13463_v0 = vld [vmem:[#allocation6 + $0xef4] sm:$0xf0]  ;;  %v16698_v52 = vadd.f32 %v16680_v36, %v8307_v61  ;;  %v12478_v36 = vor.u32 %v15500_v7, %v12475_v21  ;;  %v13414_v33 = vor.u32 %v15734_v48, %v13411_v13  ;;  %v15968_v7 = vld [vmem:[#allocation6 + $0x15ac] sm:$0xf]  ;;  %v14347_v21 = vld [vmem:[#allocation6 + $0x15dc] sm:$0xf0] }
 0x3b3   :  { %8601 = vmatpush.bf16.msra.mxu0 %v11698_v57  ;;  %v12525_v57 = vld [vmem:[#allocation6 + $0x770] sm:$0xf]  ;;  %v13466_v28 = vor.u32 %v15747_v17, %v13463_v0  ;;  %v8373_v63 = vpop.f32.mrf.mxu2  ;;  %v15708_v17 = vld [vmem:[#allocation6 + $0xd8c] sm:$0xf]  ;;  %v13307_v0 = vld [vmem:[#allocation6 + $0xdbc] sm:$0xf0] }
 0x3b4   :  { %8614 = vmatpush.bf16.msra.mxu1 %v12114_v42  ;;  %8534 = vmatpush.bf16.msra.mxu3 %v12630_v18  ;;  %v15519_v42 = vld [vmem:[#allocation6 + $0x7a0] sm:$0xf0]  ;;  %v12421_v18 = vld [vmem:[#allocation6 + $0x6a0] sm:$0xf]  ;;  %v13310_v19 = vor.u32 %v15708_v17, %v13307_v0  ;;  %v13671_v63 = vld [vmem:[#allocation6 + $0x1094] sm:$0xf0] }
 0x3b5   :  { %v12526_v55 = vor.u32 %v15519_v42, %v12525_v57  ;;  %v14397_v57 = vld [vmem:[#allocation6 + $0x1610] sm:$0xf]  ;;  %v15987_v42 = vld [vmem:[#allocation6 + $0x1640] sm:$0xf0]  ;;  %v12377_v48 = vld [vmem:[#allocation6 + $0x640] sm:$0xf] }
 0x3b6   :  { %8625 = vmatpush.bf16.msra.mxu2 %v12634_v40  ;;  %v15838_v40 = vld [vmem:[#allocation6 + $0x119c] sm:$0xf]  ;;  %v14398_v61 = vor.u32 %v15987_v42, %v14397_v57  ;;  %v15481_v13 = vld [vmem:[#allocation6 + $0x670] sm:$0xf0]  ;;  %v16706_v57 = vld [vmem:[#allocation7] sm:$0xff] }
 0x3b7   :  { %8602 = vmatpush.bf16.msra.mxu0 %v11646_v54  ;;  %v13934_v54 = vor.u32 %v15864_v47, %v13931_v46  ;;  %v15825_v47 = vld [vmem:[#allocation6 + $0x1134] sm:$0xf]  ;;  %v13775_v46 = vld [vmem:[#allocation6 + $0x1164] sm:$0xf0]  ;;  %v4061_v42 = vperm.slane %v16706_v57, 6 }
 0x3b8   :  { %8615 = vmatpush.bf16.msra.mxu1 %v12062_v35  ;;  %8535 = vmatpush.bf16.msra.mxu3 %v12578_v6  ;;  %v12473_v35 = vld [vmem:[#allocation6 + $0x708] sm:$0xf]  ;;  %v14451_v6 = vld [vmem:[#allocation6 + $0x16ac] sm:$0xf0] }
 0x3b9   :  { %v12474_v1 = vor.u32 %v15506_v11, %v12473_v35  ;;  %v14345_v35 = vld [vmem:[#allocation6 + $0x15a8] sm:$0xf]  ;;  %v15974_v11 = vld [vmem:[#allocation6 + $0x15d8] sm:$0xf0]  ;;  %v12273_v17 = vld [vmem:[#allocation6 + $0x570] sm:$0xf] }
 0x3ba   :  { %8626 = vmatpush.bf16.msra.mxu2 %v12582_v29  ;;  %v14454_v29 = vor.u32 %v15994_v38, %v14451_v6 }
 0x3bb   :  { %8603 = vmatpush.bf16.msra.mxu0 %v11594_v24  ;;  %v16700_v26 = vpop.f32.mrf.mxu0  ;;  %v13882_v24 = vor.u32 %v15851_v27, %v13879_v20  ;;  %v15812_v27 = vld [vmem:[#allocation6 + $0x10cc] sm:$0xf]  ;;  %v13723_v20 = vld [vmem:[#allocation6 + $0x10fc] sm:$0xf0] }
 0x3bc   :  { %8616 = vmatpush.bf16.msra.mxu1 %v12010_v34  ;;  %8536 = vmatpush.bf16.msra.mxu3 %v12526_v55  ;;  %v16702_v4 = vpop.f32.mrf.mxu1  ;;  %v15493_v34 = vld [vmem:[#allocation6 + $0x6d0] sm:$0xf0]  ;;  %v14399_v55 = vld [vmem:[#allocation6 + $0x1644] sm:$0xf0] }
 0x3bd   :  { %v12422_v3 = vor.u32 %v15493_v34, %v12421_v18  ;;  %v14293_v18 = vld [vmem:[#allocation6 + $0x1540] sm:$0xf]  ;;  %v15695_v34 = vld [vmem:[#allocation6 + $0xd24] sm:$0xf] }
 0x3be   :  { %8604 = vmatmul.bf16.vlgmr.msra.gmra.mxu0 %v16457_v15  ;;  %8627 = vmatpush.bf16.msra.mxu2 %v12530_v62  ;;  %v14402_v62 = vor.u32 %v15981_v32, %v14399_v55 }
 0x3bf   :  { %8648 = vmatpush.bf16.msrb.mxu0 %v13622_v16  ;;  %8617 = vmatmul.bf16.vlgmr.msra.gmra.mxu1 %v16461_v45  ;;  %v14449_v16 = vld [vmem:[#allocation6 + $0x1678] sm:$0xf] }
 0x3c0   :  { %8661 = vmatpush.bf16.msrb.mxu1 %v14038_v59  ;;  %v16000_v59 = vld [vmem:[#allocation6 + $0x16a8] sm:$0xf0]  ;;  %8537 = vmatpush.bf16.msra.mxu3 %v12474_v1  ;;  %v14346_v1 = vor.u32 %v15974_v11, %v14345_v35  ;;  %v14189_v35 = vld [vmem:[#allocation6 + $0x1470] sm:$0xf]  ;;  %v15935_v11 = vld [vmem:[#allocation6 + $0x14a0] sm:$0xf0] }
 0x3c1   :  { %v14450_v60 = vor.u32 %v16000_v59, %v14449_v16  ;;  %v13255_v16 = vld [vmem:[#allocation6 + $0xd54] sm:$0xf0]  ;;  %v14350_v59 = vor.u32 %v15968_v7, %v14347_v21  ;;  %v15559_v7 = vld [vmem:[#allocation6 + $0x8e0] sm:$0xf0] }
 0x3c2   :  { %8628 = vmatpush.bf16.msra.mxu2 %v12478_v36  ;;  %v15799_v36 = vld [vmem:[#allocation6 + $0x1064] sm:$0xf]  ;;  %v13258_v38 = vor.u32 %v15695_v34, %v13255_v16  ;;  %v14137_v34 = vld [vmem:[#allocation6 + $0x1408] sm:$0xf]  ;;  %v15922_v16 = vld [vmem:[#allocation6 + $0x1438] sm:$0xf0] }
 0x3c3   :  { %8649 = vmatpush.bf16.msrb.mxu0 %v13570_v23  ;;  %v13830_v23 = vor.u32 %v15838_v40, %v13827_v30  ;;  %v8399_v10 = vpop.f32.mrf.mxu0  ;;  %v12793_v40 = vld [vmem:[#allocation6 + $0x980] sm:$0xf]  ;;  %v15585_v30 = vld [vmem:[#allocation6 + $0x9b0] sm:$0xf0]  ;;  %v13674_v6 = vor.u32 %v15799_v36, %v13671_v63 }
 0x3c4   :  { %8662 = vmatpush.bf16.msrb.mxu1 %v13986_v51  ;;  %v12426_v51 = vor.u32 %v15487_v31, %v12423_v9  ;;  %8538 = vmatpush.bf16.msra.mxu3 %v12422_v3  ;;  %v8412_v12 = vpop.f32.mrf.mxu1  ;;  %v15955_v9 = vld [vmem:[#allocation6 + $0x1544] sm:$0xf]  ;;  %v14295_v3 = vld [vmem:[#allocation6 + $0x1574] sm:$0xf0]  ;;  %v15942_v10 = vld [vmem:[#allocation6 + $0x14dc] sm:$0xf] }
 0x3c5   :  { %v14243_v12 = vld [vmem:[#allocation6 + $0x150c] sm:$0xf0] }
 0x3c6   :  { %8629 = vmatpush.bf16.msra.mxu2 %v12426_v51  ;;  %v15948_v51 = vld [vmem:[#allocation6 + $0x1508] sm:$0xf0] }
 0x3c7   :  { %8650 = vmatpush.bf16.msrb.mxu0 %v13518_v41  ;;  %v13362_v41 = vor.u32 %v15721_v14, %v13359_v44  ;;  %8539 = vmatmul.bf16.vlgmr.msra.gmra.mxu3 %v16465_v22  ;;  %v12325_v14 = vld [vmem:[#allocation6 + $0x5d8] sm:$0xf]  ;;  %v15468_v44 = vld [vmem:[#allocation6 + $0x608] sm:$0xf0] }
 0x3c8   :  { %8663 = vmatpush.bf16.msrb.mxu1 %v13934_v54  ;;  %8583 = vmatpush.bf16.msrb.mxu3 %v14450_v60  ;;  %v13778_v54 = vor.u32 %v15825_v47, %v13775_v46  ;;  %v14241_v60 = vld [vmem:[#allocation6 + $0x14d8] sm:$0xf]  ;;  %v15572_v46 = vld [vmem:[#allocation6 + $0x948] sm:$0xf0]  ;;  %v8332_v55 = vpop.f32.mrf.mxu3 }
 0x3c9   :  { %8630 = vmatmul.bf16.vlgmr.msra.gmra.mxu2 %v16465_v22  ;;  %v12741_v47 = vld [vmem:[#allocation6 + $0x918] sm:$0xf]  ;;  %v14242_v32 = vor.u32 %v15948_v51, %v14241_v60  ;;  %v15682_v51 = vld [vmem:[#allocation6 + $0xcbc] sm:$0xf] }
 0x3ca   :  { %8674 = vmatpush.bf16.msrb.mxu2 %v14454_v29  ;;  %v14298_v29 = vor.u32 %v15955_v9, %v14295_v3 }
 0x3cb   :  { %8651 = vmatpush.bf16.msrb.mxu0 %v13466_v28  ;;  %v13726_v28 = vor.u32 %v15812_v27, %v13723_v20  ;;  %v16709_v0 = vpop.f32.mrf.mxu2  ;;  %v15455_v27 = vld [vmem:[#allocation6 + $0x5a0] sm:$0xf0]  ;;  %v12689_v20 = vld [vmem:[#allocation6 + $0x8b0] sm:$0xf] }
 0x3cc   :  { %8664 = vmatpush.bf16.msrb.mxu1 %v13882_v24  ;;  %8584 = vmatpush.bf16.msrb.mxu3 %v14398_v61  ;;  %v15961_v24 = vld [vmem:[#allocation6 + $0x1570] sm:$0xf0]  ;;  %v8333_v61 = vadd.f32 %v8332_v55, %v4061_v42  ;;  %v13203_v42 = vld [vmem:[#allocation6 + $0xcec] sm:$0xf0]  ;;  %v13209_v55 = vld [vmem:[#allocation6 + $0xcc0] sm:$0xf] }
 0x3cd   :  { %v14294_v31 = vor.u32 %v15961_v24, %v14293_v18  ;;  %v14191_v18 = vld [vmem:[#allocation6 + $0x14a4] sm:$0xf0]  ;;  %v12690_v24 = vor.u32 %v15559_v7, %v12689_v20  ;;  %v15416_v7 = vld [vmem:[#allocation6 + $0x468] sm:$0xf0] }
 0x3ce   :  { %8675 = vmatpush.bf16.msrb.mxu2 %v14402_v62  ;;  %v14246_v62 = vor.u32 %v15942_v10, %v14243_v12  ;;  %v8346_v21 = vadd.f32 %v16684_v58, %v8333_v61  ;;  %v14139_v58 = vld [vmem:[#allocation6 + $0x143c] sm:$0xf0]  ;;  %v15903_v10 = vld [vmem:[#allocation6 + $0x13a4] sm:$0xf]  ;;  %v14087_v12 = vld [vmem:[#allocation6 + $0x13d4] sm:$0xf0] }
 0x3cf   :  { %8652 = vmatpush.bf16.msrb.mxu0 %v13414_v33  ;;  %v12378_v33 = vor.u32 %v15481_v13, %v12377_v48  ;;  %v15442_v48 = vld [vmem:[#allocation6 + $0x538] sm:$0xf0]  ;;  %v12637_v13 = vld [vmem:[#allocation6 + $0x848] sm:$0xf]  ;;  %v15689_v61 = vld [vmem:[#allocation6 + $0xcf0] sm:$0xf0] }
 0x3d0   :  { %8665 = vmatpush.bf16.msrb.mxu1 %v13830_v23  ;;  %8585 = vmatpush.bf16.msrb.mxu3 %v14346_v1  ;;  %v12794_v23 = vor.u32 %v15585_v30, %v12793_v40  ;;  %v15929_v1 = vld [vmem:[#allocation6 + $0x1474] sm:$0xf]  ;;  %v8359_v36 = vadd.f32 %v16686_v43, %v8346_v21  ;;  %v15546_v40 = vld [vmem:[#allocation6 + $0x878] sm:$0xf0]  ;;  %v15916_v30 = vld [vmem:[#allocation6 + $0x140c] sm:$0xf]  ;;  %v8334_v43 = vpop.f32.mrf.mxu3  ;;  %v13210_v20 = vor.u32 %v15689_v61, %v13209_v55 }
 0x3d1   :  { %v14194_v63 = vor.u32 %v15929_v1, %v14191_v18  ;;  %v12533_v21 = vld [vmem:[#allocation6 + $0x778] sm:$0xf]  ;;  %v15520_v1 = vld [vmem:[#allocation6 + $0x7a8] sm:$0xf0]  ;;  %v13053_v55 = vld [vmem:[#allocation6 + $0xb88] sm:$0xf] }
 0x3d2   :  { %8676 = vmatpush.bf16.msrb.mxu2 %v14350_v59  ;;  %v12221_v59 = vld [vmem:[#allocation6 + $0x508] sm:$0xf]  ;;  %v15650_v61 = vld [vmem:[#allocation6 + $0xbb8] sm:$0xf0] }
 0x3d3   :  { %8653 = vmatpush.bf16.msrb.mxu0 %v13362_v41  ;;  %v12326_v41 = vor.u32 %v15468_v44, %v12325_v14  ;;  %v12222_v60 = vor.u32 %v15442_v48, %v12221_v59  ;;  %v14142_v14 = vor.u32 %v15916_v30, %v14139_v58  ;;  %v15429_v44 = vld [vmem:[#allocation6 + $0x4d0] sm:$0xf0]  ;;  %v12534_v59 = vor.u32 %v15520_v1, %v12533_v21  ;;  %v12065_v48 = vld [vmem:[#allocation6 + $0x3d0] sm:$0xf]  ;;  %v15507_v58 = vld [vmem:[#allocation6 + $0x740] sm:$0xf0] }
 0x3d4   :  { %8666 = vmatpush.bf16.msrb.mxu1 %v13778_v54  ;;  %8586 = vmatpush.bf16.msrb.mxu3 %v14294_v31  ;;  %v12742_v54 = vor.u32 %v15572_v46, %v12741_v47  ;;  %v16716_v31 = vadd.f32 %v16691_v49, %v8359_v36  ;;  %v12169_v49 = vld [vmem:[#allocation6 + $0x4a0] sm:$0xf]  ;;  %v15533_v46 = vld [vmem:[#allocation6 + $0x810] sm:$0xf0]  ;;  %v15656_v36 = vld [vmem:[#allocation6 + $0xbec] sm:$0xf] }
 0x3d5   :  { %v12585_v47 = vld [vmem:[#allocation6 + $0x7e0] sm:$0xf]  ;;  %v12481_v30 = vld [vmem:[#allocation6 + $0x710] sm:$0xf]  ;;  %v14405_v21 = vld [vmem:[#allocation6 + $0x1618] sm:$0xf] }
 0x3d6   :  { %8677 = vmatpush.bf16.msrb.mxu2 %v14298_v29  ;;  %v8425_v29 = vpop.f32.mrf.mxu2  ;;  %v15988_v1 = vld [vmem:[#allocation6 + $0x1648] sm:$0xf0] }
 0x3d7   :  { %8654 = vmatpush.bf16.msrb.mxu0 %v13310_v19  ;;  %v14190_v19 = vor.u32 %v15935_v11, %v14189_v35  ;;  %v12586_v35 = vor.u32 %v15533_v46, %v12585_v47  ;;  %v14090_v11 = vor.u32 %v15903_v10, %v14087_v12  ;;  %v14041_v47 = vld [vmem:[#allocation6 + $0x1340] sm:$0xf]  ;;  %v15897_v46 = vld [vmem:[#allocation6 + $0x1370] sm:$0xf0] }
 0x3d8   :  { %8667 = vmatpush.bf16.msrb.mxu1 %v13726_v28  ;;  %8587 = vmatpush.bf16.msrb.mxu3 %v14242_v32  ;;  %v12274_v28 = vor.u32 %v15455_v27, %v12273_v17  ;;  %v15669_v17 = vld [vmem:[#allocation6 + $0xc54] sm:$0xf]  ;;  %v12117_v27 = vld [vmem:[#allocation6 + $0x438] sm:$0xf]  ;;  %v14457_v10 = vld [vmem:[#allocation6 + $0x1680] sm:$0xf] }
 0x3d9   :  { %v16001_v12 = vld [vmem:[#allocation6 + $0x16b0] sm:$0xf0] }
 0x3da   :  { %8678 = vmatpush.bf16.msrb.mxu2 %v14246_v62  ;;  %v13151_v62 = vld [vmem:[#allocation6 + $0xc84] sm:$0xf0] }
 0x3db   :  { %8655 = vmatpush.bf16.msrb.mxu0 %v13258_v38  ;;  %v16718_v9 = vpop.f32.mrf.mxu0  ;;  %v14138_v38 = vor.u32 %v15922_v16, %v14137_v34  ;;  %v13154_v34 = vor.u32 %v15669_v17, %v13151_v62  ;;  %v12118_v16 = vor.u32 %v15416_v7, %v12117_v27  ;;  %v15630_v17 = vld [vmem:[#allocation6 + $0xb1c] sm:$0xf]  ;;  %v12995_v62 = vld [vmem:[#allocation6 + $0xb4c] sm:$0xf0]  ;;  %v13989_v27 = vld [vmem:[#allocation6 + $0x12d8] sm:$0xf] }
 0x3dc   :  { %8668 = vmatpush.bf16.msrb.mxu1 %v13674_v6  ;;  %8588 = vmatpush.bf16.msrb.mxu3 %v14190_v19  ;;  %v16720_v3 = vpop.f32.mrf.mxu1  ;;  %v14085_v6 = vld [vmem:[#allocation6 + $0x13a0] sm:$0xf]  ;;  %v15884_v7 = vld [vmem:[#allocation6 + $0x1308] sm:$0xf0] }
 0x3de   :  { %8656 = vmatmul.bf16.vlgmr.msrb.gmra.mxu0 %v16481_v53  ;;  %8679 = vmatpush.bf16.msrb.mxu2 %v14194_v63  ;;  %v13099_v63 = vld [vmem:[#allocation6 + $0xc1c] sm:$0xf0] }
 0x3df   :  { %8700 = vmatpush.bf16.msra.mxu0 %v12378_v33  ;;  %8669 = vmatmul.bf16.vlgmr.msrb.gmra.mxu1 %v16501_v8  ;;  %v12638_v33 = vor.u32 %v15546_v40, %v12637_v13  ;;  %v15403_v40 = vld [vmem:[#allocation6 + $0x400] sm:$0xf0]  ;;  %v13102_v43 = vor.u32 %v15656_v36, %v13099_v63  ;;  %v15617_v36 = vld [vmem:[#allocation6 + $0xab4] sm:$0xf]  ;;  %v12943_v63 = vld [vmem:[#allocation6 + $0xae4] sm:$0xf0] }
 0x3e0   :  { %8713 = vmatpush.bf16.msra.mxu1 %v12794_v23  ;;  %v15909_v23 = vld [vmem:[#allocation6 + $0x13d0] sm:$0xf0]  ;;  %8589 = vmatpush.bf16.msrb.mxu3 %v14138_v38  ;;  %v13105_v38 = vld [vmem:[#allocation6 + $0xbf0] sm:$0xf] }
 0x3e1   :  { %v14086_v32 = vor.u32 %v15909_v23, %v14085_v6  ;;  %v15663_v6 = vld [vmem:[#allocation6 + $0xc20] sm:$0xf0]  ;;  %v12482_v23 = vor.u32 %v15507_v58, %v12481_v30  ;;  %v14353_v58 = vld [vmem:[#allocation6 + $0x15b0] sm:$0xf] }
 0x3e2   :  { %8680 = vmatpush.bf16.msrb.mxu2 %v14142_v14  ;;  %v15390_v14 = vld [vmem:[#allocation6 + $0x398] sm:$0xf0]  ;;  %v13106_v29 = vor.u32 %v15663_v6, %v13105_v38  ;;  %v15871_v30 = vld [vmem:[#allocation6 + $0x12a0] sm:$0xf0] }
 0x3e3   :  { %8701 = vmatpush.bf16.msra.mxu0 %v12326_v41  ;;  %v13206_v41 = vor.u32 %v15682_v51, %v13203_v42  ;;  %v8451_v18 = vpop.f32.mrf.mxu0  ;;  %v13047_v51 = vld [vmem:[#allocation6 + $0xbb4] sm:$0xf0]  ;;  %v12013_v42 = vld [vmem:[#allocation6 + $0x368] sm:$0xf]  ;;  %v15975_v38 = vld [vmem:[#allocation6 + $0x15e0] sm:$0xf0] }
 0x3e4   :  { %8714 = vmatpush.bf16.msra.mxu1 %v12742_v54  ;;  %v12170_v54 = vor.u32 %v15429_v44, %v12169_v49  ;;  %8590 = vmatpush.bf16.msrb.mxu3 %v14086_v32  ;;  %v8464_v19 = vpop.f32.mrf.mxu1  ;;  %v12429_v49 = vld [vmem:[#allocation6 + $0x6a8] sm:$0xf]  ;;  %v15494_v44 = vld [vmem:[#allocation6 + $0x6d8] sm:$0xf0]  ;;  %v13001_v18 = vld [vmem:[#allocation6 + $0xb20] sm:$0xf] }
 0x3e5   :  { %v15637_v19 = vld [vmem:[#allocation6 + $0xb50] sm:$0xf0] }
 0x3e6   :  { %8681 = vmatpush.bf16.msrb.mxu2 %v14090_v11  ;;  %v14458_v11 = vor.u32 %v16001_v12, %v14457_v10  ;;  %v15611_v10 = vld [vmem:[#allocation6 + $0xa80] sm:$0xf0] }
 0x3e7   :  { %8702 = vmatpush.bf16.msra.mxu0 %v12274_v28  ;;  %v13157_v28 = vld [vmem:[#allocation6 + $0xc58] sm:$0xf]  ;;  %8591 = vmatmul.bf16.vlgmr.msrb.gmra.mxu3 %v16530_v25 }
 0x3e8   :  { %8715 = vmatpush.bf16.msra.mxu1 %v12690_v24  ;;  %v15676_v24 = vld [vmem:[#allocation6 + $0xc88] sm:$0xf0]  ;;  %8635 = vmatpush.bf16.msra.mxu3 %v13206_v41  ;;  %v12014_v41 = vor.u32 %v15390_v14, %v12013_v42  ;;  %v12891_v14 = vld [vmem:[#allocation6 + $0xa7c] sm:$0xf0] }
 0x3e9   :  { %v13158_v13 = vor.u32 %v15676_v24, %v13157_v28  ;;  %8682 = vmatmul.bf16.vlgmr.msrb.gmra.mxu2 %v16530_v25  ;;  %v12998_v28 = vor.u32 %v15630_v17, %v12995_v62  ;;  %v8384_v24 = vpop.f32.mrf.mxu3  ;;  %v15604_v42 = vld [vmem:[#allocation6 + $0xa4c] sm:$0xf]  ;;  %v15377_v17 = vld [vmem:[#allocation6 + $0x330] sm:$0xf0] }
 0x3ea   :  { %8726 = vmatpush.bf16.msra.mxu2 %v13210_v20  ;;  %v13054_v20 = vor.u32 %v15650_v61, %v13053_v55  ;;  %v15591_v55 = vld [vmem:[#allocation6 + $0x9e4] sm:$0xf] }
 0x3eb   :  { %8703 = vmatpush.bf16.msra.mxu0 %v12222_v60  ;;  %v15643_v60 = vld [vmem:[#allocation6 + $0xb84] sm:$0xf] }
 0x3ec   :  { %8716 = vmatpush.bf16.msra.mxu1 %v12638_v33  ;;  %8636 = vmatpush.bf16.msra.mxu3 %v13154_v34  ;;  %v12066_v33 = vor.u32 %v15403_v40, %v12065_v48  ;;  %v13050_v32 = vor.u32 %v15643_v60, %v13047_v51  ;;  %v8385_v34 = vadd.f32 %v8384_v24, %v16716_v31  ;;  %v13937_v48 = vld [vmem:[#allocation6 + $0x1270] sm:$0xf]  ;;  %v16725_v40 = vpop.f32.mrf.mxu2  ;;  %v15624_v31 = vld [vmem:[#allocation6 + $0xae8] sm:$0xf0]  ;;  %v15371_v24 = vld [vmem:[#allocation6 + $0x304] sm:$0xf] }
 0x3ed   :  { %v12946_v60 = vor.u32 %v15617_v36, %v12943_v63  ;;  %v14354_v51 = vor.u32 %v15975_v38, %v14353_v58  ;;  %v15832_v38 = vld [vmem:[#allocation6 + $0x1168] sm:$0xf0] }
 0x3ee   :  { %8727 = vmatpush.bf16.msra.mxu2 %v13158_v13  ;;  %v13002_v13 = vor.u32 %v15637_v19, %v13001_v18  ;;  %v8398_v6 = vadd.f32 %v16700_v26, %v8385_v34  ;;  %v12897_v26 = vld [vmem:[#allocation6 + $0xa50] sm:$0xf]  ;;  %v12845_v18 = vld [vmem:[#allocation6 + $0x9e8] sm:$0xf]  ;;  %v15598_v19 = vld [vmem:[#allocation6 + $0xa18] sm:$0xf0] }
 0x3ef   :  { %8704 = vmatpush.bf16.msra.mxu0 %v12170_v54  ;;  %v12430_v54 = vor.u32 %v15494_v44, %v12429_v49  ;;  %v15858_v44 = vld [vmem:[#allocation6 + $0x1238] sm:$0xf0]  ;;  %v12898_v62 = vor.u32 %v15611_v10, %v12897_v26  ;;  %v11963_v34 = vld [vmem:[#allocation6 + $0x334] sm:$0xf0]  ;;  %v12846_v63 = vor.u32 %v15598_v19, %v12845_v18  ;;  %v15819_v26 = vld [vmem:[#allocation6 + $0x1100] sm:$0xf0] }
 0x3f0   :  { %8717 = vmatpush.bf16.msra.mxu1 %v12586_v35  ;;  %8637 = vmatpush.bf16.msra.mxu3 %v13102_v43  ;;  %v14042_v35 = vor.u32 %v15897_v46, %v14041_v47  ;;  %v12949_v43 = vld [vmem:[#allocation6 + $0xab8] sm:$0xf]  ;;  %v14301_v47 = vld [vmem:[#allocation6 + $0x1548] sm:$0xf]  ;;  %v15962_v46 = vld [vmem:[#allocation6 + $0x1578] sm:$0xf0]  ;;  %v11966_v58 = vor.u32 %v15371_v24, %v11963_v34 }
 0x3f1   :  { %v12950_v49 = vor.u32 %v15624_v31, %v12949_v43  ;;  %v8386_v61 = vpop.f32.mrf.mxu3  ;;  %v15936_v43 = vld [vmem:[#allocation6 + $0x14a8] sm:$0xf0]  ;;  %v14145_v10 = vld [vmem:[#allocation6 + $0x1410] sm:$0xf]  ;;  %v15579_v18 = vld [vmem:[#allocation6 + $0x984] sm:$0xf] }
 0x3f2   :  { %8728 = vmatpush.bf16.msra.mxu2 %v13106_v29  ;;  %v13885_v29 = vld [vmem:[#allocation6 + $0x1208] sm:$0xf]  ;;  %v12795_v19 = vld [vmem:[#allocation6 + $0x9b4] sm:$0xf0]  ;;  %v4062_v34 = vperm.slane %v16706_v57, 7 }
 0x3f3   :  { %8705 = vmatpush.bf16.msra.mxu0 %v12118_v16  ;;  %v13990_v16 = vor.u32 %v15884_v7, %v13989_v27  ;;  %v15845_v7 = vld [vmem:[#allocation6 + $0x11d0] sm:$0xf0]  ;;  %v11859_v61 = vld [vmem:[#allocation6 + $0x264] sm:$0xf0]  ;;  %v13211_v24 = vld [vmem:[#allocation6 + $0xcf4] sm:$0xf0] }
 0x3f4   :  { %8718 = vmatpush.bf16.msra.mxu1 %v12534_v59  ;;  %8638 = vmatpush.bf16.msra.mxu3 %v13050_v32  ;;  %v14406_v59 = vor.u32 %v15988_v1, %v14405_v21  ;;  %v8477_v27 = vpop.f32.mrf.mxu2  ;;  %v14249_v21 = vld [vmem:[#allocation6 + $0x14e0] sm:$0xf]  ;;  %v15949_v1 = vld [vmem:[#allocation6 + $0x1510] sm:$0xf0]  ;;  %v13159_v57 = vld [vmem:[#allocation6 + $0xc8c] sm:$0xf0] }
 0x3f5   :  { %v14250_v36 = vor.u32 %v15949_v1, %v14249_v21  ;;  %v13677_v27 = vld [vmem:[#allocation6 + $0x1068] sm:$0xf]  ;;  %v15910_v1 = vld [vmem:[#allocation6 + $0x13d8] sm:$0xf0] }
 0x3f6   :  { %8729 = vmatpush.bf16.msra.mxu2 %v13054_v20  ;;  %v13833_v20 = vld [vmem:[#allocation6 + $0x11a0] sm:$0xf]  ;;  %v14093_v21 = vld [vmem:[#allocation6 + $0x13a8] sm:$0xf] }
 0x3f7   :  { %8706 = vmatpush.bf16.msra.mxu0 %v12066_v33  ;;  %v16731_v33 = vadd.f32 %v16702_v4, %v8398_v6  ;;  %v12894_v4 = vor.u32 %v15604_v42, %v12891_v14  ;;  %v14197_v6 = vld [vmem:[#allocation6 + $0x1478] sm:$0xf] }
 0x3f8   :  { %8719 = vmatpush.bf16.msra.mxu1 %v12482_v23  ;;  %8639 = vmatpush.bf16.msra.mxu3 %v12998_v28  ;;  %v13938_v23 = vor.u32 %v15871_v30, %v13937_v48  ;;  %v11909_v48 = vld [vmem:[#allocation6 + $0x298] sm:$0xf] }
 0x3f9   :  { %v13781_v30 = vld [vmem:[#allocation6 + $0x1138] sm:$0xf] }
 0x3fa   :  { %8730 = vmatpush.bf16.msra.mxu2 %v13002_v13  ;;  %v15364_v13 = vld [vmem:[#allocation6 + $0x2c8] sm:$0xf0]  ;;  %v13782_v14 = vor.u32 %v15832_v38, %v13781_v30  ;;  %v11753_v30 = vld [vmem:[#allocation6 + $0x160] sm:$0xf] }
 0x3fb   :  { %8707 = vmatpush.bf16.msra.mxu0 %v12014_v41  ;;  %v16733_v12 = vpop.f32.mrf.mxu0  ;;  %v13886_v41 = vor.u32 %v15858_v44, %v13885_v29  ;;  %v11910_v42 = vor.u32 %v15364_v13, %v11909_v48  ;;  %v14198_v29 = vor.u32 %v15936_v43, %v14197_v6  ;;  %v15351_v44 = vld [vmem:[#allocation6 + $0x260] sm:$0xf0]  ;;  %v14094_v13 = vor.u32 %v15910_v1, %v14093_v21  ;;  %v15325_v6 = vld [vmem:[#allocation6 + $0x190] sm:$0xf0]  ;;  %v15566_v43 = vld [vmem:[#allocation6 + $0x91c] sm:$0xf] }
 0x3fc   :  { %8720 = vmatpush.bf16.msra.mxu1 %v12430_v54  ;;  %8640 = vmatpush.bf16.msra.mxu3 %v12946_v60  ;;  %v16735_v32 = vpop.f32.mrf.mxu1  ;;  %v14302_v54 = vor.u32 %v15962_v46, %v14301_v47  ;;  %v13729_v47 = vld [vmem:[#allocation6 + $0x10d0] sm:$0xf] }
 0x3fd   :  { %v11649_v1 = vld [vmem:[#allocation6 + $0x90] sm:$0xf] }
 0x3fe   :  { %8708 = vmatmul.bf16.vlgmr.msra.gmra.mxu0 %v16461_v45  ;;  %8731 = vmatpush.bf16.msra.mxu2 %v12950_v49  ;;  %v11857_v49 = vld [vmem:[#allocation6 + $0x230] sm:$0xf] }
 0x3ff   :  { %8752 = vmatpush.bf16.msrb.mxu0 %v14042_v35  ;;  %8721 = vmatmul.bf16.vlgmr.msra.gmra.mxu1 %v16465_v22  ;;  %v12839_v35 = vld [vmem:[#allocation6 + $0xa14] sm:$0xf0] }
 0x400   :  { %8765 = vmatpush.bf16.msrb.mxu1 %v14458_v11  ;;  %v11961_v11 = vld [vmem:[#allocation6 + $0x300] sm:$0xf]  ;;  %8641 = vmatpush.bf16.msra.mxu3 %v12894_v4  ;;  %v12842_v28 = vor.u32 %v15591_v55, %v12839_v35  ;;  %v15923_v4 = vld [vmem:[#allocation6 + $0x1440] sm:$0xf0]  ;;  %v15345_v55 = vld [vmem:[#allocation6 + $0x234] sm:$0xf] }
 0x401   :  { %v11805_v35 = vld [vmem:[#allocation6 + $0x1c8] sm:$0xf] }
 0x402   :  { %8732 = vmatpush.bf16.msra.mxu2 %v12898_v62  ;;  %v15338_v62 = vld [vmem:[#allocation6 + $0x1f8] sm:$0xf0] }
 0x403   :  { %8753 = vmatpush.bf16.msrb.mxu0 %v13990_v16  ;;  %v11962_v16 = vor.u32 %v15377_v17, %v11961_v11  ;;  %v8503_v31 = vpop.f32.mrf.mxu0  ;;  %v13730_v11 = vor.u32 %v15819_v26, %v13729_v47  ;;  %v14146_v17 = vor.u32 %v15923_v4, %v14145_v10  ;;  %v11701_v10 = vld [vmem:[#allocation6 + $0xf8] sm:$0xf]  ;;  %v15312_v4 = vld [vmem:[#allocation6 + $0x128] sm:$0xf0] }
 0x404   :  { %8766 = vmatpush.bf16.msrb.mxu1 %v14406_v59  ;;  %v13834_v59 = vor.u32 %v15845_v7, %v13833_v20  ;;  %8642 = vmatpush.bf16.msra.mxu3 %v12842_v28  ;;  %v8516_v60 = vpop.f32.mrf.mxu1  ;;  %v15806_v20 = vld [vmem:[#allocation6 + $0x1098] sm:$0xf0]  ;;  %v11862_v7 = vor.u32 %v15345_v55, %v11859_v61  ;;  %v15683_v28 = vld [vmem:[#allocation6 + $0xcc4] sm:$0xf]  ;;  %v12743_v31 = vld [vmem:[#allocation6 + $0x94c] sm:$0xf0] }
 0x405   :  { %v13678_v48 = vor.u32 %v15806_v20, %v13677_v27  ;;  %v13214_v38 = vor.u32 %v15683_v28, %v13211_v24  ;;  %v15553_v55 = vld [vmem:[#allocation6 + $0x8b4] sm:$0xf]  ;;  %v11703_v27 = vld [vmem:[#allocation6 + $0x12c] sm:$0xf0]  ;;  %v11702_v20 = vor.u32 %v15312_v4, %v11701_v10 }
 0x406   :  { %8733 = vmatpush.bf16.msra.mxu2 %v12846_v63 }
 0x407   :  { %8754 = vmatpush.bf16.msrb.mxu0 %v13938_v23  ;;  %v15358_v23 = vld [vmem:[#allocation6 + $0x29c] sm:$0xf]  ;;  %8643 = vmatmul.bf16.vlgmr.msra.gmra.mxu3 %v16479_v50 }
 0x408   :  { %8767 = vmatpush.bf16.msrb.mxu1 %v14354_v51  ;;  %v11911_v51 = vld [vmem:[#allocation6 + $0x2cc] sm:$0xf0]  ;;  %8687 = vmatpush.bf16.msrb.mxu3 %v11962_v16  ;;  %v11806_v16 = vor.u32 %v15338_v62, %v11805_v35  ;;  %v15657_v35 = vld [vmem:[#allocation6 + $0xbf4] sm:$0xf]  ;;  %v15306_v62 = vld [vmem:[#allocation6 + $0xfc] sm:$0xf] }
 0x409   :  { %v11914_v46 = vor.u32 %v15358_v23, %v11911_v51  ;;  %8734 = vmatmul.bf16.vlgmr.msra.gmra.mxu2 %v16479_v50  ;;  %v15670_v23 = vld [vmem:[#allocation6 + $0xc5c] sm:$0xf]  ;;  %v8424_v51 = vadd.f32 %v16709_v0, %v4062_v34  ;;  %v11706_v24 = vor.u32 %v15306_v62, %v11703_v27  ;;  %v12639_v34 = vld [vmem:[#allocation6 + $0x87c] sm:$0xf0]  ;;  %v12951_v62 = vld [vmem:[#allocation6 + $0xaec] sm:$0xf0] }
 0x40a   :  { %8778 = vmatpush.bf16.msrb.mxu2 %v11966_v58  ;;  %v12798_v58 = vor.u32 %v15579_v18, %v12795_v19  ;;  %v13162_v26 = vor.u32 %v15670_v23, %v13159_v57  ;;  %v15299_v18 = vld [vmem:[#allocation6 + $0xc0] sm:$0xf0]  ;;  %v15540_v19 = vld [vmem:[#allocation6 + $0x84c] sm:$0xf] }
 0x40b   :  { %8755 = vmatpush.bf16.msrb.mxu0 %v13886_v41  ;;  %v16738_v41 = vld [vmem:[#allocation7 + $0x8] sm:$0x1f] }
 0x40c   :  { %8768 = vmatpush.bf16.msrb.mxu1 %v14302_v54  ;;  %8688 = vmatpush.bf16.msrb.mxu3 %v11910_v42  ;;  %v11858_v54 = vor.u32 %v15351_v44, %v11857_v49  ;;  %v4063_v63 = vperm.slane %v16738_v41, 0  ;;  %v15319_v42 = vld [vmem:[#allocation6 + $0x164] sm:$0xf]  ;;  %v8436_v49 = vpop.f32.mrf.mxu3  ;;  %v12746_v44 = vor.u32 %v15566_v43, %v12743_v31  ;;  %v8527_v0 = vpop.f32.mrf.mxu2  ;;  %v15286_v43 = vld [vmem:[#allocation6 + $0x58] sm:$0xf0] }
 0x40d   :  { %v13625_v31 = vld [vmem:[#allocation6 + $0x1000] sm:$0xf] }
 0x40e   :  { %8779 = vmatpush.bf16.msrb.mxu2 %v11914_v46  ;;  %v8515_v47 = vadd.f32 %v16735_v32, %v4063_v63  ;;  %v8437_v46 = vadd.f32 %v8436_v49, %v8424_v51  ;;  %v12587_v51 = vld [vmem:[#allocation6 + $0x814] sm:$0xf0]  ;;  %v11599_v49 = vld [vmem:[#allocation6 + $0x5c] sm:$0xf0] }
 0x40f   :  { %8756 = vmatpush.bf16.msrb.mxu0 %v13834_v59  ;;  %v15332_v59 = vld [vmem:[#allocation6 + $0x1cc] sm:$0xf] }
 0x410   :  { %8769 = vmatpush.bf16.msrb.mxu1 %v14250_v36  ;;  %8689 = vmatpush.bf16.msrb.mxu3 %v11858_v54  ;;  %v11807_v36 = vld [vmem:[#allocation6 + $0x1fc] sm:$0xf0]  ;;  %v12691_v54 = vld [vmem:[#allocation6 + $0x8e4] sm:$0xf0]  ;;  %v16748_v32 = vadd.f32 %v8527_v0, %v8515_v47  ;;  %v15787_v47 = vld [vmem:[#allocation6 + $0x1004] sm:$0xf] }
 0x411   :  { %v11810_v60 = vor.u32 %v15332_v59, %v11807_v36  ;;  %v15293_v59 = vld [vmem:[#allocation6 + $0x94] sm:$0xf]  ;;  %v11651_v36 = vld [vmem:[#allocation6 + $0xc4] sm:$0xf0]  ;;  %v15780_v0 = vld [vmem:[#allocation6 + $0xfc8] sm:$0xf0] }
 0x412   :  { %8780 = vmatpush.bf16.msrb.mxu2 %v11862_v7  ;;  %v12694_v7 = vor.u32 %v15553_v55, %v12691_v54  ;;  %v11654_v23 = vor.u32 %v15293_v59, %v11651_v36  ;;  %v15514_v54 = vld [vmem:[#allocation6 + $0x77c] sm:$0xf]  ;;  %v15605_v59 = vld [vmem:[#allocation6 + $0xa54] sm:$0xf]  ;;  %v12899_v36 = vld [vmem:[#allocation6 + $0xa84] sm:$0xf0] }
 0x413   :  { %8757 = vmatpush.bf16.msrb.mxu0 %v13782_v14  ;;  %v11755_v14 = vld [vmem:[#allocation6 + $0x194] sm:$0xf0] }
 0x414   :  { %8770 = vmatpush.bf16.msrb.mxu1 %v14198_v29  ;;  %8690 = vmatpush.bf16.msrb.mxu3 %v11806_v16  ;;  %v11754_v29 = vor.u32 %v15325_v6, %v11753_v30  ;;  %v11758_v61 = vor.u32 %v15319_v42, %v11755_v14  ;;  %v15644_v16 = vld [vmem:[#allocation6 + $0xb8c] sm:$0xf]  ;;  %v11650_v30 = vor.u32 %v15299_v18, %v11649_v1  ;;  %v8529_v57 = vpop.f32.mrf.mxu2  ;;  %v15631_v42 = vld [vmem:[#allocation6 + $0xb24] sm:$0xf]  ;;  %v13003_v14 = vld [vmem:[#allocation6 + $0xb54] sm:$0xf0] }
 0x415   :  { %v13006_v4 = vor.u32 %v15631_v42, %v13003_v14  ;;  %v15995_v42 = vld [vmem:[#allocation6 + $0x1684] sm:$0xf]  ;;  %v14459_v14 = vld [vmem:[#allocation6 + $0x16b4] sm:$0xf0] }
 0x416   :  { %8781 = vmatpush.bf16.msrb.mxu2 %v11810_v60  ;;  %v15793_v60 = vld [vmem:[#allocation6 + $0x1030] sm:$0xf0] }
 0x417   :  { %8758 = vmatpush.bf16.msrb.mxu0 %v13730_v11  ;;  %v13107_v11 = vld [vmem:[#allocation6 + $0xc24] sm:$0xf0] }
 0x418   :  { %8771 = vmatpush.bf16.msrb.mxu1 %v14146_v17  ;;  %v8450_v17 = vadd.f32 %v16718_v9, %v8437_v46  ;;  %8691 = vmatpush.bf16.msrb.mxu3 %v11754_v29  ;;  %v13110_v21 = vor.u32 %v15657_v35, %v13107_v11  ;;  %v13055_v9 = vld [vmem:[#allocation6 + $0xbbc] sm:$0xf0]  ;;  %v15280_v29 = vld [vmem:[#allocation6 + $0x2c] sm:$0xf]  ;;  %v13627_v46 = vld [vmem:[#allocation6 + $0x1034] sm:$0xf0] }
 0x419   :  { %v13058_v6 = vor.u32 %v15644_v16, %v13055_v9  ;;  %v11602_v55 = vor.u32 %v15280_v29, %v11599_v49  ;;  %v13630_v35 = vor.u32 %v15787_v47, %v13627_v46  ;;  %v12535_v11 = vld [vmem:[#allocation6 + $0x7ac] sm:$0xf0]  ;;  %v12483_v9 = vld [vmem:[#allocation6 + $0x744] sm:$0xf0]  ;;  %v15378_v49 = vld [vmem:[#allocation6 + $0x338] sm:$0xf0] }
 0x41a   :  { %v8463_v28 = vadd.f32 %v16720_v3, %v8450_v17  ;;  %8782 = vmatpush.bf16.msrb.mxu2 %v11758_v61  ;;  %v8438_v3 = vpop.f32.mrf.mxu3  ;;  %v13573_v61 = vld [vmem:[#allocation6 + $0xf98] sm:$0xf]  ;;  %v15618_v17 = vld [vmem:[#allocation6 + $0xabc] sm:$0xf]  ;;  %v12538_v18 = vor.u32 %v15514_v54, %v12535_v11  ;;  %v11969_v29 = vld [vmem:[#allocation6 + $0x308] sm:$0xf] }
 0x41b   :  { %8759 = vmatpush.bf16.msrb.mxu0 %v13678_v48  ;;  %v16754_v48 = vpop.f32.mrf.mxu0  ;;  %v13574_v1 = vor.u32 %v15780_v0, %v13573_v61  ;;  %v15748_v47 = vld [vmem:[#allocation6 + $0xecc] sm:$0xf]  ;;  %v13471_v46 = vld [vmem:[#allocation6 + $0xefc] sm:$0xf0]  ;;  %v15741_v0 = vld [vmem:[#allocation6 + $0xe90] sm:$0xf0] }
 0x41c   :  { %8772 = vmatpush.bf16.msrb.mxu1 %v14094_v13  ;;  %v16752_v63 = vadd.f32 %v16725_v40, %v8463_v28  ;;  %8692 = vmatpush.bf16.msrb.mxu3 %v11702_v20  ;;  %v16756_v13 = vpop.f32.mrf.mxu1  ;;  %v15527_v40 = vld [vmem:[#allocation6 + $0x7e4] sm:$0xf]  ;;  %v13521_v28 = vld [vmem:[#allocation6 + $0xf30] sm:$0xf]  ;;  %v13417_v61 = vld [vmem:[#allocation6 + $0xe60] sm:$0xf] }
 0x41d   :  { %v12590_v10 = vor.u32 %v15527_v40, %v12587_v51  ;;  %v15592_v40 = vld [vmem:[#allocation6 + $0x9ec] sm:$0xf]  ;;  %v12847_v51 = vld [vmem:[#allocation6 + $0xa1c] sm:$0xf0]  ;;  %v15982_v54 = vld [vmem:[#allocation6 + $0x161c] sm:$0xf] }
 0x41e   :  { %8760 = vmatmul.bf16.vlgmr.msrb.gmra.mxu0 %v16501_v8  ;;  %8783 = vmatpush.bf16.msrb.mxu2 %v11706_v24  ;;  %v15767_v24 = vld [vmem:[#allocation6 + $0xf60] sm:$0xf0]  ;;  %v14407_v11 = vld [vmem:[#allocation6 + $0x164c] sm:$0xf0] }
 0x41f   :  { %8804 = vmatpush.bf16.msra.mxu0 %v12798_v58  ;;  %8773 = vmatmul.bf16.vlgmr.msrb.gmra.mxu1 %v16530_v25  ;;  %v11597_v58 = vld [vmem:[#allocation6 + $0x28] sm:$0xf]  ;;  %v13522_v3 = vor.u32 %v15767_v24, %v13521_v28  ;;  %v13365_v28 = vld [vmem:[#allocation6 + $0xdf8] sm:$0xf]  ;;  %v15728_v24 = vld [vmem:[#allocation6 + $0xe28] sm:$0xf0] }
 0x420   :  { %8817 = vmatpush.bf16.msra.mxu1 %v13214_v38  ;;  %v12642_v38 = vor.u32 %v15540_v19, %v12639_v34  ;;  %8693 = vmatpush.bf16.msrb.mxu3 %v11650_v30  ;;  %v12954_v19 = vor.u32 %v15618_v17, %v12951_v62  ;;  %v15501_v34 = vld [vmem:[#allocation6 + $0x714] sm:$0xf]  ;;  %v11917_v17 = vld [vmem:[#allocation6 + $0x2a0] sm:$0xf] }
 0x421   :  { %v15761_v30 = vld [vmem:[#allocation6 + $0xf34] sm:$0xf] }
 0x422   :  { %8784 = vmatpush.bf16.msrb.mxu2 %v11654_v23  ;;  %v12431_v23 = vld [vmem:[#allocation6 + $0x6dc] sm:$0xf0]  ;;  %v15365_v62 = vld [vmem:[#allocation6 + $0x2d0] sm:$0xf0] }
 0x423   :  { %8805 = vmatpush.bf16.msra.mxu0 %v12746_v44  ;;  %v11598_v44 = vor.u32 %v15286_v43, %v11597_v58  ;;  %v8555_v27 = vpop.f32.mrf.mxu0  ;;  %v13523_v58 = vld [vmem:[#allocation6 + $0xf64] sm:$0xf0]  ;;  %v12902_v43 = vor.u32 %v15605_v59, %v12899_v36  ;;  %v11865_v36 = vld [vmem:[#allocation6 + $0x238] sm:$0xf] }
 0x424   :  { %8818 = vmatpush.bf16.msra.mxu1 %v13162_v26  ;;  %v13626_v26 = vor.u32 %v15793_v60, %v13625_v31  ;;  %v8568_v20 = vpop.f32.mrf.mxu1  ;;  %v15754_v31 = vld [vmem:[#allocation6 + $0xef8] sm:$0xf0]  ;;  %v15488_v60 = vld [vmem:[#allocation6 + $0x6ac] sm:$0xf]  ;;  %v13526_v57 = vor.u32 %v15761_v30, %v13523_v58  ;;  %v15735_v27 = vld [vmem:[#allocation6 + $0xe64] sm:$0xf] }
 0x425   :  { %8694 = vmatpush.bf16.msrb.mxu3 %v11598_v44  ;;  %v13419_v20 = vld [vmem:[#allocation6 + $0xe94] sm:$0xf0]  ;;  %v14355_v59 = vld [vmem:[#allocation6 + $0x15e4] sm:$0xf0]  ;;  %v15352_v30 = vld [vmem:[#allocation6 + $0x268] sm:$0xf0] }
 0x426   :  { %8785 = vmatpush.bf16.msrb.mxu2 %v11602_v55  ;;  %v11970_v55 = vor.u32 %v15378_v49, %v11969_v29  ;;  %v13315_v29 = vld [vmem:[#allocation6 + $0xdc4] sm:$0xf0] }
 0x427   :  { %8806 = vmatpush.bf16.msra.mxu0 %v12694_v7  ;;  %v15774_v7 = vld [vmem:[#allocation6 + $0xf9c] sm:$0xf] }
 0x428   :  { %8819 = vmatpush.bf16.msra.mxu1 %v13110_v21  ;;  %v13575_v21 = vld [vmem:[#allocation6 + $0xfcc] sm:$0xf0]  ;;  %8695 = vmatmul.bf16.vlgmr.msrb.gmra.mxu3 %v16457_v15 }
 0x429   :  { %8739 = vmatpush.bf16.msra.mxu3 %v13626_v26  ;;  %v13578_v16 = vor.u32 %v15774_v7, %v13575_v21  ;;  %8786 = vmatmul.bf16.vlgmr.msrb.gmra.mxu2 %v16457_v15  ;;  %v12434_v26 = vor.u32 %v15488_v60, %v12431_v23  ;;  %v13418_v7 = vor.u32 %v15741_v0, %v13417_v61  ;;  %v4064_v60 = vperm.slane %v16738_v41, 1  ;;  %v15715_v23 = vld [vmem:[#allocation6 + $0xdc0] sm:$0xf0]  ;;  %v12379_v0 = vld [vmem:[#allocation6 + $0x674] sm:$0xf0] }
 0x42a   :  { %8830 = vmatpush.bf16.msra.mxu2 %v13630_v35  ;;  %v13474_v35 = vor.u32 %v15748_v47, %v13471_v46  ;;  %v8488_v21 = vpop.f32.mrf.mxu3  ;;  %v13261_v46 = vld [vmem:[#allocation6 + $0xd28] sm:$0xf]  ;;  %v15475_v61 = vld [vmem:[#allocation6 + $0x644] sm:$0xf] }
 0x42b   :  { %8807 = vmatpush.bf16.msra.mxu0 %v12642_v38  ;;  %v13469_v38 = vld [vmem:[#allocation6 + $0xec8] sm:$0xf] }
 0x42c   :  { %8820 = vmatpush.bf16.msra.mxu1 %v13058_v6  ;;  %v12486_v6 = vor.u32 %v15501_v34, %v12483_v9  ;;  %v13470_v44 = vor.u32 %v15754_v31, %v13469_v38  ;;  %v15969_v34 = vld [vmem:[#allocation6 + $0x15b4] sm:$0xf]  ;;  %v16761_v9 = vpop.f32.mrf.mxu2  ;;  %v13366_v38 = vor.u32 %v15728_v24, %v13365_v28  ;;  %v11866_v31 = vor.u32 %v15352_v30, %v11865_v36  ;;  %v12327_v36 = vld [vmem:[#allocation6 + $0x60c] sm:$0xf0]  ;;  %v15930_v30 = vld [vmem:[#allocation6 + $0x147c] sm:$0xf] }
 0x42d   :  { %8740 = vmatpush.bf16.msra.mxu3 %v13574_v1  ;;  %v8489_v1 = vadd.f32 %v8488_v21, %v16752_v63  ;;  %v15722_v63 = vld [vmem:[#allocation6 + $0xdfc] sm:$0xf]  ;;  %v13263_v21 = vld [vmem:[#allocation6 + $0xd5c] sm:$0xf0]  ;;  %v12382_v28 = vor.u32 %v15475_v61, %v12379_v0  ;;  %v15904_v0 = vld [vmem:[#allocation6 + $0x13ac] sm:$0xf] }
 0x42e   :  { %8831 = vmatpush.bf16.msra.mxu2 %v13578_v16  ;;  %v13422_v16 = vor.u32 %v15735_v27, %v13419_v20  ;;  %v15326_v20 = vld [vmem:[#allocation6 + $0x198] sm:$0xf0]  ;;  %v12223_v61 = vld [vmem:[#allocation6 + $0x53c] sm:$0xf0] }
 0x42f   :  { %8808 = vmatpush.bf16.msra.mxu0 %v12590_v10  ;;  %v12850_v10 = vor.u32 %v15592_v40, %v12847_v51  ;;  %v16766_v58 = vadd.f32 %v16733_v12, %v8489_v1  ;;  %v14303_v51 = vld [vmem:[#allocation6 + $0x157c] sm:$0xf0]  ;;  %v15709_v12 = vld [vmem:[#allocation6 + $0xd94] sm:$0xf] }
 0x430   :  { %8821 = vmatpush.bf16.msra.mxu1 %v13006_v4  ;;  %v14462_v4 = vor.u32 %v15995_v42, %v14459_v14  ;;  %v11813_v42 = vld [vmem:[#allocation6 + $0x1d0] sm:$0xf]  ;;  %v15339_v14 = vld [vmem:[#allocation6 + $0x200] sm:$0xf0] }
 0x431   :  { %8741 = vmatpush.bf16.msra.mxu3 %v13522_v3  ;;  %v13367_v3 = vld [vmem:[#allocation6 + $0xe2c] sm:$0xf0]  ;;  %v11814_v41 = vor.u32 %v15339_v14, %v11813_v42  ;;  %v15449_v42 = vld [vmem:[#allocation6 + $0x574] sm:$0xf]  ;;  %v12275_v14 = vld [vmem:[#allocation6 + $0x5a4] sm:$0xf0] }
 0x432   :  { %8832 = vmatpush.bf16.msra.mxu2 %v13526_v57  ;;  %v15956_v57 = vld [vmem:[#allocation6 + $0x154c] sm:$0xf]  ;;  %v13370_v40 = vor.u32 %v15722_v63, %v13367_v3  ;;  %v14199_v3 = vld [vmem:[#allocation6 + $0x14ac] sm:$0xf0] }
 0x433   :  { %8809 = vmatpush.bf16.msra.mxu0 %v12538_v18  ;;  %v14410_v18 = vor.u32 %v15982_v54, %v14407_v11  ;;  %v13318_v54 = vor.u32 %v15709_v12, %v13315_v29  ;;  %v15943_v11 = vld [vmem:[#allocation6 + $0x14e4] sm:$0xf]  ;;  %v15917_v12 = vld [vmem:[#allocation6 + $0x1414] sm:$0xf] }
 0x434   :  { %8822 = vmatpush.bf16.msra.mxu1 %v12954_v19  ;;  %v11918_v19 = vor.u32 %v15365_v62, %v11917_v17  ;;  %v14251_v17 = vld [vmem:[#allocation6 + $0x1514] sm:$0xf0]  ;;  %v11761_v62 = vld [vmem:[#allocation6 + $0x168] sm:$0xf] }
 0x435   :  { %8742 = vmatpush.bf16.msra.mxu3 %v13470_v44  ;;  %v14254_v24 = vor.u32 %v15943_v11, %v14251_v17  ;;  %v11605_v11 = vld [vmem:[#allocation6 + $0x30] sm:$0xf]  ;;  %v15287_v17 = vld [vmem:[#allocation6 + $0x60] sm:$0xf0] }
 0x436   :  { %8833 = vmatpush.bf16.msra.mxu2 %v13474_v35  ;;  %v8581_v35 = vpop.f32.mrf.mxu2 }
 0x437   :  { %8810 = vmatpush.bf16.msra.mxu0 %v12486_v6  ;;  %v13313_v6 = vld [vmem:[#allocation6 + $0xd90] sm:$0xf] }
 0x438   :  { %8823 = vmatpush.bf16.msra.mxu1 %v12902_v43  ;;  %v14358_v43 = vor.u32 %v15969_v34, %v14355_v59  ;;  %v13314_v47 = vor.u32 %v15715_v23, %v13313_v6  ;;  %v11762_v34 = vor.u32 %v15326_v20, %v11761_v62  ;;  %v15462_v59 = vld [vmem:[#allocation6 + $0x5dc] sm:$0xf]  ;;  %v15313_v6 = vld [vmem:[#allocation6 + $0x130] sm:$0xf0]  ;;  %v13217_v62 = vld [vmem:[#allocation6 + $0xcc8] sm:$0xf] }
 0x439   :  { %8743 = vmatpush.bf16.msra.mxu3 %v13418_v7  ;;  %v15696_v7 = vld [vmem:[#allocation6 + $0xd2c] sm:$0xf]  ;;  %v15469_v23 = vld [vmem:[#allocation6 + $0x610] sm:$0xf0]  ;;  %v15690_v20 = vld [vmem:[#allocation6 + $0xcf8] sm:$0xf0] }
 0x43a   :  { %8834 = vmatpush.bf16.msra.mxu2 %v13422_v16  ;;  %v13266_v16 = vor.u32 %v15696_v7, %v13263_v21  ;;  %v13633_v7 = vld [vmem:[#allocation6 + $0x1008] sm:$0xf]  ;;  %v15794_v21 = vld [vmem:[#allocation6 + $0x1038] sm:$0xf0] }
 0x43b   :  { %8811 = vmatpush.bf16.msra.mxu0 %v12434_v26  ;;  %v8605_v49 = vpop.f32.mrf.mxu0 }
 0x43c   :  { %8824 = vmatpush.bf16.msra.mxu1 %v12850_v10  ;;  %v8618_v44 = vpop.f32.mrf.mxu1  ;;  %v8606_v26 = vadd.f32 %v8605_v49, %v4064_v60  ;;  %v8490_v10 = vpop.f32.mrf.mxu3  ;;  %v12333_v60 = vld [vmem:[#allocation6 + $0x5e0] sm:$0xf]  ;;  %v14147_v49 = vld [vmem:[#allocation6 + $0x1444] sm:$0xf0] }
 0x43d   :  { %8744 = vmatpush.bf16.msra.mxu3 %v13366_v38  ;;  %v11709_v38 = vld [vmem:[#allocation6 + $0x100] sm:$0xf]  ;;  %v12334_v29 = vor.u32 %v15469_v23, %v12333_v60  ;;  %v12278_v10 = vor.u32 %v15449_v42, %v12275_v14  ;;  %v15410_v42 = vld [vmem:[#allocation6 + $0x43c] sm:$0xf]  ;;  %v12119_v14 = vld [vmem:[#allocation6 + $0x46c] sm:$0xf0] }
 0x43e   :  { %8812 = vmatmul.bf16.vlgmr.msra.gmra.mxu0 %v16465_v22  ;;  %8835 = vmatpush.bf16.msra.mxu2 %v13370_v40  ;;  %v16769_v27 = vadd.f32 %v8618_v44, %v8606_v26  ;;  %v14202_v40 = vor.u32 %v15930_v30, %v14199_v3  ;;  %v11657_v44 = vld [vmem:[#allocation6 + $0x98] sm:$0xf]  ;;  %v15456_v26 = vld [vmem:[#allocation6 + $0x5a8] sm:$0xf0]  ;;  %v13165_v30 = vld [vmem:[#allocation6 + $0xc60] sm:$0xf] }
 0x43f   :  { %8856 = vmatpush.bf16.msrb.mxu0 %v14462_v4  ;;  %8825 = vmatmul.bf16.vlgmr.msra.gmra.mxu1 %v16479_v50  ;;  %v14306_v4 = vor.u32 %v15956_v57, %v14303_v51  ;;  %v12330_v57 = vor.u32 %v15462_v59, %v12327_v36  ;;  %v11710_v51 = vor.u32 %v15313_v6, %v11709_v38  ;;  %v15423_v59 = vld [vmem:[#allocation6 + $0x4a4] sm:$0xf]  ;;  %v12171_v36 = vld [vmem:[#allocation6 + $0x4d4] sm:$0xf0]  ;;  %v15677_v3 = vld [vmem:[#allocation6 + $0xc90] sm:$0xf0] }
 0x440   :  { %8869 = vmatpush.bf16.msrb.mxu1 %v11970_v55  ;;  %v15702_v55 = vld [vmem:[#allocation6 + $0xd58] sm:$0xf0]  ;;  %v13581_v38 = vld [vmem:[#allocation6 + $0xfa0] sm:$0xf]  ;;  %v15781_v6 = vld [vmem:[#allocation6 + $0xfd0] sm:$0xf0]  ;;  %v12174_v60 = vor.u32 %v15423_v59, %v12171_v36 }
 0x441   :  { %8745 = vmatpush.bf16.msra.mxu3 %v13314_v47  ;;  %v13262_v1 = vor.u32 %v15702_v55, %v13261_v46  ;;  %v15300_v47 = vld [vmem:[#allocation6 + $0xc8] sm:$0xf0]  ;;  %v12281_v46 = vld [vmem:[#allocation6 + $0x578] sm:$0xf] }
 0x442   :  { %8836 = vmatpush.bf16.msra.mxu2 %v13318_v54  ;;  %v11658_v55 = vor.u32 %v15300_v47, %v11657_v44  ;;  %v14095_v54 = vld [vmem:[#allocation6 + $0x13dc] sm:$0xf0]  ;;  %v12282_v35 = vor.u32 %v15456_v26, %v12281_v46  ;;  %v15664_v44 = vld [vmem:[#allocation6 + $0xc28] sm:$0xf0]  ;;  %v13529_v47 = vld [vmem:[#allocation6 + $0xf38] sm:$0xf] }
 0x443   :  { %8857 = vmatpush.bf16.msrb.mxu0 %v14410_v18  ;;  %v12385_v18 = vld [vmem:[#allocation6 + $0x648] sm:$0xf]  ;;  %v15768_v46 = vld [vmem:[#allocation6 + $0xf68] sm:$0xf0]  ;;  %v14043_v59 = vld [vmem:[#allocation6 + $0x1374] sm:$0xf0] }
 0x444   :  { %8870 = vmatpush.bf16.msrb.mxu1 %v11918_v19  ;;  %v15482_v19 = vld [vmem:[#allocation6 + $0x678] sm:$0xf0] }
 0x445   :  { %v12386_v63 = vor.u32 %v15482_v19, %v12385_v18  ;;  %8746 = vmatpush.bf16.msra.mxu3 %v13262_v1  ;;  %v12229_v18 = vld [vmem:[#allocation6 + $0x510] sm:$0xf]  ;;  %v15443_v19 = vld [vmem:[#allocation6 + $0x540] sm:$0xf0] }
 0x446   :  { %8837 = vmatpush.bf16.msra.mxu2 %v13266_v16  ;;  %v13634_v16 = vor.u32 %v15794_v21, %v13633_v7 }
 0x447   :  { %8858 = vmatpush.bf16.msrb.mxu0 %v14358_v43  ;;  %v8607_v43 = vpop.f32.mrf.mxu0 }
 0x448   :  { %8871 = vmatpush.bf16.msrb.mxu1 %v11866_v31  ;;  %v8620_v31 = vpop.f32.mrf.mxu1  ;;  %8747 = vmatmul.bf16.vlgmr.msra.gmra.mxu3 %v16481_v53  ;;  %v12177_v43 = vld [vmem:[#allocation6 + $0x4a8] sm:$0xf] }
 0x449   :  { %8791 = vmatpush.bf16.msrb.mxu3 %v12382_v28  ;;  %8838 = vmatmul.bf16.vlgmr.msra.gmra.mxu2 %v16481_v53  ;;  %v14098_v28 = vor.u32 %v15904_v0, %v14095_v54  ;;  %v15430_v31 = vld [vmem:[#allocation6 + $0x4d8] sm:$0xf0]  ;;  %v15397_v0 = vld [vmem:[#allocation6 + $0x3d4] sm:$0xf]  ;;  %v12067_v54 = vld [vmem:[#allocation6 + $0x404] sm:$0xf0] }
 0x44a   :  { %8882 = vmatpush.bf16.msrb.mxu2 %v12386_v63  ;;  %v12230_v63 = vor.u32 %v15443_v19, %v12229_v18  ;;  %v8540_v23 = vpop.f32.mrf.mxu3  ;;  %v12070_v18 = vor.u32 %v15397_v0, %v12067_v54  ;;  %v15384_v19 = vld [vmem:[#allocation6 + $0x36c] sm:$0xf]  ;;  %v15865_v54 = vld [vmem:[#allocation6 + $0x1274] sm:$0xf] }
 0x44b   :  { %8859 = vmatpush.bf16.msrb.mxu0 %v14306_v4  ;;  %v15436_v4 = vld [vmem:[#allocation6 + $0x50c] sm:$0xf] }
 0x44c   :  { %8872 = vmatpush.bf16.msrb.mxu1 %v11814_v41  ;;  %v14150_v41 = vor.u32 %v15917_v12, %v14147_v49  ;;  %v12226_v1 = vor.u32 %v15436_v4, %v12223_v61  ;;  %v13113_v12 = vld [vmem:[#allocation6 + $0xbf8] sm:$0xf]  ;;  %v8631_v49 = vpop.f32.mrf.mxu2  ;;  %v15417_v4 = vld [vmem:[#allocation6 + $0x470] sm:$0xf0]  ;;  %v13530_v61 = vor.u32 %v15768_v46, %v13529_v47  ;;  %v13373_v47 = vld [vmem:[#allocation6 + $0xe00] sm:$0xf] }
 0x44d   :  { %8792 = vmatpush.bf16.msrb.mxu3 %v12330_v57  ;;  %v8541_v57 = vadd.f32 %v8540_v23, %v16748_v32  ;;  %v12125_v32 = vld [vmem:[#allocation6 + $0x440] sm:$0xf]  ;;  %v15898_v23 = vld [vmem:[#allocation6 + $0x1378] sm:$0xf0]  ;;  %v15729_v46 = vld [vmem:[#allocation6 + $0xe30] sm:$0xf0] }
 0x44e   :  { %8883 = vmatpush.bf16.msrb.mxu2 %v12334_v29  ;;  %v12178_v29 = vor.u32 %v15430_v31, %v12177_v43  ;;  %v15391_v43 = vld [vmem:[#allocation6 + $0x3a0] sm:$0xf0]  ;;  %v13374_v0 = vor.u32 %v15729_v46, %v13373_v47 }
 0x44f   :  { %8860 = vmatpush.bf16.msrb.mxu0 %v14254_v24  ;;  %v11606_v24 = vor.u32 %v15287_v17, %v11605_v11  ;;  %v8554_v26 = vadd.f32 %v16754_v48, %v8541_v57  ;;  %v15651_v17 = vld [vmem:[#allocation6 + $0xbc0] sm:$0xf0]  ;;  %v13477_v48 = vld [vmem:[#allocation6 + $0xed0] sm:$0xf] }
 0x450   :  { %8873 = vmatpush.bf16.msrb.mxu1 %v11762_v34  ;;  %v13218_v34 = vor.u32 %v15690_v20, %v13217_v62  ;;  %v15755_v62 = vld [vmem:[#allocation6 + $0xf00] sm:$0xf0]  ;;  %v15404_v20 = vld [vmem:[#allocation6 + $0x408] sm:$0xf0] }
 0x451   :  { %8793 = vmatpush.bf16.msrb.mxu3 %v12278_v10  ;;  %v16778_v10 = vadd.f32 %v8631_v49, %v16769_v27  ;;  %v8567_v11 = vadd.f32 %v16756_v13, %v8554_v26  ;;  %v12073_v27 = vld [vmem:[#allocation6 + $0x3d8] sm:$0xf] }
 0x452   :  { %8884 = vmatpush.bf16.msrb.mxu2 %v12282_v35  ;;  %v13061_v35 = vld [vmem:[#allocation6 + $0xb90] sm:$0xf]  ;;  %v8542_v13 = vpop.f32.mrf.mxu3  ;;  %v12074_v36 = vor.u32 %v15404_v20, %v12073_v27  ;;  %v13945_v27 = vld [vmem:[#allocation6 + $0x1278] sm:$0xf]  ;;  %v15872_v20 = vld [vmem:[#allocation6 + $0x12a8] sm:$0xf0] }
 0x453   :  { %8861 = vmatpush.bf16.msrb.mxu0 %v14202_v40  ;;  %v13166_v40 = vor.u32 %v15677_v3, %v13165_v30  ;;  %v16782_v7 = vadd.f32 %v16761_v9, %v8567_v11  ;;  %v13009_v9 = vld [vmem:[#allocation6 + $0xb28] sm:$0xf]  ;;  %v12905_v11 = vld [vmem:[#allocation6 + $0xa58] sm:$0xf] }
 0x454   :  { %8874 = vmatpush.bf16.msrb.mxu1 %v11710_v51  ;;  %v13582_v51 = vor.u32 %v15781_v6, %v13581_v38  ;;  %v8633_v30 = vpop.f32.mrf.mxu2  ;;  %v13425_v3 = vld [vmem:[#allocation6 + $0xe68] sm:$0xf]  ;;  %v15742_v38 = vld [vmem:[#allocation6 + $0xe98] sm:$0xf0]  ;;  %v12021_v6 = vld [vmem:[#allocation6 + $0x370] sm:$0xf] }
 0x455   :  { %8794 = vmatpush.bf16.msrb.mxu3 %v12226_v1  ;;  %v15703_v30 = vld [vmem:[#allocation6 + $0xd60] sm:$0xf0] }
 0x456   :  { %8885 = vmatpush.bf16.msrb.mxu2 %v12230_v63  ;;  %v15638_v63 = vld [vmem:[#allocation6 + $0xb58] sm:$0xf0] }
 0x457   :  { %8862 = vmatpush.bf16.msrb.mxu0 %v14150_v41  ;;  %v12122_v41 = vor.u32 %v15410_v42, %v12119_v14  ;;  %v12022_v42 = vor.u32 %v15391_v43, %v12021_v6  ;;  %v15878_v14 = vld [vmem:[#allocation6 + $0x12dc] sm:$0xf]  ;;  %v16010_v6 = vld [vmem:[#allocation9 + $0x38] sm:$0xff] }
 0x458   :  { %8875 = vmatpush.bf16.msrb.mxu1 %v11658_v55  ;;  %v13114_v55 = vor.u32 %v15664_v44, %v13113_v12  ;;  %v13991_v12 = vld [vmem:[#allocation6 + $0x130c] sm:$0xf0]  ;;  %v15625_v44 = vld [vmem:[#allocation6 + $0xaf0] sm:$0xf0]  ;;  %v16018_v43 = vld [vmem:[#allocation9 + $0x78] sm:$0xff] }
 0x459   :  { %8795 = vmatpush.bf16.msrb.mxu3 %v12174_v60  ;;  %v14049_v60 = vld [vmem:[#allocation6 + $0x1348] sm:$0xf] }
 0x45a   :  { %8886 = vmatpush.bf16.msrb.mxu2 %v12178_v29  ;;  %v12957_v29 = vld [vmem:[#allocation6 + $0xac0] sm:$0xf]  ;;  %v14050_v49 = vor.u32 %v15898_v23, %v14049_v60  ;;  %v13835_v60 = vld [vmem:[#allocation6 + $0x11d4] sm:$0xf0] }
 0x45b   :  { %8863 = vmatpush.bf16.msrb.mxu0 %v14098_v28  ;;  %v16784_v21 = vpop.f32.mrf.mxu0  ;;  %v13062_v28 = vor.u32 %v15651_v17, %v13061_v35  ;;  %v13939_v35 = vld [vmem:[#allocation6 + $0x12a4] sm:$0xf0]  ;;  %v15612_v17 = vld [vmem:[#allocation6 + $0xa88] sm:$0xf0] }
 0x45c   :  { %8876 = vmatpush.bf16.msrb.mxu1 %v11606_v24  ;;  %v16786_v1 = vpop.f32.mrf.mxu1  ;;  %v13478_v24 = vor.u32 %v15755_v62, %v13477_v48  ;;  %v13321_v48 = vld [vmem:[#allocation6 + $0xd98] sm:$0xf]  ;;  %v15716_v62 = vld [vmem:[#allocation6 + $0xdc8] sm:$0xf0] }
 0x45d   :  { %8796 = vmatpush.bf16.msrb.mxu3 %v12122_v41  ;;  %v15885_v41 = vld [vmem:[#allocation6 + $0x1310] sm:$0xf0]  ;;  %v13322_v13 = vor.u32 %v15716_v62, %v13321_v48  ;;  %v15800_v62 = vld [vmem:[#allocation6 + $0x106c] sm:$0xf] }
 0x45e   :  { %8864 = vmatmul.bf16.vlgmr.msrb.gmra.mxu0 %v16530_v25  ;;  %v16015_v48 = vld [vmem:[#allocation9 + $0x60] sm:$0xff] }
 0x45f   :  { %8908 = vmatpush.bf16.msra.mxu0 %v13218_v34  ;;  %8877 = vmatmul.bf16.vlgmr.msrb.gmra.mxu1 %v16457_v15  ;;  %v12126_v15 = vor.u32 %v15417_v4, %v12125_v32  ;;  %v12015_v34 = vld [vmem:[#allocation6 + $0x39c] sm:$0xf0] }
 0x460   :  { %8921 = vmatpush.bf16.msra.mxu1 %v13634_v16  ;;  %v15891_v16 = vld [vmem:[#allocation6 + $0x1344] sm:$0xf]  ;;  %v12018_v31 = vor.u32 %v15384_v19, %v12015_v34  ;;  %v13997_v4 = vld [vmem:[#allocation6 + $0x12e0] sm:$0xf]  ;;  %v12906_v19 = vor.u32 %v15612_v17, %v12905_v11  ;;  %v12853_v34 = vld [vmem:[#allocation6 + $0x9f0] sm:$0xf] }
 0x461   :  { %8887 = vmatpush.bf16.msrb.mxu2 %v12126_v15  ;;  %8797 = vmatpush.bf16.msrb.mxu3 %v12070_v18  ;;  %v14046_v57 = vor.u32 %v15891_v16, %v14043_v59  ;;  %v13998_v15 = vor.u32 %v15885_v41, %v13997_v4  ;;  %v13942_v18 = vor.u32 %v15865_v54, %v13939_v35  ;;  %v15599_v59 = vld [vmem:[#allocation6 + $0xa20] sm:$0xf0]  ;;  %v16008_v41 = vld [vmem:[#allocation9 + $0x28] sm:$0xff]  ;;  %v15820_v35 = vld [vmem:[#allocation6 + $0x1108] sm:$0xf0] }
 0x462   :  { %v13946_v16 = vor.u32 %v15872_v20, %v13945_v27  ;;  %v13737_v54 = vld [vmem:[#allocation6 + $0x10d8] sm:$0xf]  ;;  %v13679_v27 = vld [vmem:[#allocation6 + $0x109c] sm:$0xf0] }
 0x463   :  { %8909 = vmatpush.bf16.msra.mxu0 %v13166_v40  ;;  %v13010_v40 = vor.u32 %v15638_v63, %v13009_v9  ;;  %v8659_v26 = vpop.f32.mrf.mxu0  ;;  %v13893_v63 = vld [vmem:[#allocation6 + $0x1210] sm:$0xf]  ;;  %v13738_v20 = vor.u32 %v15820_v35, %v13737_v54  ;;  %v8960_v54 = vpack.c.bf16 %v16577_v5, %v16577_v5  ;;  %v8961_v35 = vpack.c.bf16 %v16592_v39, %v16592_v39 }
 0x464   :  { %8922 = vmatpush.bf16.msra.mxu1 %v13582_v51  ;;  %v13426_v51 = vor.u32 %v15742_v38, %v13425_v3  ;;  %v8672_v32 = vpop.f32.mrf.mxu1  ;;  %v15859_v3 = vld [vmem:[#allocation6 + $0x1240] sm:$0xf0]  ;;  %v13789_v26 = vld [vmem:[#allocation6 + $0x1140] sm:$0xf] }
 0x465   :  { %8888 = vmatpush.bf16.msrb.mxu2 %v12074_v36  ;;  %8798 = vmatpush.bf16.msrb.mxu3 %v12018_v31  ;;  %v13269_v36 = vld [vmem:[#allocation6 + $0xd30] sm:$0xf]  ;;  %v15839_v31 = vld [vmem:[#allocation6 + $0x11a4] sm:$0xf]  ;;  %v13894_v23 = vor.u32 %v15859_v3, %v13893_v63  ;;  %v15833_v32 = vld [vmem:[#allocation6 + $0x1170] sm:$0xf0] }
 0x466   :  { %v13270_v38 = vor.u32 %v15703_v30, %v13269_v36  ;;  %v16014_v36 = vld [vmem:[#allocation9 + $0x58] sm:$0xff]  ;;  %v15573_v63 = vld [vmem:[#allocation6 + $0x950] sm:$0xf0] }
 0x467   :  { %8910 = vmatpush.bf16.msra.mxu0 %v13114_v55  ;;  %v13994_v55 = vor.u32 %v15878_v14, %v13991_v12  ;;  %v16009_v14 = vld [vmem:[#allocation9 + $0x30] sm:$0xff]  ;;  %v16026_v3 = vld [vmem:[#allocation9 + $0xb8] sm:$0xff] }
 0x468   :  { %8923 = vmatpush.bf16.msra.mxu1 %v13530_v61  ;;  %v12958_v61 = vor.u32 %v15625_v44, %v12957_v29  ;;  %8799 = vmatmul.bf16.vlgmr.msrb.gmra.mxu3 %v16461_v45  ;;  %v16017_v29 = vld [vmem:[#allocation9 + $0x70] sm:$0xff]  ;;  %v13783_v44 = vld [vmem:[#allocation6 + $0x116c] sm:$0xf0] }
 0x469   :  { %8843 = vmatpush.bf16.msra.mxu3 %v14046_v57  ;;  %8889 = vmatpush.bf16.msrb.mxu2 %v12022_v42  ;;  %v13841_v57 = vld [vmem:[#allocation6 + $0x11a8] sm:$0xf] }
 0x46a   :  { %v8592_v42 = vpop.f32.mrf.mxu3 }
 0x46b   :  { %8911 = vmatpush.bf16.msra.mxu0 %v13062_v28  ;;  %v15852_v28 = vld [vmem:[#allocation6 + $0x120c] sm:$0xf]  ;;  %v16791_v12 = vadd.f32 %v8592_v42, %v16782_v7  ;;  %v16016_v7 = vld [vmem:[#allocation9 + $0x68] sm:$0xff] }
 0x46c   :  { %8924 = vmatpush.bf16.msra.mxu1 %v13478_v24  ;;  %8890 = vmatmul.bf16.vlgmr.msrb.gmra.mxu2 %v16461_v45  ;;  %v13887_v24 = vld [vmem:[#allocation6 + $0x123c] sm:$0xf0]  ;;  %v12854_v45 = vor.u32 %v15599_v59, %v12853_v34  ;;  %v16793_v46 = vpop.f32.mrf.mxu2  ;;  %v13682_v34 = vor.u32 %v15800_v62, %v13679_v27  ;;  %v16006_v59 = vld [vmem:[#allocation9 + $0x18] sm:$0xff]  ;;  %v16012_v42 = vld [vmem:[#allocation9 + $0x48] sm:$0xff] }
 0x46d   :  { %8934 = vmatpush.bf16.msra.mxu2 %v14050_v49  ;;  %8844 = vmatpush.bf16.msra.mxu3 %v13994_v55  ;;  %v13890_v9 = vor.u32 %v15852_v28, %v13887_v24  ;;  %v15826_v49 = vld [vmem:[#allocation6 + $0x113c] sm:$0xf]  ;;  %v15813_v55 = vld [vmem:[#allocation6 + $0x10d4] sm:$0xf]  ;;  %v13685_v28 = vld [vmem:[#allocation6 + $0x1070] sm:$0xf] }
 0x46e   :  { %v13786_v4 = vor.u32 %v15826_v49, %v13783_v44  ;;  %v15807_v24 = vld [vmem:[#allocation6 + $0x10a0] sm:$0xf0]  ;;  %v16024_v49 = vld [vmem:[#allocation9 + $0xa8] sm:$0xff] }
 0x46f   :  { %8912 = vmatpush.bf16.msra.mxu0 %v13010_v40  ;;  %v15846_v40 = vld [vmem:[#allocation6 + $0x11d8] sm:$0xf0]  ;;  %v13686_v30 = vor.u32 %v15807_v24, %v13685_v28  ;;  %v16022_v62 = vld [vmem:[#allocation9 + $0x98] sm:$0xff] }
 0x470   :  { %8925 = vmatpush.bf16.msra.mxu1 %v13426_v51  ;;  %v13838_v51 = vor.u32 %v15839_v31, %v13835_v60  ;;  %v13842_v47 = vor.u32 %v15846_v40, %v13841_v57  ;;  %v16013_v31 = vld [vmem:[#allocation9 + $0x50] sm:$0xff]  ;;  %v12697_v60 = vld [vmem:[#allocation6 + $0x8b8] sm:$0xf] }
 0x471   :  { %8935 = vmatpush.bf16.msra.mxu2 %v13998_v15  ;;  %8845 = vmatpush.bf16.msra.mxu3 %v13942_v18  ;;  %v16007_v15 = vld [vmem:[#allocation9 + $0x20] sm:$0xff]  ;;  %v16025_v57 = vld [vmem:[#allocation9 + $0xb0] sm:$0xff] }
 0x472   :  { %v8594_v17 = vpop.f32.mrf.mxu3  ;;  %v16021_v28 = vld [vmem:[#allocation9 + $0x90] sm:$0xff] }
 0x473   :  { %8913 = vmatpush.bf16.msra.mxu0 %v12958_v61  ;;  %v13731_v61 = vld [vmem:[#allocation6 + $0x1104] sm:$0xf0]  ;;  %v12541_v17 = vld [vmem:[#allocation6 + $0x780] sm:$0xf] }
 0x474   :  { %8926 = vmatpush.bf16.msra.mxu1 %v13374_v0  ;;  %v13790_v0 = vor.u32 %v15833_v32, %v13789_v26  ;;  %v8685_v18 = vpop.f32.mrf.mxu2  ;;  %v16011_v26 = vld [vmem:[#allocation9 + $0x40] sm:$0xff]  ;;  %v16042_v32 = vld [vmem:[#allocation9 + $0x138] sm:$0xff] }
 0x475   :  { %8936 = vmatpush.bf16.msra.mxu2 %v13946_v16  ;;  %8846 = vmatpush.bf16.msra.mxu3 %v13890_v9  ;;  %v12749_v9 = vld [vmem:[#allocation6 + $0x920] sm:$0xf]  ;;  %v16040_v18 = vld [vmem:[#allocation9 + $0x128] sm:$0xff] }
 0x477   :  { %8914 = vmatpush.bf16.msra.mxu0 %v12906_v19  ;;  %v12801_v19 = vld [vmem:[#allocation6 + $0x988] sm:$0xf] }
 0x478   :  { %8927 = vmatpush.bf16.msra.mxu1 %v13322_v13  ;;  %v15586_v13 = vld [vmem:[#allocation6 + $0x9b8] sm:$0xf0] }
 0x479   :  { %8937 = vmatpush.bf16.msra.mxu2 %v13894_v23  ;;  %8847 = vmatpush.bf16.msra.mxu3 %v13838_v51  ;;  %v12802_v16 = vor.u32 %v15586_v13, %v12801_v19  ;;  %v15560_v23 = vld [vmem:[#allocation6 + $0x8e8] sm:$0xf0]  ;;  %v16004_v51 = vld [vmem:[#allocation9 + $0x8] sm:$0xff] }
 0x47a   :  { %v12698_v40 = vor.u32 %v15560_v23, %v12697_v60  ;;  %v16048_v19 = vld [vmem:[#allocation9 + $0x168] sm:$0xff]  ;;  %v15508_v13 = vld [vmem:[#allocation6 + $0x748] sm:$0xf0]  ;;  %v14413_v23 = vld [vmem:[#allocation6 + $0x1620] sm:$0xf] }
 0x47b   :  { %8915 = vmatpush.bf16.msra.mxu0 %v12854_v45  ;;  %v16797_v11 = vpop.f32.mrf.mxu0  ;;  %v16019_v60 = vld [vmem:[#allocation9 + $0x80] sm:$0xff] }
 0x47c   :  { %8928 = vmatpush.bf16.msra.mxu1 %v13270_v38 }
 0x47d   :  { %8938 = vmatpush.bf16.msra.mxu2 %v13842_v47  ;;  %8848 = vmatpush.bf16.msra.mxu3 %v13786_v4  ;;  %v16003_v47 = vld [vmem:[#allocation9] sm:$0xff]  ;;  %v16050_v4 = vld [vmem:[#allocation9 + $0x178] sm:$0xff] }
 0x47e   :  { %8916 = vmatmul.bf16.vlgmr.msra.gmra.mxu0 %v16479_v50  ;;  %v16799_v50 = vpop.f32.mrf.mxu1 }
 0x47f   :  { %9809 = vmatpush.bf16.msrb.mxu0 %v16010_v6  ;;  %8929 = vmatmul.bf16.vlgmr.msra.gmra.mxu1 %v16481_v53  ;;  %v13734_v53 = vor.u32 %v15813_v55, %v13731_v61  ;;  %v12750_v6 = vor.u32 %v15573_v63, %v12749_v9  ;;  %v15495_v9 = vld [vmem:[#allocation6 + $0x6e0] sm:$0xf0]  ;;  %v16020_v63 = vld [vmem:[#allocation9 + $0x88] sm:$0xff] }
 0x480   :  { %9822 = vmatpush.bf16.msrb.mxu1 %v16018_v43  ;;  %v16005_v43 = vld [vmem:[#allocation9 + $0x10] sm:$0xff] }
 0x481   :  { %8939 = vmatpush.bf16.msra.mxu2 %v13790_v0  ;;  %8849 = vmatpush.bf16.msra.mxu3 %v13734_v53  ;;  %v16041_v0 = vld [vmem:[#allocation9 + $0x130] sm:$0xff] }
 0x483   :  { %9810 = vmatpush.bf16.msrb.mxu0 %v16009_v14  ;;  %v8711_v45 = vpop.f32.mrf.mxu0  ;;  %v12645_v14 = vld [vmem:[#allocation6 + $0x850] sm:$0xf] }
 0x484   :  { %9823 = vmatpush.bf16.msrb.mxu1 %v16017_v29  ;;  %v15547_v29 = vld [vmem:[#allocation6 + $0x880] sm:$0xf0]  ;;  %v14465_v45 = vld [vmem:[#allocation6 + $0x1688] sm:$0xf] }
 0x485   :  { %8940 = vmatpush.bf16.msra.mxu2 %v13738_v20  ;;  %8850 = vmatpush.bf16.msra.mxu3 %v13682_v34  ;;  %v12646_v44 = vor.u32 %v15547_v29, %v12645_v14  ;;  %v16037_v29 = vld [vmem:[#allocation9 + $0x110] sm:$0xff] }
 0x486   :  { %v8724_v38 = vpop.f32.mrf.mxu1 }
 0x487   :  { %9811 = vmatpush.bf16.msrb.mxu0 %v16008_v41  ;;  %v12593_v41 = vld [vmem:[#allocation6 + $0x7e8] sm:$0xf]  ;;  %v16002_v38 = vld [vmem:[#allocation6 + $0x16b8] sm:$0xf0] }
 0x488   :  { %9824 = vmatpush.bf16.msrb.mxu1 %v16016_v7  ;;  %8851 = vmatmul.bf16.vlgmr.msra.gmra.mxu3 %v16501_v8  ;;  %v16023_v7 = vld [vmem:[#allocation9 + $0xa0] sm:$0xff] }
 0x489   :  { %8895 = vmatpush.bf16.msrb.mxu3 %v12802_v16  ;;  %8941 = vmatpush.bf16.msra.mxu2 %v13686_v30  ;;  %v12437_v30 = vld [vmem:[#allocation6 + $0x6b0] sm:$0xf] }
 0x48a   :  { %v8644_v61 = vpop.f32.mrf.mxu3 }
 0x48b   :  { %9812 = vmatpush.bf16.msrb.mxu0 %v16007_v15  ;;  %v8645_v53 = vadd.f32 %v8644_v61, %v16778_v10  ;;  %v16049_v15 = vld [vmem:[#allocation9 + $0x170] sm:$0xff]  ;;  %v12489_v10 = vld [vmem:[#allocation6 + $0x718] sm:$0xf] }
 0x48c   :  { %9825 = vmatpush.bf16.msrb.mxu1 %v16015_v48  ;;  %8942 = vmatmul.bf16.vlgmr.msra.gmra.mxu2 %v16501_v8  ;;  %v15534_v8 = vld [vmem:[#allocation6 + $0x818] sm:$0xf0]  ;;  %v15521_v48 = vld [vmem:[#allocation6 + $0x7b0] sm:$0xf0]  ;;  %v16808_v27 = vpop.f32.mrf.mxu2 }
 0x48d   :  { %9835 = vmatpush.bf16.msrb.mxu2 %v16026_v3  ;;  %8896 = vmatpush.bf16.msrb.mxu3 %v12750_v6  ;;  %v12594_v55 = vor.u32 %v15534_v8, %v12593_v41  ;;  %v8658_v20 = vadd.f32 %v16784_v21, %v8645_v53  ;;  %v12542_v5 = vor.u32 %v15521_v48, %v12541_v17  ;;  %v16036_v41 = vld [vmem:[#allocation9 + $0x108] sm:$0xff]  ;;  %v14257_v53 = vld [vmem:[#allocation6 + $0x14e8] sm:$0xf] }
 0x48e   :  { %v12490_v21 = vor.u32 %v15508_v13, %v12489_v10  ;;  %v14466_v6 = vor.u32 %v16002_v38, %v14465_v45  ;;  %v16044_v8 = vld [vmem:[#allocation9 + $0x148] sm:$0xff]  ;;  %v16822_v17 = vld [vmem:[#allocation7 + $0x8] sm:$0x1f]  ;;  %v16081_v13 = vld [vmem:[#allocation9 + $0x270] sm:$0xff] }
 0x48f   :  { %9813 = vmatpush.bf16.msrb.mxu0 %v16006_v59  ;;  %v8671_v39 = vadd.f32 %v16786_v1, %v8658_v20  ;;  %v16039_v59 = vld [vmem:[#allocation9 + $0x120] sm:$0xff]  ;;  %v16056_v61 = vld [vmem:[#allocation9 + $0x1a8] sm:$0xff]  ;;  %v4065_v48 = vperm.slane %v16822_v17, 2  ;;  %v16053_v45 = vld [vmem:[#allocation9 + $0x190] sm:$0xff] }
 0x490   :  { %9826 = vmatpush.bf16.msrb.mxu1 %v16014_v36  ;;  %v16047_v36 = vld [vmem:[#allocation9 + $0x160] sm:$0xff] }
 0x491   :  { %9836 = vmatpush.bf16.msrb.mxu2 %v16025_v57  ;;  %8897 = vmatpush.bf16.msrb.mxu3 %v12698_v40  ;;  %v16813_v24 = vadd.f32 %v16793_v46, %v8671_v39  ;;  %v12438_v46 = vor.u32 %v15495_v9, %v12437_v30  ;;  %v15989_v57 = vld [vmem:[#allocation6 + $0x1650] sm:$0xf0]  ;;  %v16058_v40 = vld [vmem:[#allocation9 + $0x1b8] sm:$0xff]  ;;  %v8964_v39 = vpack.c.bf16 %v16678_v37, %v16678_v37  ;;  %v14153_v9 = vld [vmem:[#allocation6 + $0x1418] sm:$0xf] }
 0x492   :  { %v8646_v1 = vpop.f32.mrf.mxu3  ;;  %v14414_v14 = vor.u32 %v15989_v57, %v14413_v23  ;;  %v16072_v37 = vld [vmem:[#allocation9 + $0x228] sm:$0xff]  ;;  %v14101_v23 = vld [vmem:[#allocation6 + $0x13b0] sm:$0xf]  ;;  %v15911_v57 = vld [vmem:[#allocation6 + $0x13e0] sm:$0xf0] }
 0x493   :  { %9814 = vmatpush.bf16.msrb.mxu0 %v16005_v43  ;;  %v16038_v43 = vld [vmem:[#allocation9 + $0x118] sm:$0xff] }
 0x494   :  { %9827 = vmatpush.bf16.msrb.mxu1 %v16013_v31  ;;  %v8737_v3 = vpop.f32.mrf.mxu2  ;;  %v16046_v31 = vld [vmem:[#allocation9 + $0x158] sm:$0xff] }
 0x495   :  { %9837 = vmatpush.bf16.msrb.mxu2 %v16024_v49  ;;  %8898 = vmatpush.bf16.msrb.mxu3 %v12646_v44  ;;  %v16045_v49 = vld [vmem:[#allocation9 + $0x150] sm:$0xff]  ;;  %v14361_v44 = vld [vmem:[#allocation6 + $0x15b8] sm:$0xf] }
 0x497   :  { %9815 = vmatpush.bf16.msrb.mxu0 %v16004_v51 }
 0x498   :  { %9828 = vmatpush.bf16.msrb.mxu1 %v16012_v42 }
 0x499   :  { %9838 = vmatpush.bf16.msrb.mxu2 %v16023_v7  ;;  %8899 = vmatpush.bf16.msrb.mxu3 %v12594_v55  ;;  %v14309_v7 = vld [vmem:[#allocation6 + $0x1550] sm:$0xf]  ;;  %v15963_v55 = vld [vmem:[#allocation6 + $0x1580] sm:$0xf0] }
 0x49b   :  { %9816 = vmatpush.bf16.msrb.mxu0 %v16003_v47  ;;  %v16815_v34 = vpop.f32.mrf.mxu0  ;;  %v15976_v47 = vld [vmem:[#allocation6 + $0x15e8] sm:$0xf0] }
 0x49c   :  { %9829 = vmatpush.bf16.msrb.mxu1 %v16011_v26  ;;  %v16817_v16 = vpop.f32.mrf.mxu1  ;;  %v8962_v26 = vpack.c.bf16 %v16620_v56, %v16620_v56  ;;  %v16035_v56 = vld [vmem:[#allocation9 + $0x100] sm:$0xff] }
 0x49d   :  { %9839 = vmatpush.bf16.msrb.mxu2 %v16022_v62  ;;  %8900 = vmatpush.bf16.msrb.mxu3 %v12542_v5  ;;  %v16055_v62 = vld [vmem:[#allocation9 + $0x1a0] sm:$0xff] }
 0x49e   :  { %9817 = vmatmul.bf16.vlgmr.msrb.gmra.mxu0 %v8960_v54  ;;  %v16043_v54 = vld [vmem:[#allocation9 + $0x140] sm:$0xff] }
 0x49f   :  { %9861 = vmatpush.bf16.msra.mxu0 %v16042_v32  ;;  %9830 = vmatmul.bf16.vlgmr.msrb.gmra.mxu1 %v8961_v35  ;;  %v16057_v32 = vld [vmem:[#allocation9 + $0x1b0] sm:$0xff]  ;;  %v16082_v35 = vld [vmem:[#allocation9 + $0x278] sm:$0xff] }
 0x4a0   :  { %9874 = vmatpush.bf16.msra.mxu1 %v16050_v4  ;;  %v14362_v4 = vor.u32 %v15976_v47, %v14361_v44 }
 0x4a1   :  { %9840 = vmatpush.bf16.msrb.mxu2 %v16021_v28  ;;  %8901 = vmatpush.bf16.msrb.mxu3 %v12490_v21  ;;  %v14205_v28 = vld [vmem:[#allocation6 + $0x1480] sm:$0xf]  ;;  %v15937_v21 = vld [vmem:[#allocation6 + $0x14b0] sm:$0xf0] }
 0x4a2   :  { %v14206_v30 = vor.u32 %v15937_v21, %v14205_v28  ;;  %v16084_v28 = vld [vmem:[#allocation9 + $0x288] sm:$0xff] }
 0x4a3   :  { %9862 = vmatpush.bf16.msra.mxu0 %v16041_v0  ;;  %v8763_v51 = vpop.f32.mrf.mxu0  ;;  %v14310_v0 = vor.u32 %v15963_v55, %v14309_v7  ;;  %v16032_v7 = vld [vmem:[#allocation9 + $0xe8] sm:$0xff] }
 0x4a4   :  { %9875 = vmatpush.bf16.msra.mxu1 %v16049_v15  ;;  %v8776_v42 = vpop.f32.mrf.mxu1  ;;  %v15950_v15 = vld [vmem:[#allocation6 + $0x1518] sm:$0xf0]  ;;  %v14102_v51 = vor.u32 %v15911_v57, %v14101_v23 }
 0x4a5   :  { %9841 = vmatpush.bf16.msrb.mxu2 %v16020_v63  ;;  %8902 = vmatpush.bf16.msrb.mxu3 %v12438_v46  ;;  %v14258_v20 = vor.u32 %v15950_v15, %v14257_v53  ;;  %v15924_v63 = vld [vmem:[#allocation6 + $0x1448] sm:$0xf0]  ;;  %v16068_v55 = vld [vmem:[#allocation9 + $0x208] sm:$0xff]  ;;  %v8968_v53 = vpack.c.bf16 %v16791_v12, %v16791_v12  ;;  %v8969_v15 = vpack.c.bf16 %v16813_v24, %v16813_v24 }
 0x4a6   :  { %v16070_v42 = vld [vmem:[#allocation9 + $0x218] sm:$0xff]  ;;  %v16028_v24 = vld [vmem:[#allocation9 + $0xc8] sm:$0xff] }
 0x4a7   :  { %9863 = vmatpush.bf16.msra.mxu0 %v16040_v18  ;;  %v16073_v18 = vld [vmem:[#allocation9 + $0x230] sm:$0xff] }
 0x4a8   :  { %9876 = vmatpush.bf16.msra.mxu1 %v16048_v19  ;;  %8903 = vmatmul.bf16.vlgmr.msrb.gmra.mxu3 %v16465_v22  ;;  %v16074_v22 = vld [vmem:[#allocation9 + $0x238] sm:$0xff]  ;;  %v8965_v19 = vpack.c.bf16 %v16698_v52, %v16698_v52  ;;  %v16080_v52 = vld [vmem:[#allocation9 + $0x268] sm:$0xff] }
 0x4a9   :  { %8947 = vmatpush.bf16.msra.mxu3 %v14466_v6  ;;  %9842 = vmatpush.bf16.msrb.mxu2 %v16019_v60  ;;  %v16079_v60 = vld [vmem:[#allocation9 + $0x260] sm:$0xff] }
 0x4ab   :  { %9864 = vmatpush.bf16.msra.mxu0 %v16039_v59  ;;  %v8696_v5 = vpop.f32.mrf.mxu3  ;;  %v16054_v59 = vld [vmem:[#allocation9 + $0x198] sm:$0xff] }
 0x4ac   :  { %9877 = vmatpush.bf16.msra.mxu1 %v16047_v36  ;;  %9843 = vmatmul.bf16.vlgmr.msrb.gmra.mxu2 %v8962_v26  ;;  %v8697_v10 = vadd.f32 %v8696_v5, %v4065_v48  ;;  %v16829_v1 = vpop.f32.mrf.mxu2  ;;  %v16033_v26 = vld [vmem:[#allocation9 + $0xf0] sm:$0xff] }
 0x4ad   :  { %9887 = vmatpush.bf16.msra.mxu2 %v16058_v40  ;;  %8948 = vmatpush.bf16.msra.mxu3 %v14414_v14  ;;  %v16078_v14 = vld [vmem:[#allocation9 + $0x258] sm:$0xff] }
 0x4ae   :  { %v8710_v36 = vadd.f32 %v16797_v11, %v8697_v10  ;;  %v14154_v11 = vor.u32 %v15924_v63, %v14153_v9  ;;  %v16064_v63 = vld [vmem:[#allocation9 + $0x1e8] sm:$0xff] }
 0x4af   :  { %9865 = vmatpush.bf16.msra.mxu0 %v16038_v43  ;;  %v16071_v43 = vld [vmem:[#allocation9 + $0x220] sm:$0xff] }
 0x4b0   :  { %9878 = vmatpush.bf16.msra.mxu1 %v16046_v31  ;;  %v8723_v3 = vadd.f32 %v16799_v50, %v8710_v36  ;;  %v16052_v50 = vld [vmem:[#allocation9 + $0x188] sm:$0xff]  ;;  %v16066_v36 = vld [vmem:[#allocation9 + $0x1f8] sm:$0xff] }
 0x4b1   :  { %9888 = vmatpush.bf16.msra.mxu2 %v16057_v32  ;;  %8949 = vmatpush.bf16.msra.mxu3 %v14362_v4  ;;  %v16069_v32 = vld [vmem:[#allocation9 + $0x210] sm:$0xff] }
 0x4b2   :  { %v16834_v38 = vadd.f32 %v16808_v27, %v8723_v3  ;;  %v16034_v27 = vld [vmem:[#allocation9 + $0xf8] sm:$0xff]  ;;  %v16077_v4 = vld [vmem:[#allocation9 + $0x250] sm:$0xff]  ;;  %v4066_v3 = vperm.slane %v16822_v17, 3 }
 0x4b3   :  { %9866 = vmatpush.bf16.msra.mxu0 %v16037_v29  ;;  %v8698_v31 = vpop.f32.mrf.mxu3  ;;  %v16051_v29 = vld [vmem:[#allocation9 + $0x180] sm:$0xff] }
 0x4b4   :  { %9879 = vmatpush.bf16.msra.mxu1 %v16045_v49  ;;  %v8789_v40 = vpop.f32.mrf.mxu2  ;;  %v16090_v49 = vld [vmem:[#allocation9 + $0x2b8] sm:$0xff] }
 0x4b5   :  { %9889 = vmatpush.bf16.msra.mxu2 %v16056_v61  ;;  %8950 = vmatpush.bf16.msra.mxu3 %v14310_v0  ;;  %v16076_v61 = vld [vmem:[#allocation9 + $0x248] sm:$0xff]  ;;  %v16061_v40 = vld [vmem:[#allocation9 + $0x1d0] sm:$0xff] }
 0x4b6   :  { %v16088_v0 = vld [vmem:[#allocation9 + $0x2a8] sm:$0xff] }
 0x4b7   :  { %9867 = vmatpush.bf16.msra.mxu0 %v16036_v41  ;;  %v8966_v41 = vpack.c.bf16 %v16731_v33, %v16731_v33  ;;  %v16087_v33 = vld [vmem:[#allocation9 + $0x2a0] sm:$0xff] }
 0x4b8   :  { %9880 = vmatpush.bf16.msra.mxu1 %v16044_v8  ;;  %v16089_v8 = vld [vmem:[#allocation9 + $0x2b0] sm:$0xff] }
 0x4b9   :  { %9890 = vmatpush.bf16.msra.mxu2 %v16055_v62  ;;  %8951 = vmatpush.bf16.msra.mxu3 %v14258_v20  ;;  %v16086_v62 = vld [vmem:[#allocation9 + $0x298] sm:$0xff] }
 0x4bb   :  { %9868 = vmatpush.bf16.msra.mxu0 %v16035_v56  ;;  %v16836_v46 = vpop.f32.mrf.mxu0  ;;  %v16031_v56 = vld [vmem:[#allocation9 + $0xe0] sm:$0xff] }
 0x4bc   :  { %9881 = vmatpush.bf16.msra.mxu1 %v16043_v54  ;;  %v16838_v6 = vpop.f32.mrf.mxu1  ;;  %v16067_v54 = vld [vmem:[#allocation9 + $0x200] sm:$0xff] }
 0x4bd   :  { %9891 = vmatpush.bf16.msra.mxu2 %v16054_v59  ;;  %8952 = vmatpush.bf16.msra.mxu3 %v14206_v30  ;;  %v16027_v59 = vld [vmem:[#allocation9 + $0xc0] sm:$0xff] }
 0x4be   :  { %9869 = vmatmul.bf16.vlgmr.msra.gmra.mxu0 %v8964_v39 }
 0x4bf   :  { %9913 = vmatpush.bf16.msrb.mxu0 %v16074_v22  ;;  %9882 = vmatmul.bf16.vlgmr.msra.gmra.mxu1 %v8965_v19  ;;  %v16075_v22 = vld [vmem:[#allocation9 + $0x240] sm:$0xff]  ;;  %v16085_v19 = vld [vmem:[#allocation9 + $0x290] sm:$0xff] }
 0x4c0   :  { %9926 = vmatpush.bf16.msrb.mxu1 %v16082_v35 }
 0x4c1   :  { %9892 = vmatpush.bf16.msra.mxu2 %v16053_v45  ;;  %8953 = vmatpush.bf16.msra.mxu3 %v14154_v11  ;;  %v16063_v45 = vld [vmem:[#allocation9 + $0x1e0] sm:$0xff]  ;;  %v8788_v11 = vadd.f32 %v16829_v1, %v4066_v3 }
 0x4c3   :  { %9914 = vmatpush.bf16.msrb.mxu0 %v16073_v18  ;;  %v8815_v44 = vpop.f32.mrf.mxu0  ;;  %v16029_v18 = vld [vmem:[#allocation9 + $0xd0] sm:$0xff] }
 0x4c4   :  { %9927 = vmatpush.bf16.msrb.mxu1 %v16081_v13  ;;  %v8828_v47 = vpop.f32.mrf.mxu1  ;;  %v16098_v44 = vld [vmem:[#allocation9 + $0x2f8] sm:$0xff] }
 0x4c5   :  { %9893 = vmatpush.bf16.msra.mxu2 %v16052_v50  ;;  %8954 = vmatpush.bf16.msra.mxu3 %v14102_v51  ;;  %v8967_v47 = vpack.c.bf16 %v16766_v58, %v16766_v58  ;;  %v16119_v58 = vld [vmem:[#allocation10] ss:$0 sm:$0xff] }
 0x4c7   :  { %9915 = vmatpush.bf16.msrb.mxu0 %v16072_v37 }
 0x4c8   :  { %9928 = vmatpush.bf16.msrb.mxu1 %v16080_v52  ;;  %8955 = vmatmul.bf16.vlgmr.msra.gmra.mxu3 %v16530_v25  ;;  %v16030_v25 = vld [vmem:[#allocation9 + $0xd8] sm:$0xff]  ;;  %v16065_v52 = vld [vmem:[#allocation9 + $0x1f0] sm:$0xff] }
 0x4c9   :  { %9848 = vmatpush.bf16.msrb.mxu3 %v16034_v27  ;;  %9894 = vmatpush.bf16.msra.mxu2 %v16051_v29  ;;  %v16060_v27 = vld [vmem:[#allocation9 + $0x1c8] sm:$0xff] }
 0x4cb   :  { %9916 = vmatpush.bf16.msrb.mxu0 %v16071_v43  ;;  %v8748_v35 = vpop.f32.mrf.mxu3  ;;  %v16062_v43 = vld [vmem:[#allocation9 + $0x1d8] sm:$0xff] }
 0x4cc   :  { %9929 = vmatpush.bf16.msrb.mxu1 %v16079_v60  ;;  %9895 = vmatmul.bf16.vlgmr.msra.gmra.mxu2 %v8966_v41  ;;  %v8749_v48 = vadd.f32 %v8748_v35, %v16834_v38  ;;  %v8839_v20 = vpop.f32.mrf.mxu2  ;;  %v4067_v38 = vperm.slane %v16822_v17, 4  ;;  %v16094_v41 = vld [vmem:[#allocation9 + $0x2d8] sm:$0xff]  ;;  %v16104_v35 = vld [vmem:[#allocation9 + $0x328] sm:$0xff] }
 0x4cd   :  { %9939 = vmatpush.bf16.msrb.mxu2 %v16090_v49  ;;  %9849 = vmatpush.bf16.msrb.mxu3 %v16033_v26  ;;  %v16059_v49 = vld [vmem:[#allocation9 + $0x1c0] sm:$0xff] }
 0x4ce   :  { %v8762_v5 = vadd.f32 %v16815_v34, %v8749_v48  ;;  %v16083_v34 = vld [vmem:[#allocation9 + $0x280] sm:$0xff] }
 0x4cf   :  { %9917 = vmatpush.bf16.msrb.mxu0 %v16070_v42 }
 0x4d0   :  { %9930 = vmatpush.bf16.msrb.mxu1 %v16078_v14  ;;  %v8775_v39 = vadd.f32 %v16817_v16, %v8762_v5  ;;  %v8963_v16 = vpack.c.bf16 %v16653_v2, %v16653_v2  ;;  %v16103_v5 = vld [vmem:[#allocation9 + $0x320] sm:$0xff] }
 0x4d1   :  { %9940 = vmatpush.bf16.msrb.mxu2 %v16089_v8  ;;  %9850 = vmatpush.bf16.msrb.mxu3 %v16032_v7 }
 0x4d2   :  { %v8970_v9 = vpack.c.bf16 %v8775_v39, %v8775_v39  ;;  %v16102_v39 = vld [vmem:[#allocation9 + $0x318] sm:$0xff] }
 0x4d3   :  { %9918 = vmatpush.bf16.msrb.mxu0 %v16069_v32  ;;  %v8750_v13 = vpop.f32.mrf.mxu3  ;;  %v16097_v32 = vld [vmem:[#allocation9 + $0x2f0] sm:$0xff] }
 0x4d4   :  { %9931 = vmatpush.bf16.msrb.mxu1 %v16077_v4  ;;  %v8841_v21 = vpop.f32.mrf.mxu2  ;;  %v16095_v4 = vld [vmem:[#allocation9 + $0x2e0] sm:$0xff] }
 0x4d5   :  { %9941 = vmatpush.bf16.msrb.mxu2 %v16088_v0  ;;  %9851 = vmatpush.bf16.msrb.mxu3 %v16031_v56  ;;  %v16093_v0 = vld [vmem:[#allocation9 + $0x2d0] sm:$0xff]  ;;  %v16099_v13 = vld [vmem:[#allocation9 + $0x300] sm:$0xff] }
 0x4d7   :  { %9919 = vmatpush.bf16.msrb.mxu0 %v16068_v55  ;;  %v16106_v55 = vld [vmem:[#allocation9 + $0x338] sm:$0xff] }
 0x4d8   :  { %9932 = vmatpush.bf16.msrb.mxu1 %v16076_v61 }
 0x4d9   :  { %9942 = vmatpush.bf16.msrb.mxu2 %v16087_v33  ;;  %9852 = vmatpush.bf16.msrb.mxu3 %v16030_v25 }
 0x4db   :  { %9920 = vmatpush.bf16.msrb.mxu0 %v16067_v54  ;;  %v16850_v12 = vpop.f32.mrf.mxu0  ;;  %v16105_v54 = vld [vmem:[#allocation9 + $0x330] sm:$0xff] }
 0x4dc   :  { %9933 = vmatpush.bf16.msrb.mxu1 %v16075_v22  ;;  %v8878_v10 = vpop.f32.mrf.mxu1  ;;  %v16092_v22 = vld [vmem:[#allocation9 + $0x2c8] sm:$0xff] }
 0x4dd   :  { %9943 = vmatpush.bf16.msrb.mxu2 %v16086_v62  ;;  %9853 = vmatpush.bf16.msrb.mxu3 %v16029_v18  ;;  %v8879_v2 = vadd.f32 %v8878_v10, %v4067_v38  ;;  %v16091_v62 = vld [vmem:[#allocation9 + $0x2c0] sm:$0xff]  ;;  %v16101_v10 = vld [vmem:[#allocation9 + $0x310] sm:$0xff] }
 0x4de   :  { %9921 = vmatmul.bf16.vlgmr.msrb.gmra.mxu0 %v8968_v53 }
 0x4df   :  { %9934 = vmatmul.bf16.vlgmr.msrb.gmra.mxu1 %v8969_v15  ;;  %9965 = vmatpush.bf16.msra.mxu0 %v16106_v55 }
 0x4e1   :  { %9944 = vmatpush.bf16.msrb.mxu2 %v16085_v19  ;;  %9854 = vmatpush.bf16.msrb.mxu3 %v16028_v24  ;;  %v16100_v24 = vld [vmem:[#allocation9 + $0x308] sm:$0xff] }
 0x4e3   :  { %v8867_v30 = vpop.f32.mrf.mxu0  ;;  %9966 = vmatpush.bf16.msra.mxu0 %v16105_v54 }
 0x4e4   :  { %v8880_v37 = vpop.f32.mrf.mxu1 }
 0x4e5   :  { %9945 = vmatpush.bf16.msrb.mxu2 %v16084_v28  ;;  %9855 = vmatpush.bf16.msrb.mxu3 %v16027_v59 }
 0x4e7   :  { %9967 = vmatpush.bf16.msra.mxu0 %v16104_v35 }
 0x4e8   :  { %9856 = vmatmul.bf16.vlgmr.msrb.gmra.mxu3 %v8963_v16 }
 0x4e9   :  { %9900 = vmatpush.bf16.msra.mxu3 %v16066_v36  ;;  %9946 = vmatpush.bf16.msrb.mxu2 %v16083_v34 }
 0x4eb   :  { %v8800_v31 = vpop.f32.mrf.mxu3  ;;  %9968 = vmatpush.bf16.msra.mxu0 %v16103_v5 }
 0x4ec   :  { %9947 = vmatmul.bf16.vlgmr.msrb.gmra.mxu2 %v8970_v9  ;;  %v8801_v60 = vadd.f32 %v8800_v31, %v8788_v11 }
 0x4ed   :  { %9901 = vmatpush.bf16.msra.mxu3 %v16065_v52 }
 0x4ee   :  { %v8814_v57 = vadd.f32 %v16836_v46, %v8801_v60 }
 0x4ef   :  { %v8891_v23 = vpop.f32.mrf.mxu2  ;;  %9969 = vmatpush.bf16.msra.mxu0 %v16102_v39 }
 0x4f0   :  { %v16858_v50 = vadd.f32 %v8891_v23, %v8879_v2  ;;  %v8827_v51 = vadd.f32 %v16838_v6, %v8814_v57  ;;  %v16096_v6 = vld [vmem:[#allocation9 + $0x2e8] sm:$0xff] }
 0x4f1   :  { %9902 = vmatpush.bf16.msra.mxu3 %v16064_v63 }
 0x4f2   :  { %v8840_v42 = vadd.f32 %v8839_v20, %v8827_v51 }
 0x4f3   :  { %v8802_v1 = vpop.f32.mrf.mxu3  ;;  %9970 = vmatpush.bf16.msra.mxu0 %v16101_v10 }
 0x4f5   :  { %9903 = vmatpush.bf16.msra.mxu3 %v16063_v45 }
 0x4f7   :  { %v8893_v29 = vpop.f32.mrf.mxu2  ;;  %9971 = vmatpush.bf16.msra.mxu0 %v16100_v24 }
 0x4f9   :  { %9904 = vmatpush.bf16.msra.mxu3 %v16062_v43 }
 0x4fb   :  { %v8917_v17 = vpop.f32.mrf.mxu0  ;;  %9972 = vmatpush.bf16.msra.mxu0 %v16099_v13 }
 0x4fc   :  { %v8930_v14 = vpop.f32.mrf.mxu1 }
 0x4fd   :  { %9905 = vmatpush.bf16.msra.mxu3 %v16061_v40 }
 0x501   :  { %9906 = vmatpush.bf16.msra.mxu3 %v16060_v27 }
 0x503   :  { %v8919_v46 = vpop.f32.mrf.mxu0 }
 0x504   :  { %v8932_v26 = vpop.f32.mrf.mxu1 }
 0x505   :  { %9907 = vmatpush.bf16.msra.mxu3 %v16059_v49 }
 0x508   :  { %9908 = vmatmul.bf16.vlgmr.msra.gmra.mxu3 %v8967_v47 }
 0x509   :  { %9952 = vmatpush.bf16.msrb.mxu3 %v16098_v44 }
 0x50b   :  { %v8852_v8 = vpop.f32.mrf.mxu3 }
 0x50c   :  { %v8853_v7 = vadd.f32 %v8852_v8, %v8840_v42 }
 0x50d   :  { %9953 = vmatpush.bf16.msrb.mxu3 %v16097_v32 }
 0x50e   :  { %v8866_v56 = vadd.f32 %v16850_v12, %v8853_v7 }
 0x50f   :  { %v8943_v61 = vpop.f32.mrf.mxu2 }
 0x510   :  { %v8971_v18 = vpack.c.bf16 %v8866_v56, %v8866_v56 }
 0x511   :  { %9954 = vmatpush.bf16.msrb.mxu3 %v16096_v6 }
 0x513   :  { %v8854_v15 = vpop.f32.mrf.mxu3 }
 0x515   :  { %9955 = vmatpush.bf16.msrb.mxu3 %v16095_v4 }
 0x517   :  { %v8945_v48 = vpop.f32.mrf.mxu2 }
 0x519   :  { %9956 = vmatpush.bf16.msrb.mxu3 %v16094_v41 }
 0x51b   :  { %v9818_v33 = vpop.f32.mrf.mxu0 }
 0x51c   :  { %v9831_v25 = vpop.f32.mrf.mxu1  ;;  %v9819_v53 = vadd.f32 %v16119_v58, %v9818_v33 }
 0x51d   :  { %9957 = vmatpush.bf16.msrb.mxu3 %v16093_v0 }
 0x51e   :  { %v9832_v20 = vadd.f32 %v9831_v25, %v9819_v53 }
 0x521   :  { %9958 = vmatpush.bf16.msrb.mxu3 %v16092_v22 }
 0x523   :  { %v9820_v19 = vpop.f32.mrf.mxu0 }
 0x524   :  { %v9833_v12 = vpop.f32.mrf.mxu1 }
 0x525   :  { %9959 = vmatpush.bf16.msrb.mxu3 %v16091_v62 }
 0x528   :  { %9960 = vmatmul.bf16.vlgmr.msrb.gmra.mxu3 %v8971_v18 }
 0x52b   :  { %v8904_v28 = vpop.f32.mrf.mxu3 }
 0x52c   :  { %v8905_v21 = vadd.f32 %v8904_v28, %v16858_v50 }
 0x52e   :  { %v8918_v36 = vadd.f32 %v8917_v17, %v8905_v21 }
 0x52f   :  { %v9844_v59 = vpop.f32.mrf.mxu2 }
 0x530   :  { %v9845_v34 = vadd.f32 %v9844_v59, %v9832_v20  ;;  %v8931_v30 = vadd.f32 %v8930_v14, %v8918_v36 }
 0x532   :  { %v8944_v45 = vadd.f32 %v8943_v61, %v8931_v30 }
 0x533   :  { %v8906_v52 = vpop.f32.mrf.mxu3 }
 0x537   :  { %v9846_v9 = vpop.f32.mrf.mxu2 }
 0x53b   :  { %v9870_v37 = vpop.f32.mrf.mxu0 }
 0x53c   :  { %v9883_v16 = vpop.f32.mrf.mxu1 }
 0x543   :  { %v9872_v63 = vpop.f32.mrf.mxu0 }
 0x544   :  { %v9885_v3 = vpop.f32.mrf.mxu1 }
 0x54b   :  { %v8956_v38 = vpop.f32.mrf.mxu3 }
 0x54c   :  { %v8957_v11 = vadd.f32 %v8956_v38, %v8944_v45 }
 0x54e   :  { %v8972_v31 = vpack.c.bf16 %v8957_v11, %v8957_v11 }
 0x54f   :  { %v9896_v43 = vpop.f32.mrf.mxu2 }
 0x550   :  { %9973 = vmatmul.bf16.vlgmr.msra.gmra.mxu0 %v8972_v31 }
 0x553   :  { %v8958_v23 = vpop.f32.mrf.mxu3 }
 0x557   :  { %v9898_v57 = vpop.f32.mrf.mxu2 }
 0x55b   :  { %v9922_v2 = vpop.f32.mrf.mxu0 }
 0x55c   :  { %v9935_v60 = vpop.f32.mrf.mxu1 }
 0x563   :  { %v9924_v50 = vpop.f32.mrf.mxu0 }
 0x564   :  { %v9937_v40 = vpop.f32.mrf.mxu1 }
 0x56b   :  { %v9857_v51 = vpop.f32.mrf.mxu3 }
 0x56c   :  { %v9858_v27 = vadd.f32 %v9857_v51, %v9845_v34 }
 0x56e   :  { %v9871_v17 = vadd.f32 %v9870_v37, %v9858_v27 }
 0x56f   :  { %v9948_v42 = vpop.f32.mrf.mxu2 }
 0x570   :  { %v9884_v14 = vadd.f32 %v9883_v16, %v9871_v17 }
 0x572   :  { %v9897_v1 = vadd.f32 %v9896_v43, %v9884_v14 }
 0x573   :  { %v9859_v29 = vpop.f32.mrf.mxu3 }
 0x577   :  { %v9950_v49 = vpop.f32.mrf.mxu2 }
 0x58b   :  { %v9909_v44 = vpop.f32.mrf.mxu3 }
 0x58c   :  { %v9910_v47 = vadd.f32 %v9909_v44, %v9897_v1 }
 0x58e   :  { %v9923_v46 = vadd.f32 %v9922_v2, %v9910_v47 }
 0x590   :  { %v9936_v26 = vadd.f32 %v9935_v60, %v9923_v46 }
 0x592   :  { %v9949_v32 = vadd.f32 %v9948_v42, %v9936_v26 }
 0x593   :  { %v9911_v6 = vpop.f32.mrf.mxu3 }
 0x5ab   :  { %v9961_v4 = vpop.f32.mrf.mxu3 }
 0x5ac   :  { %v9962_v8 = vadd.f32 %v9961_v4, %v9949_v32 }
 0x5b3   :  { %v9963_v41 = vpop.f32.mrf.mxu3 }
 0x5cd   :  { %v9974_v7 = vpop.f32.mrf.mxu0 }
 0x5ce   :  { %v9975_v55 = vadd.f32 %v9974_v7, %v9962_v8 }
 0x5d0   :  { %9978 = vst [vmem:[%s16875_s7] sm:$0xff] %v9975_v55 }
 0x5d5   :  { %v9976_v61 = vpop.f32.mrf.mxu0 }
 0x5d6   :  { %9983 = vsyncpa [#allocation3], 1 }
 0x5d7   :  { %9984 = vsyncpa [#allocation5], 1 }
 0x5d8   :  { %9985 = vsyncpa [#allocation8], 1 }
 0x5d9   :  { %9986 = vsyncpa [#allocation11], 1 }

</bundles_post_ra>
